<compile_context>
chip_gen: v7x
topology: tpu7x:2x2x1
jax: 0.10.0
libtpu: 0.0.40
codegen_flags: <defaults>
</compile_context>

<pallas_src>
import math

import jax
import jax.numpy as jnp
from jax.experimental import pallas as pl
from jax.experimental.pallas import tpu as pltpu

# ---------------- model hyper-parameters (small, consistent with module) ----
IMAGE_SIZE = (16, 16)
PATCH = 4
DIM = 32
MLP_DIM = 64
HEAD_DIM = 16
N_HEADS = DIM // HEAD_DIM
DEPTH = 2
N_CLASSES = 10
# Output(dim, n_classes, pad_to=64) pads classes; we pad further to 128 so the
# logits write is a full 128-lane (unmasked) store.  Extra columns are zero and
# sliced off outside the kernel, so returned logits are unaffected.
N_CLASSES_PAD = 128
NH = IMAGE_SIZE[0] // PATCH
NW = IMAGE_SIZE[1] // PATCH
L = NH * NW                       # tokens per image (16)
PATCH_DIM = PATCH * PATCH * 3     # (ph pw C) = 48
EPS = 1e-6

# Images per grid step.  TB*L = 256 feeds the 256-wide MXU (v6e/v7x) and is
# >=128 for v5e.  For real workloads feed N >= 2*TB so the (parallel) grid has
# at least 2 steps and shards across the 2 TensorCores on v7x.
TB = 16
M_TOK = TB * L                    # 256 rows per step


# ---------------- in-kernel helpers -----------------------------------------
def _rmsnorm(x):
    # TODO(synk): RMSNorm source not provided; standard x * rsqrt(mean(x^2)+eps), no affine.
    return x * jax.lax.rsqrt(jnp.mean(x * x, axis=-1, keepdims=True) + EPS)


# ---------------- fused Pallas kernel ----------------------------------------
def vit_fused_kernel(
    p_ref,       # (M_TOK, PATCH_DIM)    bf16  patches for TB images (flattened tokens)
    pe_ref,      # (M_TOK, DIM)          f32   sin-cos positional table tiled over TB
    pw_ref,      # (PATCH_DIM, DIM)      bf16  patchify weight (pre-transposed)
    seg_ref,     # (2*DIM, 2*DIM)        bf16  block-diag 1/HEAD_DIM (segmented qk-norm)
    qkvw_ref,    # (DEPTH, DIM, 3*DIM)   bf16  fused QKV weights, [q|k|v] columns
    ow_ref,      # (DEPTH, DIM, DIM)     bf16  o_proj weights
    osc_ref,     # (DEPTH, 1, DIM)       f32   o_proj per-output scales
    w1_ref,      # (DEPTH, DIM, MLP_DIM) bf16
    w2_ref,      # (DEPTH, MLP_DIM, DIM) bf16
    msc_ref,     # (DEPTH, 1, DIM)       f32   MLP output scales
    outw_ref,    # (DIM, N_CLASSES_PAD)  bf16  (pad columns are zero)
    o_ref,       # (TB, N_CLASSES_PAD)   f32
):
    inv_sqrt_hd = 1.0 / math.sqrt(HEAD_DIM)

    # ---- patchify (FusedLinear) + FixedSinCosPE -----------------------------
    x = jnp.dot(p_ref[...], pw_ref[...],
                preferred_element_type=jnp.float32) + pe_ref[...]   # (M, D) f32

    for d in range(DEPTH):                                          # static unroll (DEPTH=2)
        # ---- EncoderSelfAttention (rotary=None, pos_embed_input path) -------
        xn = _rmsnorm(x).astype(jnp.bfloat16)                       # in_norm
        qkv = jnp.dot(xn, qkvw_ref[d],
                      preferred_element_type=jnp.float32)           # (M, 3D) f32

        # segmented per-head qk RMSNorm via one MXU matmul + one rsqrt
        qk = qkv[:, :2 * DIM]                                        # (M, 2D) f32
        sq = (qk * qk).astype(jnp.bfloat16)
        seg_ms = jnp.dot(sq, seg_ref[...],
                         preferred_element_type=jnp.float32)        # per-head mean(x^2)
        qkn = qk * jax.lax.rsqrt(seg_ms + EPS)                       # normalized q|k, f32

        qkn_b = qkn.astype(jnp.bfloat16).reshape(TB, L, 2 * DIM)     # per-image view
        v_b = qkv[:, 2 * DIM:].astype(jnp.bfloat16).reshape(TB, L, DIM)

        ow_d = ow_ref[d]                                             # (D, D) bf16
        y = jnp.zeros((M_TOK, DIM), jnp.float32)
        for h in range(N_HEADS):                                     # tiny static loop
            lo = h * HEAD_DIM
            qh = qkn_b[:, :, lo:lo + HEAD_DIM]                       # (TB, L, hd) bf16
            kh = qkn_b[:, :, DIM + lo:DIM + lo + HEAD_DIM]
            vh = v_b[:, :, lo:lo + HEAD_DIM]

            s = jnp.einsum('bqd,bkd->bqk', qh, kh,
                           preferred_element_type=jnp.float32) * inv_sqrt_hd
            # qk-norm bounds |s| <= sqrt(HEAD_DIM) ~ 4: no max-subtraction needed.
            pexp = jnp.exp(s)
            pexp = pexp * pl.reciprocal(jnp.sum(pexp, axis=-1, keepdims=True),
                                        approx=True)
            ah = jnp.einsum('bqk,bkd->bqd', pexp.astype(jnp.bfloat16), vh,
                            preferred_element_type=jnp.float32)      # (TB, L, hd)

            # per-head o_proj contribution: attn @ W_o == sum_h attn_h @ W_o[h]
            y = y + jnp.dot(ah.reshape(M_TOK, HEAD_DIM).astype(jnp.bfloat16),
                            ow_d[lo:lo + HEAD_DIM, :],
                            preferred_element_type=jnp.float32)

        # TODO(synk): FusedLinear(scale=True, zero_init=True) source not provided;
        # modeled as (x @ W) * per-output scale (synthetic nonzero scale so path is live).
        x = x + y * osc_ref[d]

        # ---- MLPBlock --------------------------------------------------------
        # TODO(synk): MLPBlock source not provided; modeled as
        # x + scale*(relu(W1 @ rmsnorm(x))^2 @ W2), the archibox convention.
        xn = _rmsnorm(x).astype(jnp.bfloat16)
        h1 = jnp.dot(xn, w1_ref[d], preferred_element_type=jnp.float32)   # (M, MLP)
        h1 = jnp.maximum(h1, 0.0)
        h1 = h1 * h1
        x = x + jnp.dot(h1.astype(jnp.bfloat16), w2_ref[d],
                        preferred_element_type=jnp.float32) * msc_ref[d]

    # ---- mean pooling over tokens + Output head ------------------------------
    # TODO(synk): Output(dim, n_classes, pad_to=64) source not provided;
    # modeled as linear(rmsnorm(x)) into a lane-padded class dim, sliced outside.
    pooled = jnp.mean(x.reshape(TB, L, DIM), axis=1)                 # (TB, D) f32
    pn = _rmsnorm(pooled).astype(jnp.bfloat16)
    o_ref[...] = jnp.dot(pn, outw_ref[...], preferred_element_type=jnp.float32)


# ---------------- pallas_call wrapper -----------------------------------------
def vit_forward(images_NCHW, params):
    N, C, H, W = images_NCHW.shape
    assert (C, H, W) == (3, IMAGE_SIZE[0], IMAGE_SIZE[1])

    # rearrange 'N C (nh ph) (nw pw) -> N nh nw (ph pw C)', flatten tokens, cast bf16.
    # TODO(synk): this rearrange may still cost one extra HBM pass if XLA does not fuse
    # it into the producer; an in-kernel rearrange of raw NCHW blocks would remove it.
    x = images_NCHW.reshape(N, C, NH, PATCH, NW, PATCH)
    x = jnp.transpose(x, (0, 2, 4, 3, 5, 1))                         # N nh nw ph pw C
    patches = x.reshape(N * L, PATCH_DIM).astype(jnp.bfloat16)       # bf16 halves DMA

    n_pad = int(pl.cdiv(N, TB)) * TB                                 # pad batch to TB
    if n_pad != N:
        patches = jnp.pad(patches, ((0, (n_pad - N) * L), (0, 0)))
    grid = (n_pad // TB,)

    pe_tiled = jnp.tile(params["pos_emb"], (TB, 1))                  # (M_TOK, DIM) f32

    # advisory cost for XLA's scheduler
    m_tok = n_pad * L
    flops = (
        2 * m_tok * PATCH_DIM * DIM
        + DEPTH * (2 * m_tok * DIM * 3 * DIM                          # qkv proj
                   + 2 * m_tok * (2 * DIM) * (2 * DIM)                # segmented qk-norm
                   + 2 * 2 * n_pad * N_HEADS * L * L * HEAD_DIM       # scores + PV
                   + 2 * m_tok * DIM * DIM                            # o_proj
                   + 2 * 2 * m_tok * DIM * MLP_DIM)                   # MLP
        + 2 * n_pad * DIM * N_CLASSES_PAD                             # head
    )
    transcendentals = n_pad * DEPTH * N_HEADS * L * L + m_tok * (2 * DEPTH + 1)
    weight_bytes = sum(int(v.size) * v.dtype.itemsize
                       for k, v in params.items() if k != "pos_emb")
    bytes_accessed = (int(patches.size) * 2 + int(pe_tiled.size) * 4
                      + weight_bytes + n_pad * N_CLASSES_PAD * 4)

    logits_pad = pl.pallas_call(
        vit_fused_kernel,
        out_shape=jax.ShapeDtypeStruct((n_pad, N_CLASSES_PAD), jnp.float32),
        grid=grid,
        in_specs=[
            pl.BlockSpec((M_TOK, PATCH_DIM), lambda n: (n, 0)),
            pl.BlockSpec((M_TOK, DIM), lambda n: (0, 0)),
            pl.BlockSpec((PATCH_DIM, DIM), lambda n: (0, 0)),
            pl.BlockSpec((2 * DIM, 2 * DIM), lambda n: (0, 0)),
            pl.BlockSpec((DEPTH, DIM, 3 * DIM), lambda n: (0, 0, 0)),
            pl.BlockSpec((DEPTH, DIM, DIM), lambda n: (0, 0, 0)),
            pl.BlockSpec((DEPTH, 1, DIM), lambda n: (0, 0, 0)),
            pl.BlockSpec((DEPTH, DIM, MLP_DIM), lambda n: (0, 0, 0)),
            pl.BlockSpec((DEPTH, MLP_DIM, DIM), lambda n: (0, 0, 0)),
            pl.BlockSpec((DEPTH, 1, DIM), lambda n: (0, 0, 0)),
            pl.BlockSpec((DIM, N_CLASSES_PAD), lambda n: (0, 0)),
        ],
        out_specs=pl.BlockSpec((TB, N_CLASSES_PAD), lambda n: (n, 0)),
        compiler_params=pltpu.CompilerParams(dimension_semantics=("parallel",)),
        cost_estimate=pl.CostEstimate(flops=flops,
                                      transcendentals=transcendentals,
                                      bytes_accessed=bytes_accessed),
    )(
        patches,
        pe_tiled,
        params["patchify_w"],
        params["seg_norm"],
        params["qkv_w"],
        params["o_w"],
        params["o_scale"],
        params["w1"],
        params["w2"],
        params["mlp_scale"],
        params["out_w"],
    )
    return logits_pad[:N, :N_CLASSES]                                # (N, n_classes)


# ---------------- parameters & glue -------------------------------------------
def sincos_2d_pos_emb(nh, nw, dim):
    # TODO(synk): FixedSinCosPE source not provided; standard 2D sin-cos table.
    dh = dim // 2

    def sincos_1d(n, d):
        omega = jnp.arange(d // 2, dtype=jnp.float32) / (d // 2)
        omega = 1.0 / (10000.0 ** omega)
        pos = jnp.arange(n, dtype=jnp.float32)
        ang = pos[:, None] * omega[None, :]
        return jnp.concatenate([jnp.sin(ang), jnp.cos(ang)], axis=-1)   # (n, d)

    eh = sincos_1d(nh, dh)
    ew = sincos_1d(nw, dh)
    pe = jnp.concatenate(
        [
            jnp.broadcast_to(eh[:, None, :], (nh, nw, dh)),
            jnp.broadcast_to(ew[None, :, :], (nh, nw, dh)),
        ],
        axis=-1,
    )
    return pe.reshape(nh * nw, dim).astype(jnp.float32)


def init_params(key):
    keys = iter(jax.random.split(key, 2 + DEPTH * 6))
    bf16 = jnp.bfloat16

    patchify_w = (jax.random.normal(next(keys), (PATCH_DIM, DIM), jnp.float32)
                  / math.sqrt(PATCH_DIM)).astype(bf16)

    qkvw, ow, osc, w1s, w2s, msc = [], [], [], [], [], []
    for _ in range(DEPTH):
        qkv = jax.random.normal(next(keys), (3, DIM, DIM), jnp.float32) / math.sqrt(DIM) / 2
        # x @ qkv_weight.flatten(0,1).T == x @ [q.T | k.T | v.T]  (columns q|k|v)
        qkvw.append(jnp.concatenate([qkv[0].T, qkv[1].T, qkv[2].T], axis=1))
        ow.append(jax.random.normal(next(keys), (DIM, DIM), jnp.float32) / math.sqrt(DIM))
        # o_proj is zero_init in the module; synthetic nonzero scale so the path runs.
        osc.append(0.1 * jax.random.normal(next(keys), (1, DIM), jnp.float32))
        w1s.append(jax.random.normal(next(keys), (DIM, MLP_DIM), jnp.float32) / math.sqrt(DIM))
        w2s.append(jax.random.normal(next(keys), (MLP_DIM, DIM), jnp.float32) / math.sqrt(MLP_DIM))
        msc.append(0.1 * jax.random.normal(next(keys), (1, DIM), jnp.float32))

    out_w = (jax.random.normal(next(keys), (DIM, N_CLASSES), jnp.float32)
             / math.sqrt(DIM))
    out_w = jnp.pad(out_w, ((0, 0), (0, N_CLASSES_PAD - N_CLASSES)))   # zero pad columns

    # block-diagonal (2D, 2D) matrix that averages each HEAD_DIM-wide segment
    seg_norm = (jnp.kron(jnp.eye(2 * N_HEADS, dtype=jnp.float32),
                         jnp.ones((HEAD_DIM, HEAD_DIM), jnp.float32)) / HEAD_DIM)

    return {
        "patchify_w": patchify_w,                              # (PATCH_DIM, DIM) bf16
        "pos_emb": sincos_2d_pos_emb(NH, NW, DIM),             # (L, DIM) f32
        "seg_norm": seg_norm.astype(bf16),                     # (2D, 2D) bf16
        "qkv_w": jnp.stack(qkvw).astype(bf16),                 # (DEPTH, DIM, 3*DIM)
        "o_w": jnp.stack(ow).astype(bf16),                     # (DEPTH, DIM, DIM)
        "o_scale": jnp.stack(osc),                             # (DEPTH, 1, DIM) f32
        "w1": jnp.stack(w1s).astype(bf16),                     # (DEPTH, DIM, MLP_DIM)
        "w2": jnp.stack(w2s).astype(bf16),                     # (DEPTH, MLP_DIM, DIM)
        "mlp_scale": jnp.stack(msc),                           # (DEPTH, 1, DIM) f32
        "out_w": out_w.astype(bf16),                           # (DIM, N_CLASSES_PAD)
    }


# ---------------- main --------------------------------------------------------
if __name__ == "__main__":
    key = jax.random.PRNGKey(0)
    k_img, k_par = jax.random.split(key)
    images = jax.random.normal(k_img, (2, 3, IMAGE_SIZE[0], IMAGE_SIZE[1]), jnp.float32)
    params = init_params(k_par)

    logits = jax.jit(vit_forward)(images, params)
    logits = jax.block_until_ready(logits)
    assert logits.shape == (2, N_CLASSES)
    assert jnp.all(jnp.isfinite(logits))
    print("KERNEL_OK")
</pallas_src>

<mosaic_0001>
module attributes {stable_mosaic.version = 11 : i64} {
  func.func @vit_fused_kernel(%arg0: i32, %arg1: memref<256x48xbf16, #tpu.memory_space<vmem>>, %arg2: memref<256x32xf32, #tpu.memory_space<vmem>>, %arg3: memref<48x32xbf16, #tpu.memory_space<vmem>>, %arg4: memref<64x64xbf16, #tpu.memory_space<vmem>>, %arg5: memref<2x32x96xbf16, #tpu.memory_space<vmem>>, %arg6: memref<2x32x32xbf16, #tpu.memory_space<vmem>>, %arg7: memref<2x1x32xf32, #tpu.memory_space<vmem>>, %arg8: memref<2x32x64xbf16, #tpu.memory_space<vmem>>, %arg9: memref<2x64x32xbf16, #tpu.memory_space<vmem>>, %arg10: memref<2x1x32xf32, #tpu.memory_space<vmem>>, %arg11: memref<32x128xbf16, #tpu.memory_space<vmem>>, %arg12: memref<16x128xf32, #tpu.memory_space<vmem>>) attributes {dimension_semantics = [#tpu.dimension_semantics<parallel>], iteration_bounds = array<i64: 1>, scalar_prefetch = 0 : i64, scratch_operands = 0 : i64, tpu.core_type = #tpu.core_type<tc>, window_params = [{transform_indices = @transform_0, window_bounds = array<i64: 256, 48>}, {pipeline_mode = #tpu.pipeline_mode<synchronous>, transform_indices = @transform_1, window_bounds = array<i64: 256, 32>}, {pipeline_mode = #tpu.pipeline_mode<synchronous>, transform_indices = @transform_2, window_bounds = array<i64: 48, 32>}, {pipeline_mode = #tpu.pipeline_mode<synchronous>, transform_indices = @transform_3, window_bounds = array<i64: 64, 64>}, {pipeline_mode = #tpu.pipeline_mode<synchronous>, transform_indices = @transform_4, window_bounds = array<i64: 2, 32, 96>}, {pipeline_mode = #tpu.pipeline_mode<synchronous>, transform_indices = @transform_5, window_bounds = array<i64: 2, 32, 32>}, {pipeline_mode = #tpu.pipeline_mode<synchronous>, transform_indices = @transform_6, window_bounds = array<i64: 2, 1, 32>}, {pipeline_mode = #tpu.pipeline_mode<synchronous>, transform_indices = @transform_7, window_bounds = array<i64: 2, 32, 64>}, {pipeline_mode = #tpu.pipeline_mode<synchronous>, transform_indices = @transform_8, window_bounds = array<i64: 2, 64, 32>}, {pipeline_mode = #tpu.pipeline_mode<synchronous>, transform_indices = @transform_9, window_bounds = array<i64: 2, 1, 32>}, {pipeline_mode = #tpu.pipeline_mode<synchronous>, transform_indices = @transform_10, window_bounds = array<i64: 32, 128>}, {transform_indices = @transform_11, window_bounds = array<i64: 16, 128>}]} {
    %c0 = arith.constant 0 : index
    %c0_0 = arith.constant 0 : index
    %0 = vector.load %arg1[%c0, %c0_0] : memref<256x48xbf16, #tpu.memory_space<vmem>>, vector<256x48xbf16>
    %c0_1 = arith.constant 0 : index
    %c0_2 = arith.constant 0 : index
    %1 = vector.load %arg3[%c0_1, %c0_2] : memref<48x32xbf16, #tpu.memory_space<vmem>>, vector<48x32xbf16>
    %cst = arith.constant dense<0.000000e+00> : vector<256x32xf32>
    %2 = tpu.matmul %0, %1, %cst {dimension_numbers = #tpu.dot_dimension_numbers<[1], [0], [0], [1], [0, 0, 1, 1], [], []>} : vector<256x48xbf16>, vector<48x32xbf16>, vector<256x32xf32> -> vector<256x32xf32>
    %c0_3 = arith.constant 0 : index
    %c0_4 = arith.constant 0 : index
    %3 = vector.load %arg2[%c0_3, %c0_4] : memref<256x32xf32, #tpu.memory_space<vmem>>, vector<256x32xf32>
    %4 = arith.addf %2, %3 : vector<256x32xf32>
    %5 = arith.mulf %4, %4 : vector<256x32xf32>
    %cst_5 = arith.constant dense<0.000000e+00> : vector<256xf32>
    %6 = vector.multi_reduction <add>, %5, %cst_5 [1] : vector<256x32xf32> to vector<256xf32>
    %7 = vector.shape_cast %6 : vector<256xf32> to vector<256x1xf32>
    %cst_6 = arith.constant 3.200000e+01 : f32
    %8 = vector.broadcast %cst_6 : f32 to vector<256x1xf32>
    %9 = arith.divf %7, %8 : vector<256x1xf32>
    %cst_7 = arith.constant 9.99999997E-7 : f32
    %10 = vector.broadcast %cst_7 : f32 to vector<256x1xf32>
    %11 = arith.addf %9, %10 : vector<256x1xf32>
    %12 = math.rsqrt %11 : vector<256x1xf32>
    %13 = vector.broadcast %12 : vector<256x1xf32> to vector<256x32xf32>
    %14 = arith.mulf %4, %13 : vector<256x32xf32>
    %15 = arith.truncf %14 : vector<256x32xf32> to vector<256x32xbf16>
    %c0_8 = arith.constant 0 : index
    %c0_9 = arith.constant 0 : index
    %c0_10 = arith.constant 0 : index
    %16 = vector.load %arg5[%c0_8, %c0_9, %c0_10] : memref<2x32x96xbf16, #tpu.memory_space<vmem>>, vector<1x32x96xbf16>
    %17 = vector.shape_cast %16 : vector<1x32x96xbf16> to vector<32x96xbf16>
    %cst_11 = arith.constant dense<0.000000e+00> : vector<256x96xf32>
    %18 = tpu.matmul %15, %17, %cst_11 {dimension_numbers = #tpu.dot_dimension_numbers<[1], [0], [0], [1], [0, 0, 1, 1], [], []>} : vector<256x32xbf16>, vector<32x96xbf16>, vector<256x96xf32> -> vector<256x96xf32>
    %19 = vector.extract_strided_slice %18 {offsets = [0, 0], sizes = [256, 64], strides = [1, 1]} : vector<256x96xf32> to vector<256x64xf32>
    %20 = arith.mulf %19, %19 : vector<256x64xf32>
    %21 = arith.truncf %20 : vector<256x64xf32> to vector<256x64xbf16>
    %c0_12 = arith.constant 0 : index
    %c0_13 = arith.constant 0 : index
    %22 = vector.load %arg4[%c0_12, %c0_13] : memref<64x64xbf16, #tpu.memory_space<vmem>>, vector<64x64xbf16>
    %cst_14 = arith.constant dense<0.000000e+00> : vector<256x64xf32>
    %23 = tpu.matmul %21, %22, %cst_14 {dimension_numbers = #tpu.dot_dimension_numbers<[1], [0], [0], [1], [0, 0, 1, 1], [], []>} : vector<256x64xbf16>, vector<64x64xbf16>, vector<256x64xf32> -> vector<256x64xf32>
    %cst_15 = arith.constant 9.99999997E-7 : f32
    %24 = vector.broadcast %cst_15 : f32 to vector<256x64xf32>
    %25 = arith.addf %23, %24 : vector<256x64xf32>
    %26 = math.rsqrt %25 : vector<256x64xf32>
    %27 = arith.mulf %19, %26 : vector<256x64xf32>
    %28 = arith.truncf %27 : vector<256x64xf32> to vector<256x64xbf16>
    %29 = vector.shape_cast %28 : vector<256x64xbf16> to vector<16x16x64xbf16>
    %30 = vector.extract_strided_slice %18 {offsets = [0, 64], sizes = [256, 32], strides = [1, 1]} : vector<256x96xf32> to vector<256x32xf32>
    %31 = arith.truncf %30 : vector<256x32xf32> to vector<256x32xbf16>
    %32 = vector.shape_cast %31 : vector<256x32xbf16> to vector<16x16x32xbf16>
    %c0_16 = arith.constant 0 : index
    %c0_17 = arith.constant 0 : index
    %c0_18 = arith.constant 0 : index
    %33 = vector.load %arg6[%c0_16, %c0_17, %c0_18] : memref<2x32x32xbf16, #tpu.memory_space<vmem>>, vector<1x32x32xbf16>
    %34 = vector.shape_cast %33 : vector<1x32x32xbf16> to vector<32x32xbf16>
    %cst_19 = arith.constant 0.000000e+00 : f32
    %35 = vector.broadcast %cst_19 : f32 to vector<256x32xf32>
    %36 = vector.extract_strided_slice %29 {offsets = [0, 0, 0], sizes = [16, 16, 16], strides = [1, 1, 1]} : vector<16x16x64xbf16> to vector<16x16x16xbf16>
    %37 = vector.extract_strided_slice %29 {offsets = [0, 0, 32], sizes = [16, 16, 16], strides = [1, 1, 1]} : vector<16x16x64xbf16> to vector<16x16x16xbf16>
    %38 = vector.extract_strided_slice %32 {offsets = [0, 0, 0], sizes = [16, 16, 16], strides = [1, 1, 1]} : vector<16x16x32xbf16> to vector<16x16x16xbf16>
    "tpu.trace_start"() <{level = 10 : i32, message = "bqd,bkd->bqk"}> : () -> ()
    %cst_20 = arith.constant dense<0.000000e+00> : vector<16x16x16xf32>
    %39 = tpu.matmul %36, %37, %cst_20 {dimension_numbers = #tpu.dot_dimension_numbers<[2], [2], [1], [1], [0, 0, 0, 1, 1, 1], [0], [0]>} : vector<16x16x16xbf16>, vector<16x16x16xbf16>, vector<16x16x16xf32> -> vector<16x16x16xf32>
    "tpu.trace_stop"() : () -> ()
    %cst_21 = arith.constant 2.500000e-01 : f32
    %40 = vector.broadcast %cst_21 : f32 to vector<16x16x16xf32>
    %41 = arith.mulf %39, %40 : vector<16x16x16xf32>
    %42 = math.exp %41 : vector<16x16x16xf32>
    %cst_22 = arith.constant dense<0.000000e+00> : vector<16x16xf32>
    %43 = vector.multi_reduction <add>, %42, %cst_22 [2] : vector<16x16x16xf32> to vector<16x16xf32>
    %44 = vector.shape_cast %43 : vector<16x16xf32> to vector<16x16x1xf32>
    %45 = tpu.reciprocal %44 {approx = true} : vector<16x16x1xf32> -> vector<16x16x1xf32>
    %46 = vector.broadcast %45 : vector<16x16x1xf32> to vector<16x16x16xf32>
    %47 = arith.mulf %42, %46 : vector<16x16x16xf32>
    %48 = arith.truncf %47 : vector<16x16x16xf32> to vector<16x16x16xbf16>
    "tpu.trace_start"() <{level = 10 : i32, message = "bqk,bkd->bqd"}> : () -> ()
    %cst_23 = arith.constant dense<0.000000e+00> : vector<16x16x16xf32>
    %49 = tpu.matmul %48, %38, %cst_23 {dimension_numbers = #tpu.dot_dimension_numbers<[2], [1], [1], [2], [0, 0, 0, 1, 1, 2], [0], [0]>} : vector<16x16x16xbf16>, vector<16x16x16xbf16>, vector<16x16x16xf32> -> vector<16x16x16xf32>
    "tpu.trace_stop"() : () -> ()
    %50 = vector.shape_cast %49 : vector<16x16x16xf32> to vector<256x16xf32>
    %51 = arith.truncf %50 : vector<256x16xf32> to vector<256x16xbf16>
    %52 = vector.extract_strided_slice %34 {offsets = [0, 0], sizes = [16, 32], strides = [1, 1]} : vector<32x32xbf16> to vector<16x32xbf16>
    %cst_24 = arith.constant dense<0.000000e+00> : vector<256x32xf32>
    %53 = tpu.matmul %51, %52, %cst_24 {dimension_numbers = #tpu.dot_dimension_numbers<[1], [0], [0], [1], [0, 0, 1, 1], [], []>} : vector<256x16xbf16>, vector<16x32xbf16>, vector<256x32xf32> -> vector<256x32xf32>
    %54 = arith.addf %35, %53 : vector<256x32xf32>
    %55 = vector.extract_strided_slice %29 {offsets = [0, 0, 16], sizes = [16, 16, 16], strides = [1, 1, 1]} : vector<16x16x64xbf16> to vector<16x16x16xbf16>
    %56 = vector.extract_strided_slice %29 {offsets = [0, 0, 48], sizes = [16, 16, 16], strides = [1, 1, 1]} : vector<16x16x64xbf16> to vector<16x16x16xbf16>
    %57 = vector.extract_strided_slice %32 {offsets = [0, 0, 16], sizes = [16, 16, 16], strides = [1, 1, 1]} : vector<16x16x32xbf16> to vector<16x16x16xbf16>
    "tpu.trace_start"() <{level = 10 : i32, message = "bqd,bkd->bqk"}> : () -> ()
    %cst_25 = arith.constant dense<0.000000e+00> : vector<16x16x16xf32>
    %58 = tpu.matmul %55, %56, %cst_25 {dimension_numbers = #tpu.dot_dimension_numbers<[2], [2], [1], [1], [0, 0, 0, 1, 1, 1], [0], [0]>} : vector<16x16x16xbf16>, vector<16x16x16xbf16>, vector<16x16x16xf32> -> vector<16x16x16xf32>
    "tpu.trace_stop"() : () -> ()
    %cst_26 = arith.constant 2.500000e-01 : f32
    %59 = vector.broadcast %cst_26 : f32 to vector<16x16x16xf32>
    %60 = arith.mulf %58, %59 : vector<16x16x16xf32>
    %61 = math.exp %60 : vector<16x16x16xf32>
    %cst_27 = arith.constant dense<0.000000e+00> : vector<16x16xf32>
    %62 = vector.multi_reduction <add>, %61, %cst_27 [2] : vector<16x16x16xf32> to vector<16x16xf32>
    %63 = vector.shape_cast %62 : vector<16x16xf32> to vector<16x16x1xf32>
    %64 = tpu.reciprocal %63 {approx = true} : vector<16x16x1xf32> -> vector<16x16x1xf32>
    %65 = vector.broadcast %64 : vector<16x16x1xf32> to vector<16x16x16xf32>
    %66 = arith.mulf %61, %65 : vector<16x16x16xf32>
    %67 = arith.truncf %66 : vector<16x16x16xf32> to vector<16x16x16xbf16>
    "tpu.trace_start"() <{level = 10 : i32, message = "bqk,bkd->bqd"}> : () -> ()
    %cst_28 = arith.constant dense<0.000000e+00> : vector<16x16x16xf32>
    %68 = tpu.matmul %67, %57, %cst_28 {dimension_numbers = #tpu.dot_dimension_numbers<[2], [1], [1], [2], [0, 0, 0, 1, 1, 2], [0], [0]>} : vector<16x16x16xbf16>, vector<16x16x16xbf16>, vector<16x16x16xf32> -> vector<16x16x16xf32>
    "tpu.trace_stop"() : () -> ()
    %69 = vector.shape_cast %68 : vector<16x16x16xf32> to vector<256x16xf32>
    %70 = arith.truncf %69 : vector<256x16xf32> to vector<256x16xbf16>
    %71 = vector.extract_strided_slice %34 {offsets = [16, 0], sizes = [16, 32], strides = [1, 1]} : vector<32x32xbf16> to vector<16x32xbf16>
    %cst_29 = arith.constant dense<0.000000e+00> : vector<256x32xf32>
    %72 = tpu.matmul %70, %71, %cst_29 {dimension_numbers = #tpu.dot_dimension_numbers<[1], [0], [0], [1], [0, 0, 1, 1], [], []>} : vector<256x16xbf16>, vector<16x32xbf16>, vector<256x32xf32> -> vector<256x32xf32>
    %73 = arith.addf %54, %72 : vector<256x32xf32>
    %c0_30 = arith.constant 0 : index
    %c0_31 = arith.constant 0 : index
    %c0_32 = arith.constant 0 : index
    %74 = vector.load %arg7[%c0_30, %c0_31, %c0_32] : memref<2x1x32xf32, #tpu.memory_space<vmem>>, vector<1x1x32xf32>
    %75 = vector.shape_cast %74 : vector<1x1x32xf32> to vector<1x32xf32>
    %76 = vector.broadcast %75 : vector<1x32xf32> to vector<256x32xf32>
    %77 = arith.mulf %73, %76 : vector<256x32xf32>
    %78 = arith.addf %4, %77 : vector<256x32xf32>
    %79 = arith.mulf %78, %78 : vector<256x32xf32>
    %cst_33 = arith.constant dense<0.000000e+00> : vector<256xf32>
    %80 = vector.multi_reduction <add>, %79, %cst_33 [1] : vector<256x32xf32> to vector<256xf32>
    %81 = vector.shape_cast %80 : vector<256xf32> to vector<256x1xf32>
    %cst_34 = arith.constant 3.200000e+01 : f32
    %82 = vector.broadcast %cst_34 : f32 to vector<256x1xf32>
    %83 = arith.divf %81, %82 : vector<256x1xf32>
    %cst_35 = arith.constant 9.99999997E-7 : f32
    %84 = vector.broadcast %cst_35 : f32 to vector<256x1xf32>
    %85 = arith.addf %83, %84 : vector<256x1xf32>
    %86 = math.rsqrt %85 : vector<256x1xf32>
    %87 = vector.broadcast %86 : vector<256x1xf32> to vector<256x32xf32>
    %88 = arith.mulf %78, %87 : vector<256x32xf32>
    %89 = arith.truncf %88 : vector<256x32xf32> to vector<256x32xbf16>
    %c0_36 = arith.constant 0 : index
    %c0_37 = arith.constant 0 : index
    %c0_38 = arith.constant 0 : index
    %90 = vector.load %arg8[%c0_36, %c0_37, %c0_38] : memref<2x32x64xbf16, #tpu.memory_space<vmem>>, vector<1x32x64xbf16>
    %91 = vector.shape_cast %90 : vector<1x32x64xbf16> to vector<32x64xbf16>
    %cst_39 = arith.constant dense<0.000000e+00> : vector<256x64xf32>
    %92 = tpu.matmul %89, %91, %cst_39 {dimension_numbers = #tpu.dot_dimension_numbers<[1], [0], [0], [1], [0, 0, 1, 1], [], []>} : vector<256x32xbf16>, vector<32x64xbf16>, vector<256x64xf32> -> vector<256x64xf32>
    %cst_40 = arith.constant 0.000000e+00 : f32
    %93 = vector.broadcast %cst_40 : f32 to vector<256x64xf32>
    %94 = arith.maximumf %92, %93 : vector<256x64xf32>
    %95 = arith.mulf %94, %94 : vector<256x64xf32>
    %96 = arith.truncf %95 : vector<256x64xf32> to vector<256x64xbf16>
    %c0_41 = arith.constant 0 : index
    %c0_42 = arith.constant 0 : index
    %c0_43 = arith.constant 0 : index
    %97 = vector.load %arg9[%c0_41, %c0_42, %c0_43] : memref<2x64x32xbf16, #tpu.memory_space<vmem>>, vector<1x64x32xbf16>
    %98 = vector.shape_cast %97 : vector<1x64x32xbf16> to vector<64x32xbf16>
    %cst_44 = arith.constant dense<0.000000e+00> : vector<256x32xf32>
    %99 = tpu.matmul %96, %98, %cst_44 {dimension_numbers = #tpu.dot_dimension_numbers<[1], [0], [0], [1], [0, 0, 1, 1], [], []>} : vector<256x64xbf16>, vector<64x32xbf16>, vector<256x32xf32> -> vector<256x32xf32>
    %c0_45 = arith.constant 0 : index
    %c0_46 = arith.constant 0 : index
    %c0_47 = arith.constant 0 : index
    %100 = vector.load %arg10[%c0_45, %c0_46, %c0_47] : memref<2x1x32xf32, #tpu.memory_space<vmem>>, vector<1x1x32xf32>
    %101 = vector.shape_cast %100 : vector<1x1x32xf32> to vector<1x32xf32>
    %102 = vector.broadcast %101 : vector<1x32xf32> to vector<256x32xf32>
    %103 = arith.mulf %99, %102 : vector<256x32xf32>
    %104 = arith.addf %78, %103 : vector<256x32xf32>
    %105 = arith.mulf %104, %104 : vector<256x32xf32>
    %cst_48 = arith.constant dense<0.000000e+00> : vector<256xf32>
    %106 = vector.multi_reduction <add>, %105, %cst_48 [1] : vector<256x32xf32> to vector<256xf32>
    %107 = vector.shape_cast %106 : vector<256xf32> to vector<256x1xf32>
    %cst_49 = arith.constant 3.200000e+01 : f32
    %108 = vector.broadcast %cst_49 : f32 to vector<256x1xf32>
    %109 = arith.divf %107, %108 : vector<256x1xf32>
    %cst_50 = arith.constant 9.99999997E-7 : f32
    %110 = vector.broadcast %cst_50 : f32 to vector<256x1xf32>
    %111 = arith.addf %109, %110 : vector<256x1xf32>
    %112 = math.rsqrt %111 : vector<256x1xf32>
    %113 = vector.broadcast %112 : vector<256x1xf32> to vector<256x32xf32>
    %114 = arith.mulf %104, %113 : vector<256x32xf32>
    %115 = arith.truncf %114 : vector<256x32xf32> to vector<256x32xbf16>
    %c1 = arith.constant 1 : index
    %c0_51 = arith.constant 0 : index
    %c0_52 = arith.constant 0 : index
    %116 = vector.load %arg5[%c1, %c0_51, %c0_52] : memref<2x32x96xbf16, #tpu.memory_space<vmem>>, vector<1x32x96xbf16>
    %117 = vector.shape_cast %116 : vector<1x32x96xbf16> to vector<32x96xbf16>
    %cst_53 = arith.constant dense<0.000000e+00> : vector<256x96xf32>
    %118 = tpu.matmul %115, %117, %cst_53 {dimension_numbers = #tpu.dot_dimension_numbers<[1], [0], [0], [1], [0, 0, 1, 1], [], []>} : vector<256x32xbf16>, vector<32x96xbf16>, vector<256x96xf32> -> vector<256x96xf32>
    %119 = vector.extract_strided_slice %118 {offsets = [0, 0], sizes = [256, 64], strides = [1, 1]} : vector<256x96xf32> to vector<256x64xf32>
    %120 = arith.mulf %119, %119 : vector<256x64xf32>
    %121 = arith.truncf %120 : vector<256x64xf32> to vector<256x64xbf16>
    %c0_54 = arith.constant 0 : index
    %c0_55 = arith.constant 0 : index
    %122 = vector.load %arg4[%c0_54, %c0_55] : memref<64x64xbf16, #tpu.memory_space<vmem>>, vector<64x64xbf16>
    %cst_56 = arith.constant dense<0.000000e+00> : vector<256x64xf32>
    %123 = tpu.matmul %121, %122, %cst_56 {dimension_numbers = #tpu.dot_dimension_numbers<[1], [0], [0], [1], [0, 0, 1, 1], [], []>} : vector<256x64xbf16>, vector<64x64xbf16>, vector<256x64xf32> -> vector<256x64xf32>
    %cst_57 = arith.constant 9.99999997E-7 : f32
    %124 = vector.broadcast %cst_57 : f32 to vector<256x64xf32>
    %125 = arith.addf %123, %124 : vector<256x64xf32>
    %126 = math.rsqrt %125 : vector<256x64xf32>
    %127 = arith.mulf %119, %126 : vector<256x64xf32>
    %128 = arith.truncf %127 : vector<256x64xf32> to vector<256x64xbf16>
    %129 = vector.shape_cast %128 : vector<256x64xbf16> to vector<16x16x64xbf16>
    %130 = vector.extract_strided_slice %118 {offsets = [0, 64], sizes = [256, 32], strides = [1, 1]} : vector<256x96xf32> to vector<256x32xf32>
    %131 = arith.truncf %130 : vector<256x32xf32> to vector<256x32xbf16>
    %132 = vector.shape_cast %131 : vector<256x32xbf16> to vector<16x16x32xbf16>
    %c1_58 = arith.constant 1 : index
    %c0_59 = arith.constant 0 : index
    %c0_60 = arith.constant 0 : index
    %133 = vector.load %arg6[%c1_58, %c0_59, %c0_60] : memref<2x32x32xbf16, #tpu.memory_space<vmem>>, vector<1x32x32xbf16>
    %134 = vector.shape_cast %133 : vector<1x32x32xbf16> to vector<32x32xbf16>
    %cst_61 = arith.constant 0.000000e+00 : f32
    %135 = vector.broadcast %cst_61 : f32 to vector<256x32xf32>
    %136 = vector.extract_strided_slice %129 {offsets = [0, 0, 0], sizes = [16, 16, 16], strides = [1, 1, 1]} : vector<16x16x64xbf16> to vector<16x16x16xbf16>
    %137 = vector.extract_strided_slice %129 {offsets = [0, 0, 32], sizes = [16, 16, 16], strides = [1, 1, 1]} : vector<16x16x64xbf16> to vector<16x16x16xbf16>
    %138 = vector.extract_strided_slice %132 {offsets = [0, 0, 0], sizes = [16, 16, 16], strides = [1, 1, 1]} : vector<16x16x32xbf16> to vector<16x16x16xbf16>
    "tpu.trace_start"() <{level = 10 : i32, message = "bqd,bkd->bqk"}> : () -> ()
    %cst_62 = arith.constant dense<0.000000e+00> : vector<16x16x16xf32>
    %139 = tpu.matmul %136, %137, %cst_62 {dimension_numbers = #tpu.dot_dimension_numbers<[2], [2], [1], [1], [0, 0, 0, 1, 1, 1], [0], [0]>} : vector<16x16x16xbf16>, vector<16x16x16xbf16>, vector<16x16x16xf32> -> vector<16x16x16xf32>
    "tpu.trace_stop"() : () -> ()
    %cst_63 = arith.constant 2.500000e-01 : f32
    %140 = vector.broadcast %cst_63 : f32 to vector<16x16x16xf32>
    %141 = arith.mulf %139, %140 : vector<16x16x16xf32>
    %142 = math.exp %141 : vector<16x16x16xf32>
    %cst_64 = arith.constant dense<0.000000e+00> : vector<16x16xf32>
    %143 = vector.multi_reduction <add>, %142, %cst_64 [2] : vector<16x16x16xf32> to vector<16x16xf32>
    %144 = vector.shape_cast %143 : vector<16x16xf32> to vector<16x16x1xf32>
    %145 = tpu.reciprocal %144 {approx = true} : vector<16x16x1xf32> -> vector<16x16x1xf32>
    %146 = vector.broadcast %145 : vector<16x16x1xf32> to vector<16x16x16xf32>
    %147 = arith.mulf %142, %146 : vector<16x16x16xf32>
    %148 = arith.truncf %147 : vector<16x16x16xf32> to vector<16x16x16xbf16>
    "tpu.trace_start"() <{level = 10 : i32, message = "bqk,bkd->bqd"}> : () -> ()
    %cst_65 = arith.constant dense<0.000000e+00> : vector<16x16x16xf32>
    %149 = tpu.matmul %148, %138, %cst_65 {dimension_numbers = #tpu.dot_dimension_numbers<[2], [1], [1], [2], [0, 0, 0, 1, 1, 2], [0], [0]>} : vector<16x16x16xbf16>, vector<16x16x16xbf16>, vector<16x16x16xf32> -> vector<16x16x16xf32>
    "tpu.trace_stop"() : () -> ()
    %150 = vector.shape_cast %149 : vector<16x16x16xf32> to vector<256x16xf32>
    %151 = arith.truncf %150 : vector<256x16xf32> to vector<256x16xbf16>
    %152 = vector.extract_strided_slice %134 {offsets = [0, 0], sizes = [16, 32], strides = [1, 1]} : vector<32x32xbf16> to vector<16x32xbf16>
    %cst_66 = arith.constant dense<0.000000e+00> : vector<256x32xf32>
    %153 = tpu.matmul %151, %152, %cst_66 {dimension_numbers = #tpu.dot_dimension_numbers<[1], [0], [0], [1], [0, 0, 1, 1], [], []>} : vector<256x16xbf16>, vector<16x32xbf16>, vector<256x32xf32> -> vector<256x32xf32>
    %154 = arith.addf %135, %153 : vector<256x32xf32>
    %155 = vector.extract_strided_slice %129 {offsets = [0, 0, 16], sizes = [16, 16, 16], strides = [1, 1, 1]} : vector<16x16x64xbf16> to vector<16x16x16xbf16>
    %156 = vector.extract_strided_slice %129 {offsets = [0, 0, 48], sizes = [16, 16, 16], strides = [1, 1, 1]} : vector<16x16x64xbf16> to vector<16x16x16xbf16>
    %157 = vector.extract_strided_slice %132 {offsets = [0, 0, 16], sizes = [16, 16, 16], strides = [1, 1, 1]} : vector<16x16x32xbf16> to vector<16x16x16xbf16>
    "tpu.trace_start"() <{level = 10 : i32, message = "bqd,bkd->bqk"}> : () -> ()
    %cst_67 = arith.constant dense<0.000000e+00> : vector<16x16x16xf32>
    %158 = tpu.matmul %155, %156, %cst_67 {dimension_numbers = #tpu.dot_dimension_numbers<[2], [2], [1], [1], [0, 0, 0, 1, 1, 1], [0], [0]>} : vector<16x16x16xbf16>, vector<16x16x16xbf16>, vector<16x16x16xf32> -> vector<16x16x16xf32>
    "tpu.trace_stop"() : () -> ()
    %cst_68 = arith.constant 2.500000e-01 : f32
    %159 = vector.broadcast %cst_68 : f32 to vector<16x16x16xf32>
    %160 = arith.mulf %158, %159 : vector<16x16x16xf32>
    %161 = math.exp %160 : vector<16x16x16xf32>
    %cst_69 = arith.constant dense<0.000000e+00> : vector<16x16xf32>
    %162 = vector.multi_reduction <add>, %161, %cst_69 [2] : vector<16x16x16xf32> to vector<16x16xf32>
    %163 = vector.shape_cast %162 : vector<16x16xf32> to vector<16x16x1xf32>
    %164 = tpu.reciprocal %163 {approx = true} : vector<16x16x1xf32> -> vector<16x16x1xf32>
    %165 = vector.broadcast %164 : vector<16x16x1xf32> to vector<16x16x16xf32>
    %166 = arith.mulf %161, %165 : vector<16x16x16xf32>
    %167 = arith.truncf %166 : vector<16x16x16xf32> to vector<16x16x16xbf16>
    "tpu.trace_start"() <{level = 10 : i32, message = "bqk,bkd->bqd"}> : () -> ()
    %cst_70 = arith.constant dense<0.000000e+00> : vector<16x16x16xf32>
    %168 = tpu.matmul %167, %157, %cst_70 {dimension_numbers = #tpu.dot_dimension_numbers<[2], [1], [1], [2], [0, 0, 0, 1, 1, 2], [0], [0]>} : vector<16x16x16xbf16>, vector<16x16x16xbf16>, vector<16x16x16xf32> -> vector<16x16x16xf32>
    "tpu.trace_stop"() : () -> ()
    %169 = vector.shape_cast %168 : vector<16x16x16xf32> to vector<256x16xf32>
    %170 = arith.truncf %169 : vector<256x16xf32> to vector<256x16xbf16>
    %171 = vector.extract_strided_slice %134 {offsets = [16, 0], sizes = [16, 32], strides = [1, 1]} : vector<32x32xbf16> to vector<16x32xbf16>
    %cst_71 = arith.constant dense<0.000000e+00> : vector<256x32xf32>
    %172 = tpu.matmul %170, %171, %cst_71 {dimension_numbers = #tpu.dot_dimension_numbers<[1], [0], [0], [1], [0, 0, 1, 1], [], []>} : vector<256x16xbf16>, vector<16x32xbf16>, vector<256x32xf32> -> vector<256x32xf32>
    %173 = arith.addf %154, %172 : vector<256x32xf32>
    %c1_72 = arith.constant 1 : index
    %c0_73 = arith.constant 0 : index
    %c0_74 = arith.constant 0 : index
    %174 = vector.load %arg7[%c1_72, %c0_73, %c0_74] : memref<2x1x32xf32, #tpu.memory_space<vmem>>, vector<1x1x32xf32>
    %175 = vector.shape_cast %174 : vector<1x1x32xf32> to vector<1x32xf32>
    %176 = vector.broadcast %175 : vector<1x32xf32> to vector<256x32xf32>
    %177 = arith.mulf %173, %176 : vector<256x32xf32>
    %178 = arith.addf %104, %177 : vector<256x32xf32>
    %179 = arith.mulf %178, %178 : vector<256x32xf32>
    %cst_75 = arith.constant dense<0.000000e+00> : vector<256xf32>
    %180 = vector.multi_reduction <add>, %179, %cst_75 [1] : vector<256x32xf32> to vector<256xf32>
    %181 = vector.shape_cast %180 : vector<256xf32> to vector<256x1xf32>
    %cst_76 = arith.constant 3.200000e+01 : f32
    %182 = vector.broadcast %cst_76 : f32 to vector<256x1xf32>
    %183 = arith.divf %181, %182 : vector<256x1xf32>
    %cst_77 = arith.constant 9.99999997E-7 : f32
    %184 = vector.broadcast %cst_77 : f32 to vector<256x1xf32>
    %185 = arith.addf %183, %184 : vector<256x1xf32>
    %186 = math.rsqrt %185 : vector<256x1xf32>
    %187 = vector.broadcast %186 : vector<256x1xf32> to vector<256x32xf32>
    %188 = arith.mulf %178, %187 : vector<256x32xf32>
    %189 = arith.truncf %188 : vector<256x32xf32> to vector<256x32xbf16>
    %c1_78 = arith.constant 1 : index
    %c0_79 = arith.constant 0 : index
    %c0_80 = arith.constant 0 : index
    %190 = vector.load %arg8[%c1_78, %c0_79, %c0_80] : memref<2x32x64xbf16, #tpu.memory_space<vmem>>, vector<1x32x64xbf16>
    %191 = vector.shape_cast %190 : vector<1x32x64xbf16> to vector<32x64xbf16>
    %cst_81 = arith.constant dense<0.000000e+00> : vector<256x64xf32>
    %192 = tpu.matmul %189, %191, %cst_81 {dimension_numbers = #tpu.dot_dimension_numbers<[1], [0], [0], [1], [0, 0, 1, 1], [], []>} : vector<256x32xbf16>, vector<32x64xbf16>, vector<256x64xf32> -> vector<256x64xf32>
    %cst_82 = arith.constant 0.000000e+00 : f32
    %193 = vector.broadcast %cst_82 : f32 to vector<256x64xf32>
    %194 = arith.maximumf %192, %193 : vector<256x64xf32>
    %195 = arith.mulf %194, %194 : vector<256x64xf32>
    %196 = arith.truncf %195 : vector<256x64xf32> to vector<256x64xbf16>
    %c1_83 = arith.constant 1 : index
    %c0_84 = arith.constant 0 : index
    %c0_85 = arith.constant 0 : index
    %197 = vector.load %arg9[%c1_83, %c0_84, %c0_85] : memref<2x64x32xbf16, #tpu.memory_space<vmem>>, vector<1x64x32xbf16>
    %198 = vector.shape_cast %197 : vector<1x64x32xbf16> to vector<64x32xbf16>
    %cst_86 = arith.constant dense<0.000000e+00> : vector<256x32xf32>
    %199 = tpu.matmul %196, %198, %cst_86 {dimension_numbers = #tpu.dot_dimension_numbers<[1], [0], [0], [1], [0, 0, 1, 1], [], []>} : vector<256x64xbf16>, vector<64x32xbf16>, vector<256x32xf32> -> vector<256x32xf32>
    %c1_87 = arith.constant 1 : index
    %c0_88 = arith.constant 0 : index
    %c0_89 = arith.constant 0 : index
    %200 = vector.load %arg10[%c1_87, %c0_88, %c0_89] : memref<2x1x32xf32, #tpu.memory_space<vmem>>, vector<1x1x32xf32>
    %201 = vector.shape_cast %200 : vector<1x1x32xf32> to vector<1x32xf32>
    %202 = vector.broadcast %201 : vector<1x32xf32> to vector<256x32xf32>
    %203 = arith.mulf %199, %202 : vector<256x32xf32>
    %204 = arith.addf %178, %203 : vector<256x32xf32>
    %205 = vector.shape_cast %204 : vector<256x32xf32> to vector<16x16x32xf32>
    %cst_90 = arith.constant dense<0.000000e+00> : vector<16x32xf32>
    %206 = vector.multi_reduction <add>, %205, %cst_90 [1] : vector<16x16x32xf32> to vector<16x32xf32>
    %cst_91 = arith.constant 1.600000e+01 : f32
    %207 = vector.broadcast %cst_91 : f32 to vector<16x32xf32>
    %208 = arith.divf %206, %207 : vector<16x32xf32>
    %209 = arith.mulf %208, %208 : vector<16x32xf32>
    %cst_92 = arith.constant dense<0.000000e+00> : vector<16xf32>
    %210 = vector.multi_reduction <add>, %209, %cst_92 [1] : vector<16x32xf32> to vector<16xf32>
    %211 = vector.shape_cast %210 : vector<16xf32> to vector<16x1xf32>
    %cst_93 = arith.constant 3.200000e+01 : f32
    %212 = vector.broadcast %cst_93 : f32 to vector<16x1xf32>
    %213 = arith.divf %211, %212 : vector<16x1xf32>
    %cst_94 = arith.constant 9.99999997E-7 : f32
    %214 = vector.broadcast %cst_94 : f32 to vector<16x1xf32>
    %215 = arith.addf %213, %214 : vector<16x1xf32>
    %216 = math.rsqrt %215 : vector<16x1xf32>
    %217 = vector.broadcast %216 : vector<16x1xf32> to vector<16x32xf32>
    %218 = arith.mulf %208, %217 : vector<16x32xf32>
    %219 = arith.truncf %218 : vector<16x32xf32> to vector<16x32xbf16>
    %c0_95 = arith.constant 0 : index
    %c0_96 = arith.constant 0 : index
    %220 = vector.load %arg11[%c0_95, %c0_96] : memref<32x128xbf16, #tpu.memory_space<vmem>>, vector<32x128xbf16>
    %cst_97 = arith.constant dense<0.000000e+00> : vector<16x128xf32>
    %221 = tpu.matmul %219, %220, %cst_97 {dimension_numbers = #tpu.dot_dimension_numbers<[1], [0], [0], [1], [0, 0, 1, 1], [], []>} : vector<16x32xbf16>, vector<32x128xbf16>, vector<16x128xf32> -> vector<16x128xf32>
    %c0_98 = arith.constant 0 : index
    %c0_99 = arith.constant 0 : index
    %222 = vector.load %arg12[%c0_98, %c0_99] : memref<16x128xf32, #tpu.memory_space<vmem>>, vector<16x128xf32>
    tpu.vector_store %arg12[%c0_98, %c0_99], %221 {strides = array<i32>} : memref<16x128xf32, #tpu.memory_space<vmem>>, vector<16x128xf32>,
    return
  }
  func.func @transform_0(%arg0: i32) -> (i32, i32) {
    %c0_i32 = arith.constant 0 : i32
    %c0_i32_0 = arith.constant 0 : i32
    return %arg0, %c0_i32 : i32, i32
  }
  func.func @transform_1(%arg0: i32) -> (i32, i32) {
    %c0_i32 = arith.constant 0 : i32
    %c0_i32_0 = arith.constant 0 : i32
    %c0_i32_1 = arith.constant 0 : i32
    return %c0_i32, %c0_i32_0 : i32, i32
  }
  func.func @transform_2(%arg0: i32) -> (i32, i32) {
    %c0_i32 = arith.constant 0 : i32
    %c0_i32_0 = arith.constant 0 : i32
    %c0_i32_1 = arith.constant 0 : i32
    return %c0_i32, %c0_i32_0 : i32, i32
  }
  func.func @transform_3(%arg0: i32) -> (i32, i32) {
    %c0_i32 = arith.constant 0 : i32
    %c0_i32_0 = arith.constant 0 : i32
    %c0_i32_1 = arith.constant 0 : i32
    return %c0_i32, %c0_i32_0 : i32, i32
  }
  func.func @transform_4(%arg0: i32) -> (i32, i32, i32) {
    %c0_i32 = arith.constant 0 : i32
    %c0_i32_0 = arith.constant 0 : i32
    %c0_i32_1 = arith.constant 0 : i32
    %c0_i32_2 = arith.constant 0 : i32
    return %c0_i32, %c0_i32_0, %c0_i32_1 : i32, i32, i32
  }
  func.func @transform_5(%arg0: i32) -> (i32, i32, i32) {
    %c0_i32 = arith.constant 0 : i32
    %c0_i32_0 = arith.constant 0 : i32
    %c0_i32_1 = arith.constant 0 : i32
    %c0_i32_2 = arith.constant 0 : i32
    return %c0_i32, %c0_i32_0, %c0_i32_1 : i32, i32, i32
  }
  func.func @transform_6(%arg0: i32) -> (i32, i32, i32) {
    %c0_i32 = arith.constant 0 : i32
    %c0_i32_0 = arith.constant 0 : i32
    %c0_i32_1 = arith.constant 0 : i32
    %c0_i32_2 = arith.constant 0 : i32
    return %c0_i32, %c0_i32_0, %c0_i32_1 : i32, i32, i32
  }
  func.func @transform_7(%arg0: i32) -> (i32, i32, i32) {
    %c0_i32 = arith.constant 0 : i32
    %c0_i32_0 = arith.constant 0 : i32
    %c0_i32_1 = arith.constant 0 : i32
    %c0_i32_2 = arith.constant 0 : i32
    return %c0_i32, %c0_i32_0, %c0_i32_1 : i32, i32, i32
  }
  func.func @transform_8(%arg0: i32) -> (i32, i32, i32) {
    %c0_i32 = arith.constant 0 : i32
    %c0_i32_0 = arith.constant 0 : i32
    %c0_i32_1 = arith.constant 0 : i32
    %c0_i32_2 = arith.constant 0 : i32
    return %c0_i32, %c0_i32_0, %c0_i32_1 : i32, i32, i32
  }
  func.func @transform_9(%arg0: i32) -> (i32, i32, i32) {
    %c0_i32 = arith.constant 0 : i32
    %c0_i32_0 = arith.constant 0 : i32
    %c0_i32_1 = arith.constant 0 : i32
    %c0_i32_2 = arith.constant 0 : i32
    return %c0_i32, %c0_i32_0, %c0_i32_1 : i32, i32, i32
  }
  func.func @transform_10(%arg0: i32) -> (i32, i32) {
    %c0_i32 = arith.constant 0 : i32
    %c0_i32_0 = arith.constant 0 : i32
    %c0_i32_1 = arith.constant 0 : i32
    return %c0_i32, %c0_i32_0 : i32, i32
  }
  func.func @transform_11(%arg0: i32) -> (i32, i32) {
    %c0_i32 = arith.constant 0 : i32
    %c0_i32_0 = arith.constant 0 : i32
    return %arg0, %c0_i32 : i32, i32
  }
}

</mosaic_0001>

<bundles_post_ra>
// kernel: vit_forward.1
= control target key start
LH: loop header
LB: loop body
LE: loop exit
PB: predicated region body
PF: predicated region fallthrough
CT: control target
= control target key end

     0   :  { %vm207_vm0 = vcmask 392192   ;;  %vm449_vm1 = vcmask 261120   ;;  %vm996_vm2 = vcmask 523264   ;;  %vm16007_vm3 = vmmov 0   ;;  %s16008_s26 = smov 96   ;;  %s16009_s27 = smov 64   ;;  %s20242_s2 = inlined_call_operand.vmem [shape: bf16[48,32], index: 2, kind: input, shape index: {}]   ;;  %s20243_s0 = inlined_call_operand.vmem [shape: bf16[256,48], index: 0, kind: input, shape index: {}]   ;;  %s20244_s1 = inlined_call_operand.vmem [shape: f32[256,32], index: 1, kind: input, shape index: {}]   ;;  %s20245_s4 = inlined_call_operand.vmem [shape: bf16[2,32,96], index: 4, kind: input, shape index: {}]   ;;  %s20246_s3 = inlined_call_operand.vmem [shape: bf16[64,64], index: 3, kind: input, shape index: {}]   ;;  %s20247_s5 = inlined_call_operand.vmem [shape: bf16[2,32,32], index: 5, kind: input, shape index: {}]   ;;  %s20248_s6 = inlined_call_operand.vmem [shape: f32[2,1,32], index: 6, kind: input, shape index: {}]   ;;  %s20249_s7 = inlined_call_operand.vmem [shape: bf16[2,32,64], index: 7, kind: input, shape index: {}]   ;;  %s20250_s8 = inlined_call_operand.vmem [shape: bf16[2,64,32], index: 8, kind: input, shape index: {}]   ;;  %s20251_s9 = inlined_call_operand.vmem [shape: f32[2,1,32], index: 9, kind: input, shape index: {}]   ;;  %s20252_s10 = inlined_call_operand.vmem [shape: bf16[32,128], index: 10, kind: input, shape index: {}]   ;;  %s20253_s11 = inlined_call_operand.vmem [shape: f32[16,128], index: 11, kind: output, shape index: {}]  }
   0x1   :  { %v15057_v0 = vld [vmem:[%s20242_s2] sm:$0xff]   ;;  %v15058_v1 = vld [vmem:[%s20242_s2 + $0x8] sm:$0xff]   ;;  %v15059_v3 = vld [vmem:[%s20242_s2 + $0x10] sm:$0xff]   ;;  %vm1309_vm4 = vcmask 130048   ;;  %s16010_s28 = smov 80   ;;  %s16011_s29 = smov 112  }
   0x2   :  { %13732 = vmatprep.subr.bf16.mxu0 %v15057_v0  ;;  %v15060_v2 = vld [vmem:[%s20243_s0] sm:$0xff]   ;;  %v15061_v4 = vld [vmem:[%s20243_s0 + $0x8] sm:$0xff]   ;;  %v15062_v5 = vld [vmem:[%s20243_s0 + $0x10] sm:$0xff]   ;;  %s16012_s30 = smov 48   ;;  %vm12596_vm5 = vcmask 1041409   ;;  %vm12598_vm6 = vcmask 1042434  }
   0x3   :  { %13733 = vmatpush3.bf16.msra.mxu0 %v15057_v0  ;;  %13738 = vmatprep.mubr.msk.bf16.mxu0 %vm207_vm0, %v15060_v2  ;;  %v15063_v6 = vld [vmem:[%s20243_s0 + $0x18] sm:$0xff]   ;;  %v15064_v7 = vld [vmem:[%s20243_s0 + $0x20] sm:$0xff]   ;;  %v15065_v8 = vld [vmem:[%s20243_s0 + $0x28] sm:$0xff]   ;;  %vm12600_vm7 = vcmask 1043459   ;;  %vm12602_vm8 = vcmask 1044484   ;;  %vm12604_vm9 = vcmask 1045509  }
   0x4   :  { %13734 = vmatprep.subr.bf16.mxu0 %v15058_v1  ;;  %v15066_v9 = vld [vmem:[%s20243_s0 + $0x30] sm:$0xff]   ;;  %v15067_v10 = vld [vmem:[%s20243_s0 + $0x38] sm:$0xff]   ;;  %v15068_v11 = vld [vmem:[%s20243_s0 + $0x40] sm:$0xff]   ;;  %vm12606_vm10 = vcmask 1046534   ;;  %vm12608_vm11 = vcmask 1047559  }
   0x5   :  { %v15069_v12 = vld [vmem:[%s20243_s0 + $0x48] sm:$0xff]   ;;  %v15070_v13 = vld [vmem:[%s20243_s0 + $0x50] sm:$0xff]   ;;  %v15071_v14 = vld [vmem:[%s20243_s0 + $0x58] sm:$0xff]  }
   0x6   :  { %v15072_v15 = vld [vmem:[%s20243_s0 + $0x60] sm:$0xff]   ;;  %v15073_v16 = vld [vmem:[%s20243_s0 + $0x68] sm:$0xff]   ;;  %v15074_v17 = vld [vmem:[%s20243_s0 + $0x70] sm:$0xff]  }
   0x7   :  { %13735 = vmatpush3.bf16.msra.mxu0 %v15058_v1  ;;  %v15075_v18 = vld [vmem:[%s20243_s0 + $0x78] sm:$0xff]   ;;  %v79_v19 = vld [vmem:[%s20244_s1 + $0x10] sm:$0xff]  ;;  %v77_v20 = vld [vmem:[%s20244_s1] sm:$0xff] }
   0x8   :  { %13736 = vmatprep.subr.bf16.mxu0 %v15059_v3  ;;  %v80_v22 = vld [vmem:[%s20244_s1 + $0x18] sm:$0xff]  ;;  %v78_v25 = vld [vmem:[%s20244_s1 + $0x8] sm:$0xff]  ;;  %v83_v36 = vld [vmem:[%s20244_s1 + $0x30] sm:$0xff] }
   0x9   :  { %v81_v38 = vld [vmem:[%s20244_s1 + $0x20] sm:$0xff]  ;;  %v84_v40 = vld [vmem:[%s20244_s1 + $0x38] sm:$0xff]  ;;  %v82_v44 = vld [vmem:[%s20244_s1 + $0x28] sm:$0xff] }
   0xa   :  { %v87_v54 = vld [vmem:[%s20244_s1 + $0x50] sm:$0xff]  ;;  %v85_v56 = vld [vmem:[%s20244_s1 + $0x40] sm:$0xff]  ;;  %v88_v63 = vld [vmem:[%s20244_s1 + $0x58] sm:$0xff] }
   0xb   :  { %13737 = vmatpush3.bf16.msra.mxu0 %v15059_v3  ;;  %v86_v0 = vld [vmem:[%s20244_s1 + $0x48] sm:$0xff] }
   0xe   :  { %13739 = vmatmul.mubr.msk.bf16.vlgmr.msra.gmra.mrb[0].mxu0 %vm207_vm0, %v15061_v4 }
   0xf   :  { %13742 = vmatprep.mubr.msk.bf16.mxu0 %vm207_vm0, %v15062_v5 }
  0x16   :  { %13743 = vmatmul.mubr.msk.bf16.gmra.mrb[4].mxu0 %vm207_vm0, %v15063_v6 }
  0x17   :  { %13746 = vmatprep.mubr.msk.bf16.mxu0 %vm207_vm0, %v15064_v7 }
  0x1e   :  { %13747 = vmatmul.mubr.msk.bf16.gmra.mrb[8].mxu0 %vm207_vm0, %v15065_v8 }
  0x1f   :  { %13750 = vmatprep.mubr.msk.bf16.mxu0 %vm207_vm0, %v15066_v9 }
  0x26   :  { %13751 = vmatmul.mubr.msk.bf16.gmra.mrb[12].mxu0 %vm207_vm0, %v15067_v10  ;;  %v91_v10 = vld [vmem:[%s20244_s1 + $0x70] sm:$0xff] }
  0x27   :  { %13754 = vmatprep.mubr.msk.bf16.mxu0 %vm207_vm0, %v15068_v11 }
  0x2e   :  { %13755 = vmatmul.mubr.msk.bf16.gmra.mrb[16].mxu0 %vm207_vm0, %v15069_v12  ;;  %v89_v12 = vld [vmem:[%s20244_s1 + $0x60] sm:$0xff] }
  0x2f   :  { %13758 = vmatprep.mubr.msk.bf16.mxu0 %vm207_vm0, %v15070_v13 }
  0x36   :  { %13759 = vmatmul.mubr.msk.bf16.gmra.mrb[20].mxu0 %vm207_vm0, %v15071_v14 }
  0x37   :  { %13762 = vmatprep.mubr.msk.bf16.mxu0 %vm207_vm0, %v15072_v15  ;;  %v92_v15 = vld [vmem:[%s20244_s1 + $0x78] sm:$0xff] }
  0x3e   :  { %13763 = vmatmul.mubr.msk.bf16.gmra.mrb[24].mxu0 %vm207_vm0, %v15073_v16 }
  0x3f   :  { %13766 = vmatprep.mubr.msk.bf16.mxu0 %vm207_vm0, %v15074_v17 }
  0x46   :  { %13767 = vmatmul.mubr.msk.bf16.gmra.mrb[28].mxu0 %vm207_vm0, %v15075_v18 }
  0xe1   :  { %v13740_v21 = vpop.f32.mrb[0].mxu0 }
  0xe2   :  { %v16155_v23 = vadd.f32 %v13740_v21, %v79_v19  ;;  %v290_v24 = vpop.f32.mrb[1].mxu0 }
  0xe3   :  { %v16160_v26 = vadd.f32 %v290_v24, %v77_v20  ;;  %v13741_v27 = vpop.f32.mrb[2].mxu0  ;;  %v90_v20 = vld [vmem:[%s20244_s1 + $0x68] sm:$0xff] }
  0xe4   :  { %20403 = vst [vmem:[#allocation2_spill] sm:$0xff] %v16155_v23  ;;  %v16162_v28 = vadd.f32 %v13741_v27, %v80_v22  ;;  %v293_v29 = vpop.f32.mrb[3].mxu0  ;;  %v419_v30 = vmul.f32 %v16155_v23, %v16155_v23 }
  0xe5   :  { %20404 = vst [vmem:[#allocation3_spill] sm:$0xff] %v16160_v26  ;;  %v16166_v31 = vadd.f32 %v293_v29, %v78_v25  ;;  %v417_v32 = vmul.f32 %v16160_v26, %v16160_v26 }
  0xe6   :  { %20405 = vst [vmem:[#allocation4_spill] sm:$0xff] %v16162_v28  ;;  %v456_v33 = vsel %vm449_vm1, %v419_v30, 0.0  ;;  %v420_v34 = vmul.f32 %v16162_v28, %v16162_v28 }
  0xe7   :  { %20406 = vst [vmem:[#allocation5_spill] sm:$0xff] %v16166_v31  ;;  %457 = vadd.xlane.f32.xlu1 %v456_v33  ;;  %v450_v35 = vsel %vm449_vm1, %v417_v32, 0.0  ;;  %v418_v37 = vmul.f32 %v16166_v31, %v16166_v31 }
  0xe8   :  { %451 = vadd.xlane.f32.xlu0 %v450_v35  ;;  %v459_v43 = vsel %vm449_vm1, %v420_v34, 0.0  ;;  %v95_v34 = vld [vmem:[%s20244_s1 + $0x90] sm:$0xff] }
  0xe9   :  { %v13744_v39 = vpop.f32.mrb[4].mxu0  ;;  %v453_v47 = vsel %vm449_vm1, %v418_v37, 0.0  ;;  %v93_v37 = vld [vmem:[%s20244_s1 + $0x80] sm:$0xff] }
  0xea   :  { %v16185_v41 = vadd.f32 %v13744_v39, %v83_v36  ;;  %v306_v42 = vpop.f32.mrb[5].mxu0 }
  0xeb   :  { %v16191_v45 = vadd.f32 %v306_v42, %v81_v38  ;;  %460 = vadd.xlane.f32.xlu1 %v459_v43  ;;  %v13745_v46 = vpop.f32.mrb[6].mxu0 }
  0xec   :  { %20407 = vst [vmem:[#allocation6_spill] sm:$0xff] %v16185_v41  ;;  %v16194_v48 = vadd.f32 %v13745_v46, %v84_v40  ;;  %v309_v49 = vpop.f32.mrb[7].mxu0  ;;  %454 = vadd.xlane.f32.xlu0 %v453_v47  ;;  %v423_v52 = vmul.f32 %v16185_v41, %v16185_v41  ;;  %v96_v40 = vld [vmem:[%s20244_s1 + $0x98] sm:$0xff]  ;;  %v94_v46 = vld [vmem:[%s20244_s1 + $0x88] sm:$0xff] }
  0xed   :  { %20408 = vst [vmem:[#allocation7_spill] sm:$0xff] %v16191_v45  ;;  %v16196_v50 = vadd.f32 %v309_v49, %v82_v44  ;;  %v421_v51 = vmul.f32 %v16191_v45, %v16191_v45 }
  0xee   :  { %20409 = vst [vmem:[#allocation8_spill] sm:$0xff] %v16194_v48  ;;  %v424_v57 = vmul.f32 %v16194_v48, %v16194_v48  ;;  %v468_v60 = vsel %vm449_vm1, %v423_v52, 0.0 }
  0xef   :  { %20410 = vst [vmem:[#allocation9_spill] sm:$0xff] %v16196_v50  ;;  %v462_v53 = vsel %vm449_vm1, %v421_v51, 0.0  ;;  %v422_v55 = vmul.f32 %v16196_v50, %v16196_v50 }
  0xf0   :  { %463 = vadd.xlane.f32.xlu0 %v462_v53  ;;  %v471_v4 = vsel %vm449_vm1, %v424_v57, 0.0 }
  0xf1   :  { %v13748_v58 = vpop.f32.mrb[8].mxu0  ;;  %v465_v59 = vsel %vm449_vm1, %v422_v55, 0.0 }
  0xf2   :  { %v16215_v61 = vadd.f32 %v13748_v58, %v87_v54  ;;  %v322_v62 = vpop.f32.mrb[9].mxu0  ;;  %466 = vadd.xlane.f32.xlu1 %v465_v59  ;;  %v15076_v54 = vld [vmem:[%s20245_s4] sm:$0xff]   ;;  %v99_v59 = vld [vmem:[%s20244_s1 + $0xb0] sm:$0xff] }
  0xf3   :  { %v16223_v1 = vadd.f32 %v322_v62, %v85_v56  ;;  %v13749_v2 = vpop.f32.mrb[10].mxu0  ;;  %13770 = vmatprep.subr.bf16.mxu1 %v15076_v54  ;;  %v97_v62 = vld [vmem:[%s20244_s1 + $0xa0] sm:$0xff] }
  0xf4   :  { %20411 = vst [vmem:[#allocation10_spill] sm:$0xff] %v16215_v61  ;;  %v325_v3 = vpop.f32.mrb[11].mxu0  ;;  %469 = vadd.xlane.f32.xlu0 %v468_v60  ;;  %v16226_v5 = vadd.f32 %v13749_v2, %v88_v63  ;;  %v427_v8 = vmul.f32 %v16215_v61, %v16215_v61  ;;  %13771 = vmatpush3.bf16.msra.mxu1 %v15076_v54 }
  0xf5   :  { %20412 = vst [vmem:[#allocation11_spill] sm:$0xff] %v16223_v1  ;;  %v16228_v6 = vadd.f32 %v325_v3, %v86_v0  ;;  %v425_v7 = vmul.f32 %v16223_v1, %v16223_v1  ;;  %v15077_v0 = vld [vmem:[%s20245_s4 + $0x8] sm:$0xff]  }
  0xf6   :  { %20413 = vst [vmem:[#allocation12_spill] sm:$0xff] %v16226_v5  ;;  %472 = vadd.xlane.f32.xlu1 %v471_v4  ;;  %v480_v16 = vsel %vm449_vm1, %v427_v8, 0.0  ;;  %v428_v17 = vmul.f32 %v16226_v5, %v16226_v5  ;;  %13772 = vmatprep.subr.bf16.mxu1 %v15077_v0 }
  0xf7   :  { %20414 = vst [vmem:[#allocation13_spill] sm:$0xff] %v16228_v6  ;;  %v474_v9 = vsel %vm449_vm1, %v425_v7, 0.0  ;;  %v426_v11 = vmul.f32 %v16228_v6, %v16228_v6 }
  0xf8   :  { %475 = vadd.xlane.f32.xlu0 %v474_v9  ;;  %v483_v29 = vsel %vm449_vm1, %v428_v17, 0.0  ;;  %v100_v9 = vld [vmem:[%s20244_s1 + $0xb8] sm:$0xff]  ;;  %13773 = vmatpush3.bf16.msra.mxu1 %v15077_v0 }
  0xf9   :  { %v13752_v13 = vpop.f32.mrb[12].mxu0  ;;  %v477_v14 = vsel %vm449_vm1, %v426_v11, 0.0 }
  0xfa   :  { %v16250_v18 = vadd.f32 %v13752_v13, %v91_v10  ;;  %v338_v19 = vpop.f32.mrb[13].mxu0  ;;  %478 = vadd.xlane.f32.xlu1 %v477_v14  ;;  %v98_v10 = vld [vmem:[%s20244_s1 + $0xa8] sm:$0xff] }
  0xfb   :  { %v16255_v21 = vadd.f32 %v338_v19, %v89_v12  ;;  %v13753_v22 = vpop.f32.mrb[14].mxu0 }
  0xfc   :  { %20415 = vst [vmem:[#allocation14_spill] sm:$0xff] %v16250_v18  ;;  %v16257_v24 = vadd.f32 %v13753_v22, %v92_v15  ;;  %v341_v25 = vpop.f32.mrb[15].mxu0  ;;  %481 = vadd.xlane.f32.xlu0 %v480_v16  ;;  %v431_v32 = vmul.f32 %v16250_v18, %v16250_v18  ;;  %v103_v22 = vld [vmem:[%s20244_s1 + $0xd0] sm:$0xff] }
  0xfd   :  { %20416 = vst [vmem:[#allocation15_spill] sm:$0xff] %v16255_v21  ;;  %v16259_v27 = vadd.f32 %v341_v25, %v90_v20  ;;  %v429_v30 = vmul.f32 %v16255_v21, %v16255_v21 }
  0xfe   :  { %20417 = vst [vmem:[#allocation16_spill] sm:$0xff] %v16257_v24  ;;  %484 = vadd.xlane.f32.xlu1 %v483_v29  ;;  %v432_v36 = vmul.f32 %v16257_v24, %v16257_v24  ;;  %v492_v42 = vsel %vm449_vm1, %v431_v32, 0.0  ;;  %v101_v29 = vld [vmem:[%s20244_s1 + $0xc0] sm:$0xff] }
  0xff   :  { %20418 = vst [vmem:[#allocation17_spill] sm:$0xff] %v16259_v27  ;;  %v486_v33 = vsel %vm449_vm1, %v429_v30, 0.0  ;;  %v430_v35 = vmul.f32 %v16259_v27, %v16259_v27 }
 0x100   :  { %487 = vadd.xlane.f32.xlu0 %v486_v33  ;;  %v495_v51 = vsel %vm449_vm1, %v432_v36, 0.0  ;;  %v104_v33 = vld [vmem:[%s20244_s1 + $0xd8] sm:$0xff] }
 0x101   :  { %v13756_v38 = vpop.f32.mrb[16].mxu0  ;;  %v489_v39 = vsel %vm449_vm1, %v430_v35, 0.0 }
 0x102   :  { %v16282_v43 = vadd.f32 %v13756_v38, %v95_v34  ;;  %v354_v44 = vpop.f32.mrb[17].mxu0  ;;  %490 = vadd.xlane.f32.xlu1 %v489_v39  ;;  %v102_v38 = vld [vmem:[%s20244_s1 + $0xc8] sm:$0xff] }
 0x103   :  { %v16287_v47 = vadd.f32 %v354_v44, %v93_v37  ;;  %v13757_v49 = vpop.f32.mrb[18].mxu0 }
 0x104   :  { %20419 = vst [vmem:[#allocation18_spill] sm:$0xff] %v16282_v43  ;;  %v16290_v52 = vadd.f32 %v13757_v49, %v96_v40  ;;  %v357_v53 = vpop.f32.mrb[19].mxu0  ;;  %493 = vadd.xlane.f32.xlu0 %v492_v42  ;;  %v435_v57 = vmul.f32 %v16282_v43, %v16282_v43 }
 0x105   :  { %20420 = vst [vmem:[#allocation19_spill] sm:$0xff] %v16287_v47  ;;  %v16295_v55 = vadd.f32 %v357_v53, %v94_v46  ;;  %v433_v56 = vmul.f32 %v16287_v47, %v16287_v47 }
 0x106   :  { %20421 = vst [vmem:[#allocation20_spill] sm:$0xff] %v16290_v52  ;;  %496 = vadd.xlane.f32.xlu1 %v495_v51  ;;  %v436_v63 = vmul.f32 %v16290_v52, %v16290_v52  ;;  %v504_v4 = vsel %vm449_vm1, %v435_v57, 0.0 }
 0x107   :  { %20422 = vst [vmem:[#allocation21_spill] sm:$0xff] %v16295_v55  ;;  %v498_v58 = vsel %vm449_vm1, %v433_v56, 0.0  ;;  %v434_v60 = vmul.f32 %v16295_v55, %v16295_v55  ;;  %v107_v56 = vld [vmem:[%s20244_s1 + $0xf0] sm:$0xff] }
 0x108   :  { %499 = vadd.xlane.f32.xlu0 %v498_v58  ;;  %v507_v14 = vsel %vm449_vm1, %v436_v63, 0.0  ;;  %v105_v58 = vld [vmem:[%s20244_s1 + $0xe0] sm:$0xff] }
 0x109   :  { %v13760_v2 = vpop.f32.mrb[20].mxu0  ;;  %v501_v3 = vsel %vm449_vm1, %v434_v60, 0.0 }
 0x10a   :  { %v16317_v7 = vadd.f32 %v13760_v2, %v99_v59  ;;  %v370_v8 = vpop.f32.mrb[21].mxu0  ;;  %502 = vadd.xlane.f32.xlu1 %v501_v3  ;;  %v108_v3 = vld [vmem:[%s20244_s1 + $0xf8] sm:$0xff] }
 0x10b   :  { %v16325_v11 = vadd.f32 %v370_v8, %v97_v62  ;;  %v13761_v12 = vpop.f32.mrb[22].mxu0 }
 0x10c   :  { %20423 = vst [vmem:[#allocation22_spill] sm:$0xff] %v16317_v7  ;;  %v373_v13 = vpop.f32.mrb[23].mxu0  ;;  %505 = vadd.xlane.f32.xlu0 %v504_v4  ;;  %v16328_v15 = vadd.f32 %v13761_v12, %v100_v9  ;;  %v439_v19 = vmul.f32 %v16317_v7, %v16317_v7  ;;  %v106_v4 = vld [vmem:[%s20244_s1 + $0xe8] sm:$0xff] }
 0x10d   :  { %20424 = vst [vmem:[#allocation23_spill] sm:$0xff] %v16325_v11  ;;  %v16330_v16 = vadd.f32 %v373_v13, %v98_v10  ;;  %v437_v17 = vmul.f32 %v16325_v11, %v16325_v11 }
 0x10e   :  { %20425 = vst [vmem:[#allocation24_spill] sm:$0xff] %v16328_v15  ;;  %508 = vadd.xlane.f32.xlu1 %v507_v14  ;;  %v516_v34 = vsel %vm449_vm1, %v439_v19, 0.0  ;;  %v440_v35 = vmul.f32 %v16328_v15, %v16328_v15 }
 0x10f   :  { %20426 = vst [vmem:[#allocation25_spill] sm:$0xff] %v16330_v16  ;;  %v510_v20 = vsel %vm449_vm1, %v437_v17, 0.0  ;;  %v438_v25 = vmul.f32 %v16330_v16, %v16330_v16 }
 0x110   :  { %511 = vadd.xlane.f32.xlu0 %v510_v20  ;;  %v519_v49 = vsel %vm449_vm1, %v440_v35, 0.0 }
 0x111   :  { %v13764_v30 = vpop.f32.mrb[24].mxu0  ;;  %v513_v32 = vsel %vm449_vm1, %v438_v25, 0.0 }
 0x112   :  { %v16352_v36 = vadd.f32 %v13764_v30, %v103_v22  ;;  %v386_v37 = vpop.f32.mrb[25].mxu0  ;;  %514 = vadd.xlane.f32.xlu1 %v513_v32 }
 0x113   :  { %v16357_v39 = vadd.f32 %v386_v37, %v101_v29  ;;  %v13765_v40 = vpop.f32.mrb[26].mxu0 }
 0x114   :  { %20427 = vst [vmem:[#allocation26_spill] sm:$0xff] %v16352_v36  ;;  %v16359_v42 = vadd.f32 %v13765_v40, %v104_v33  ;;  %v389_v44 = vpop.f32.mrb[27].mxu0  ;;  %517 = vadd.xlane.f32.xlu0 %v516_v34  ;;  %v443_v53 = vmul.f32 %v16352_v36, %v16352_v36  ;;  %v16411_v33 = vld [vmem:[%s20246_s3] sm:$0xff]  }
 0x115   :  { %20428 = vst [vmem:[#allocation27_spill] sm:$0xff] %v16357_v39  ;;  %v16361_v46 = vadd.f32 %v389_v44, %v102_v38  ;;  %v441_v51 = vmul.f32 %v16357_v39, %v16357_v39  ;;  %13806 = vmatprep.subr.bf16.mxu1 %v16411_v33 }
 0x116   :  { %20429 = vst [vmem:[#allocation28_spill] sm:$0xff] %v16359_v42  ;;  %520 = vadd.xlane.f32.xlu1 %v519_v49  ;;  %v444_v59 = vmul.f32 %v16359_v42, %v16359_v42  ;;  %v528_v63 = vsel %vm449_vm1, %v443_v53, 0.0 }
 0x117   :  { %20430 = vst [vmem:[#allocation29_spill] sm:$0xff] %v16361_v46  ;;  %v522_v54 = vsel %vm449_vm1, %v441_v51, 0.0  ;;  %v442_v57 = vmul.f32 %v16361_v46, %v16361_v46 }
 0x118   :  { %523 = vadd.xlane.f32.xlu0 %v522_v54  ;;  %v531_v12 = vsel %vm449_vm1, %v444_v59, 0.0 }
 0x119   :  { %v13768_v60 = vpop.f32.mrb[28].mxu0  ;;  %v525_v62 = vsel %vm449_vm1, %v442_v57, 0.0 }
 0x11a   :  { %v16381_v0 = vadd.f32 %v13768_v60, %v107_v56  ;;  %v402_v2 = vpop.f32.mrb[29].mxu0  ;;  %526 = vadd.xlane.f32.xlu1 %v525_v62 }
 0x11b   :  { %v16389_v8 = vadd.f32 %v402_v2, %v105_v58  ;;  %v13769_v9 = vpop.f32.mrb[30].mxu0 }
 0x11c   :  { %20431 = vst [vmem:[#allocation30_spill] sm:$0xff] %v16381_v0  ;;  %v405_v10 = vpop.f32.mrb[31].mxu0  ;;  %529 = vadd.xlane.f32.xlu0 %v528_v63  ;;  %v16392_v13 = vadd.f32 %v13769_v9, %v108_v3  ;;  %v447_v19 = vmul.f32 %v16381_v0, %v16381_v0 }
 0x11d   :  { %20432 = vst [vmem:[#allocation31_spill] sm:$0xff] %v16389_v8  ;;  %v16394_v14 = vadd.f32 %v405_v10, %v106_v4  ;;  %v445_v17 = vmul.f32 %v16389_v8, %v16389_v8 }
 0x11e   :  { %20433 = vst [vmem:[#allocation32_spill] sm:$0xff] %v16392_v13  ;;  %532 = vadd.xlane.f32.xlu1 %v531_v12  ;;  %v540_v29 = vsel %vm449_vm1, %v447_v19, 0.0  ;;  %v448_v30 = vmul.f32 %v16392_v13, %v16392_v13 }
 0x11f   :  { %20434 = vst [vmem:[#allocation33_spill] sm:$0xff] %v16394_v14  ;;  %v534_v20 = vsel %vm449_vm1, %v445_v17, 0.0  ;;  %v446_v22 = vmul.f32 %v16394_v14, %v16394_v14 }
 0x120   :  { %535 = vadd.xlane.f32.xlu0 %v534_v20  ;;  %v543_v32 = vsel %vm449_vm1, %v448_v30, 0.0 }
 0x121   :  { %v537_v25 = vsel %vm449_vm1, %v446_v22, 0.0 }
 0x122   :  { %538 = vadd.xlane.f32.xlu1 %v537_v25 }
 0x124   :  { %541 = vadd.xlane.f32.xlu0 %v540_v29 }
 0x126   :  { %544 = vadd.xlane.f32.xlu1 %v543_v32 }
 0x174   :  { %v458_v34 = vpop.xlane.xlu1 %457 }
 0x175   :  { %v549_v35 = vmul.f32 0.03125, %v458_v34  ;;  %v452_v37 = vpop.xlane.xlu0 %451 }
 0x176   :  { %v547_v38 = vmul.f32 0.03125, %v452_v37 }
 0x177   :  { %v581_v40 = vadd.f32 1e-06, %v549_v35 }
 0x178   :  { %v579_v44 = vadd.f32 1e-06, %v547_v38  ;;  %v461_v49 = vpop.xlane.xlu1 %460 }
 0x179   :  { %v550_v51 = vmul.f32 0.03125, %v461_v49  ;;  %v455_v53 = vpop.xlane.xlu0 %454  ;;  %15106 = vrsqrt.f32 %v581_v40 }
 0x17a   :  { %v548_v54 = vmul.f32 0.03125, %v455_v53  ;;  %15108 = vrsqrt.f32 %v579_v44 }
 0x17b   :  { %v582_v56 = vadd.f32 1e-06, %v550_v51 }
 0x17c   :  { %v580_v57 = vadd.f32 1e-06, %v548_v54 }
 0x17d   :  { %15110 = vrsqrt.f32 %v582_v56  ;;  %v464_v58 = vpop.xlane.xlu0 %463 }
 0x17e   :  { %15112 = vrsqrt.f32 %v580_v57  ;;  %v551_v59 = vmul.f32 0.03125, %v464_v58 }
 0x17f   :  { %v467_v60 = vpop.xlane.xlu1 %466 }
 0x180   :  { %v583_v62 = vadd.f32 1e-06, %v551_v59  ;;  %v552_v63 = vmul.f32 0.03125, %v467_v60 }
 0x181   :  { %v470_v2 = vpop.xlane.xlu0 %469 }
 0x182   :  { %15114 = vrsqrt.f32 %v583_v62  ;;  %v584_v3 = vadd.f32 1e-06, %v552_v63  ;;  %v553_v4 = vmul.f32 0.03125, %v470_v2  ;;  %v15079_v62 = vld [vmem:[%s20246_s3 + $0x8] sm:$0xff]  }
 0x183   :  { %v473_v9 = vpop.xlane.xlu1 %472  ;;  %v15107_v17 = vpop.eup %15106 }
 0x184   :  { %15116 = vrsqrt.f32 %v584_v3  ;;  %v585_v10 = vadd.f32 1e-06, %v553_v4  ;;  %v554_v12 = vmul.f32 0.03125, %v473_v9  ;;  %v15109_v20 = vpop.eup %15108  ;;  %v645_v53 = vmul.f32 %v15107_v17, %v16155_v23 }
 0x185   :  { %v476_v19 = vpop.xlane.xlu0 %475  ;;  %v643_v40 = vmul.f32 %v15109_v20, %v16160_v26  ;;  %v20285_v26 = vmov 0.0  }
 0x186   :  { %15118 = vrsqrt.f32 %v585_v10  ;;  %v586_v22 = vadd.f32 1e-06, %v554_v12  ;;  %v555_v25 = vmul.f32 0.03125, %v476_v19  ;;  %13846 = vmatprep.subr.bf16.mxu0 %v20285_v26  ;;  %13848 = vmatprep.mubr.msk.bf16.mxu0 %vm16007_vm3, %v20285_v26 }
 0x187   :  { %v15111_v29 = vpop.eup %15110  ;;  %v479_v30 = vpop.xlane.xlu1 %478 }
 0x188   :  { %v15113_v32 = vpop.eup %15112  ;;  %15120 = vrsqrt.f32 %v586_v22  ;;  %v587_v34 = vadd.f32 1e-06, %v555_v25  ;;  %v556_v35 = vmul.f32 0.03125, %v479_v30  ;;  %v646_v37 = vmul.f32 %v15111_v29, %v16162_v28 }
 0x189   :  { %v482_v38 = vpop.xlane.xlu0 %481  ;;  %v644_v44 = vmul.f32 %v15113_v32, %v16166_v31 }
 0x18a   :  { %15122 = vrsqrt.f32 %v587_v34  ;;  %v588_v49 = vadd.f32 1e-06, %v556_v35  ;;  %v557_v51 = vmul.f32 0.03125, %v482_v38  ;;  %v676_v60 = vpack.c.bf16 %v646_v37, %v645_v53 }
 0x18b   :  { %v485_v54 = vpop.xlane.xlu1 %484  ;;  %v675_v56 = vpack.c.bf16 %v644_v44, %v643_v40 }
 0x18c   :  { %v15115_v57 = vpop.eup %15114  ;;  %15124 = vrsqrt.f32 %v588_v49  ;;  %v589_v58 = vadd.f32 1e-06, %v557_v51  ;;  %v558_v59 = vmul.f32 0.03125, %v485_v54 }
 0x18d   :  { %13774 = vmatprep.mubr.msk.bf16.mxu1 %vm449_vm1, %v675_v56  ;;  %v488_v63 = vpop.xlane.xlu0 %487  ;;  %v647_v10 = vmul.f32 %v15115_v57, %v16191_v45 }
 0x18e   :  { %v15117_v2 = vpop.eup %15116  ;;  %15126 = vrsqrt.f32 %v589_v58  ;;  %v590_v3 = vadd.f32 1e-06, %v558_v59  ;;  %v559_v4 = vmul.f32 0.03125, %v488_v63  ;;  %13775 = vmatmul.mubr.msk.bf16.vlgmr.msra.gmra.mrb[0].mxu1 %vm449_vm1, %v676_v60 }
 0x18f   :  { %v491_v9 = vpop.xlane.xlu1 %490  ;;  %v648_v12 = vmul.f32 %v15117_v2, %v16196_v50  ;;  %13807 = vmatpush3.bf16.msra.mxu1 %v16411_v33 }
 0x190   :  { %v15119_v17 = vpop.eup %15118  ;;  %15128 = vrsqrt.f32 %v590_v3  ;;  %v591_v19 = vadd.f32 1e-06, %v559_v4  ;;  %v560_v20 = vmul.f32 0.03125, %v491_v9  ;;  %13808 = vmatprep.subr.bf16.mxu1 %v15079_v62 }
 0x191   :  { %v494_v22 = vpop.xlane.xlu0 %493  ;;  %v677_v25 = vpack.c.bf16 %v648_v12, %v647_v10  ;;  %v649_v35 = vmul.f32 %v15119_v17, %v16185_v41 }
 0x192   :  { %v15121_v29 = vpop.eup %15120  ;;  %15130 = vrsqrt.f32 %v591_v19  ;;  %v592_v30 = vadd.f32 1e-06, %v560_v20  ;;  %v561_v32 = vmul.f32 0.03125, %v494_v22 }
 0x193   :  { %v497_v34 = vpop.xlane.xlu1 %496  ;;  %13778 = vmatprep.mubr.msk.bf16.mxu1 %vm449_vm1, %v677_v25  ;;  %v650_v37 = vmul.f32 %v15121_v29, %v16194_v48  ;;  %13809 = vmatpush3.bf16.msra.mxu1 %v15079_v62 }
 0x194   :  { %v15123_v33 = vpop.eup %15122  ;;  %15132 = vrsqrt.f32 %v592_v30  ;;  %v593_v38 = vadd.f32 1e-06, %v561_v32  ;;  %v562_v40 = vmul.f32 0.03125, %v497_v34 }
 0x195   :  { %v500_v44 = vpop.xlane.xlu0 %499  ;;  %v678_v49 = vpack.c.bf16 %v650_v37, %v649_v35  ;;  %v651_v57 = vmul.f32 %v15123_v33, %v16223_v1 }
 0x196   :  { %v15125_v51 = vpop.eup %15124  ;;  %15134 = vrsqrt.f32 %v593_v38  ;;  %v594_v53 = vadd.f32 1e-06, %v562_v40  ;;  %v563_v54 = vmul.f32 0.03125, %v500_v44 }
 0x197   :  { %v503_v56 = vpop.xlane.xlu1 %502  ;;  %13779 = vmatmul.mubr.msk.bf16.gmra.mrb[4].mxu1 %vm449_vm1, %v678_v49  ;;  %v652_v58 = vmul.f32 %v15125_v51, %v16228_v6 }
 0x198   :  { %v15127_v59 = vpop.eup %15126  ;;  %15136 = vrsqrt.f32 %v594_v53  ;;  %v595_v60 = vadd.f32 1e-06, %v563_v54  ;;  %v564_v62 = vmul.f32 0.03125, %v503_v56 }
 0x199   :  { %v506_v63 = vpop.xlane.xlu0 %505  ;;  %v679_v2 = vpack.c.bf16 %v652_v58, %v651_v57  ;;  %v653_v12 = vmul.f32 %v15127_v59, %v16215_v61 }
 0x19a   :  { %v15129_v3 = vpop.eup %15128  ;;  %15138 = vrsqrt.f32 %v595_v60  ;;  %v596_v4 = vadd.f32 1e-06, %v564_v62  ;;  %v565_v9 = vmul.f32 0.03125, %v506_v63 }
 0x19b   :  { %v509_v10 = vpop.xlane.xlu1 %508  ;;  %13782 = vmatprep.mubr.msk.bf16.mxu1 %vm449_vm1, %v679_v2  ;;  %v654_v17 = vmul.f32 %v15129_v3, %v16226_v5 }
 0x19c   :  { %v15131_v19 = vpop.eup %15130  ;;  %15140 = vrsqrt.f32 %v596_v4  ;;  %v597_v20 = vadd.f32 1e-06, %v565_v9  ;;  %v566_v22 = vmul.f32 0.03125, %v509_v10 }
 0x19d   :  { %v512_v25 = vpop.xlane.xlu0 %511  ;;  %v680_v29 = vpack.c.bf16 %v654_v17, %v653_v12  ;;  %v655_v37 = vmul.f32 %v15131_v19, %v16255_v21 }
 0x19e   :  { %v15133_v30 = vpop.eup %15132  ;;  %15142 = vrsqrt.f32 %v597_v20  ;;  %v598_v32 = vadd.f32 1e-06, %v566_v22  ;;  %v567_v34 = vmul.f32 0.03125, %v512_v25 }
 0x19f   :  { %v515_v35 = vpop.xlane.xlu1 %514  ;;  %13783 = vmatmul.mubr.msk.bf16.gmra.mrb[8].mxu1 %vm449_vm1, %v680_v29  ;;  %v656_v33 = vmul.f32 %v15133_v30, %v16259_v27 }
 0x1a0   :  { %v15135_v38 = vpop.eup %15134  ;;  %15144 = vrsqrt.f32 %v598_v32  ;;  %v599_v40 = vadd.f32 1e-06, %v567_v34  ;;  %v568_v44 = vmul.f32 0.03125, %v515_v35 }
 0x1a1   :  { %v518_v49 = vpop.xlane.xlu0 %517  ;;  %v681_v51 = vpack.c.bf16 %v656_v33, %v655_v37  ;;  %v657_v58 = vmul.f32 %v15135_v38, %v16250_v18 }
 0x1a2   :  { %v15137_v53 = vpop.eup %15136  ;;  %15146 = vrsqrt.f32 %v599_v40  ;;  %v600_v54 = vadd.f32 1e-06, %v568_v44  ;;  %v569_v56 = vmul.f32 0.03125, %v518_v49 }
 0x1a3   :  { %v521_v57 = vpop.xlane.xlu1 %520  ;;  %13786 = vmatprep.mubr.msk.bf16.mxu1 %vm449_vm1, %v681_v51  ;;  %v658_v59 = vmul.f32 %v15137_v53, %v16257_v24 }
 0x1a4   :  { %v15139_v60 = vpop.eup %15138  ;;  %15148 = vrsqrt.f32 %v600_v54  ;;  %v601_v62 = vadd.f32 1e-06, %v569_v56  ;;  %v570_v63 = vmul.f32 0.03125, %v521_v57 }
 0x1a5   :  { %v524_v2 = vpop.xlane.xlu0 %523  ;;  %v682_v3 = vpack.c.bf16 %v658_v59, %v657_v58  ;;  %v659_v17 = vmul.f32 %v15139_v60, %v16287_v47 }
 0x1a6   :  { %v15141_v4 = vpop.eup %15140  ;;  %15150 = vrsqrt.f32 %v601_v62  ;;  %v602_v9 = vadd.f32 1e-06, %v570_v63  ;;  %v571_v10 = vmul.f32 0.03125, %v524_v2 }
 0x1a7   :  { %v527_v12 = vpop.xlane.xlu1 %526  ;;  %13787 = vmatmul.mubr.msk.bf16.gmra.mrb[12].mxu1 %vm449_vm1, %v682_v3  ;;  %v660_v19 = vmul.f32 %v15141_v4, %v16295_v55 }
 0x1a8   :  { %v15143_v20 = vpop.eup %15142  ;;  %15152 = vrsqrt.f32 %v602_v9  ;;  %v603_v22 = vadd.f32 1e-06, %v571_v10  ;;  %v572_v25 = vmul.f32 0.03125, %v527_v12 }
 0x1a9   :  { %v530_v29 = vpop.xlane.xlu0 %529  ;;  %v683_v30 = vpack.c.bf16 %v660_v19, %v659_v17  ;;  %v661_v33 = vmul.f32 %v15143_v20, %v16282_v43 }
 0x1aa   :  { %v15145_v32 = vpop.eup %15144  ;;  %15154 = vrsqrt.f32 %v603_v22  ;;  %v604_v34 = vadd.f32 1e-06, %v572_v25  ;;  %v573_v35 = vmul.f32 0.03125, %v530_v29 }
 0x1ab   :  { %v533_v37 = vpop.xlane.xlu1 %532  ;;  %13790 = vmatprep.mubr.msk.bf16.mxu1 %vm449_vm1, %v683_v30  ;;  %v662_v38 = vmul.f32 %v15145_v32, %v16290_v52 }
 0x1ac   :  { %v15147_v40 = vpop.eup %15146  ;;  %15156 = vrsqrt.f32 %v604_v34  ;;  %v605_v44 = vadd.f32 1e-06, %v573_v35  ;;  %v574_v49 = vmul.f32 0.03125, %v533_v37 }
 0x1ad   :  { %v536_v51 = vpop.xlane.xlu0 %535  ;;  %v684_v53 = vpack.c.bf16 %v662_v38, %v661_v33  ;;  %v663_v59 = vmul.f32 %v15147_v40, %v16325_v11 }
 0x1ae   :  { %v15149_v54 = vpop.eup %15148  ;;  %15158 = vrsqrt.f32 %v605_v44  ;;  %v606_v56 = vadd.f32 1e-06, %v574_v49  ;;  %v575_v57 = vmul.f32 0.03125, %v536_v51 }
 0x1af   :  { %v539_v58 = vpop.xlane.xlu1 %538  ;;  %13791 = vmatmul.mubr.msk.bf16.gmra.mrb[16].mxu1 %vm449_vm1, %v684_v53  ;;  %v664_v60 = vmul.f32 %v15149_v54, %v16330_v16 }
 0x1b0   :  { %v15151_v62 = vpop.eup %15150  ;;  %15160 = vrsqrt.f32 %v606_v56  ;;  %v607_v63 = vadd.f32 1e-06, %v575_v57  ;;  %v576_v2 = vmul.f32 0.03125, %v539_v58 }
 0x1b1   :  { %v542_v3 = vpop.xlane.xlu0 %541  ;;  %v685_v4 = vpack.c.bf16 %v664_v60, %v663_v59  ;;  %v665_v19 = vmul.f32 %v15151_v62, %v16317_v7 }
 0x1b2   :  { %v15153_v9 = vpop.eup %15152  ;;  %15162 = vrsqrt.f32 %v607_v63  ;;  %v608_v10 = vadd.f32 1e-06, %v576_v2  ;;  %v577_v12 = vmul.f32 0.03125, %v542_v3  ;;  %v15080_v3 = vld [vmem:[%s20246_s3 + $0x10] sm:$0xff]  }
 0x1b3   :  { %v545_v17 = vpop.xlane.xlu1 %544  ;;  %13794 = vmatprep.mubr.msk.bf16.mxu1 %vm449_vm1, %v685_v4  ;;  %v666_v20 = vmul.f32 %v15153_v9, %v16328_v15  ;;  %13810 = vmatprep.subr.bf16.mxu1 %v15080_v3  ;;  %v15081_v4 = vld [vmem:[%s20246_s3 + $0x18] sm:$0xff]  }
 0x1b4   :  { %v15155_v22 = vpop.eup %15154  ;;  %15164 = vrsqrt.f32 %v608_v10  ;;  %v609_v25 = vadd.f32 1e-06, %v577_v12  ;;  %v578_v29 = vmul.f32 0.03125, %v545_v17  ;;  %13811 = vmatpush3.bf16.msra.mxu1 %v15080_v3 }
 0x1b5   :  { %v686_v30 = vpack.c.bf16 %v666_v20, %v665_v19  ;;  %v667_v35 = vmul.f32 %v15155_v22, %v16357_v39  ;;  %13812 = vmatprep.subr.bf16.mxu1 %v15081_v4 }
 0x1b6   :  { %v15157_v32 = vpop.eup %15156  ;;  %15166 = vrsqrt.f32 %v609_v25  ;;  %v610_v34 = vadd.f32 1e-06, %v578_v29 }
 0x1b7   :  { %13795 = vmatmul.mubr.msk.bf16.gmra.mrb[20].mxu1 %vm449_vm1, %v686_v30  ;;  %v668_v37 = vmul.f32 %v15157_v32, %v16361_v46 }
 0x1b8   :  { %v15159_v33 = vpop.eup %15158  ;;  %15168 = vrsqrt.f32 %v610_v34  ;;  %13813 = vmatpush3.bf16.msra.mxu1 %v15081_v4 }
 0x1b9   :  { %v687_v38 = vpack.c.bf16 %v668_v37, %v667_v35  ;;  %v669_v44 = vmul.f32 %v15159_v33, %v16352_v36  ;;  %13894 = vmatprep.subr.bf16.mxu1 %v20285_v26 }
 0x1ba   :  { %v15161_v40 = vpop.eup %15160 }
 0x1bb   :  { %13798 = vmatprep.mubr.msk.bf16.mxu1 %vm449_vm1, %v687_v38  ;;  %v670_v49 = vmul.f32 %v15161_v40, %v16359_v42 }
 0x1bc   :  { %v15163_v51 = vpop.eup %15162 }
 0x1bd   :  { %v688_v53 = vpack.c.bf16 %v670_v49, %v669_v44  ;;  %v671_v56 = vmul.f32 %v15163_v51, %v16389_v8 }
 0x1be   :  { %v15165_v54 = vpop.eup %15164 }
 0x1bf   :  { %13799 = vmatmul.mubr.msk.bf16.gmra.mrb[24].mxu1 %vm449_vm1, %v688_v53  ;;  %v672_v57 = vmul.f32 %v15165_v54, %v16394_v14 }
 0x1c0   :  { %v15167_v58 = vpop.eup %15166 }
 0x1c1   :  { %v689_v59 = vpack.c.bf16 %v672_v57, %v671_v56  ;;  %v673_v62 = vmul.f32 %v15167_v58, %v16381_v0 }
 0x1c2   :  { %v15169_v60 = vpop.eup %15168 }
 0x1c3   :  { %13802 = vmatprep.mubr.msk.bf16.mxu1 %vm449_vm1, %v689_v59  ;;  %v674_v63 = vmul.f32 %v15169_v60, %v16392_v13 }
 0x1c5   :  { %v690_v2 = vpack.c.bf16 %v674_v63, %v673_v62 }
 0x1c7   :  { %13803 = vmatmul.mubr.msk.bf16.gmra.mrb[28].mxu1 %vm449_vm1, %v690_v2 }
 0x261   :  { %v16472_v9 = vpop.f32.mrb[0].mxu1 }
 0x262   :  { %v16474_v10 = vpop.f32.mrb[1].mxu1  ;;  %v918_v17 = vmul.f32 %v16472_v9, %v16472_v9 }
 0x263   :  { %v16476_v12 = vpop.f32.mrb[2].mxu1  ;;  %v916_v25 = vmul.f32 %v16474_v10, %v16474_v10 }
 0x264   :  { %v919_v19 = vmul.f32 %v16476_v12, %v16476_v12  ;;  %v16482_v20 = vpop.f32.mrb[3].mxu1  ;;  %v16486_v22 = vpack.c.bf16 %v16476_v12, %v16472_v9 }
 0x265   :  { %v917_v29 = vmul.f32 %v16482_v20, %v16482_v20  ;;  %v16494_v30 = vpack.c.bf16 %v16482_v20, %v16474_v10 }
 0x266   :  { %20435 = vst [vmem:[#allocation34_spill] sm:$0xff] %v16486_v22  ;;  %v949_v32 = vpack.c.bf16 %v919_v19, %v918_v17 }
 0x267   :  { %v948_v34 = vpack.c.bf16 %v917_v29, %v916_v25 }
 0x269   :  { %13814 = vmatprep.mubr.msk.bf16.mxu1 %vm996_vm2, %v948_v34 }
 0x26a   :  { %v16497_v35 = vpop.f32.mrb[4].mxu1  ;;  %13815 = vmatmul.mubr.msk.bf16.vlgmr.msra.gmra.mrb[32].mxu1 %vm996_vm2, %v949_v32 }
 0x26b   :  { %v16500_v37 = vpop.f32.mrb[5].mxu1  ;;  %v922_v38 = vmul.f32 %v16497_v35, %v16497_v35 }
 0x26c   :  { %v16502_v33 = vpop.f32.mrb[6].mxu1  ;;  %v920_v51 = vmul.f32 %v16500_v37, %v16500_v37 }
 0x26d   :  { %v923_v40 = vmul.f32 %v16502_v33, %v16502_v33  ;;  %v16508_v44 = vpop.f32.mrb[7].mxu1  ;;  %v16512_v49 = vpack.c.bf16 %v16502_v33, %v16497_v35 }
 0x26e   :  { %v921_v53 = vmul.f32 %v16508_v44, %v16508_v44  ;;  %v16520_v54 = vpack.c.bf16 %v16508_v44, %v16500_v37 }
 0x26f   :  { %20436 = vst [vmem:[#allocation35_spill] sm:$0xff] %v16512_v49  ;;  %v951_v56 = vpack.c.bf16 %v923_v40, %v922_v38 }
 0x270   :  { %v950_v57 = vpack.c.bf16 %v921_v53, %v920_v51 }
 0x272   :  { %v16522_v58 = vpop.f32.mrb[8].mxu1  ;;  %13818 = vmatprep.mubr.msk.bf16.mxu1 %vm996_vm2, %v950_v57 }
 0x273   :  { %v16525_v59 = vpop.f32.mrb[9].mxu1  ;;  %13819 = vmatmul.mubr.msk.bf16.gmra.mrb[36].mxu1 %vm996_vm2, %v951_v56  ;;  %v926_v62 = vmul.f32 %v16522_v58, %v16522_v58 }
 0x274   :  { %v16528_v60 = vpop.f32.mrb[10].mxu1  ;;  %v924_v4 = vmul.f32 %v16525_v59, %v16525_v59 }
 0x275   :  { %v927_v63 = vmul.f32 %v16528_v60, %v16528_v60  ;;  %v16534_v2 = vpop.f32.mrb[11].mxu1  ;;  %v16538_v3 = vpack.c.bf16 %v16528_v60, %v16522_v58 }
 0x276   :  { %v925_v17 = vmul.f32 %v16534_v2, %v16534_v2  ;;  %v16546_v19 = vpack.c.bf16 %v16534_v2, %v16525_v59 }
 0x277   :  { %20437 = vst [vmem:[#allocation36_spill] sm:$0xff] %v16538_v3  ;;  %v953_v25 = vpack.c.bf16 %v927_v63, %v926_v62 }
 0x278   :  { %20438 = vst [vmem:[#allocation37_spill] sm:$0xff] %v16546_v19  ;;  %v952_v29 = vpack.c.bf16 %v925_v17, %v924_v4 }
 0x27a   :  { %v16548_v32 = vpop.f32.mrb[12].mxu1  ;;  %13822 = vmatprep.mubr.msk.bf16.mxu1 %vm996_vm2, %v952_v29 }
 0x27b   :  { %v16551_v34 = vpop.f32.mrb[13].mxu1  ;;  %13823 = vmatmul.mubr.msk.bf16.gmra.mrb[40].mxu1 %vm996_vm2, %v953_v25  ;;  %v930_v40 = vmul.f32 %v16548_v32, %v16548_v32 }
 0x27c   :  { %v16554_v38 = vpop.f32.mrb[14].mxu1  ;;  %v928_v57 = vmul.f32 %v16551_v34, %v16551_v34 }
 0x27d   :  { %v931_v51 = vmul.f32 %v16554_v38, %v16554_v38  ;;  %v16560_v53 = vpop.f32.mrb[15].mxu1  ;;  %v16564_v56 = vpack.c.bf16 %v16554_v38, %v16548_v32 }
 0x27e   :  { %v929_v62 = vmul.f32 %v16560_v53, %v16560_v53  ;;  %v16572_v63 = vpack.c.bf16 %v16560_v53, %v16551_v34 }
 0x27f   :  { %20439 = vst [vmem:[#allocation38_spill] sm:$0xff] %v16564_v56  ;;  %v955_v4 = vpack.c.bf16 %v931_v51, %v930_v40 }
 0x280   :  { %20440 = vst [vmem:[#allocation39_spill] sm:$0xff] %v16572_v63  ;;  %v954_v17 = vpack.c.bf16 %v929_v62, %v928_v57 }
 0x282   :  { %v16574_v25 = vpop.f32.mrb[16].mxu1  ;;  %13826 = vmatprep.mubr.msk.bf16.mxu1 %vm996_vm2, %v954_v17 }
 0x283   :  { %v16577_v29 = vpop.f32.mrb[17].mxu1  ;;  %13827 = vmatmul.mubr.msk.bf16.gmra.mrb[44].mxu1 %vm996_vm2, %v955_v4  ;;  %v934_v14 = vmul.f32 %v16574_v25, %v16574_v25 }
 0x284   :  { %v16580_v0 = vpop.f32.mrb[18].mxu1  ;;  %v932_v51 = vmul.f32 %v16577_v29, %v16577_v29 }
 0x285   :  { %v935_v13 = vmul.f32 %v16580_v0, %v16580_v0  ;;  %v16586_v8 = vpop.f32.mrb[19].mxu1  ;;  %v16590_v40 = vpack.c.bf16 %v16580_v0, %v16574_v25 }
 0x286   :  { %v933_v57 = vmul.f32 %v16586_v8, %v16586_v8  ;;  %v16598_v62 = vpack.c.bf16 %v16586_v8, %v16577_v29 }
 0x287   :  { %20441 = vst [vmem:[#allocation40_spill] sm:$0xff] %v16590_v40  ;;  %v957_v4 = vpack.c.bf16 %v935_v13, %v934_v14 }
 0x288   :  { %20442 = vst [vmem:[#allocation41_spill] sm:$0xff] %v16598_v62  ;;  %v956_v17 = vpack.c.bf16 %v933_v57, %v932_v51 }
 0x28a   :  { %v16600_v36 = vpop.f32.mrb[20].mxu1  ;;  %13830 = vmatprep.mubr.msk.bf16.mxu1 %vm996_vm2, %v956_v17 }
 0x28b   :  { %v16603_v46 = vpop.f32.mrb[21].mxu1  ;;  %13831 = vmatmul.mubr.msk.bf16.gmra.mrb[48].mxu1 %vm996_vm2, %v957_v4  ;;  %v938_v39 = vmul.f32 %v16600_v36, %v16600_v36 }
 0x28c   :  { %v16606_v42 = vpop.f32.mrb[22].mxu1  ;;  %v936_v14 = vmul.f32 %v16603_v46, %v16603_v46 }
 0x28d   :  { %v939_v7 = vmul.f32 %v16606_v42, %v16606_v42  ;;  %v16612_v16 = vpop.f32.mrb[23].mxu1  ;;  %v16616_v13 = vpack.c.bf16 %v16606_v42, %v16600_v36 }
 0x28e   :  { %v937_v51 = vmul.f32 %v16612_v16, %v16612_v16  ;;  %v16624_v57 = vpack.c.bf16 %v16612_v16, %v16603_v46 }
 0x28f   :  { %20443 = vst [vmem:[#allocation42_spill] sm:$0xff] %v16616_v13  ;;  %v959_v4 = vpack.c.bf16 %v939_v7, %v938_v39 }
 0x290   :  { %20444 = vst [vmem:[#allocation43_spill] sm:$0xff] %v16624_v57  ;;  %v958_v17 = vpack.c.bf16 %v937_v51, %v936_v14 }
 0x292   :  { %v16626_v15 = vpop.f32.mrb[24].mxu1  ;;  %13834 = vmatprep.mubr.msk.bf16.mxu1 %vm996_vm2, %v958_v17 }
 0x293   :  { %v16629_v11 = vpop.f32.mrb[25].mxu1  ;;  %13835 = vmatmul.mubr.msk.bf16.gmra.mrb[52].mxu1 %vm996_vm2, %v959_v4  ;;  %v942_v55 = vmul.f32 %v16626_v15, %v16626_v15 }
 0x294   :  { %v16632_v43 = vpop.f32.mrb[26].mxu1  ;;  %v940_v39 = vmul.f32 %v16629_v11, %v16629_v11 }
 0x295   :  { %v943_v52 = vmul.f32 %v16632_v43, %v16632_v43  ;;  %v16638_v47 = vpop.f32.mrb[27].mxu1  ;;  %v16642_v7 = vpack.c.bf16 %v16632_v43, %v16626_v15 }
 0x296   :  { %v941_v14 = vmul.f32 %v16638_v47, %v16638_v47  ;;  %v16650_v51 = vpack.c.bf16 %v16638_v47, %v16629_v11 }
 0x297   :  { %20445 = vst [vmem:[#allocation44_spill] sm:$0xff] %v16642_v7  ;;  %v961_v4 = vpack.c.bf16 %v943_v52, %v942_v55 }
 0x298   :  { %20446 = vst [vmem:[#allocation45_spill] sm:$0xff] %v16650_v51  ;;  %v960_v17 = vpack.c.bf16 %v941_v14, %v940_v39 }
 0x29a   :  { %v16652_v18 = vpop.f32.mrb[28].mxu1  ;;  %13838 = vmatprep.mubr.msk.bf16.mxu1 %vm996_vm2, %v960_v17 }
 0x29b   :  { %v16655_v27 = vpop.f32.mrb[29].mxu1  ;;  %13839 = vmatmul.mubr.msk.bf16.gmra.mrb[56].mxu1 %vm996_vm2, %v961_v4  ;;  %v946_v21 = vmul.f32 %v16652_v18, %v16652_v18 }
 0x29c   :  { %v16658_v24 = vpop.f32.mrb[30].mxu1  ;;  %v944_v55 = vmul.f32 %v16655_v27, %v16655_v27 }
 0x29d   :  { %v947_v61 = vmul.f32 %v16658_v24, %v16658_v24  ;;  %v16664_v6 = vpop.f32.mrb[31].mxu1  ;;  %v16668_v52 = vpack.c.bf16 %v16658_v24, %v16652_v18 }
 0x29e   :  { %v945_v39 = vmul.f32 %v16664_v6, %v16664_v6  ;;  %v16676_v14 = vpack.c.bf16 %v16664_v6, %v16655_v27 }
 0x29f   :  { %20447 = vst [vmem:[#allocation46_spill] sm:$0xff] %v16668_v52  ;;  %v963_v4 = vpack.c.bf16 %v947_v61, %v946_v21 }
 0x2a0   :  { %20448 = vst [vmem:[#allocation47_spill] sm:$0xff] %v16676_v14  ;;  %v962_v17 = vpack.c.bf16 %v945_v39, %v944_v55 }
 0x2a2   :  { %13842 = vmatprep.mubr.msk.bf16.mxu1 %vm996_vm2, %v962_v17 }
 0x2a3   :  { %13843 = vmatmul.mubr.msk.bf16.gmra.mrb[60].mxu1 %vm996_vm2, %v963_v4 }
 0x2a4   :  { %13896 = vmatprep.mubr.msk.bf16.mxu1 %vm16007_vm3, %v20285_v26 }
 0x33d   :  { %v13816_v5 = vpop.f32.mrb[32].mxu1 }
 0x33e   :  { %v1088_v1 = vadd.f32 1e-06, %v13816_v5  ;;  %v1079_v41 = vpop.f32.mrb[33].mxu1 }
 0x33f   :  { %v1080_v50 = vadd.f32 1e-06, %v1079_v41  ;;  %v13817_v48 = vpop.f32.mrb[34].mxu1 }
 0x340   :  { %15170 = vrsqrt.f32 %v1088_v1  ;;  %v1091_v45 = vadd.f32 1e-06, %v13817_v48  ;;  %v1082_v28 = vpop.f32.mrb[35].mxu1 }
 0x341   :  { %15172 = vrsqrt.f32 %v1080_v50  ;;  %v1083_v31 = vadd.f32 1e-06, %v1082_v28 }
 0x342   :  { %15174 = vrsqrt.f32 %v1091_v45 }
 0x343   :  { %15176 = vrsqrt.f32 %v1083_v31 }
 0x346   :  { %v13820_v61 = vpop.f32.mrb[36].mxu1 }
 0x347   :  { %v1104_v21 = vadd.f32 1e-06, %v13820_v61  ;;  %v1095_v55 = vpop.f32.mrb[37].mxu1 }
 0x348   :  { %v1096_v41 = vadd.f32 1e-06, %v1095_v55  ;;  %v13821_v48 = vpop.f32.mrb[38].mxu1 }
 0x349   :  { %15178 = vrsqrt.f32 %v1104_v21  ;;  %v1107_v28 = vadd.f32 1e-06, %v13821_v48  ;;  %v1098_v31 = vpop.f32.mrb[39].mxu1 }
 0x34a   :  { %v15171_v45 = vpop.eup %15170  ;;  %15180 = vrsqrt.f32 %v1096_v41  ;;  %v1099_v50 = vadd.f32 1e-06, %v1098_v31 }
 0x34b   :  { %v15173_v1 = vpop.eup %15172  ;;  %15182 = vrsqrt.f32 %v1107_v28  ;;  %v1240_v5 = vmul.f32 %v15171_v45, %v16472_v9 }
 0x34c   :  { %v15175_v39 = vpop.eup %15174  ;;  %15184 = vrsqrt.f32 %v1099_v50  ;;  %v1238_v4 = vmul.f32 %v15173_v1, %v16474_v10 }
 0x34d   :  { %v15177_v17 = vpop.eup %15176  ;;  %v1241_v61 = vmul.f32 %v15175_v39, %v16476_v12 }
 0x34e   :  { %v13824_v26 = vpop.f32.mrb[40].mxu1  ;;  %v1239_v55 = vmul.f32 %v15177_v17, %v16482_v20 }
 0x34f   :  { %v1120_v21 = vadd.f32 1e-06, %v13824_v26  ;;  %v1111_v48 = vpop.f32.mrb[41].mxu1  ;;  %v16690_v23 = vpack.c.bf16 %v1241_v61, %v1240_v5 }
 0x350   :  { %v1112_v41 = vadd.f32 1e-06, %v1111_v48  ;;  %v13825_v31 = vpop.f32.mrb[42].mxu1  ;;  %v16692_v14 = vpack.c.bf16 %v1239_v55, %v1238_v4 }
 0x351   :  { %15186 = vrsqrt.f32 %v1120_v21  ;;  %v1123_v9 = vadd.f32 1e-06, %v13825_v31  ;;  %1358 = vrot.lane.b32.xlu1 %v16690_v23, %s16008_s26  ;;  %v1114_v10 = vpop.f32.mrb[43].mxu1 }
 0x352   :  { %15188 = vrsqrt.f32 %v1112_v41  ;;  %v1115_v12 = vadd.f32 1e-06, %v1114_v10  ;;  %1307 = vrot.lane.b32.xlu0 %v16692_v14, %s16008_s26 }
 0x353   :  { %v15179_v26 = vpop.eup %15178  ;;  %15190 = vrsqrt.f32 %v1123_v9 }
 0x354   :  { %v15181_v20 = vpop.eup %15180  ;;  %15192 = vrsqrt.f32 %v1115_v12  ;;  %v1244_v28 = vmul.f32 %v15179_v26, %v16497_v35 }
 0x355   :  { %v15183_v45 = vpop.eup %15182  ;;  %v1242_v50 = vmul.f32 %v15181_v20, %v16500_v37 }
 0x356   :  { %v15185_v1 = vpop.eup %15184  ;;  %v13828_v5 = vpop.f32.mrb[44].mxu1  ;;  %v1245_v39 = vmul.f32 %v15183_v45, %v16502_v33 }
 0x357   :  { %v1136_v4 = vadd.f32 1e-06, %v13828_v5  ;;  %v1127_v17 = vpop.f32.mrb[45].mxu1  ;;  %v1243_v61 = vmul.f32 %v15185_v1, %v16508_v44 }
 0x358   :  { %v1128_v55 = vadd.f32 1e-06, %v1127_v17  ;;  %v13829_v21 = vpop.f32.mrb[46].mxu1  ;;  %v16702_v48 = vpack.c.bf16 %v1245_v39, %v1244_v28 }
 0x359   :  { %15194 = vrsqrt.f32 %v1136_v4  ;;  %v1139_v41 = vadd.f32 1e-06, %v13829_v21  ;;  %v1130_v31 = vpop.f32.mrb[47].mxu1  ;;  %v16704_v9 = vpack.c.bf16 %v1243_v61, %v1242_v50 }
 0x35a   :  { %15196 = vrsqrt.f32 %v1128_v55  ;;  %v1131_v35 = vadd.f32 1e-06, %v1130_v31 }
 0x35b   :  { %v15187_v37 = vpop.eup %15186  ;;  %15198 = vrsqrt.f32 %v1139_v41  ;;  %1408 = vrot.lane.b32.xlu1 %v16704_v9, %s16008_s26 }
 0x35c   :  { %v15189_v33 = vpop.eup %15188  ;;  %15200 = vrsqrt.f32 %v1131_v35  ;;  %v1248_v44 = vmul.f32 %v15187_v37, %v16522_v58 }
 0x35d   :  { %v15191_v10 = vpop.eup %15190  ;;  %v1246_v12 = vmul.f32 %v15189_v33, %v16525_v59 }
 0x35e   :  { %v15193_v26 = vpop.eup %15192  ;;  %v13832_v20 = vpop.f32.mrb[48].mxu1  ;;  %v1249_v28 = vmul.f32 %v15191_v10, %v16528_v60 }
 0x35f   :  { %v1152_v45 = vadd.f32 1e-06, %v13832_v20  ;;  %v1143_v50 = vpop.f32.mrb[49].mxu1  ;;  %1458 = vrot.lane.b32.xlu1 %v16702_v48, %s16008_s26  ;;  %v1247_v1 = vmul.f32 %v15193_v26, %v16534_v2 }
 0x360   :  { %v1144_v5 = vadd.f32 1e-06, %v1143_v50  ;;  %v13833_v39 = vpop.f32.mrb[50].mxu1  ;;  %v16714_v4 = vpack.c.bf16 %v1249_v28, %v1248_v44 }
 0x361   :  { %15202 = vrsqrt.f32 %v1152_v45  ;;  %v1155_v58 = vadd.f32 1e-06, %v13833_v39  ;;  %v1146_v17 = vpop.f32.mrb[51].mxu1  ;;  %v16716_v61 = vpack.c.bf16 %v1247_v1, %v1246_v12 }
 0x362   :  { %15204 = vrsqrt.f32 %v1144_v5  ;;  %v1147_v59 = vadd.f32 1e-06, %v1146_v17 }
 0x363   :  { %v15195_v55 = vpop.eup %15194  ;;  %15206 = vrsqrt.f32 %v1155_v58  ;;  %1558 = vrot.lane.b32.xlu1 %v16714_v4, %s16008_s26  ;;  %1508 = vrot.lane.b32.xlu0 %v16716_v61, %s16008_s26 }
 0x364   :  { %v15197_v60 = vpop.eup %15196  ;;  %15208 = vrsqrt.f32 %v1147_v59  ;;  %v1252_v2 = vmul.f32 %v15195_v55, %v16548_v32 }
 0x365   :  { %v15199_v21 = vpop.eup %15198  ;;  %v1250_v41 = vmul.f32 %v15197_v60, %v16551_v34 }
 0x366   :  { %v15201_v31 = vpop.eup %15200  ;;  %v13836_v35 = vpop.f32.mrb[52].mxu1  ;;  %v1253_v37 = vmul.f32 %v15199_v21, %v16554_v38 }
 0x367   :  { %v1168_v33 = vadd.f32 1e-06, %v13836_v35  ;;  %v1159_v44 = vpop.f32.mrb[53].mxu1  ;;  %v1251_v10 = vmul.f32 %v15201_v31, %v16560_v53 }
 0x368   :  { %v1160_v12 = vadd.f32 1e-06, %v1159_v44  ;;  %v13837_v26 = vpop.f32.mrb[54].mxu1  ;;  %v16726_v20 = vpack.c.bf16 %v1253_v37, %v1252_v2 }
 0x369   :  { %15210 = vrsqrt.f32 %v1168_v33  ;;  %v1171_v28 = vadd.f32 1e-06, %v13837_v26  ;;  %v1162_v45 = vpop.f32.mrb[55].mxu1  ;;  %v16728_v50 = vpack.c.bf16 %v1251_v10, %v1250_v41 }
 0x36a   :  { %15212 = vrsqrt.f32 %v1160_v12  ;;  %v1163_v32 = vadd.f32 1e-06, %v1162_v45  ;;  %1658 = vrot.lane.b32.xlu1 %v16726_v20, %s16008_s26 }
 0x36b   :  { %v15203_v34 = vpop.eup %15202  ;;  %15214 = vrsqrt.f32 %v1171_v28  ;;  %1608 = vrot.lane.b32.xlu0 %v16728_v50, %s16008_s26 }
 0x36c   :  { %v15205_v38 = vpop.eup %15204  ;;  %15216 = vrsqrt.f32 %v1163_v32  ;;  %v1256_v53 = vmul.f32 %v15203_v34, %v16574_v25 }
 0x36d   :  { %v15207_v1 = vpop.eup %15206  ;;  %v1254_v5 = vmul.f32 %v15205_v38, %v16577_v29 }
 0x36e   :  { %v15209_v39 = vpop.eup %15208  ;;  %v13840_v58 = vpop.f32.mrb[56].mxu1  ;;  %v1257_v17 = vmul.f32 %v15207_v1, %v16580_v0 }
 0x36f   :  { %v1184_v59 = vadd.f32 1e-06, %v13840_v58  ;;  %v1175_v55 = vpop.f32.mrb[57].mxu1  ;;  %v1255_v60 = vmul.f32 %v15209_v39, %v16586_v8 }
 0x370   :  { %v1176_v2 = vadd.f32 1e-06, %v1175_v55  ;;  %v13841_v21 = vpop.f32.mrb[58].mxu1  ;;  %v16738_v41 = vpack.c.bf16 %v1257_v17, %v1256_v53 }
 0x371   :  { %15218 = vrsqrt.f32 %v1184_v59  ;;  %v1187_v31 = vadd.f32 1e-06, %v13841_v21  ;;  %v1178_v35 = vpop.f32.mrb[59].mxu1  ;;  %v16740_v37 = vpack.c.bf16 %v1255_v60, %v1254_v5 }
 0x372   :  { %15220 = vrsqrt.f32 %v1176_v2  ;;  %v1179_v25 = vadd.f32 1e-06, %v1178_v35  ;;  %1758 = vrot.lane.b32.xlu1 %v16738_v41, %s16008_s26 }
 0x373   :  { %v15211_v29 = vpop.eup %15210  ;;  %15222 = vrsqrt.f32 %v1187_v31  ;;  %1708 = vrot.lane.b32.xlu0 %v16740_v37, %s16008_s26 }
 0x374   :  { %v15213_v0 = vpop.eup %15212  ;;  %15224 = vrsqrt.f32 %v1179_v25  ;;  %v1260_v8 = vmul.f32 %v15211_v29, %v16600_v36 }
 0x375   :  { %v15215_v33 = vpop.eup %15214  ;;  %v1258_v44 = vmul.f32 %v15213_v0, %v16603_v46 }
 0x376   :  { %v15217_v10 = vpop.eup %15216  ;;  %v13844_v12 = vpop.f32.mrb[60].mxu1  ;;  %v1261_v26 = vmul.f32 %v15215_v33, %v16606_v42 }
 0x377   :  { %v1200_v28 = vadd.f32 1e-06, %v13844_v12  ;;  %v1191_v45 = vpop.f32.mrb[61].mxu1  ;;  %v1259_v32 = vmul.f32 %v15217_v10, %v16612_v16 }
 0x378   :  { %v1192_v34 = vadd.f32 1e-06, %v1191_v45  ;;  %v13845_v38 = vpop.f32.mrb[62].mxu1  ;;  %v16750_v53 = vpack.c.bf16 %v1261_v26, %v1260_v8 }
 0x379   :  { %15226 = vrsqrt.f32 %v1200_v28  ;;  %v1203_v1 = vadd.f32 1e-06, %v13845_v38  ;;  %v1194_v5 = vpop.f32.mrb[63].mxu1  ;;  %v16752_v39 = vpack.c.bf16 %v1259_v32, %v1258_v44 }
 0x37a   :  { %15228 = vrsqrt.f32 %v1192_v34  ;;  %v1195_v36 = vadd.f32 1e-06, %v1194_v5  ;;  %1858 = vrot.lane.b32.xlu1 %v16750_v53, %s16008_s26 }
 0x37b   :  { %v15219_v46 = vpop.eup %15218  ;;  %15230 = vrsqrt.f32 %v1203_v1  ;;  %1808 = vrot.lane.b32.xlu0 %v16752_v39, %s16008_s26 }
 0x37c   :  { %v15221_v16 = vpop.eup %15220  ;;  %15232 = vrsqrt.f32 %v1195_v36  ;;  %v1264_v42 = vmul.f32 %v15219_v46, %v16626_v15 }
 0x37d   :  { %v15223_v58 = vpop.eup %15222  ;;  %v1262_v17 = vmul.f32 %v15221_v16, %v16629_v11 }
 0x37e   :  { %v15225_v59 = vpop.eup %15224  ;;  %v1265_v55 = vmul.f32 %v15223_v58, %v16632_v43 }
 0x37f   :  { %v1263_v60 = vmul.f32 %v15225_v59, %v16638_v47 }
 0x380   :  { %v16762_v2 = vpack.c.bf16 %v1265_v55, %v1264_v42 }
 0x381   :  { %v16764_v21 = vpack.c.bf16 %v1263_v60, %v1262_v17 }
 0x382   :  { %1958 = vrot.lane.b32.xlu1 %v16762_v2, %s16008_s26 }
 0x383   :  { %v15227_v31 = vpop.eup %15226  ;;  %1908 = vrot.lane.b32.xlu0 %v16764_v21, %s16008_s26 }
 0x384   :  { %v15229_v15 = vpop.eup %15228  ;;  %v1268_v35 = vmul.f32 %v15227_v31, %v16652_v18 }
 0x385   :  { %v15231_v11 = vpop.eup %15230  ;;  %v1266_v25 = vmul.f32 %v15229_v15, %v16655_v27 }
 0x386   :  { %v15233_v43 = vpop.eup %15232  ;;  %v1269_v47 = vmul.f32 %v15231_v11, %v16658_v24  ;;  %v20450_v24 = vmov 0.0  }
 0x387   :  { %v1267_v29 = vmul.f32 %v15233_v43, %v16664_v6 }
 0x388   :  { %v16774_v0 = vpack.c.bf16 %v1269_v47, %v1268_v35 }
 0x389   :  { %v16776_v8 = vpack.c.bf16 %v1267_v29, %v1266_v25 }
 0x38a   :  { %20449 = vst [vmem:[#allocation48_spill] sm:$0xff] %v16774_v0  ;;  %2058 = vrot.lane.b32.xlu1 %v16774_v0, %s16008_s26 }
 0x38b   :  { %2008 = vrot.lane.b32.xlu0 %v16776_v8, %s16008_s26 }
 0x38e   :  { %2428 = vrot.lane.b32.xlu1 %v16486_v22, %s16009_s27 }
 0x38f   :  { %2380 = vrot.lane.b32.xlu0 %v16494_v30, %s16009_s27 }
 0x392   :  { %2524 = vrot.lane.b32.xlu1 %v16512_v49, %s16009_s27 }
 0x393   :  { %2476 = vrot.lane.b32.xlu0 %v16520_v54, %s16009_s27 }
 0x396   :  { %2620 = vrot.lane.b32.xlu1 %v16538_v3, %s16009_s27 }
 0x397   :  { %2572 = vrot.lane.b32.xlu0 %v16546_v19, %s16009_s27 }
 0x39a   :  { %2716 = vrot.lane.b32.xlu1 %v16564_v56, %s16009_s27 }
 0x39b   :  { %2668 = vrot.lane.b32.xlu0 %v16572_v63, %s16009_s27 }
 0x39e   :  { %2812 = vrot.lane.b32.xlu1 %v16590_v40, %s16009_s27 }
 0x39f   :  { %2764 = vrot.lane.b32.xlu0 %v16598_v62, %s16009_s27 }
 0x3a2   :  { %2860 = vrot.lane.b32.xlu1 %v16624_v57, %s16009_s27 }
 0x3a3   :  { %2956 = vrot.lane.b32.xlu0 %v16650_v51, %s16009_s27 }
 0x3a6   :  { %2908 = vrot.lane.b32.xlu1 %v16616_v13, %s16009_s27 }
 0x3aa   :  { %3004 = vrot.lane.b32.xlu1 %v16642_v7, %s16009_s27 }
 0x3c3   :  { %v1359_v27 = vpop.permute.xlu1 %1358 }
 0x3c4   :  { %v1308_v6 = vpop.permute.xlu0 %1307  ;;  %v1364_v33 = vsel %vm1309_vm4, %v1359_v27, 0 }
 0x3c5   :  { %v1314_v18 = vsel %vm1309_vm4, %v1308_v6, 0 }
 0x3c6   :  { %13847 = vmatpush3.bf16.xpose.msra.mxu0 %v1314_v18 }
 0x3c7   :  { %13852 = vmatprep.subr.bf16.mxu0 %v20450_v24 }
 0x3cd   :  { %13849 = vmatmul.mubr.msk.bf16.vlgmr.msra.gmra.mrb[32].mxu0 %vm1309_vm4, %v16692_v14  ;;  %v1409_v44 = vpop.permute.xlu1 %1408 }
 0x3ce   :  { %13853 = vmatpush3.bf16.xpose.msra.mxu0 %v1364_v33  ;;  %13854 = vmatprep.mubr.msk.bf16.mxu0 %vm16007_vm3, %v20450_v24  ;;  %v1414_v10 = vsel %vm1309_vm4, %v1409_v44, 0 }
 0x3cf   :  { %13858 = vmatprep.subr.bf16.mxu0 %v20450_v24 }
 0x3d1   :  { %v1459_v12 = vpop.permute.xlu1 %1458 }
 0x3d2   :  { %v1464_v26 = vsel %vm1309_vm4, %v1459_v12, 0 }
 0x3d5   :  { %13855 = vmatmul.mubr.msk.bf16.vlgmr.msra.gmra.mrb[36].mxu0 %vm1309_vm4, %v16690_v23  ;;  %v1509_v28 = vpop.permute.xlu0 %1508  ;;  %v1559_v1 = vpop.permute.xlu1 %1558 }
 0x3d6   :  { %13859 = vmatpush3.bf16.xpose.msra.mxu0 %v1414_v10  ;;  %13860 = vmatprep.mubr.msk.bf16.mxu0 %vm16007_vm3, %v20450_v24  ;;  %v1514_v32 = vsel %vm1309_vm4, %v1509_v28, 0  ;;  %v1564_v5 = vsel %vm1309_vm4, %v1559_v1, 0 }
 0x3d7   :  { %13864 = vmatprep.subr.bf16.mxu0 %v20450_v24 }
 0x3dc   :  { %v1659_v17 = vpop.permute.xlu1 %1658 }
 0x3dd   :  { %13861 = vmatmul.mubr.msk.bf16.vlgmr.msra.gmra.mrb[40].mxu0 %vm1309_vm4, %v16704_v9  ;;  %v1609_v45 = vpop.permute.xlu0 %1608  ;;  %v1664_v59 = vsel %vm1309_vm4, %v1659_v17, 0 }
 0x3de   :  { %13865 = vmatpush3.bf16.xpose.msra.mxu0 %v1464_v26  ;;  %13866 = vmatprep.mubr.msk.bf16.mxu0 %vm16007_vm3, %v20450_v24  ;;  %v1614_v16 = vsel %vm1309_vm4, %v1609_v45, 0 }
 0x3df   :  { %13870 = vmatprep.subr.bf16.mxu0 %v20450_v24 }
 0x3e4   :  { %v1759_v31 = vpop.permute.xlu1 %1758 }
 0x3e5   :  { %13867 = vmatmul.mubr.msk.bf16.vlgmr.msra.gmra.mrb[44].mxu0 %vm1309_vm4, %v16702_v48  ;;  %v1709_v34 = vpop.permute.xlu0 %1708  ;;  %v1764_v15 = vsel %vm1309_vm4, %v1759_v31, 0 }
 0x3e6   :  { %v1714_v38 = vsel %vm1309_vm4, %v1709_v34, 0  ;;  %13871 = vmatpush3.bf16.xpose.msra.mxu0 %v1514_v32  ;;  %13872 = vmatprep.mubr.msk.bf16.mxu0 %vm16007_vm3, %v20450_v24 }
 0x3e7   :  { %13895 = vmatpush3.bf16.xpose.msra.mxu1 %v1714_v38  ;;  %13876 = vmatprep.subr.bf16.mxu0 %v20450_v24 }
 0x3e8   :  { %13906 = vmatprep.subr.bf16.mxu1 %v20450_v24 }
 0x3ec   :  { %v1859_v11 = vpop.permute.xlu1 %1858 }
 0x3ed   :  { %13873 = vmatmul.mubr.msk.bf16.vlgmr.msra.gmra.mrb[48].mxu0 %vm1309_vm4, %v16716_v61  ;;  %v1809_v36 = vpop.permute.xlu0 %1808  ;;  %v1864_v25 = vsel %vm1309_vm4, %v1859_v11, 0 }
 0x3ee   :  { %v1814_v46 = vsel %vm1309_vm4, %v1809_v36, 0  ;;  %13877 = vmatpush3.bf16.xpose.msra.mxu0 %v1564_v5  ;;  %13897 = vmatmul.mubr.msk.bf16.vlgmr.msra.gmra.mrb[64].mxu1 %vm1309_vm4, %v16740_v37 }
 0x3ef   :  { %13907 = vmatpush3.bf16.xpose.msra.mxu1 %v1814_v46  ;;  %13878 = vmatprep.mubr.msk.bf16.mxu0 %vm16007_vm3, %v20450_v24 }
 0x3f0   :  { %13882 = vmatprep.subr.bf16.mxu0 %v20450_v24  ;;  %13908 = vmatprep.mubr.msk.bf16.mxu1 %vm16007_vm3, %v20450_v24 }
 0x3f1   :  { %13918 = vmatprep.subr.bf16.mxu1 %v20450_v24 }
 0x3f4   :  { %v1959_v43 = vpop.permute.xlu1 %1958 }
 0x3f5   :  { %13879 = vmatmul.mubr.msk.bf16.vlgmr.msra.gmra.mrb[52].mxu0 %vm1309_vm4, %v16714_v4  ;;  %v1909_v42 = vpop.permute.xlu0 %1908  ;;  %v1964_v47 = vsel %vm1309_vm4, %v1959_v43, 0 }
 0x3f6   :  { %v1914_v58 = vsel %vm1309_vm4, %v1909_v42, 0  ;;  %13883 = vmatpush3.bf16.xpose.msra.mxu0 %v1614_v16  ;;  %13909 = vmatmul.mubr.msk.bf16.vlgmr.msra.gmra.mrb[68].mxu1 %vm1309_vm4, %v16752_v39 }
 0x3f7   :  { %13919 = vmatpush3.bf16.xpose.msra.mxu1 %v1914_v58  ;;  %13884 = vmatprep.mubr.msk.bf16.mxu0 %vm16007_vm3, %v20450_v24 }
 0x3f8   :  { %13888 = vmatprep.subr.bf16.mxu0 %v20450_v24  ;;  %13920 = vmatprep.mubr.msk.bf16.mxu1 %vm16007_vm3, %v20450_v24 }
 0x3f9   :  { %13930 = vmatprep.subr.bf16.mxu1 %v20450_v24 }
 0x3fc   :  { %v2059_v29 = vpop.permute.xlu1 %2058 }
 0x3fd   :  { %13885 = vmatmul.mubr.msk.bf16.vlgmr.msra.gmra.mrb[56].mxu0 %vm1309_vm4, %v16728_v50  ;;  %v2009_v55 = vpop.permute.xlu0 %2008  ;;  %v2064_v6 = vsel %vm1309_vm4, %v2059_v29, 0 }
 0x3fe   :  { %v2014_v60 = vsel %vm1309_vm4, %v2009_v55, 0  ;;  %13889 = vmatpush3.bf16.xpose.msra.mxu0 %v1664_v59  ;;  %13921 = vmatmul.mubr.msk.bf16.vlgmr.msra.gmra.mrb[72].mxu1 %vm1309_vm4, %v16764_v21 }
 0x3ff   :  { %13931 = vmatpush3.bf16.xpose.msra.mxu1 %v2014_v60  ;;  %13890 = vmatprep.mubr.msk.bf16.mxu0 %vm16007_vm3, %v20450_v24 }
 0x400   :  { %13900 = vmatprep.subr.bf16.mxu0 %v20450_v24  ;;  %13932 = vmatprep.mubr.msk.bf16.mxu1 %vm16007_vm3, %v20450_v24  ;;  %v2429_v18 = vpop.permute.xlu1 %2428 }
 0x401   :  { %13942 = vmatprep.subr.bf16.mxu1 %v20450_v24  ;;  %v2381_v35 = vpop.permute.xlu0 %2380 }
 0x405   :  { %13891 = vmatmul.mubr.msk.bf16.vlgmr.msra.gmra.mrb[60].mxu0 %vm1309_vm4, %v16726_v20 }
 0x406   :  { %13901 = vmatpush3.bf16.xpose.msra.mxu0 %v1764_v15  ;;  %13933 = vmatmul.mubr.msk.bf16.vlgmr.msra.gmra.mrb[76].mxu1 %vm1309_vm4, %v16776_v8 }
 0x407   :  { %13943 = vmatpush3.bf16.msra.mxu1 %v2381_v35  ;;  %13902 = vmatprep.mubr.msk.bf16.mxu0 %vm16007_vm3, %v20450_v24 }
 0x408   :  { %13912 = vmatprep.subr.bf16.mxu0 %v20450_v24  ;;  %13944 = vmatprep.mubr.msk.bf16.mxu1 %vm16007_vm3, %v20450_v24 }
 0x409   :  { %13954 = vmatprep.subr.bf16.mxu1 %v20450_v24 }
 0x40d   :  { %13903 = vmatmul.mubr.msk.bf16.vlgmr.msra.gmra.mrb[64].mxu0 %vm1309_vm4, %v16738_v41 }
 0x40e   :  { %13913 = vmatpush3.bf16.xpose.msra.mxu0 %v1864_v25  ;;  %13914 = vmatprep.mubr.msk.bf16.mxu0 %vm16007_vm3, %v20450_v24 }
 0x40f   :  { %13924 = vmatprep.subr.bf16.mxu0 %v20450_v24 }
 0x415   :  { %13915 = vmatmul.mubr.msk.bf16.vlgmr.msra.gmra.mrb[68].mxu0 %vm1309_vm4, %v16750_v53 }
 0x416   :  { %13925 = vmatpush3.bf16.xpose.msra.mxu0 %v1964_v47  ;;  %13926 = vmatprep.mubr.msk.bf16.mxu0 %vm16007_vm3, %v20450_v24 }
 0x417   :  { %13936 = vmatprep.subr.bf16.mxu0 %v20450_v24 }
 0x41d   :  { %13927 = vmatmul.mubr.msk.bf16.vlgmr.msra.gmra.mrb[72].mxu0 %vm1309_vm4, %v16762_v2 }
 0x41e   :  { %13937 = vmatpush3.bf16.xpose.msra.mxu0 %v2064_v6  ;;  %13938 = vmatprep.mubr.msk.bf16.mxu0 %vm16007_vm3, %v20450_v24 }
 0x41f   :  { %13948 = vmatprep.subr.bf16.mxu0 %v20450_v24 }
 0x425   :  { %13939 = vmatmul.mubr.msk.bf16.vlgmr.msra.gmra.mrb[76].mxu0 %vm1309_vm4, %v16774_v0 }
 0x426   :  { %13949 = vmatpush3.bf16.msra.mxu0 %v2429_v18  ;;  %13950 = vmatprep.mubr.msk.bf16.mxu0 %vm16007_vm3, %v20450_v24 }
 0x427   :  { %13960 = vmatprep.subr.bf16.mxu0 %v20450_v24 }
 0x4a0   :  { %v1350_v27 = vpop.f32.mrb[32].mxu0 }
 0x4a1   :  { %v2107_v33 = vmul.f32 0.25, %v1350_v27  ;;  %v13850_v44 = vpop.f32.mrb[33].mxu0 }
 0x4a2   :  { %v1353_v10 = vpop.f32.mrb[34].mxu0 }
 0x4a3   :  { %v2139_v12 = vmul.f32 1.442695, %v2107_v33  ;;  %v2108_v26 = vmul.f32 0.25, %v1353_v10  ;;  %v13851_v28 = vpop.f32.mrb[35].mxu0 }
 0x4a5   :  { %15234 = vpow2.f32 %v2139_v12  ;;  %v2141_v45 = vmul.f32 1.442695, %v2108_v26 }
 0x4a7   :  { %15236 = vpow2.f32 %v2141_v45 }
 0x4a8   :  { %v1400_v32 = vpop.f32.mrb[36].mxu0 }
 0x4a9   :  { %v2109_v34 = vmul.f32 0.25, %v1400_v32  ;;  %v13856_v38 = vpop.f32.mrb[37].mxu0 }
 0x4aa   :  { %v1403_v1 = vpop.f32.mrb[38].mxu0 }
 0x4ab   :  { %v2143_v5 = vmul.f32 1.442695, %v2109_v34  ;;  %v2110_v36 = vmul.f32 0.25, %v1403_v1  ;;  %v13857_v46 = vpop.f32.mrb[39].mxu0 }
 0x4ad   :  { %15238 = vpow2.f32 %v2143_v5  ;;  %v2145_v16 = vmul.f32 1.442695, %v2110_v36 }
 0x4af   :  { %v16908_v42 = vpop.eup %15234  ;;  %15240 = vpow2.f32 %v2145_v16 }
 0x4b0   :  { %v1450_v58 = vpop.f32.mrb[40].mxu0  ;;  %v2203_v17 = vsel %vm1309_vm4, %v16908_v42, 0.0 }
 0x4b1   :  { %v16912_v59 = vpop.eup %15236  ;;  %v2111_v55 = vmul.f32 0.25, %v1450_v58  ;;  %v13862_v60 = vpop.f32.mrb[41].mxu0  ;;  %2204 = vadd.xlane.f32.xlu0 %v2203_v17 }
 0x4b2   :  { %v1453_v31 = vpop.f32.mrb[42].mxu0  ;;  %v2206_v15 = vsel %vm1309_vm4, %v16912_v59, 0.0 }
 0x4b3   :  { %v2147_v35 = vmul.f32 1.442695, %v2111_v55  ;;  %v2112_v11 = vmul.f32 0.25, %v1453_v31  ;;  %v13863_v25 = vpop.f32.mrb[43].mxu0  ;;  %2207 = vadd.xlane.f32.xlu1 %v2206_v15 }
 0x4b5   :  { %15242 = vpow2.f32 %v2147_v35  ;;  %v2149_v43 = vmul.f32 1.442695, %v2112_v11 }
 0x4b7   :  { %v16916_v47 = vpop.eup %15238  ;;  %15244 = vpow2.f32 %v2149_v43 }
 0x4b8   :  { %v1500_v29 = vpop.f32.mrb[44].mxu0  ;;  %v2209_v6 = vsel %vm1309_vm4, %v16916_v47, 0.0 }
 0x4b9   :  { %v16920_v18 = vpop.eup %15240  ;;  %v2113_v27 = vmul.f32 0.25, %v1500_v29  ;;  %v13868_v33 = vpop.f32.mrb[45].mxu0  ;;  %2210 = vadd.xlane.f32.xlu0 %v2209_v6 }
 0x4ba   :  { %v1503_v44 = vpop.f32.mrb[46].mxu0  ;;  %v2212_v28 = vsel %vm1309_vm4, %v16920_v18, 0.0 }
 0x4bb   :  { %v2151_v10 = vmul.f32 1.442695, %v2113_v27  ;;  %v2114_v12 = vmul.f32 0.25, %v1503_v44  ;;  %v13869_v26 = vpop.f32.mrb[47].mxu0 }
 0x4bd   :  { %15246 = vpow2.f32 %v2151_v10  ;;  %v2153_v45 = vmul.f32 1.442695, %v2114_v12  ;;  %2213 = vadd.xlane.f32.xlu0 %v2212_v28 }
 0x4bf   :  { %v16924_v32 = vpop.eup %15242  ;;  %15248 = vpow2.f32 %v2153_v45 }
 0x4c0   :  { %v1550_v34 = vpop.f32.mrb[48].mxu0  ;;  %v2215_v38 = vsel %vm1309_vm4, %v16924_v32, 0.0 }
 0x4c1   :  { %v16928_v1 = vpop.eup %15244  ;;  %v2115_v5 = vmul.f32 0.25, %v1550_v34  ;;  %v13874_v36 = vpop.f32.mrb[49].mxu0  ;;  %2216 = vadd.xlane.f32.xlu0 %v2215_v38 }
 0x4c2   :  { %v1750_v46 = vpop.f32.mrb[64].mxu1  ;;  %v1553_v58 = vpop.f32.mrb[50].mxu0  ;;  %v2218_v55 = vsel %vm1309_vm4, %v16928_v1, 0.0 }
 0x4c3   :  { %v2123_v16 = vmul.f32 0.25, %v1750_v46  ;;  %v13898_v17 = vpop.f32.mrb[65].mxu1  ;;  %v2155_v60 = vmul.f32 1.442695, %v2115_v5  ;;  %v2116_v31 = vmul.f32 0.25, %v1553_v58  ;;  %v13875_v15 = vpop.f32.mrb[51].mxu0  ;;  %2219 = vadd.xlane.f32.xlu1 %v2218_v55 }
 0x4c4   :  { %v1753_v35 = vpop.f32.mrb[66].mxu1 }
 0x4c5   :  { %v2171_v11 = vmul.f32 1.442695, %v2123_v16  ;;  %v2124_v25 = vmul.f32 0.25, %v1753_v35  ;;  %v13899_v43 = vpop.f32.mrb[67].mxu1  ;;  %15250 = vpow2.f32 %v2155_v60  ;;  %v2157_v29 = vmul.f32 1.442695, %v2116_v31 }
 0x4c7   :  { %15252 = vpow2.f32 %v2171_v11  ;;  %v2173_v6 = vmul.f32 1.442695, %v2124_v25  ;;  %v16932_v27 = vpop.eup %15246 }
 0x4c8   :  { %15254 = vpow2.f32 %v2157_v29  ;;  %v1600_v33 = vpop.f32.mrb[52].mxu0  ;;  %v2221_v44 = vsel %vm1309_vm4, %v16932_v27, 0.0 }
 0x4c9   :  { %15256 = vpow2.f32 %v2173_v6  ;;  %v16936_v10 = vpop.eup %15248  ;;  %v2117_v12 = vmul.f32 0.25, %v1600_v33  ;;  %v13880_v26 = vpop.f32.mrb[53].mxu0  ;;  %2222 = vadd.xlane.f32.xlu0 %v2221_v44 }
 0x4ca   :  { %v1850_v28 = vpop.f32.mrb[68].mxu1  ;;  %v1603_v34 = vpop.f32.mrb[54].mxu0  ;;  %v2224_v5 = vsel %vm1309_vm4, %v16936_v10, 0.0 }
 0x4cb   :  { %v2127_v45 = vmul.f32 0.25, %v1850_v28  ;;  %v13910_v38 = vpop.f32.mrb[69].mxu1  ;;  %v2159_v36 = vmul.f32 1.442695, %v2117_v12  ;;  %v2118_v46 = vmul.f32 0.25, %v1603_v34  ;;  %v13881_v16 = vpop.f32.mrb[55].mxu0  ;;  %2225 = vadd.xlane.f32.xlu1 %v2224_v5 }
 0x4cc   :  { %v1853_v58 = vpop.f32.mrb[70].mxu1 }
 0x4cd   :  { %v2179_v17 = vmul.f32 1.442695, %v2127_v45  ;;  %v2128_v55 = vmul.f32 0.25, %v1853_v58  ;;  %v13911_v60 = vpop.f32.mrb[71].mxu1  ;;  %15258 = vpow2.f32 %v2159_v36  ;;  %v2161_v31 = vmul.f32 1.442695, %v2118_v46 }
 0x4cf   :  { %15260 = vpow2.f32 %v2179_v17  ;;  %v2181_v15 = vmul.f32 1.442695, %v2128_v55  ;;  %v16940_v35 = vpop.eup %15250 }
 0x4d0   :  { %15262 = vpow2.f32 %v2161_v31  ;;  %v1650_v25 = vpop.f32.mrb[56].mxu0  ;;  %v2227_v43 = vsel %vm1309_vm4, %v16940_v35, 0.0 }
 0x4d1   :  { %v16942_v11 = vpop.eup %15252  ;;  %15264 = vpow2.f32 %v2181_v15  ;;  %v2119_v6 = vmul.f32 0.25, %v1650_v25  ;;  %v13886_v33 = vpop.f32.mrb[57].mxu0  ;;  %2228 = vadd.xlane.f32.xlu0 %v2227_v43 }
 0x4d2   :  { %v16946_v29 = vpop.eup %15254  ;;  %v1950_v44 = vpop.f32.mrb[72].mxu1  ;;  %v2251_v12 = vsel %vm1309_vm4, %v16942_v11, 0.0 }
 0x4d3   :  { %v16950_v26 = vpop.eup %15256  ;;  %v2131_v28 = vmul.f32 0.25, %v1950_v44  ;;  %v1653_v45 = vpop.f32.mrb[58].mxu0  ;;  %2252 = vadd.xlane.f32.xlu1 %v2251_v12  ;;  %v2163_v38 = vmul.f32 1.442695, %v2119_v6  ;;  %v2230_v31 = vsel %vm1309_vm4, %v16946_v29, 0.0 }
 0x4d4   :  { %v13922_v34 = vpop.f32.mrb[73].mxu1  ;;  %v2120_v5 = vmul.f32 0.25, %v1653_v45  ;;  %v13887_v36 = vpop.f32.mrb[59].mxu0  ;;  %v2254_v16 = vsel %vm1309_vm4, %v16950_v26, 0.0 }
 0x4d5   :  { %v1953_v46 = vpop.f32.mrb[74].mxu1  ;;  %v2187_v58 = vmul.f32 1.442695, %v2131_v28  ;;  %15266 = vpow2.f32 %v2163_v38  ;;  %2255 = vadd.xlane.f32.xlu0 %v2254_v16 }
 0x4d6   :  { %v2132_v17 = vmul.f32 0.25, %v1953_v46  ;;  %v13923_v55 = vpop.f32.mrb[75].mxu1  ;;  %v2165_v60 = vmul.f32 1.442695, %v2120_v5 }
 0x4d7   :  { %15268 = vpow2.f32 %v2187_v58  ;;  %2231 = vadd.xlane.f32.xlu1 %v2230_v31  ;;  %v16956_v25 = vpop.eup %15258 }
 0x4d8   :  { %v2189_v15 = vmul.f32 1.442695, %v2132_v17  ;;  %15270 = vpow2.f32 %v2165_v60  ;;  %v1700_v6 = vpop.f32.mrb[60].mxu0  ;;  %v2233_v33 = vsel %vm1309_vm4, %v16956_v25, 0.0 }
 0x4d9   :  { %v16958_v43 = vpop.eup %15260  ;;  %v2121_v12 = vmul.f32 0.25, %v1700_v6  ;;  %v13892_v28 = vpop.f32.mrb[61].mxu0  ;;  %2234 = vadd.xlane.f32.xlu0 %v2233_v33 }
 0x4da   :  { %15272 = vpow2.f32 %v2189_v15  ;;  %v16962_v44 = vpop.eup %15262  ;;  %v2050_v45 = vpop.f32.mrb[76].mxu1  ;;  %v2263_v34 = vsel %vm1309_vm4, %v16958_v43, 0.0 }
 0x4db   :  { %v16966_v38 = vpop.eup %15264  ;;  %v2135_v5 = vmul.f32 0.25, %v2050_v45  ;;  %v1703_v36 = vpop.f32.mrb[62].mxu0  ;;  %2264 = vadd.xlane.f32.xlu1 %v2263_v34  ;;  %v2167_v16 = vmul.f32 1.442695, %v2121_v12  ;;  %v2236_v28 = vsel %vm1309_vm4, %v16962_v44, 0.0 }
 0x4dc   :  { %v13934_v46 = vpop.f32.mrb[77].mxu1  ;;  %v2122_v58 = vmul.f32 0.25, %v1703_v36  ;;  %v13893_v17 = vpop.f32.mrb[63].mxu0  ;;  %v2266_v60 = vsel %vm1309_vm4, %v16966_v38, 0.0 }
 0x4dd   :  { %v2053_v55 = vpop.f32.mrb[78].mxu1  ;;  %v2195_v31 = vmul.f32 1.442695, %v2135_v5  ;;  %15274 = vpow2.f32 %v2167_v16  ;;  %2267 = vadd.xlane.f32.xlu0 %v2266_v60 }
 0x4de   :  { %v2136_v15 = vmul.f32 0.25, %v2053_v55  ;;  %v13935_v6 = vpop.f32.mrb[79].mxu1  ;;  %v2169_v33 = vmul.f32 1.442695, %v2122_v58 }
 0x4df   :  { %15276 = vpow2.f32 %v2195_v31  ;;  %2237 = vadd.xlane.f32.xlu1 %v2236_v28  ;;  %v16972_v34 = vpop.eup %15266 }
 0x4e0   :  { %v2197_v45 = vmul.f32 1.442695, %v2136_v15  ;;  %15278 = vpow2.f32 %v2169_v33  ;;  %v1800_v36 = vpop.f32.mrb[64].mxu0  ;;  %v2239_v5 = vsel %vm1309_vm4, %v16972_v34, 0.0 }
 0x4e1   :  { %v16974_v12 = vpop.eup %15268  ;;  %v2125_v16 = vmul.f32 0.25, %v1800_v36  ;;  %v13904_v58 = vpop.f32.mrb[65].mxu0  ;;  %2240 = vadd.xlane.f32.xlu0 %v2239_v5 }
 0x4e2   :  { %20451 = vst [vmem:[#allocation49_spill] sm:$0xff] %v16974_v12  ;;  %15280 = vpow2.f32 %v2197_v45  ;;  %v16978_v46 = vpop.eup %15270  ;;  %v2275_v17 = vsel %vm1309_vm4, %v16974_v12, 0.0  ;;  %v1803_v60 = vpop.f32.mrb[66].mxu0 }
 0x4e3   :  { %2276 = vadd.xlane.f32.xlu1 %v2275_v17  ;;  %v2175_v31 = vmul.f32 1.442695, %v2125_v16  ;;  %v2126_v15 = vmul.f32 0.25, %v1803_v60  ;;  %v13905_v6 = vpop.f32.mrb[67].mxu0  ;;  %v2242_v45 = vsel %vm1309_vm4, %v16978_v46, 0.0 }
 0x4e4   :  { %v16982_v55 = vpop.eup %15272 }
 0x4e5   :  { %v2278_v33 = vsel %vm1309_vm4, %v16982_v55, 0.0  ;;  %15282 = vpow2.f32 %v2175_v31  ;;  %v2177_v28 = vmul.f32 1.442695, %v2126_v15 }
 0x4e6   :  { %2279 = vadd.xlane.f32.xlu0 %v2278_v33 }
 0x4e7   :  { %2243 = vadd.xlane.f32.xlu1 %v2242_v45  ;;  %v16988_v36 = vpop.eup %15274  ;;  %15284 = vpow2.f32 %v2177_v28 }
 0x4e8   :  { %v1900_v58 = vpop.f32.mrb[68].mxu0  ;;  %v2245_v16 = vsel %vm1309_vm4, %v16988_v36, 0.0 }
 0x4e9   :  { %v16990_v5 = vpop.eup %15276  ;;  %v2129_v60 = vmul.f32 0.25, %v1900_v58  ;;  %v13916_v6 = vpop.f32.mrb[69].mxu0 }
 0x4ea   :  { %20452 = vst [vmem:[#allocation50_spill] sm:$0xff] %v16990_v5  ;;  %v16994_v17 = vpop.eup %15278  ;;  %2246 = vadd.xlane.f32.xlu0 %v2245_v16  ;;  %v2287_v31 = vsel %vm1309_vm4, %v16990_v5, 0.0  ;;  %v1903_v33 = vpop.f32.mrb[70].mxu0 }
 0x4eb   :  { %2288 = vadd.xlane.f32.xlu1 %v2287_v31  ;;  %v2183_v45 = vmul.f32 1.442695, %v2129_v60  ;;  %v2130_v28 = vmul.f32 0.25, %v1903_v33  ;;  %v13917_v7 = vpop.f32.mrb[71].mxu0  ;;  %v2248_v58 = vsel %vm1309_vm4, %v16994_v17, 0.0 }
 0x4ec   :  { %v16998_v15 = vpop.eup %15280 }
 0x4ed   :  { %20453 = vst [vmem:[#allocation51_spill] sm:$0xff] %v16998_v15  ;;  %v2290_v13 = vsel %vm1309_vm4, %v16998_v15, 0.0  ;;  %15286 = vpow2.f32 %v2183_v45  ;;  %v2185_v57 = vmul.f32 1.442695, %v2130_v28 }
 0x4ee   :  { %2291 = vadd.xlane.f32.xlu0 %v2290_v13 }
 0x4ef   :  { %2249 = vadd.xlane.f32.xlu1 %v2248_v58  ;;  %v17004_v16 = vpop.eup %15282  ;;  %15288 = vpow2.f32 %v2185_v57 }
 0x4f0   :  { %v2000_v6 = vpop.f32.mrb[72].mxu0  ;;  %v2257_v31 = vsel %vm1309_vm4, %v17004_v16, 0.0 }
 0x4f1   :  { %v17008_v60 = vpop.eup %15284  ;;  %v2133_v7 = vmul.f32 0.25, %v2000_v6  ;;  %v13928_v33 = vpop.f32.mrb[73].mxu0 }
 0x4f2   :  { %2258 = vadd.xlane.f32.xlu0 %v2257_v31  ;;  %v2003_v40 = vpop.f32.mrb[74].mxu0  ;;  %v2260_v13 = vsel %vm1309_vm4, %v17008_v60, 0.0 }
 0x4f3   :  { %v2191_v45 = vmul.f32 1.442695, %v2133_v7  ;;  %v13929_v28 = vpop.f32.mrb[75].mxu0  ;;  %2261 = vadd.xlane.f32.xlu1 %v2260_v13 }
 0x4f5   :  { %15290 = vpow2.f32 %v2191_v45  ;;  %v20456_v45 = vld [vmem:[#allocation47_spill] sm:$0xff] }
 0x4f7   :  { %v17012_v58 = vpop.eup %15286 }
 0x4f8   :  { %20454 = vst [vmem:[#allocation52_spill] sm:$0xff] %v17012_v58  ;;  %v2100_v57 = vpop.f32.mrb[76].mxu0  ;;  %v2269_v56 = vsel %vm1309_vm4, %v17012_v58, 0.0 }
 0x4f9   :  { %v17016_v3 = vpop.eup %15288  ;;  %v13940_v49 = vpop.f32.mrb[77].mxu0  ;;  %2270 = vadd.xlane.f32.xlu0 %v2269_v56  ;;  %v2134_v56 = vmul.f32 0.25, %v2003_v40 }
 0x4fa   :  { %v2103_v6 = vpop.f32.mrb[78].mxu0  ;;  %v2272_v31 = vsel %vm1309_vm4, %v17016_v3, 0.0  ;;  %v17028_v49 = vpop.permute.xlu1 %2524 }
 0x4fb   :  { %v13941_v33 = vpop.f32.mrb[79].mxu0  ;;  %2273 = vadd.xlane.f32.xlu1 %v2272_v31  ;;  %v2193_v22 = vmul.f32 1.442695, %v2134_v56  ;;  %v2477_v31 = vpop.permute.xlu0 %2476 }
 0x4fc   :  { %v2137_v33 = vmul.f32 0.25, %v2100_v57 }
 0x4fd   :  { %15292 = vpow2.f32 %v2193_v22 }
 0x4fe   :  { %v17030_v28 = vpop.permute.xlu1 %2620  ;;  %v2199_v51 = vmul.f32 1.442695, %v2137_v33 }
 0x4ff   :  { %v17020_v7 = vpop.eup %15290 }
 0x500   :  { %20455 = vst [vmem:[#allocation53_spill] sm:$0xff] %v17020_v7  ;;  %v2281_v13 = vsel %vm1309_vm4, %v17020_v7, 0.0  ;;  %v17034_v7 = vpop.permute.xlu0 %2572  ;;  %15294 = vpow2.f32 %v2199_v51 }
 0x501   :  { %2282 = vadd.xlane.f32.xlu0 %v2281_v13 }
 0x502   :  { %v17032_v0 = vpop.permute.xlu1 %2716 }
 0x506   :  { %v17036_v13 = vpop.permute.xlu1 %2812 }
 0x50a   :  { %v17044_v5 = vpop.permute.xlu1 %2860 }
 0x50c   :  { %3100 = vrot.lane.b32.xlu1 %v16668_v52, %s16009_s27  ;;  %v17038_v52 = vpop.eup %15292 }
 0x50d   :  { %20457 = vst [vmem:[#allocation54_spill] sm:$0xff] %v17038_v52  ;;  %v2284_v40 = vsel %vm1309_vm4, %v17038_v52, 0.0  ;;  %v17046_v57 = vpop.eup %15294 }
 0x50e   :  { %20458 = vst [vmem:[#allocation55_spill] sm:$0xff] %v17046_v57  ;;  %v2293_v56 = vsel %vm1309_vm4, %v17046_v57, 0.0  ;;  %v17052_v51 = vpop.permute.xlu1 %2908 }
 0x512   :  { %v17056_v62 = vpop.permute.xlu1 %3004 }
 0x513   :  { %20459 = vst [vmem:[#allocation56_spill] sm:$0xff] %v17056_v62 }
 0x517   :  { %3052 = vrot.lane.b32.xlu0 %v20456_v45, %s16009_s27  ;;  %v17040_v45 = vpop.permute.xlu0 %2668 }
 0x51b   :  { %v17048_v22 = vpop.permute.xlu0 %2764 }
 0x51f   :  { %v17054_v33 = vpop.permute.xlu0 %2956 }
 0x530   :  { %2285 = vadd.xlane.f32.xlu1 %v2284_v40 }
 0x536   :  { %2294 = vadd.xlane.f32.xlu0 %v2293_v56 }
 0x53e   :  { %v2205_v15 = vpop.xlane.xlu0 %2204 }
 0x53f   :  { %15296 = vrcp.f32 %v2205_v15  ;;  %v2138_v15 = vmul.f32 0.25, %v2103_v6 }
 0x540   :  { %v2208_v52 = vpop.xlane.xlu1 %2207 }
 0x541   :  { %15298 = vrcp.f32 %v2208_v52  ;;  %3216 = vrot.lane.b32.xlu1 %v16690_v23, %s16010_s28 }
 0x546   :  { %v2211_v40 = vpop.xlane.xlu0 %2210 }
 0x547   :  { %15300 = vrcp.f32 %v2211_v40 }
 0x549   :  { %v15297_v63 = vpop.eup %15296 }
 0x54a   :  { %v2214_v58 = vpop.xlane.xlu0 %2213  ;;  %v2331_v56 = vmul.f32 %v15297_v63, %v16908_v42  ;;  %v2201_v63 = vmul.f32 1.442695, %v2138_v15 }
 0x54b   :  { %v15299_v57 = vpop.eup %15298  ;;  %15302 = vrcp.f32 %v2214_v58 }
 0x54c   :  { %v2332_v12 = vmul.f32 %v15299_v57, %v16912_v59  ;;  %3165 = vrot.lane.b32.xlu0 %v16692_v14, %s16010_s28 }
 0x54e   :  { %v2217_v62 = vpop.xlane.xlu0 %2216  ;;  %v2363_v52 = vpack.c.bf16 %v2332_v12, %v2331_v56 }
 0x54f   :  { %15304 = vrcp.f32 %v2217_v62 }
 0x550   :  { %v2220_v19 = vpop.xlane.xlu1 %2219  ;;  %3163 = vrot.lane.b32.xlu0 %v16692_v14, %s16011_s29  ;;  %13945 = vmatmul.mubr.msk.bf16.vlgmr.msra.gmra.mrb[80].mxu1 %vm1309_vm4, %v2363_v52 }
 0x551   :  { %15306 = vrcp.f32 %v2220_v19  ;;  %13955 = vmatpush3.bf16.msra.mxu1 %v2477_v31  ;;  %13956 = vmatprep.mubr.msk.bf16.mxu1 %vm16007_vm3, %v20450_v24  ;;  %v15301_v42 = vpop.eup %15300 }
 0x552   :  { %13966 = vmatprep.subr.bf16.mxu1 %v20450_v24  ;;  %15308 = vpow2.f32 %v2201_v63  ;;  %v2333_v59 = vmul.f32 %v15301_v42, %v16916_v47 }
 0x554   :  { %3214 = vrot.lane.b32.xlu0 %v16690_v23, %s16011_s29 }
 0x555   :  { %v15303_v62 = vpop.eup %15302 }
 0x556   :  { %v2334_v14 = vmul.f32 %v15303_v62, %v16920_v18  ;;  %v2223_v12 = vpop.xlane.xlu0 %2222 }
 0x557   :  { %15310 = vrcp.f32 %v2223_v12 }
 0x558   :  { %v2226_v19 = vpop.xlane.xlu1 %2225  ;;  %3265 = vrot.lane.b32.xlu0 %v16704_v9, %s16011_s29  ;;  %v2364_v58 = vpack.c.bf16 %v2334_v14, %v2333_v59 }
 0x559   :  { %v15305_v6 = vpop.eup %15304  ;;  %15312 = vrcp.f32 %v2226_v19 }
 0x55a   :  { %13951 = vmatmul.mubr.msk.bf16.vlgmr.msra.gmra.mrb[80].mxu0 %vm1309_vm4, %v2364_v58  ;;  %v2335_v23 = vmul.f32 %v15305_v6, %v16924_v32 }
 0x55b   :  { %v15307_v31 = vpop.eup %15306  ;;  %13961 = vmatpush3.bf16.msra.mxu0 %v17028_v49  ;;  %13962 = vmatprep.mubr.msk.bf16.mxu0 %vm16007_vm3, %v20450_v24 }
 0x55c   :  { %v2336_v47 = vmul.f32 %v15307_v31, %v16928_v1  ;;  %3316 = vrot.lane.b32.xlu0 %v16702_v48, %s16011_s29  ;;  %13972 = vmatprep.subr.bf16.mxu0 %v20450_v24  ;;  %v17085_v56 = vpop.eup %15308 }
 0x55e   :  { %v2229_v18 = vpop.xlane.xlu0 %2228  ;;  %v2365_v57 = vpack.c.bf16 %v2336_v47, %v2335_v23 }
 0x55f   :  { %15314 = vrcp.f32 %v2229_v18 }
 0x560   :  { %v2253_v40 = vpop.xlane.xlu1 %2252  ;;  %3367 = vrot.lane.b32.xlu0 %v16716_v61, %s16011_s29  ;;  %13957 = vmatmul.mubr.msk.bf16.vlgmr.msra.gmra.mrb[84].mxu1 %vm1309_vm4, %v2365_v57 }
 0x561   :  { %v15311_v49 = vpop.eup %15310  ;;  %13967 = vmatpush3.bf16.msra.mxu1 %v17034_v7  ;;  %13968 = vmatprep.mubr.msk.bf16.mxu1 %vm16007_vm3, %v20450_v24  ;;  %v2296_v7 = vsel %vm1309_vm4, %v17085_v56, 0.0 }
 0x562   :  { %v2256_v32 = vpop.xlane.xlu0 %2255  ;;  %13978 = vmatprep.subr.bf16.mxu1 %v20450_v24  ;;  %v2337_v52 = vmul.f32 %v15311_v49, %v16932_v27 }
 0x563   :  { %v15313_v1 = vpop.eup %15312 }
 0x564   :  { %v2232_v15 = vpop.xlane.xlu1 %2231  ;;  %v2338_v63 = vmul.f32 %v15313_v1, %v16936_v10  ;;  %3418 = vrot.lane.b32.xlu0 %v16714_v4, %s16011_s29 }
 0x565   :  { %15316 = vrcp.f32 %v2232_v15  ;;  %2297 = vadd.xlane.f32.xlu1 %v2296_v7 }
 0x566   :  { %v2235_v42 = vpop.xlane.xlu0 %2234  ;;  %v2366_v62 = vpack.c.bf16 %v2338_v63, %v2337_v52 }
 0x567   :  { %15318 = vrcp.f32 %v2235_v42 }
 0x568   :  { %v2265_v59 = vpop.xlane.xlu1 %2264  ;;  %3469 = vrot.lane.b32.xlu0 %v16728_v50, %s16011_s29  ;;  %13963 = vmatmul.mubr.msk.bf16.vlgmr.msra.gmra.mrb[84].mxu0 %vm1309_vm4, %v2366_v62 }
 0x569   :  { %13973 = vmatpush3.bf16.msra.mxu0 %v17030_v28  ;;  %13974 = vmatprep.mubr.msk.bf16.mxu0 %vm16007_vm3, %v20450_v24  ;;  %v15315_v14 = vpop.eup %15314 }
 0x56a   :  { %v2268_v27 = vpop.xlane.xlu0 %2267  ;;  %13984 = vmatprep.subr.bf16.mxu0 %v20450_v24  ;;  %v2339_v58 = vmul.f32 %v15315_v14, %v16940_v35 }
 0x56c   :  { %v2238_v10 = vpop.xlane.xlu1 %2237  ;;  %3520 = vrot.lane.b32.xlu0 %v16726_v20, %s16011_s29 }
 0x56d   :  { %15320 = vrcp.f32 %v2238_v10 }
 0x56e   :  { %v2241_v19 = vpop.xlane.xlu0 %2240 }
 0x56f   :  { %v15317_v12 = vpop.eup %15316  ;;  %15322 = vrcp.f32 %v2241_v19  ;;  %v20460_v19 = vld [vmem:[#allocation37_spill] sm:$0xff] }
 0x570   :  { %v2340_v6 = vmul.f32 %v15317_v12, %v16946_v29  ;;  %v2277_v28 = vpop.xlane.xlu1 %2276  ;;  %3571 = vrot.lane.b32.xlu0 %v16740_v37, %s16011_s29 }
 0x571   :  { %v15319_v18 = vpop.eup %15318 }
 0x572   :  { %v2367_v31 = vpack.c.bf16 %v2340_v6, %v2339_v58  ;;  %v2341_v57 = vmul.f32 %v15319_v18, %v16956_v25 }
 0x573   :  { %v2280_v23 = vpop.xlane.xlu0 %2279 }
 0x574   :  { %v2244_v47 = vpop.xlane.xlu1 %2243  ;;  %13969 = vmatmul.mubr.msk.bf16.vlgmr.msra.gmra.mrb[88].mxu1 %vm1309_vm4, %v2367_v31  ;;  %3622 = vrot.lane.b32.xlu0 %v16738_v41, %s16011_s29 }
 0x575   :  { %15324 = vrcp.f32 %v2244_v47  ;;  %13979 = vmatpush3.bf16.msra.mxu1 %v17040_v45  ;;  %13980 = vmatprep.mubr.msk.bf16.mxu1 %vm16007_vm3, %v20450_v24  ;;  %v20465_v47 = vld [vmem:[#allocation51_spill] sm:$0xff] }
 0x576   :  { %13990 = vmatprep.subr.bf16.mxu1 %v20450_v24  ;;  %3267 = vrot.lane.b32.xlu1 %v16704_v9, %s16010_s28  ;;  %15326 = vrcp.f32 %v2256_v32 }
 0x577   :  { %v15321_v35 = vpop.eup %15320  ;;  %v2247_v29 = vpop.xlane.xlu0 %2246  ;;  %15328 = vrcp.f32 %v2253_v40 }
 0x578   :  { %v2342_v49 = vmul.f32 %v15321_v35, %v16962_v44  ;;  %v17124_v1 = vpop.xlane.xlu1 %2288  ;;  %3673 = vrot.lane.b32.xlu0 %v16752_v39, %s16011_s29  ;;  %15330 = vrcp.f32 %v2247_v29  ;;  %v20466_v35 = vld [vmem:[#allocation41_spill] sm:$0xff] }
 0x579   :  { %v15323_v25 = vpop.eup %15322 }
 0x57a   :  { %v2368_v45 = vpack.c.bf16 %v2342_v49, %v2341_v57  ;;  %3318 = vrot.lane.b32.xlu1 %v16702_v48, %s16010_s28  ;;  %v2343_v48 = vmul.f32 %v15323_v25, %v16972_v34  ;;  %v20468_v57 = vld [vmem:[#allocation45_spill] sm:$0xff]  ;;  %v20474_v25 = vld [vmem:[#allocation40_spill] sm:$0xff] }
 0x57b   :  { %v17130_v15 = vpop.xlane.xlu0 %2291 }
 0x57c   :  { %v2250_v9 = vpop.xlane.xlu1 %2249  ;;  %13975 = vmatmul.mubr.msk.bf16.vlgmr.msra.gmra.mrb[88].mxu0 %vm1309_vm4, %v2368_v45  ;;  %3724 = vrot.lane.b32.xlu0 %v16750_v53, %s16011_s29  ;;  %v20471_v45 = vld [vmem:[#allocation35_spill] sm:$0xff] }
 0x57d   :  { %15332 = vrcp.f32 %v2250_v9  ;;  %13985 = vmatpush3.bf16.msra.mxu0 %v17032_v0  ;;  %13986 = vmatprep.mubr.msk.bf16.mxu0 %vm16007_vm3, %v20450_v24 }
 0x57e   :  { %13996 = vmatprep.subr.bf16.mxu0 %v20450_v24  ;;  %3369 = vrot.lane.b32.xlu1 %v16716_v61, %s16010_s28  ;;  %15334 = vrcp.f32 %v2265_v59 }
 0x57f   :  { %v15325_v44 = vpop.eup %15324  ;;  %v2259_v32 = vpop.xlane.xlu0 %2258  ;;  %15336 = vrcp.f32 %v2268_v27 }
 0x580   :  { %v2344_v40 = vmul.f32 %v15325_v44, %v16978_v46  ;;  %v2262_v0 = vpop.xlane.xlu1 %2261  ;;  %3775 = vrot.lane.b32.xlu0 %v16764_v21, %s16011_s29  ;;  %v15327_v63 = vpop.eup %15326 }
 0x581   :  { %15338 = vrcp.f32 %v2262_v0  ;;  %v15329_v7 = vpop.eup %15328  ;;  %v2348_v34 = vmul.f32 %v15327_v63, %v16950_v26  ;;  %v20476_v63 = vld [vmem:[#allocation53_spill] sm:$0xff] }
 0x582   :  { %v2369_v52 = vpack.c.bf16 %v2344_v40, %v2343_v48  ;;  %15340 = vrcp.f32 %v2259_v32  ;;  %3420 = vrot.lane.b32.xlu1 %v16714_v4, %s16010_s28  ;;  %v15331_v61 = vpop.eup %15330  ;;  %v2347_v4 = vmul.f32 %v15329_v7, %v16942_v11  ;;  %v20475_v40 = vld [vmem:[#allocation43_spill] sm:$0xff] }
 0x583   :  { %15342 = vrcp.f32 %v2277_v28  ;;  %v2345_v42 = vmul.f32 %v15331_v61, %v16988_v36  ;;  %v20477_v61 = vld [vmem:[#allocation54_spill] sm:$0xff] }
 0x584   :  { %13981 = vmatmul.mubr.msk.bf16.vlgmr.msra.gmra.mrb[92].mxu1 %vm1309_vm4, %v2369_v52  ;;  %3826 = vrot.lane.b32.xlu0 %v16762_v2, %s16011_s29  ;;  %15344 = vrcp.f32 %v2280_v23  ;;  %v2371_v10 = vpack.c.bf16 %v2348_v34, %v2347_v4  ;;  %v20464_v23 = vld [vmem:[#allocation56_spill] sm:$0xff] }
 0x585   :  { %13991 = vmatpush3.bf16.msra.mxu1 %v17048_v22  ;;  %13992 = vmatprep.mubr.msk.bf16.mxu1 %vm16007_vm3, %v20450_v24 }
 0x586   :  { %14002 = vmatprep.subr.bf16.mxu1 %v20450_v24  ;;  %3471 = vrot.lane.b32.xlu1 %v16728_v50, %s16010_s28  ;;  %v2271_v62 = vpop.xlane.xlu0 %2270 }
 0x587   :  { %v15333_v46 = vpop.eup %15332 }
 0x588   :  { %v2346_v22 = vmul.f32 %v15333_v46, %v16994_v17  ;;  %v2274_v59 = vpop.xlane.xlu1 %2273  ;;  %3877 = vrot.lane.b32.xlu0 %v16776_v8, %s16011_s29  ;;  %v15335_v26 = vpop.eup %15334  ;;  %v20478_v46 = vld [vmem:[#allocation42_spill] sm:$0xff] }
 0x589   :  { %15346 = vrcp.f32 %v2274_v59  ;;  %v15337_v14 = vpop.eup %15336 }
 0x58a   :  { %v2370_v27 = vpack.c.bf16 %v2346_v22, %v2345_v42  ;;  %15348 = vrcp.f32 %v2271_v62  ;;  %3522 = vrot.lane.b32.xlu1 %v16726_v20, %s16010_s28  ;;  %v2352_v36 = vmul.f32 %v15337_v14, %v16966_v38  ;;  %v2351_v20 = vmul.f32 %v15335_v26, %v16958_v43  ;;  %v20479_v42 = vld [vmem:[#allocation44_spill] sm:$0xff] }
 0x58b   :  { %v15339_v50 = vpop.eup %15338  ;;  %15350 = vrcp.f32 %v17130_v15  ;;  %v20472_v15 = vld [vmem:[#allocation36_spill] sm:$0xff] }
 0x58c   :  { %13987 = vmatmul.mubr.msk.bf16.vlgmr.msra.gmra.mrb[92].mxu0 %vm1309_vm4, %v2370_v27  ;;  %13993 = vmatmul.mubr.msk.bf16.vlgmr.msra.gmra.mrb[96].mxu1 %vm1309_vm4, %v2371_v10  ;;  %v15341_v11 = vpop.eup %15340  ;;  %v2350_v17 = vmul.f32 %v15339_v50, %v17008_v60  ;;  %v2373_v60 = vpack.c.bf16 %v2352_v36, %v2351_v20  ;;  %15352 = vrcp.f32 %v17124_v1  ;;  %v20470_v1 = vld [vmem:[#allocation34_spill] sm:$0xff] }
 0x58d   :  { %13997 = vmatpush3.bf16.msra.mxu0 %v17036_v13  ;;  %14003 = vmatpush3.bf16.msra.mxu1 %v17044_v5  ;;  %v2349_v5 = vmul.f32 %v15341_v11, %v17004_v16 }
 0x58e   :  { %4251 = vrot.lane.b32.xlu0 %v16494_v30, %s16012_s30  ;;  %13998 = vmatprep.mubr.msk.bf16.mxu0 %vm16007_vm3, %v20450_v24  ;;  %v15343_v30 = vpop.eup %15342  ;;  %v2283_v12 = vpop.xlane.xlu0 %2282 }
 0x58f   :  { %3573 = vrot.lane.b32.xlu1 %v16740_v37, %s16010_s28  ;;  %14004 = vmatprep.mubr.msk.bf16.mxu1 %vm16007_vm3, %v20450_v24  ;;  %v2372_v38 = vpack.c.bf16 %v2350_v17, %v2349_v5  ;;  %v15345_v37 = vpop.eup %15344  ;;  %15354 = vrcp.f32 %v2283_v12 }
 0x590   :  { %14008 = vmatprep.subr.bf16.mxu0 %v20450_v24  ;;  %14014 = vmatprep.subr.bf16.mxu1 %v20450_v24 }
 0x592   :  { %4345 = vrot.lane.b32.xlu0 %v16520_v54, %s16012_s30  ;;  %v2356_v54 = vmul.f32 %v15345_v37, %v16982_v55 }
 0x593   :  { %3624 = vrot.lane.b32.xlu1 %v16738_v41, %s16010_s28  ;;  %v15347_v43 = vpop.eup %15346  ;;  %v20461_v41 = vld [vmem:[#allocation49_spill] sm:$0xff] }
 0x594   :  { %13999 = vmatmul.mubr.msk.bf16.vlgmr.msra.gmra.mrb[96].mxu0 %vm1309_vm4, %v2372_v38  ;;  %14005 = vmatmul.mubr.msk.bf16.vlgmr.msra.gmra.mrb[100].mxu1 %vm1309_vm4, %v2373_v60  ;;  %v15349_v16 = vpop.eup %15348  ;;  %v2354_v13 = vmul.f32 %v15347_v43, %v17016_v3  ;;  %v20463_v3 = vld [vmem:[#allocation39_spill] sm:$0xff] }
 0x595   :  { %14009 = vmatpush3.bf16.msra.mxu0 %v17052_v51  ;;  %14015 = vmatpush3.bf16.msra.mxu1 %v17054_v33  ;;  %v2355_v51 = vmul.f32 %v15343_v30, %v20461_v41  ;;  %v20462_v33 = vld [vmem:[#allocation52_spill] sm:$0xff]  ;;  %v15351_v28 = vpop.eup %15350  ;;  %v20480_v38 = vld [vmem:[#allocation55_spill] sm:$0xff] }
 0x596   :  { %4439 = vrot.lane.b32.xlu0 %v20460_v19, %s16012_s30  ;;  %14010 = vmatprep.mubr.msk.bf16.mxu0 %vm16007_vm3, %v20450_v24  ;;  %v2353_v58 = vmul.f32 %v15349_v16, %v20462_v33  ;;  %v15353_v31 = vpop.eup %15352  ;;  %v2360_v18 = vmul.f32 %v15351_v28, %v20465_v47 }
 0x597   :  { %3675 = vrot.lane.b32.xlu1 %v16752_v39, %s16010_s28  ;;  %14016 = vmatprep.mubr.msk.bf16.mxu1 %vm16007_vm3, %v20450_v24  ;;  %v2375_v6 = vpack.c.bf16 %v2356_v54, %v2355_v51  ;;  %v3053_v39 = vpop.permute.xlu0 %3052 }
 0x598   :  { %14020 = vmatprep.subr.bf16.mxu0 %v20450_v24  ;;  %14026 = vmatprep.subr.bf16.mxu1 %v20450_v24  ;;  %v2374_v55 = vpack.c.bf16 %v2354_v13, %v2353_v58 }
 0x599   :  { %v15355_v48 = vpop.eup %15354 }
 0x59a   :  { %4533 = vrot.lane.b32.xlu0 %v20463_v3, %s16012_s30  ;;  %v2357_v7 = vmul.f32 %v15355_v48, %v20476_v63 }
 0x59b   :  { %3726 = vrot.lane.b32.xlu1 %v16750_v53, %s16010_s28  ;;  %v20467_v53 = vld [vmem:[#allocation50_spill] sm:$0xff] }
 0x59c   :  { %14011 = vmatmul.mubr.msk.bf16.vlgmr.msra.gmra.mrb[100].mxu0 %vm1309_vm4, %v2374_v55  ;;  %14017 = vmatmul.mubr.msk.bf16.vlgmr.msra.gmra.mrb[104].mxu1 %vm1309_vm4, %v2375_v6  ;;  %v2359_v29 = vmul.f32 %v15353_v31, %v20467_v53 }
 0x59d   :  { %14021 = vmatpush3.bf16.msra.mxu0 %v20464_v23  ;;  %14027 = vmatpush3.bf16.msra.mxu1 %v3053_v39 }
 0x59e   :  { %4627 = vrot.lane.b32.xlu0 %v20466_v35, %s16012_s30  ;;  %14028 = vmatprep.mubr.msk.bf16.mxu1 %vm16007_vm3, %v20450_v24  ;;  %v2377_v49 = vpack.c.bf16 %v2360_v18, %v2359_v29 }
 0x59f   :  { %3777 = vrot.lane.b32.xlu1 %v16764_v21, %s16010_s28  ;;  %14038 = vmatprep.subr.bf16.mxu1 %v20450_v24  ;;  %v20469_v21 = vld [vmem:[#allocation48_spill] sm:$0xff] }
 0x5a0   :  { %14022 = vmatprep.mubr.msk.bf16.mxu0 %vm16007_vm3, %v20450_v24  ;;  %14032 = vmatprep.subr.bf16.mxu0 %v20450_v24 }
 0x5a2   :  { %4815 = vrot.lane.b32.xlu0 %v20468_v57, %s16012_s30 }
 0x5a3   :  { %3828 = vrot.lane.b32.xlu1 %v16762_v2, %s16010_s28  ;;  %v3101_v2 = vpop.permute.xlu1 %3100 }
 0x5a4   :  { %14029 = vmatmul.mubr.msk.bf16.vlgmr.msra.gmra.mrb[108].mxu1 %vm1309_vm4, %v2377_v49 }
 0x5a5   :  { %14040 = vmatprep.mubr.msk.bf16.mxu1 %vm16007_vm3, %v20450_v24 }
 0x5a7   :  { %3879 = vrot.lane.b32.xlu1 %v16776_v8, %s16010_s28  ;;  %v20473_v8 = vld [vmem:[#allocation38_spill] sm:$0xff] }
 0x5ab   :  { %3930 = vrot.lane.b32.xlu1 %v20469_v21, %s16010_s28 }
 0x5af   :  { %3928 = vrot.lane.b32.xlu1 %v20469_v21, %s16011_s29 }
 0x5b3   :  { %4298 = vrot.lane.b32.xlu1 %v20470_v1, %s16012_s30 }
 0x5b7   :  { %4392 = vrot.lane.b32.xlu1 %v20471_v45, %s16012_s30 }
 0x5bb   :  { %4486 = vrot.lane.b32.xlu1 %v20472_v15, %s16012_s30 }
 0x5bd   :  { %v2286_v9 = vpop.xlane.xlu1 %2285 }
 0x5be   :  { %15356 = vrcp.f32 %v2286_v9 }
 0x5bf   :  { %4580 = vrot.lane.b32.xlu1 %v20473_v8, %s16012_s30 }
 0x5c1   :  { %v3217_v10 = vpop.permute.xlu1 %3216 }
 0x5c2   :  { %v3222_v12 = vsel %vm1309_vm4, %v3217_v10, 0 }
 0x5c3   :  { %4674 = vrot.lane.b32.xlu1 %v20474_v25, %s16012_s30  ;;  %v2295_v44 = vpop.xlane.xlu0 %2294 }
 0x5c4   :  { %15358 = vrcp.f32 %v2295_v44 }
 0x5c7   :  { %4721 = vrot.lane.b32.xlu1 %v20475_v40, %s16012_s30  ;;  %v3166_v32 = vpop.permute.xlu0 %3165 }
 0x5c8   :  { %v15357_v0 = vpop.eup %15356  ;;  %v3171_v52 = vsel %vm1309_vm4, %v3166_v32, 0 }
 0x5c9   :  { %v2358_v34 = vmul.f32 %v15357_v0, %v20477_v61  ;;  %14039 = vmatpush3.bf16.xpose.msra.mxu1 %v3171_v52 }
 0x5ca   :  { %14050 = vmatprep.subr.bf16.mxu1 %v20450_v24 }
 0x5cb   :  { %4768 = vrot.lane.b32.xlu1 %v20478_v46, %s16012_s30  ;;  %v2376_v4 = vpack.c.bf16 %v2358_v34, %v2357_v7  ;;  %v3164_v22 = vpop.permute.xlu0 %3163 }
 0x5cd   :  { %14023 = vmatmul.mubr.msk.bf16.vlgmr.msra.gmra.mrb[104].mxu0 %vm1309_vm4, %v2376_v4 }
 0x5ce   :  { %14033 = vmatpush3.bf16.msra.mxu0 %v3101_v2  ;;  %14034 = vmatprep.mubr.msk.bf16.mxu0 %vm16007_vm3, %v20450_v24  ;;  %v15359_v5 = vpop.eup %15358 }
 0x5cf   :  { %4862 = vrot.lane.b32.xlu1 %v20479_v42, %s16012_s30  ;;  %14044 = vmatprep.subr.bf16.mxu0 %v20450_v24  ;;  %v3215_v62 = vpop.permute.xlu0 %3214  ;;  %v2361_v60 = vmul.f32 %v15359_v5, %v20480_v38 }
 0x5d0   :  { %14041 = vmatmul.mubr.msk.bf16.vlgmr.msra.gmra.mrb[112].mxu1 %vm1309_vm4, %v3164_v22 }
 0x5d1   :  { %14052 = vmatprep.mubr.msk.bf16.mxu1 %vm16007_vm3, %v20450_v24 }
 0x5d3   :  { %v3266_v59 = vpop.permute.xlu0 %3265 }
 0x5d7   :  { %v3317_v26 = vpop.permute.xlu0 %3316 }
 0x5db   :  { %v3368_v27 = vpop.permute.xlu0 %3367 }
 0x5df   :  { %v3419_v50 = vpop.permute.xlu0 %3418 }
 0x5e3   :  { %v3470_v17 = vpop.permute.xlu0 %3469 }
 0x5e7   :  { %v3521_v16 = vpop.permute.xlu0 %3520 }
 0x5f2   :  { %v2298_v14 = vpop.xlane.xlu1 %2297 }
 0x5f3   :  { %15360 = vrcp.f32 %v2298_v14 }
 0x5f6   :  { %v3268_v11 = vpop.permute.xlu1 %3267 }
 0x5f7   :  { %v3273_v36 = vsel %vm1309_vm4, %v3268_v11, 0 }
 0x5f8   :  { %14051 = vmatpush3.bf16.xpose.msra.mxu1 %v3273_v36 }
 0x5f9   :  { %14062 = vmatprep.subr.bf16.mxu1 %v20450_v24 }
 0x5fa   :  { %v3319_v20 = vpop.permute.xlu1 %3318 }
 0x5fb   :  { %v3324_v33 = vsel %vm1309_vm4, %v3319_v20, 0 }
 0x5fd   :  { %v15361_v30 = vpop.eup %15360 }
 0x5fe   :  { %v2362_v37 = vmul.f32 %v15361_v30, %v17085_v56  ;;  %v3370_v43 = vpop.permute.xlu1 %3369  ;;  %v3572_v56 = vpop.permute.xlu0 %3571 }
 0x5ff   :  { %v3375_v54 = vsel %vm1309_vm4, %v3370_v43, 0  ;;  %14053 = vmatmul.mubr.msk.bf16.vlgmr.msra.gmra.mrb[116].mxu1 %vm1309_vm4, %v3266_v59 }
 0x600   :  { %14063 = vmatpush3.bf16.xpose.msra.mxu1 %v3375_v54  ;;  %v2378_v13 = vpack.c.bf16 %v2362_v37, %v2361_v60  ;;  %14064 = vmatprep.mubr.msk.bf16.mxu1 %vm16007_vm3, %v20450_v24 }
 0x601   :  { %14074 = vmatprep.subr.bf16.mxu1 %v20450_v24 }
 0x602   :  { %v3421_v19 = vpop.permute.xlu1 %3420  ;;  %14035 = vmatmul.mubr.msk.bf16.vlgmr.msra.gmra.mrb[108].mxu0 %vm1309_vm4, %v2378_v13  ;;  %v3623_v3 = vpop.permute.xlu0 %3622 }
 0x603   :  { %14045 = vmatpush3.bf16.xpose.msra.mxu0 %v3222_v12  ;;  %14046 = vmatprep.mubr.msk.bf16.mxu0 %vm16007_vm3, %v20450_v24  ;;  %v3426_v39 = vsel %vm1309_vm4, %v3421_v19, 0 }
 0x604   :  { %14056 = vmatprep.subr.bf16.mxu0 %v20450_v24 }
 0x606   :  { %v3472_v41 = vpop.permute.xlu1 %3471  ;;  %v3674_v28 = vpop.permute.xlu0 %3673 }
 0x607   :  { %v3477_v51 = vsel %vm1309_vm4, %v3472_v41, 0  ;;  %14065 = vmatmul.mubr.msk.bf16.vlgmr.msra.gmra.mrb[120].mxu1 %vm1309_vm4, %v3368_v27 }
 0x608   :  { %14075 = vmatpush3.bf16.xpose.msra.mxu1 %v3477_v51  ;;  %14076 = vmatprep.mubr.msk.bf16.mxu1 %vm16007_vm3, %v20450_v24 }
 0x609   :  { %14086 = vmatprep.subr.bf16.mxu1 %v20450_v24 }
 0x60a   :  { %v3523_v58 = vpop.permute.xlu1 %3522  ;;  %14047 = vmatmul.mubr.msk.bf16.vlgmr.msra.gmra.mrb[112].mxu0 %vm1309_vm4, %v3215_v62  ;;  %v3725_v47 = vpop.permute.xlu0 %3724 }
 0x60b   :  { %14057 = vmatpush3.bf16.xpose.msra.mxu0 %v3324_v33  ;;  %14058 = vmatprep.mubr.msk.bf16.mxu0 %vm16007_vm3, %v20450_v24  ;;  %v3528_v35 = vsel %vm1309_vm4, %v3523_v58, 0 }
 0x60c   :  { %14068 = vmatprep.subr.bf16.mxu0 %v20450_v24 }
 0x60e   :  { %v3574_v55 = vpop.permute.xlu1 %3573  ;;  %v3776_v29 = vpop.permute.xlu0 %3775 }
 0x60f   :  { %v3579_v6 = vsel %vm1309_vm4, %v3574_v55, 0  ;;  %14077 = vmatmul.mubr.msk.bf16.vlgmr.msra.gmra.mrb[124].mxu1 %vm1309_vm4, %v3470_v17 }
 0x610   :  { %14087 = vmatpush3.bf16.xpose.msra.mxu1 %v3579_v6  ;;  %14088 = vmatprep.mubr.msk.bf16.mxu1 %vm16007_vm3, %v20450_v24 }
 0x611   :  { %14098 = vmatprep.subr.bf16.mxu1 %v20450_v24 }
 0x612   :  { %v3625_v31 = vpop.permute.xlu1 %3624  ;;  %14059 = vmatmul.mubr.msk.bf16.vlgmr.msra.gmra.mrb[116].mxu0 %vm1309_vm4, %v3317_v26  ;;  %v3827_v45 = vpop.permute.xlu0 %3826 }
 0x613   :  { %14069 = vmatpush3.bf16.xpose.msra.mxu0 %v3426_v39  ;;  %14070 = vmatprep.mubr.msk.bf16.mxu0 %vm16007_vm3, %v20450_v24  ;;  %v3630_v21 = vsel %vm1309_vm4, %v3625_v31, 0 }
 0x614   :  { %14080 = vmatprep.subr.bf16.mxu0 %v20450_v24 }
 0x616   :  { %v3676_v23 = vpop.permute.xlu1 %3675  ;;  %v3878_v40 = vpop.permute.xlu0 %3877 }
 0x617   :  { %v3681_v18 = vsel %vm1309_vm4, %v3676_v23, 0  ;;  %14089 = vmatmul.mubr.msk.bf16.vlgmr.msra.gmra.mrb[128].mxu1 %vm1309_vm4, %v3572_v56 }
 0x618   :  { %14099 = vmatpush3.bf16.xpose.msra.mxu1 %v3681_v18  ;;  %14100 = vmatprep.mubr.msk.bf16.mxu1 %vm16007_vm3, %v20450_v24 }
 0x619   :  { %14110 = vmatprep.subr.bf16.mxu1 %v20450_v24 }
 0x61a   :  { %v3727_v53 = vpop.permute.xlu1 %3726  ;;  %14071 = vmatmul.mubr.msk.bf16.vlgmr.msra.gmra.mrb[120].mxu0 %vm1309_vm4, %v3419_v50  ;;  %v4252_v63 = vpop.permute.xlu0 %4251 }
 0x61b   :  { %14081 = vmatpush3.bf16.xpose.msra.mxu0 %v3528_v35  ;;  %14082 = vmatprep.mubr.msk.bf16.mxu0 %vm16007_vm3, %v20450_v24  ;;  %v3732_v32 = vsel %vm1309_vm4, %v3727_v53, 0 }
 0x61c   :  { %14092 = vmatprep.subr.bf16.mxu0 %v20450_v24 }
 0x61e   :  { %v3778_v57 = vpop.permute.xlu1 %3777 }
 0x61f   :  { %v3783_v49 = vsel %vm1309_vm4, %v3778_v57, 0  ;;  %14101 = vmatmul.mubr.msk.bf16.vlgmr.msra.gmra.mrb[132].mxu1 %vm1309_vm4, %v3674_v28 }
 0x620   :  { %14111 = vmatpush3.bf16.xpose.msra.mxu1 %v3783_v49  ;;  %14112 = vmatprep.mubr.msk.bf16.mxu1 %vm16007_vm3, %v20450_v24 }
 0x621   :  { %14122 = vmatprep.subr.bf16.mxu1 %v20450_v24 }
 0x622   :  { %v3829_v1 = vpop.permute.xlu1 %3828  ;;  %14083 = vmatmul.mubr.msk.bf16.vlgmr.msra.gmra.mrb[124].mxu0 %vm1309_vm4, %v3521_v16 }
 0x623   :  { %14093 = vmatpush3.bf16.xpose.msra.mxu0 %v3630_v21  ;;  %v17316_v2 = vpop.f32.mrb[80].mxu1  ;;  %14094 = vmatprep.mubr.msk.bf16.mxu0 %vm16007_vm3, %v20450_v24  ;;  %v3834_v46 = vsel %vm1309_vm4, %v3829_v1, 0 }
 0x624   :  { %v13946_v15 = vpop.f32.mrb[81].mxu1  ;;  %14104 = vmatprep.subr.bf16.mxu0 %v20450_v24 }
 0x625   :  { %v17321_v9 = vpop.f32.mrb[82].mxu1 }
 0x626   :  { %v3880_v25 = vpop.permute.xlu1 %3879  ;;  %v13947_v44 = vpop.f32.mrb[83].mxu1 }
 0x627   :  { %v3885_v48 = vsel %vm1309_vm4, %v3880_v25, 0  ;;  %14113 = vmatmul.mubr.msk.bf16.vlgmr.msra.gmra.mrb[136].mxu1 %vm1309_vm4, %v3776_v29 }
 0x628   :  { %14123 = vmatpush3.bf16.xpose.msra.mxu1 %v3885_v48  ;;  %14124 = vmatprep.mubr.msk.bf16.mxu1 %vm16007_vm3, %v20450_v24 }
 0x629   :  { %14134 = vmatprep.subr.bf16.mxu1 %v20450_v24 }
 0x62a   :  { %14095 = vmatmul.mubr.msk.bf16.vlgmr.msra.gmra.mrb[128].mxu0 %vm1309_vm4, %v3623_v3  ;;  %v3931_v62 = vpop.permute.xlu1 %3930 }
 0x62b   :  { %14105 = vmatpush3.bf16.xpose.msra.mxu0 %v3732_v32  ;;  %14106 = vmatprep.mubr.msk.bf16.mxu0 %vm16007_vm3, %v20450_v24  ;;  %v3936_v27 = vsel %vm1309_vm4, %v3931_v62, 0 }
 0x62c   :  { %14116 = vmatprep.subr.bf16.mxu0 %v20450_v24 }
 0x62d   :  { %v17335_v0 = vpop.f32.mrb[80].mxu0 }
 0x62e   :  { %v13952_v52 = vpop.f32.mrb[81].mxu0  ;;  %v3929_v14 = vpop.permute.xlu1 %3928 }
 0x62f   :  { %v17337_v7 = vpop.f32.mrb[82].mxu0  ;;  %14125 = vmatmul.mubr.msk.bf16.vlgmr.msra.gmra.mrb[140].mxu1 %vm1309_vm4, %v3878_v40 }
 0x630   :  { %v13953_v34 = vpop.f32.mrb[83].mxu0  ;;  %14135 = vmatpush3.bf16.msra.mxu1 %v4252_v63  ;;  %14136 = vmatprep.mubr.msk.bf16.mxu1 %vm16007_vm3, %v20450_v24 }
 0x631   :  { %14146 = vmatprep.subr.bf16.mxu1 %v20450_v24 }
 0x632   :  { %14107 = vmatmul.mubr.msk.bf16.vlgmr.msra.gmra.mrb[132].mxu0 %vm1309_vm4, %v3725_v47  ;;  %v4299_v20 = vpop.permute.xlu1 %4298 }
 0x633   :  { %14117 = vmatpush3.bf16.xpose.msra.mxu0 %v3834_v46  ;;  %v17347_v4 = vpop.f32.mrb[84].mxu1  ;;  %14118 = vmatprep.mubr.msk.bf16.mxu0 %vm16007_vm3, %v20450_v24 }
 0x634   :  { %v13958_v42 = vpop.f32.mrb[85].mxu1  ;;  %14128 = vmatprep.subr.bf16.mxu0 %v20450_v24 }
 0x635   :  { %v17352_v22 = vpop.f32.mrb[86].mxu1 }
 0x636   :  { %v13959_v26 = vpop.f32.mrb[87].mxu1 }
 0x63a   :  { %14119 = vmatmul.mubr.msk.bf16.vlgmr.msra.gmra.mrb[136].mxu0 %vm1309_vm4, %v3827_v45 }
 0x63b   :  { %14129 = vmatpush3.bf16.xpose.msra.mxu0 %v3936_v27  ;;  %v17358_v10 = vpop.f32.mrb[84].mxu0  ;;  %14130 = vmatprep.mubr.msk.bf16.mxu0 %vm16007_vm3, %v20450_v24 }
 0x63c   :  { %v13964_v50 = vpop.f32.mrb[85].mxu0  ;;  %14140 = vmatprep.subr.bf16.mxu0 %v20450_v24 }
 0x63d   :  { %v17363_v11 = vpop.f32.mrb[86].mxu0 }
 0x63e   :  { %v13965_v17 = vpop.f32.mrb[87].mxu0 }
 0x642   :  { %14131 = vmatmul.mubr.msk.bf16.vlgmr.msra.gmra.mrb[140].mxu0 %vm1309_vm4, %v3929_v14 }
 0x643   :  { %14141 = vmatpush3.bf16.msra.mxu0 %v4299_v20  ;;  %14142 = vmatprep.mubr.msk.bf16.mxu0 %vm16007_vm3, %v20450_v24 }
 0x644   :  { %14152 = vmatprep.subr.bf16.mxu0 %v20450_v24 }
 0x647   :  { %v17371_v5 = vpop.f32.mrb[88].mxu1 }
 0x648   :  { %20481 = vst [vmem:[#allocation37_spill] sm:$0xff] %v17371_v5  ;;  %v13970_v30 = vpop.f32.mrb[89].mxu1 }
 0x649   :  { %v17373_v38 = vpop.f32.mrb[90].mxu1 }
 0x64a   :  { %20482 = vst [vmem:[#allocation49_spill] sm:$0xff] %v17373_v38  ;;  %v13971_v37 = vpop.f32.mrb[91].mxu1 }
 0x64f   :  { %v17377_v43 = vpop.f32.mrb[88].mxu0 }
 0x650   :  { %20483 = vst [vmem:[#allocation52_spill] sm:$0xff] %v17377_v43  ;;  %v13976_v16 = vpop.f32.mrb[89].mxu0 }
 0x651   :  { %v17379_v54 = vpop.f32.mrb[90].mxu0 }
 0x652   :  { %20484 = vst [vmem:[#allocation39_spill] sm:$0xff] %v17379_v54  ;;  %v13977_v12 = vpop.f32.mrb[91].mxu0 }
 0x657   :  { %v17383_v19 = vpop.f32.mrb[92].mxu1 }
 0x658   :  { %20485 = vst [vmem:[#allocation56_spill] sm:$0xff] %v17383_v19  ;;  %v13982_v56 = vpop.f32.mrb[93].mxu1 }
 0x659   :  { %v17385_v41 = vpop.f32.mrb[94].mxu1 }
 0x65a   :  { %20486 = vst [vmem:[#allocation51_spill] sm:$0xff] %v17385_v41  ;;  %v13983_v33 = vpop.f32.mrb[95].mxu1 }
 0x65f   :  { %v17389_v58 = vpop.f32.mrb[92].mxu0  ;;  %v17391_v3 = vpop.f32.mrb[96].mxu1 }
 0x660   :  { %20487 = vst [vmem:[#allocation41_spill] sm:$0xff] %v17389_v58  ;;  %20488 = vst [vmem:[#allocation50_spill] sm:$0xff] %v17391_v3  ;;  %v13988_v55 = vpop.f32.mrb[93].mxu0  ;;  %v13994_v6 = vpop.f32.mrb[97].mxu1 }
 0x661   :  { %v17393_v28 = vpop.f32.mrb[94].mxu0  ;;  %v17395_v39 = vpop.f32.mrb[98].mxu1 }
 0x662   :  { %20489 = vst [vmem:[#allocation45_spill] sm:$0xff] %v17393_v28  ;;  %20490 = vst [vmem:[#allocation48_spill] sm:$0xff] %v17395_v39  ;;  %v13989_v47 = vpop.f32.mrb[95].mxu0  ;;  %v13995_v18 = vpop.f32.mrb[99].mxu1 }
 0x667   :  { %v17401_v35 = vpop.f32.mrb[96].mxu0  ;;  %v17403_v53 = vpop.f32.mrb[100].mxu1 }
 0x668   :  { %20491 = vst [vmem:[#allocation34_spill] sm:$0xff] %v17401_v35  ;;  %20492 = vst [vmem:[#allocation35_spill] sm:$0xff] %v17403_v53  ;;  %v14000_v29 = vpop.f32.mrb[97].mxu0  ;;  %v14006_v57 = vpop.f32.mrb[101].mxu1 }
 0x669   :  { %v17405_v49 = vpop.f32.mrb[98].mxu0  ;;  %v17407_v21 = vpop.f32.mrb[102].mxu1 }
 0x66a   :  { %20493 = vst [vmem:[#allocation36_spill] sm:$0xff] %v17405_v49  ;;  %20494 = vst [vmem:[#allocation38_spill] sm:$0xff] %v17407_v21  ;;  %v14001_v15 = vpop.f32.mrb[99].mxu0  ;;  %v14007_v25 = vpop.f32.mrb[103].mxu1  ;;  %v20505_v49 = vld [vmem:[#allocation46_spill] sm:$0xff] }
 0x66f   :  { %v17413_v44 = vpop.f32.mrb[100].mxu0  ;;  %v17415_v48 = vpop.f32.mrb[104].mxu1 }
 0x670   :  { %20495 = vst [vmem:[#allocation40_spill] sm:$0xff] %v17413_v44  ;;  %20496 = vst [vmem:[#allocation43_spill] sm:$0xff] %v17415_v48  ;;  %v14012_v40 = vpop.f32.mrb[101].mxu0  ;;  %v14018_v32 = vpop.f32.mrb[105].mxu1 }
 0x671   :  { %v17417_v52 = vpop.f32.mrb[102].mxu0  ;;  %v17419_v63 = vpop.f32.mrb[106].mxu1 }
 0x672   :  { %20497 = vst [vmem:[#allocation53_spill] sm:$0xff] %v17417_v52  ;;  %20498 = vst [vmem:[#allocation54_spill] sm:$0xff] %v17419_v63  ;;  %v14013_v42 = vpop.f32.mrb[103].mxu0  ;;  %v14019_v62 = vpop.f32.mrb[107].mxu1 }
 0x677   :  { %v17425_v26 = vpop.f32.mrb[108].mxu1 }
 0x678   :  { %20499 = vst [vmem:[#allocation42_spill] sm:$0xff] %v17425_v26  ;;  %v14030_v27 = vpop.f32.mrb[109].mxu1 }
 0x679   :  { %v17427_v14 = vpop.f32.mrb[110].mxu1 }
 0x67a   :  { %20500 = vst [vmem:[#allocation44_spill] sm:$0xff] %v17427_v14  ;;  %v14031_v17 = vpop.f32.mrb[111].mxu1 }
 0x6a0   :  { %v17431_v20 = vpop.f32.mrb[104].mxu0 }
 0x6a1   :  { %20501 = vst [vmem:[#allocation55_spill] sm:$0xff] %v17431_v20  ;;  %v14024_v30 = vpop.f32.mrb[105].mxu0 }
 0x6a2   :  { %v17433_v37 = vpop.f32.mrb[106].mxu0 }
 0x6a3   :  { %20502 = vst [vmem:[#allocation57_spill] sm:$0xff] %v17433_v37  ;;  %v14025_v12 = vpop.f32.mrb[107].mxu0  ;;  %v3207_v56 = vpop.f32.mrb[112].mxu1 }
 0x6a4   :  { %v3979_v33 = vmul.f32 0.25, %v3207_v56  ;;  %v14042_v55 = vpop.f32.mrb[113].mxu1 }
 0x6a5   :  { %v3210_v6 = vpop.f32.mrb[114].mxu1 }
 0x6a6   :  { %v4011_v47 = vmul.f32 1.442695, %v3979_v33  ;;  %v3980_v18 = vmul.f32 0.25, %v3210_v6  ;;  %v14043_v29 = vpop.f32.mrb[115].mxu1 }
 0x6a8   :  { %15362 = vpow2.f32 %v4011_v47  ;;  %v4013_v57 = vmul.f32 1.442695, %v3980_v18 }
 0x6aa   :  { %15364 = vpow2.f32 %v4013_v57 }
 0x6b2   :  { %v17437_v15 = vpop.eup %15362 }
 0x6b3   :  { %v4075_v25 = vsel %vm1309_vm4, %v17437_v15, 0.0 }
 0x6b4   :  { %v17441_v40 = vpop.eup %15364  ;;  %4076 = vadd.xlane.f32.xlu0 %v4075_v25 }
 0x6b5   :  { %v4078_v32 = vsel %vm1309_vm4, %v17441_v40, 0.0 }
 0x6b6   :  { %4079 = vadd.xlane.f32.xlu1 %v4078_v32 }
 0x6d2   :  { %v3309_v42 = vpop.f32.mrb[116].mxu1 }
 0x6d3   :  { %v14054_v62 = vpop.f32.mrb[117].mxu1  ;;  %v3983_v57 = vmul.f32 0.25, %v3309_v42 }
 0x6d4   :  { %v3312_v27 = vpop.f32.mrb[118].mxu1 }
 0x6d5   :  { %v3984_v17 = vmul.f32 0.25, %v3312_v27  ;;  %v17445_v30 = vpop.f32.mrb[108].mxu0  ;;  %v14055_v12 = vpop.f32.mrb[119].mxu1  ;;  %v4019_v46 = vmul.f32 1.442695, %v3983_v57 }
 0x6d6   :  { %20503 = vst [vmem:[#allocation58_spill] sm:$0xff] %v17445_v30  ;;  %v14036_v56 = vpop.f32.mrb[109].mxu0 }
 0x6d7   :  { %v4021_v33 = vmul.f32 1.442695, %v3984_v17  ;;  %v17447_v55 = vpop.f32.mrb[110].mxu0 }
 0x6d8   :  { %20504 = vst [vmem:[#allocation59_spill] sm:$0xff] %v17447_v55  ;;  %v14037_v47 = vpop.f32.mrb[111].mxu0 }
 0x6d9   :  { %15366 = vpow2.f32 %v4021_v33 }
 0x6da   :  { %v3411_v18 = vpop.f32.mrb[120].mxu1 }
 0x6db   :  { %v14066_v29 = vpop.f32.mrb[121].mxu1 }
 0x6dc   :  { %v3414_v25 = vpop.f32.mrb[122].mxu1 }
 0x6dd   :  { %v3258_v32 = vpop.f32.mrb[112].mxu0  ;;  %v14067_v62 = vpop.f32.mrb[123].mxu1 }
 0x6de   :  { %v3981_v50 = vmul.f32 0.25, %v3258_v32  ;;  %v14048_v27 = vpop.f32.mrb[113].mxu0  ;;  %v3988_v62 = vmul.f32 0.25, %v3414_v25 }
 0x6df   :  { %v3261_v16 = vpop.f32.mrb[114].mxu0 }
 0x6e0   :  { %v4015_v12 = vmul.f32 1.442695, %v3981_v50  ;;  %v3982_v56 = vmul.f32 0.25, %v3261_v16  ;;  %v14049_v17 = vpop.f32.mrb[115].mxu0  ;;  %v3987_v16 = vmul.f32 0.25, %v3411_v18 }
 0x6e1   :  { %v4029_v23 = vmul.f32 1.442695, %v3988_v62 }
 0x6e2   :  { %15368 = vpow2.f32 %v4015_v12  ;;  %v3513_v34 = vpop.f32.mrb[124].mxu1  ;;  %v4017_v33 = vmul.f32 1.442695, %v3982_v56  ;;  %v4027_v51 = vmul.f32 1.442695, %v3987_v16 }
 0x6e3   :  { %v17451_v45 = vpop.eup %15366  ;;  %v14078_v6 = vpop.f32.mrb[125].mxu1  ;;  %15370 = vpow2.f32 %v4019_v46 }
 0x6e4   :  { %v3516_v47 = vpop.f32.mrb[126].mxu1  ;;  %v4090_v42 = vsel %vm1309_vm4, %v17451_v45, 0.0  ;;  %15372 = vpow2.f32 %v4017_v33 }
 0x6e5   :  { %4091 = vadd.xlane.f32.xlu1 %v4090_v42  ;;  %v3360_v29 = vpop.f32.mrb[116].mxu0  ;;  %v14079_v32 = vpop.f32.mrb[127].mxu1  ;;  %v3992_v33 = vmul.f32 0.25, %v3516_v47 }
 0x6e6   :  { %v3985_v27 = vmul.f32 0.25, %v3360_v29  ;;  %v14060_v57 = vpop.f32.mrb[117].mxu0 }
 0x6e7   :  { %v3363_v50 = vpop.f32.mrb[118].mxu0  ;;  %v3991_v57 = vmul.f32 0.25, %v3513_v34 }
 0x6e8   :  { %v4023_v12 = vmul.f32 1.442695, %v3985_v27  ;;  %v3986_v17 = vmul.f32 0.25, %v3363_v50  ;;  %v14061_v1 = vpop.f32.mrb[119].mxu0 }
 0x6ea   :  { %v4025_v6 = vmul.f32 1.442695, %v3986_v17  ;;  %v3615_v46 = vpop.f32.mrb[128].mxu1  ;;  %15374 = vpow2.f32 %v4023_v12 }
 0x6eb   :  { %v14090_v56 = vpop.f32.mrb[129].mxu1 }
 0x6ec   :  { %v17455_v31 = vpop.eup %15368  ;;  %15376 = vpow2.f32 %v4025_v6  ;;  %v3618_v42 = vpop.f32.mrb[130].mxu1  ;;  %v4037_v56 = vmul.f32 1.442695, %v3992_v33 }
 0x6ed   :  { %v3462_v32 = vpop.f32.mrb[120].mxu0  ;;  %v14091_v25 = vpop.f32.mrb[131].mxu1  ;;  %v4081_v29 = vsel %vm1309_vm4, %v17455_v31, 0.0  ;;  %15378 = vpow2.f32 %v4029_v23 }
 0x6ee   :  { %v17459_v18 = vpop.eup %15370  ;;  %v3989_v1 = vmul.f32 0.25, %v3462_v32  ;;  %4082 = vadd.xlane.f32.xlu0 %v4081_v29  ;;  %v14072_v62 = vpop.f32.mrb[121].mxu0  ;;  %15380 = vpow2.f32 %v4027_v51  ;;  %v3995_v25 = vmul.f32 0.25, %v3615_v46  ;;  %v4035_v32 = vmul.f32 1.442695, %v3991_v57 }
 0x6ef   :  { %v3465_v27 = vpop.f32.mrb[122].mxu0  ;;  %v4087_v17 = vsel %vm1309_vm4, %v17459_v18, 0.0  ;;  %v17463_v6 = vpop.eup %15372 }
 0x6f0   :  { %v4031_v50 = vmul.f32 1.442695, %v3989_v1  ;;  %v3990_v12 = vmul.f32 0.25, %v3465_v27  ;;  %v14073_v16 = vpop.f32.mrb[123].mxu0  ;;  %v4084_v62 = vsel %vm1309_vm4, %v17463_v6, 0.0 }
 0x6f1   :  { %v4043_v33 = vmul.f32 1.442695, %v3995_v25 }
 0x6f2   :  { %v4033_v13 = vmul.f32 1.442695, %v3990_v12  ;;  %4088 = vadd.xlane.f32.xlu0 %v4087_v17  ;;  %v3717_v23 = vpop.f32.mrb[132].mxu1  ;;  %15382 = vpow2.f32 %v4031_v50  ;;  %v3996_v50 = vmul.f32 0.25, %v3618_v42 }
 0x6f3   :  { %v14102_v47 = vpop.f32.mrb[133].mxu1  ;;  %v3999_v25 = vmul.f32 0.25, %v3717_v23 }
 0x6f4   :  { %15384 = vpow2.f32 %v4033_v13  ;;  %v3720_v29 = vpop.f32.mrb[134].mxu1  ;;  %v17465_v51 = vpop.eup %15374 }
 0x6f5   :  { %v3564_v34 = vpop.f32.mrb[124].mxu0  ;;  %v14103_v1 = vpop.f32.mrb[135].mxu1  ;;  %15386 = vpow2.f32 %v4037_v56  ;;  %v4093_v60 = vsel %vm1309_vm4, %v17465_v51, 0.0  ;;  %v4051_v23 = vmul.f32 1.442695, %v3999_v25 }
 0x6f6   :  { %v17469_v27 = vpop.eup %15376  ;;  %v3993_v46 = vmul.f32 0.25, %v3564_v34  ;;  %4085 = vadd.xlane.f32.xlu0 %v4084_v62  ;;  %v14084_v12 = vpop.f32.mrb[125].mxu0  ;;  %15388 = vpow2.f32 %v4035_v32  ;;  %v4045_v32 = vmul.f32 1.442695, %v3996_v50 }
 0x6f7   :  { %v3567_v16 = vpop.f32.mrb[126].mxu0  ;;  %v4096_v57 = vsel %vm1309_vm4, %v17469_v27, 0.0  ;;  %v17473_v13 = vpop.eup %15378  ;;  %15390 = vpow2.f32 %v4043_v33 }
 0x6f8   :  { %v4039_v17 = vmul.f32 1.442695, %v3993_v46  ;;  %v3994_v47 = vmul.f32 0.25, %v3567_v16  ;;  %4097 = vadd.xlane.f32.xlu1 %v4096_v57  ;;  %v14085_v1 = vpop.f32.mrb[127].mxu0  ;;  %v17477_v56 = vpop.eup %15380  ;;  %v4102_v36 = vsel %vm1309_vm4, %v17473_v13, 0.0 }
 0x6f9   :  { %v4099_v1 = vsel %vm1309_vm4, %v17477_v56, 0.0 }
 0x6fa   :  { %v4041_v34 = vmul.f32 1.442695, %v3994_v47  ;;  %4094 = vadd.xlane.f32.xlu0 %v4093_v60  ;;  %v3819_v62 = vpop.f32.mrb[136].mxu1  ;;  %15392 = vpow2.f32 %v4039_v17  ;;  %v4000_v17 = vmul.f32 0.25, %v3720_v29 }
 0x6fb   :  { %v14114_v12 = vpop.f32.mrb[137].mxu1 }
 0x6fc   :  { %4103 = vadd.xlane.f32.xlu1 %v4102_v36  ;;  %v3822_v42 = vpop.f32.mrb[138].mxu1  ;;  %v17481_v46 = vpop.eup %15382  ;;  %15394 = vpow2.f32 %v4041_v34  ;;  %v4003_v34 = vmul.f32 0.25, %v3819_v62  ;;  %v4053_v29 = vmul.f32 1.442695, %v4000_v17 }
 0x6fd   :  { %v3666_v16 = vpop.f32.mrb[128].mxu0  ;;  %v14115_v57 = vpop.f32.mrb[139].mxu1  ;;  %15396 = vpow2.f32 %v4045_v32  ;;  %v4105_v8 = vsel %vm1309_vm4, %v17481_v46, 0.0 }
 0x6fe   :  { %v17485_v33 = vpop.eup %15384  ;;  %v3997_v60 = vmul.f32 0.25, %v3666_v16  ;;  %4100 = vadd.xlane.f32.xlu0 %v4099_v1  ;;  %v14096_v47 = vpop.f32.mrb[129].mxu0  ;;  %15398 = vpow2.f32 %v4051_v23  ;;  %v4059_v62 = vmul.f32 1.442695, %v4003_v34 }
 0x6ff   :  { %v3669_v12 = vpop.f32.mrb[130].mxu0  ;;  %v4108_v50 = vsel %vm1309_vm4, %v17485_v33, 0.0  ;;  %v17489_v36 = vpop.eup %15386 }
 0x700   :  { %v4047_v59 = vmul.f32 1.442695, %v3997_v60  ;;  %v3998_v57 = vmul.f32 0.25, %v3669_v12  ;;  %4109 = vadd.xlane.f32.xlu1 %v4108_v50  ;;  %v14097_v61 = vpop.f32.mrb[131].mxu0  ;;  %v17493_v25 = vpop.eup %15388  ;;  %v4114_v30 = vsel %vm1309_vm4, %v17489_v36, 0.0 }
 0x701   :  { %v17497_v32 = vpop.eup %15390  ;;  %v4111_v50 = vsel %vm1309_vm4, %v17493_v25, 0.0 }
 0x702   :  { %v4049_v16 = vmul.f32 1.442695, %v3998_v57  ;;  %4106 = vadd.xlane.f32.xlu0 %v4105_v8  ;;  %v3921_v1 = vpop.f32.mrb[140].mxu1  ;;  %15400 = vpow2.f32 %v4047_v59  ;;  %v4123_v55 = vsel %vm1309_vm4, %v17497_v32, 0.0  ;;  %v4004_v59 = vmul.f32 0.25, %v3822_v42 }
 0x703   :  { %v14126_v47 = vpop.f32.mrb[141].mxu1 }
 0x704   :  { %4115 = vadd.xlane.f32.xlu1 %v4114_v30  ;;  %v3924_v61 = vpop.f32.mrb[142].mxu1  ;;  %v17501_v23 = vpop.eup %15392  ;;  %15402 = vpow2.f32 %v4049_v16  ;;  %v4007_v16 = vmul.f32 0.25, %v3921_v1 }
 0x705   :  { %v3768_v60 = vpop.f32.mrb[132].mxu0  ;;  %v14127_v12 = vpop.f32.mrb[143].mxu1  ;;  %15404 = vpow2.f32 %v4053_v29  ;;  %v4117_v14 = vsel %vm1309_vm4, %v17501_v23, 0.0  ;;  %v4061_v29 = vmul.f32 1.442695, %v4004_v59  ;;  %v4008_v59 = vmul.f32 0.25, %v3924_v61 }
 0x706   :  { %v4001_v8 = vmul.f32 0.25, %v3768_v60  ;;  %4112 = vadd.xlane.f32.xlu0 %v4111_v50  ;;  %v14108_v57 = vpop.f32.mrb[133].mxu0  ;;  %v17505_v17 = vpop.eup %15394  ;;  %15406 = vpow2.f32 %v4059_v62 }
 0x707   :  { %v3771_v47 = vpop.f32.mrb[134].mxu0  ;;  %v17509_v34 = vpop.eup %15396  ;;  %v4120_v50 = vsel %vm1309_vm4, %v17505_v17, 0.0 }
 0x708   :  { %v4055_v30 = vmul.f32 1.442695, %v4001_v8  ;;  %v4002_v12 = vmul.f32 0.25, %v3771_v47  ;;  %4124 = vadd.xlane.f32.xlu1 %v4123_v55  ;;  %v14109_v26 = vpop.f32.mrb[135].mxu0  ;;  %v17513_v57 = vpop.eup %15398  ;;  %v4067_v8 = vmul.f32 1.442695, %v4007_v16 }
 0x709   :  { %v4126_v26 = vsel %vm1309_vm4, %v17509_v34, 0.0  ;;  %v4135_v47 = vsel %vm1309_vm4, %v17513_v57, 0.0 }
 0x70a   :  { %v4057_v60 = vmul.f32 1.442695, %v4002_v12  ;;  %4118 = vadd.xlane.f32.xlu0 %v4117_v14  ;;  %15408 = vpow2.f32 %v4055_v30 }
 0x70c   :  { %4121 = vadd.xlane.f32.xlu1 %v4120_v50  ;;  %v17517_v55 = vpop.eup %15400  ;;  %15410 = vpow2.f32 %v4057_v60 }
 0x70d   :  { %v3870_v42 = vpop.f32.mrb[136].mxu0  ;;  %15412 = vpow2.f32 %v4061_v29  ;;  %v4129_v37 = vsel %vm1309_vm4, %v17517_v55, 0.0 }
 0x70e   :  { %v4005_v62 = vmul.f32 0.25, %v3870_v42  ;;  %4127 = vadd.xlane.f32.xlu0 %v4126_v26  ;;  %v14120_v1 = vpop.f32.mrb[137].mxu0  ;;  %v17521_v12 = vpop.eup %15402  ;;  %15414 = vpow2.f32 %v4067_v8 }
 0x70f   :  { %v3873_v14 = vpop.f32.mrb[138].mxu0  ;;  %v17525_v16 = vpop.eup %15404  ;;  %v4132_v42 = vsel %vm1309_vm4, %v17521_v12, 0.0  ;;  %v4069_v1 = vmul.f32 1.442695, %v4008_v59 }
 0x710   :  { %v4063_v30 = vmul.f32 1.442695, %v4005_v62  ;;  %v4006_v50 = vmul.f32 0.25, %v3873_v14  ;;  %4136 = vadd.xlane.f32.xlu1 %v4135_v47  ;;  %v14121_v20 = vpop.f32.mrb[139].mxu0  ;;  %v17529_v26 = vpop.eup %15406 }
 0x711   :  { %v4138_v20 = vsel %vm1309_vm4, %v17525_v16, 0.0 }
 0x712   :  { %v4065_v60 = vmul.f32 1.442695, %v4006_v50  ;;  %4130 = vadd.xlane.f32.xlu0 %v4129_v37  ;;  %15416 = vpow2.f32 %v4063_v30  ;;  %v4147_v37 = vsel %vm1309_vm4, %v17529_v26, 0.0 }
 0x714   :  { %4133 = vadd.xlane.f32.xlu1 %v4132_v42  ;;  %v17533_v29 = vpop.eup %15408  ;;  %15418 = vpow2.f32 %v4065_v60 }
 0x715   :  { %v3972_v61 = vpop.f32.mrb[140].mxu0  ;;  %15420 = vpow2.f32 %v4069_v1  ;;  %v4141_v42 = vsel %vm1309_vm4, %v17533_v29, 0.0 }
 0x716   :  { %v4009_v62 = vmul.f32 0.25, %v3972_v61  ;;  %4139 = vadd.xlane.f32.xlu0 %v4138_v20  ;;  %v14132_v8 = vpop.f32.mrb[141].mxu0  ;;  %v17537_v47 = vpop.eup %15410 }
 0x717   :  { %v3975_v14 = vpop.f32.mrb[142].mxu0  ;;  %v17541_v48 = vpop.eup %15412  ;;  %v4144_v20 = vsel %vm1309_vm4, %v17537_v47, 0.0 }
 0x718   :  { %v4071_v59 = vmul.f32 1.442695, %v4009_v62  ;;  %v4010_v30 = vmul.f32 0.25, %v3975_v14  ;;  %4148 = vadd.xlane.f32.xlu1 %v4147_v37  ;;  %v14133_v50 = vpop.f32.mrb[143].mxu0  ;;  %v17543_v61 = vpop.permute.xlu1 %4392  ;;  %v4150_v1 = vsel %vm1309_vm4, %v17541_v48, 0.0 }
 0x719   :  { %v17547_v8 = vpop.eup %15414 }
 0x71a   :  { %v4073_v60 = vmul.f32 1.442695, %v4010_v30  ;;  %4142 = vadd.xlane.f32.xlu0 %v4141_v42  ;;  %15422 = vpow2.f32 %v4071_v59  ;;  %v4159_v14 = vsel %vm1309_vm4, %v17547_v8, 0.0 }
 0x71c   :  { %15424 = vpow2.f32 %v4073_v60  ;;  %4145 = vadd.xlane.f32.xlu1 %v4144_v20  ;;  %v17551_v62 = vpop.eup %15416  ;;  %v17557_v59 = vpop.permute.xlu1 %4486 }
 0x71d   :  { %v4153_v30 = vsel %vm1309_vm4, %v17551_v62, 0.0  ;;  %v4346_v20 = vpop.permute.xlu0 %4345 }
 0x71e   :  { %4151 = vadd.xlane.f32.xlu0 %v4150_v1  ;;  %v17555_v37 = vpop.eup %15418 }
 0x71f   :  { %v17561_v50 = vpop.eup %15420  ;;  %v4156_v42 = vsel %vm1309_vm4, %v17555_v37, 0.0 }
 0x720   :  { %4160 = vadd.xlane.f32.xlu1 %v4159_v14  ;;  %v4162_v1 = vsel %vm1309_vm4, %v17561_v50, 0.0  ;;  %v17571_v14 = vpop.permute.xlu1 %4580 }
 0x722   :  { %4154 = vadd.xlane.f32.xlu0 %v4153_v30 }
 0x724   :  { %4157 = vadd.xlane.f32.xlu1 %v4156_v42  ;;  %v17565_v60 = vpop.eup %15422  ;;  %v4440_v42 = vpop.permute.xlu0 %4439 }
 0x725   :  { %v4165_v30 = vsel %vm1309_vm4, %v17565_v60, 0.0  ;;  %v17577_v52 = vpop.permute.xlu1 %4674 }
 0x726   :  { %v17569_v63 = vpop.eup %15424  ;;  %4163 = vadd.xlane.f32.xlu0 %v4162_v1 }
 0x727   :  { %v4168_v44 = vsel %vm1309_vm4, %v17569_v63, 0.0 }
 0x728   :  { %4169 = vadd.xlane.f32.xlu1 %v4168_v44  ;;  %v17579_v53 = vpop.permute.xlu0 %4533 }
 0x729   :  { %v17581_v21 = vpop.permute.xlu1 %4721 }
 0x72a   :  { %4166 = vadd.xlane.f32.xlu0 %v4165_v30  ;;  %v20506_v30 = vld [vmem:[#allocation47_spill] sm:$0xff] }
 0x72c   :  { %v17583_v35 = vpop.permute.xlu0 %4627 }
 0x72d   :  { %v17585_v1 = vpop.permute.xlu1 %4768 }
 0x730   :  { %v17589_v3 = vpop.permute.xlu0 %4815 }
 0x731   :  { %v17591_v44 = vpop.permute.xlu1 %4862 }
 0x739   :  { %4956 = vrot.lane.b32.xlu1 %v20505_v49, %s16012_s30 }
 0x740   :  { %4909 = vrot.lane.b32.xlu0 %v20506_v30, %s16012_s30 }
 0x741   :  { %v4077_v39 = vpop.xlane.xlu0 %4076 }
 0x742   :  { %15426 = vrcp.f32 %v4077_v39 }
 0x743   :  { %v4080_v58 = vpop.xlane.xlu1 %4079 }
 0x744   :  { %15428 = vrcp.f32 %v4080_v58 }
 0x74c   :  { %v15427_v28 = vpop.eup %15426 }
 0x74d   :  { %v4203_v41 = vmul.f32 %v15427_v28, %v17437_v15 }
 0x74e   :  { %v15429_v19 = vpop.eup %15428 }
 0x74f   :  { %v4204_v43 = vmul.f32 %v15429_v19, %v17441_v40 }
 0x751   :  { %v4235_v54 = vpack.c.bf16 %v4204_v43, %v4203_v41 }
 0x753   :  { %14137 = vmatmul.mubr.msk.bf16.vlgmr.msra.gmra.mrb[144].mxu1 %vm1309_vm4, %v4235_v54 }
 0x754   :  { %14147 = vmatpush3.bf16.msra.mxu1 %v4346_v20  ;;  %14148 = vmatprep.mubr.msk.bf16.mxu1 %vm16007_vm3, %v20450_v24 }
 0x755   :  { %14158 = vmatprep.subr.bf16.mxu1 %v20450_v24 }
 0x772   :  { %v4092_v49 = vpop.xlane.xlu1 %4091 }
 0x773   :  { %15430 = vrcp.f32 %v4092_v49 }
 0x77b   :  { %v4083_v30 = vpop.xlane.xlu0 %4082 }
 0x77d   :  { %v15431_v19 = vpop.eup %15430 }
 0x77e   :  { %v4208_v41 = vmul.f32 %v15431_v19, %v17451_v45 }
 0x77f   :  { %v4089_v39 = vpop.xlane.xlu0 %4088 }
 0x780   :  { %15432 = vrcp.f32 %v4089_v39 }
 0x781   :  { %15434 = vrcp.f32 %v4083_v30 }
 0x783   :  { %v4086_v58 = vpop.xlane.xlu0 %4085 }
 0x784   :  { %15436 = vrcp.f32 %v4086_v58 }
 0x785   :  { %v4098_v28 = vpop.xlane.xlu1 %4097 }
 0x787   :  { %v4095_v15 = vpop.xlane.xlu0 %4094 }
 0x788   :  { %15438 = vrcp.f32 %v4095_v15 }
 0x789   :  { %15440 = vrcp.f32 %v4098_v28  ;;  %v4104_v43 = vpop.xlane.xlu1 %4103 }
 0x78a   :  { %v15433_v54 = vpop.eup %15432  ;;  %15442 = vrcp.f32 %v4104_v43 }
 0x78b   :  { %v4207_v40 = vmul.f32 %v15433_v54, %v17459_v18  ;;  %v4101_v20 = vpop.xlane.xlu0 %4100  ;;  %v15435_v5 = vpop.eup %15434 }
 0x78c   :  { %15444 = vrcp.f32 %v4101_v20  ;;  %v4205_v58 = vmul.f32 %v15435_v5, %v17455_v31 }
 0x78d   :  { %v4110_v49 = vpop.xlane.xlu1 %4109  ;;  %v4237_v39 = vpack.c.bf16 %v4208_v41, %v4207_v40 }
 0x78e   :  { %v15437_v30 = vpop.eup %15436 }
 0x78f   :  { %v4206_v38 = vmul.f32 %v15437_v30, %v17463_v6  ;;  %14149 = vmatmul.mubr.msk.bf16.vlgmr.msra.gmra.mrb[148].mxu1 %vm1309_vm4, %v4237_v39  ;;  %v4107_v28 = vpop.xlane.xlu0 %4106 }
 0x790   :  { %14159 = vmatpush3.bf16.msra.mxu1 %v4440_v42  ;;  %15446 = vrcp.f32 %v4107_v28  ;;  %14160 = vmatprep.mubr.msk.bf16.mxu1 %vm16007_vm3, %v20450_v24 }
 0x791   :  { %15448 = vrcp.f32 %v4110_v49  ;;  %v4116_v45 = vpop.xlane.xlu1 %4115  ;;  %v4236_v18 = vpack.c.bf16 %v4206_v38, %v4205_v58  ;;  %14170 = vmatprep.subr.bf16.mxu1 %v20450_v24 }
 0x792   :  { %v15439_v15 = vpop.eup %15438  ;;  %15450 = vrcp.f32 %v4116_v45 }
 0x793   :  { %v15441_v19 = vpop.eup %15440  ;;  %14143 = vmatmul.mubr.msk.bf16.vlgmr.msra.gmra.mrb[144].mxu0 %vm1309_vm4, %v4236_v18  ;;  %v4113_v5 = vpop.xlane.xlu0 %4112  ;;  %v4209_v6 = vmul.f32 %v15439_v15, %v17465_v51 }
 0x794   :  { %v15443_v31 = vpop.eup %15442  ;;  %14153 = vmatpush3.bf16.msra.mxu0 %v17543_v61  ;;  %15452 = vrcp.f32 %v4113_v5  ;;  %14154 = vmatprep.mubr.msk.bf16.mxu0 %vm16007_vm3, %v20450_v24  ;;  %v4210_v43 = vmul.f32 %v15441_v19, %v17469_v27 }
 0x795   :  { %v4125_v42 = vpop.xlane.xlu1 %4124  ;;  %14164 = vmatprep.subr.bf16.mxu0 %v20450_v24  ;;  %v4212_v54 = vmul.f32 %v15443_v31, %v17473_v13 }
 0x796   :  { %v15445_v38 = vpop.eup %15444  ;;  %15454 = vrcp.f32 %v4125_v42  ;;  %v4238_v20 = vpack.c.bf16 %v4210_v43, %v4209_v6 }
 0x797   :  { %v4211_v41 = vmul.f32 %v15445_v38, %v17477_v56  ;;  %v4119_v40 = vpop.xlane.xlu0 %4118 }
 0x798   :  { %15456 = vrcp.f32 %v4119_v40 }
 0x799   :  { %v4122_v61 = vpop.xlane.xlu1 %4121  ;;  %v4239_v49 = vpack.c.bf16 %v4212_v54, %v4211_v41 }
 0x79a   :  { %v15447_v39 = vpop.eup %15446  ;;  %15458 = vrcp.f32 %v4122_v61 }
 0x79b   :  { %v15449_v30 = vpop.eup %15448  ;;  %14155 = vmatmul.mubr.msk.bf16.vlgmr.msra.gmra.mrb[148].mxu0 %vm1309_vm4, %v4238_v20  ;;  %14161 = vmatmul.mubr.msk.bf16.vlgmr.msra.gmra.mrb[152].mxu1 %vm1309_vm4, %v4239_v49  ;;  %v4128_v51 = vpop.xlane.xlu0 %4127  ;;  %v4213_v27 = vmul.f32 %v15447_v39, %v17481_v46 }
 0x79c   :  { %v15451_v58 = vpop.eup %15450  ;;  %14165 = vmatpush3.bf16.msra.mxu0 %v17557_v59  ;;  %14171 = vmatpush3.bf16.msra.mxu1 %v17579_v53  ;;  %15460 = vrcp.f32 %v4128_v51  ;;  %v4214_v28 = vmul.f32 %v15449_v30, %v17485_v33 }
 0x79d   :  { %v4137_v13 = vpop.xlane.xlu1 %4136  ;;  %14166 = vmatprep.mubr.msk.bf16.mxu0 %vm16007_vm3, %v20450_v24  ;;  %14172 = vmatprep.mubr.msk.bf16.mxu1 %vm16007_vm3, %v20450_v24  ;;  %v4216_v59 = vmul.f32 %v15451_v58, %v17489_v36 }
 0x79e   :  { %v15453_v56 = vpop.eup %15452  ;;  %14176 = vmatprep.subr.bf16.mxu0 %v20450_v24  ;;  %14182 = vmatprep.subr.bf16.mxu1 %v20450_v24  ;;  %15462 = vrcp.f32 %v4137_v13  ;;  %v4240_v18 = vpack.c.bf16 %v4214_v28, %v4213_v27 }
 0x79f   :  { %v4215_v53 = vmul.f32 %v15453_v56, %v17493_v25  ;;  %v4131_v45 = vpop.xlane.xlu0 %4130 }
 0x7a0   :  { %15464 = vrcp.f32 %v4131_v45  ;;  %v15455_v19 = vpop.eup %15454 }
 0x7a1   :  { %v4134_v46 = vpop.xlane.xlu1 %4133  ;;  %v4241_v15 = vpack.c.bf16 %v4216_v59, %v4215_v53  ;;  %v4219_v42 = vmul.f32 %v15455_v19, %v17497_v32 }
 0x7a2   :  { %15466 = vrcp.f32 %v4134_v46  ;;  %v15457_v5 = vpop.eup %15456 }
 0x7a3   :  { %14167 = vmatmul.mubr.msk.bf16.vlgmr.msra.gmra.mrb[152].mxu0 %vm1309_vm4, %v4240_v18  ;;  %14173 = vmatmul.mubr.msk.bf16.vlgmr.msra.gmra.mrb[156].mxu1 %vm1309_vm4, %v4241_v15  ;;  %v4140_v31 = vpop.xlane.xlu0 %4139 }
 0x7a4   :  { %v15459_v6 = vpop.eup %15458  ;;  %14177 = vmatpush3.bf16.msra.mxu0 %v17571_v14  ;;  %14183 = vmatpush3.bf16.msra.mxu1 %v17583_v35  ;;  %15468 = vrcp.f32 %v4140_v31  ;;  %v4217_v14 = vmul.f32 %v15457_v5, %v17501_v23 }
 0x7a5   :  { %v4218_v33 = vmul.f32 %v15459_v6, %v17505_v17  ;;  %v4149_v36 = vpop.xlane.xlu1 %4148  ;;  %14178 = vmatprep.mubr.msk.bf16.mxu0 %vm16007_vm3, %v20450_v24  ;;  %14184 = vmatprep.mubr.msk.bf16.mxu1 %vm16007_vm3, %v20450_v24 }
 0x7a6   :  { %v15461_v25 = vpop.eup %15460  ;;  %14188 = vmatprep.subr.bf16.mxu0 %v20450_v24  ;;  %14194 = vmatprep.subr.bf16.mxu1 %v20450_v24  ;;  %15470 = vrcp.f32 %v4149_v36 }
 0x7a7   :  { %v4220_v35 = vmul.f32 %v15461_v25, %v17509_v34  ;;  %v4143_v38 = vpop.xlane.xlu0 %4142  ;;  %v4242_v43 = vpack.c.bf16 %v4218_v33, %v4217_v14  ;;  %v15083_v25 = vld [vmem:[%s20247_s5] sm:$0xff]  }
 0x7a8   :  { %15472 = vrcp.f32 %v4143_v38  ;;  %v15463_v41 = vpop.eup %15462 }
 0x7a9   :  { %v4146_v17 = vpop.xlane.xlu1 %4145  ;;  %v4243_v54 = vpack.c.bf16 %v4220_v35, %v4219_v42  ;;  %v4223_v49 = vmul.f32 %v15463_v41, %v17513_v57 }
 0x7aa   :  { %15474 = vrcp.f32 %v4146_v17  ;;  %v15465_v40 = vpop.eup %15464 }
 0x7ab   :  { %14179 = vmatmul.mubr.msk.bf16.vlgmr.msra.gmra.mrb[156].mxu0 %vm1309_vm4, %v4242_v43  ;;  %14185 = vmatmul.mubr.msk.bf16.vlgmr.msra.gmra.mrb[160].mxu1 %vm1309_vm4, %v4243_v54  ;;  %v4152_v61 = vpop.xlane.xlu0 %4151 }
 0x7ac   :  { %v15467_v20 = vpop.eup %15466  ;;  %14189 = vmatpush3.bf16.msra.mxu0 %v17577_v52  ;;  %14195 = vmatpush3.bf16.msra.mxu1 %v17581_v21  ;;  %15476 = vrcp.f32 %v4152_v61  ;;  %v4221_v52 = vmul.f32 %v15465_v40, %v17517_v55 }
 0x7ad   :  { %v4222_v32 = vmul.f32 %v15467_v20, %v17521_v12  ;;  %v4161_v23 = vpop.xlane.xlu1 %4160  ;;  %14190 = vmatprep.mubr.msk.bf16.mxu0 %vm16007_vm3, %v20450_v24  ;;  %14196 = vmatprep.mubr.msk.bf16.mxu1 %vm16007_vm3, %v20450_v24 }
 0x7ae   :  { %v15469_v34 = vpop.eup %15468  ;;  %14200 = vmatprep.subr.bf16.mxu0 %v20450_v24  ;;  %14206 = vmatprep.subr.bf16.mxu1 %v20450_v24  ;;  %15478 = vrcp.f32 %v4161_v23 }
 0x7af   :  { %v4224_v21 = vmul.f32 %v15469_v34, %v17525_v16  ;;  %v4155_v39 = vpop.xlane.xlu0 %4154  ;;  %v4244_v30 = vpack.c.bf16 %v4222_v32, %v4221_v52 }
 0x7b0   :  { %15480 = vrcp.f32 %v4155_v39  ;;  %v15471_v58 = vpop.eup %15470 }
 0x7b1   :  { %v4158_v12 = vpop.xlane.xlu1 %4157  ;;  %v4245_v51 = vpack.c.bf16 %v4224_v21, %v4223_v49  ;;  %v4227_v16 = vmul.f32 %v15471_v58, %v17529_v26 }
 0x7b2   :  { %15482 = vrcp.f32 %v4158_v12  ;;  %v15473_v27 = vpop.eup %15472 }
 0x7b3   :  { %14191 = vmatmul.mubr.msk.bf16.vlgmr.msra.gmra.mrb[160].mxu0 %vm1309_vm4, %v4244_v30  ;;  %14197 = vmatmul.mubr.msk.bf16.vlgmr.msra.gmra.mrb[164].mxu1 %vm1309_vm4, %v4245_v51  ;;  %v4164_v13 = vpop.xlane.xlu0 %4163 }
 0x7b4   :  { %v15475_v56 = vpop.eup %15474  ;;  %14201 = vmatpush3.bf16.msra.mxu0 %v17585_v1  ;;  %14207 = vmatpush3.bf16.msra.mxu1 %v17589_v3  ;;  %15484 = vrcp.f32 %v4164_v13  ;;  %v4225_v1 = vmul.f32 %v15473_v27, %v17533_v29 }
 0x7b5   :  { %v4226_v57 = vmul.f32 %v15475_v56, %v17537_v47  ;;  %14202 = vmatprep.mubr.msk.bf16.mxu0 %vm16007_vm3, %v20450_v24  ;;  %14208 = vmatprep.mubr.msk.bf16.mxu1 %vm16007_vm3, %v20450_v24  ;;  %v4170_v28 = vpop.xlane.xlu1 %4169 }
 0x7b6   :  { %v15477_v55 = vpop.eup %15476  ;;  %14212 = vmatprep.subr.bf16.mxu0 %v20450_v24  ;;  %14218 = vmatprep.subr.bf16.mxu1 %v20450_v24 }
 0x7b7   :  { %v4228_v3 = vmul.f32 %v15477_v55, %v17541_v48  ;;  %v4167_v59 = vpop.xlane.xlu0 %4166  ;;  %v4246_v47 = vpack.c.bf16 %v4226_v57, %v4225_v1 }
 0x7b8   :  { %15486 = vrcp.f32 %v4167_v59  ;;  %v15479_v45 = vpop.eup %15478 }
 0x7b9   :  { %v4247_v53 = vpack.c.bf16 %v4228_v3, %v4227_v16  ;;  %15488 = vrcp.f32 %v4170_v28  ;;  %v4231_v29 = vmul.f32 %v15479_v45, %v17547_v8  ;;  %v4957_v33 = vpop.permute.xlu1 %4956 }
 0x7ba   :  { %v15481_v46 = vpop.eup %15480 }
 0x7bb   :  { %14203 = vmatmul.mubr.msk.bf16.vlgmr.msra.gmra.mrb[164].mxu0 %vm1309_vm4, %v4246_v47  ;;  %14209 = vmatmul.mubr.msk.bf16.vlgmr.msra.gmra.mrb[168].mxu1 %vm1309_vm4, %v4247_v53  ;;  %v4910_v18 = vpop.permute.xlu0 %4909  ;;  %v4229_v19 = vmul.f32 %v15481_v46, %v17551_v62 }
 0x7bc   :  { %v15483_v15 = vpop.eup %15482  ;;  %14213 = vmatpush3.bf16.msra.mxu0 %v17591_v44  ;;  %14219 = vmatpush3.bf16.msra.mxu1 %v4910_v18 }
 0x7bd   :  { %v4230_v26 = vmul.f32 %v15483_v15, %v17555_v37  ;;  %14214 = vmatprep.mubr.msk.bf16.mxu0 %vm16007_vm3, %v20450_v24  ;;  %14220 = vmatprep.mubr.msk.bf16.mxu1 %vm16007_vm3, %v20450_v24 }
 0x7be   :  { %v15485_v48 = vpop.eup %15484  ;;  %14224 = vmatprep.subr.bf16.mxu0 %v20450_v24 }
 0x7bf   :  { %v4232_v5 = vmul.f32 %v15485_v48, %v17561_v50  ;;  %v4248_v31 = vpack.c.bf16 %v4230_v26, %v4229_v19  ;;  %v15082_v50 = vld [vmem:[%s20247_s5 + $0x8] sm:$0xff]  }
 0x7c0   :  { %14230 = vmatprep.subr.bf16.mxu1 %v15082_v50 }
 0x7c1   :  { %v4249_v44 = vpack.c.bf16 %v4232_v5, %v4231_v29 }
 0x7c2   :  { %v15487_v6 = vpop.eup %15486 }
 0x7c3   :  { %14215 = vmatmul.mubr.msk.bf16.vlgmr.msra.gmra.mrb[168].mxu0 %vm1309_vm4, %v4248_v31  ;;  %14221 = vmatmul.mubr.msk.bf16.vlgmr.msra.gmra.mrb[172].mxu1 %vm1309_vm4, %v4249_v44  ;;  %v15489_v37 = vpop.eup %15488  ;;  %v4233_v36 = vmul.f32 %v15487_v6, %v17565_v60 }
 0x7c4   :  { %14225 = vmatpush3.bf16.msra.mxu0 %v4957_v33  ;;  %14226 = vmatprep.mubr.msk.bf16.mxu0 %vm16007_vm3, %v20450_v24  ;;  %v4234_v8 = vmul.f32 %v15489_v37, %v17569_v63 }
 0x7c5   :  { %14231 = vmatpush3.bf16.msra.mxu1 %v15082_v50 }
 0x7c6   :  { %v4250_v62 = vpack.c.bf16 %v4234_v8, %v4233_v36  ;;  %14264 = vmatprep.subr.bf16.mxu1 %v15083_v25 }
 0x7cb   :  { %14227 = vmatmul.mubr.msk.bf16.vlgmr.msra.gmra.mrb[172].mxu0 %vm1309_vm4, %v4250_v62 }
 0x826   :  { %v4291_v42 = vpop.f32.mrb[144].mxu1 }
 0x827   :  { %v14138_v14 = vpop.f32.mrb[145].mxu1 }
 0x828   :  { %v4294_v35 = vpop.f32.mrb[146].mxu1 }
 0x829   :  { %v5003_v60 = vpack.c.bf16 %v4294_v35, %v4291_v42  ;;  %v14139_v38 = vpop.f32.mrb[147].mxu1 }
 0x82b   :  { %14232 = vmatprep.mubr.msk.bf16.mxu1 %vm1309_vm4, %v5003_v60 }
 0x862   :  { %v4385_v63 = vpop.f32.mrb[148].mxu1 }
 0x863   :  { %v14150_v17 = vpop.f32.mrb[149].mxu1 }
 0x864   :  { %v4388_v43 = vpop.f32.mrb[150].mxu1 }
 0x865   :  { %v5005_v54 = vpack.c.bf16 %v4388_v43, %v4385_v63  ;;  %v14151_v41 = vpop.f32.mrb[151].mxu1 }
 0x866   :  { %v4338_v40 = vpop.f32.mrb[144].mxu0 }
 0x867   :  { %v14144_v61 = vpop.f32.mrb[145].mxu0 }
 0x868   :  { %v4341_v20 = vpop.f32.mrb[146].mxu0 }
 0x869   :  { %v5004_v32 = vpack.c.bf16 %v4341_v20, %v4338_v40  ;;  %v14145_v23 = vpop.f32.mrb[147].mxu0 }
 0x86b   :  { %14233 = vmatmul.mubr.msk.bf16.vlgmr.msra.gmra.mrb[176].mxu1 %vm1309_vm4, %v5004_v32 }
 0x86c   :  { %14236 = vmatprep.mubr.msk.bf16.mxu1 %vm1309_vm4, %v5005_v54  ;;  %14265 = vmatpush3.bf16.msra.mxu1 %v15083_v25 }
 0x86e   :  { %v4432_v34 = vpop.f32.mrb[148].mxu0  ;;  %v4479_v49 = vpop.f32.mrb[152].mxu1 }
 0x86f   :  { %v14156_v52 = vpop.f32.mrb[149].mxu0  ;;  %v14162_v21 = vpop.f32.mrb[153].mxu1 }
 0x870   :  { %v4435_v39 = vpop.f32.mrb[150].mxu0  ;;  %v4482_v12 = vpop.f32.mrb[154].mxu1 }
 0x871   :  { %v5006_v30 = vpack.c.bf16 %v4435_v39, %v4432_v34  ;;  %v5007_v51 = vpack.c.bf16 %v4482_v12, %v4479_v49  ;;  %v14157_v58 = vpop.f32.mrb[151].mxu0  ;;  %v14163_v27 = vpop.f32.mrb[155].mxu1 }
 0x873   :  { %14237 = vmatmul.mubr.msk.bf16.gmra.mrb[180].mxu1 %vm1309_vm4, %v5006_v30 }
 0x874   :  { %14240 = vmatprep.mubr.msk.bf16.mxu1 %vm1309_vm4, %v5007_v51 }
 0x876   :  { %v4526_v13 = vpop.f32.mrb[152].mxu0  ;;  %v4573_v56 = vpop.f32.mrb[156].mxu1 }
 0x877   :  { %v14168_v57 = vpop.f32.mrb[153].mxu0  ;;  %v14174_v55 = vpop.f32.mrb[157].mxu1 }
 0x878   :  { %v4529_v16 = vpop.f32.mrb[154].mxu0  ;;  %v4576_v1 = vpop.f32.mrb[158].mxu1  ;;  %v20509_v57 = vpack.c.bf16 %v17352_v22, %v17347_v4  ;;  %v20510_v55 = vpack.c.bf16 %v17363_v11, %v17358_v10  ;;  %v20520_v22 = vld [vmem:[#allocation45_spill] sm:$0xff]  ;;  %v20523_v11 = vld [vmem:[#allocation48_spill] sm:$0xff] }
 0x879   :  { %v5008_v3 = vpack.c.bf16 %v4529_v16, %v4526_v13  ;;  %v5009_v28 = vpack.c.bf16 %v4576_v1, %v4573_v56  ;;  %v14169_v59 = vpop.f32.mrb[155].mxu0  ;;  %v14175_v47 = vpop.f32.mrb[159].mxu1  ;;  %v20507_v13 = vpack.c.bf16 %v17321_v9, %v17316_v2  ;;  %v20508_v56 = vpack.c.bf16 %v17337_v7, %v17335_v0  ;;  %v20511_v16 = vld [vmem:[#allocation49_spill] sm:$0xff]  ;;  %v20514_v9 = vld [vmem:[#allocation39_spill] sm:$0xff] }
 0x87a   :  { %v20512_v1 = vld [vmem:[#allocation37_spill] sm:$0xff]  ;;  %v20517_v7 = vld [vmem:[#allocation51_spill] sm:$0xff]  ;;  %v20524_v47 = vld [vmem:[#allocation50_spill] sm:$0xff] }
 0x87b   :  { %14241 = vmatmul.mubr.msk.bf16.gmra.mrb[184].mxu1 %vm1309_vm4, %v5008_v3  ;;  %v20513_v2 = vpack.c.bf16 %v20511_v16, %v20512_v1  ;;  %v20515_v3 = vld [vmem:[#allocation52_spill] sm:$0xff]  ;;  %v20521_v59 = vld [vmem:[#allocation41_spill] sm:$0xff] }
 0x87c   :  { %14244 = vmatprep.mubr.msk.bf16.mxu1 %vm1309_vm4, %v5009_v28  ;;  %v20516_v0 = vpack.c.bf16 %v20514_v9, %v20515_v3  ;;  %v20518_v28 = vld [vmem:[#allocation56_spill] sm:$0xff]  ;;  %v20522_v10 = vpack.c.bf16 %v20520_v22, %v20521_v59  ;;  %v20553_v22 = vld [vmem:[#allocation9_spill] sm:$0xff] }
 0x87d   :  { %v20519_v4 = vpack.c.bf16 %v20517_v7, %v20518_v28  ;;  %v20552_v28 = vld [vmem:[#allocation8_spill] sm:$0xff] }
 0x87e   :  { %v4620_v53 = vpop.f32.mrb[156].mxu0  ;;  %v4667_v45 = vpop.f32.mrb[160].mxu1 }
 0x87f   :  { %v14180_v46 = vpop.f32.mrb[157].mxu0  ;;  %v14186_v18 = vpop.f32.mrb[161].mxu1 }
 0x880   :  { %v4623_v15 = vpop.f32.mrb[158].mxu0  ;;  %v4670_v26 = vpop.f32.mrb[162].mxu1  ;;  %v20527_v46 = vld [vmem:[#allocation34_spill] sm:$0xff] }
 0x881   :  { %v5010_v48 = vpack.c.bf16 %v4623_v15, %v4620_v53  ;;  %v5011_v29 = vpack.c.bf16 %v4670_v26, %v4667_v45  ;;  %v14181_v19 = vpop.f32.mrb[159].mxu0  ;;  %v14187_v5 = vpop.f32.mrb[163].mxu1  ;;  %v20525_v53 = vpack.c.bf16 %v20523_v11, %v20524_v47  ;;  %v20526_v45 = vld [vmem:[#allocation36_spill] sm:$0xff]  ;;  %v20529_v15 = vld [vmem:[#allocation38_spill] sm:$0xff]  ;;  %v20530_v26 = vld [vmem:[#allocation35_spill] sm:$0xff] }
 0x882   :  { %v20528_v18 = vpack.c.bf16 %v20526_v45, %v20527_v46  ;;  %v20533_v19 = vld [vmem:[#allocation40_spill] sm:$0xff] }
 0x883   :  { %14245 = vmatmul.mubr.msk.bf16.gmra.mrb[188].mxu1 %vm1309_vm4, %v5010_v48  ;;  %v20531_v48 = vpack.c.bf16 %v20529_v15, %v20530_v26 }
 0x884   :  { %14248 = vmatprep.mubr.msk.bf16.mxu1 %vm1309_vm4, %v5011_v29  ;;  %v20532_v29 = vld [vmem:[#allocation53_spill] sm:$0xff] }
 0x885   :  { %v20534_v5 = vpack.c.bf16 %v20532_v29, %v20533_v19 }
 0x886   :  { %v4714_v31 = vpop.f32.mrb[160].mxu0  ;;  %v4761_v44 = vpop.f32.mrb[164].mxu1 }
 0x887   :  { %v14192_v6 = vpop.f32.mrb[161].mxu0  ;;  %v14198_v33 = vpop.f32.mrb[165].mxu1 }
 0x888   :  { %v4717_v37 = vpop.f32.mrb[162].mxu0  ;;  %v4764_v36 = vpop.f32.mrb[166].mxu1  ;;  %v20538_v33 = vld [vmem:[#allocation57_spill] sm:$0xff] }
 0x889   :  { %v5012_v8 = vpack.c.bf16 %v4717_v37, %v4714_v31  ;;  %v5013_v62 = vpack.c.bf16 %v4764_v36, %v4761_v44  ;;  %v14193_v50 = vpop.f32.mrb[163].mxu0  ;;  %v14199_v25 = vpop.f32.mrb[167].mxu1  ;;  %v20535_v31 = vld [vmem:[#allocation54_spill] sm:$0xff]  ;;  %v20536_v44 = vld [vmem:[#allocation43_spill] sm:$0xff] }
 0x88a   :  { %v20537_v6 = vpack.c.bf16 %v20535_v31, %v20536_v44  ;;  %v20539_v37 = vld [vmem:[#allocation55_spill] sm:$0xff] }
 0x88b   :  { %14249 = vmatmul.mubr.msk.bf16.gmra.mrb[192].mxu1 %vm1309_vm4, %v5012_v8  ;;  %v20540_v36 = vpack.c.bf16 %v20538_v33, %v20539_v37  ;;  %v20541_v8 = vld [vmem:[#allocation44_spill] sm:$0xff]  ;;  %v20544_v25 = vld [vmem:[#allocation59_spill] sm:$0xff] }
 0x88c   :  { %14252 = vmatprep.mubr.msk.bf16.mxu1 %vm1309_vm4, %v5013_v62  ;;  %v20542_v62 = vld [vmem:[#allocation42_spill] sm:$0xff] }
 0x88d   :  { %v20543_v50 = vpack.c.bf16 %v20541_v8, %v20542_v62  ;;  %v20556_v8 = vld [vmem:[#allocation12_spill] sm:$0xff] }
 0x88e   :  { %v4808_v42 = vpop.f32.mrb[164].mxu0  ;;  %v4855_v14 = vpop.f32.mrb[168].mxu1 }
 0x88f   :  { %v14204_v35 = vpop.f32.mrb[165].mxu0  ;;  %v14210_v60 = vpop.f32.mrb[169].mxu1 }
 0x890   :  { %v4811_v38 = vpop.f32.mrb[166].mxu0  ;;  %v4858_v63 = vpop.f32.mrb[170].mxu1  ;;  %v17782_v35 = vld [vmem:[%s20248_s6] ss:$0 sm:$0xff] }
 0x891   :  { %v5014_v17 = vpack.c.bf16 %v4811_v38, %v4808_v42  ;;  %v5015_v43 = vpack.c.bf16 %v4858_v63, %v4855_v14  ;;  %v14205_v54 = vpop.f32.mrb[167].mxu0  ;;  %v14211_v41 = vpop.f32.mrb[171].mxu1  ;;  %v20545_v42 = vld [vmem:[#allocation58_spill] sm:$0xff] }
 0x892   :  { %v20546_v14 = vpack.c.bf16 %v20544_v25, %v20545_v42  ;;  %v20547_v41 = vld [vmem:[#allocation2_spill] sm:$0xff] }
 0x893   :  { %14253 = vmatmul.mubr.msk.bf16.gmra.mrb[196].mxu1 %vm1309_vm4, %v5014_v17 }
 0x894   :  { %14256 = vmatprep.mubr.msk.bf16.mxu1 %vm1309_vm4, %v5015_v43 }
 0x896   :  { %v4902_v40 = vpop.f32.mrb[168].mxu0  ;;  %v4949_v61 = vpop.f32.mrb[172].mxu1 }
 0x897   :  { %v14216_v20 = vpop.f32.mrb[169].mxu0  ;;  %v14222_v32 = vpop.f32.mrb[173].mxu1 }
 0x898   :  { %v4905_v23 = vpop.f32.mrb[170].mxu0  ;;  %v4952_v34 = vpop.f32.mrb[174].mxu1 }
 0x899   :  { %v5016_v49 = vpack.c.bf16 %v4905_v23, %v4902_v40  ;;  %v5017_v52 = vpack.c.bf16 %v4952_v34, %v4949_v61  ;;  %v14217_v21 = vpop.f32.mrb[171].mxu0  ;;  %v14223_v39 = vpop.f32.mrb[175].mxu1  ;;  %v20548_v61 = vld [vmem:[#allocation3_spill] sm:$0xff]  ;;  %v20549_v34 = vld [vmem:[#allocation5_spill] sm:$0xff] }
 0x89a   :  { %v20550_v21 = vld [vmem:[#allocation4_spill] sm:$0xff] }
 0x89b   :  { %14257 = vmatmul.mubr.msk.bf16.gmra.mrb[200].mxu1 %vm1309_vm4, %v5016_v49 }
 0x89c   :  { %14260 = vmatprep.mubr.msk.bf16.mxu1 %vm1309_vm4, %v5017_v52 }
 0x89e   :  { %v4996_v12 = vpop.f32.mrb[172].mxu0 }
 0x89f   :  { %v14228_v30 = vpop.f32.mrb[173].mxu0 }
 0x8a0   :  { %v4999_v51 = vpop.f32.mrb[174].mxu0 }
 0x8a1   :  { %v5018_v58 = vpack.c.bf16 %v4999_v51, %v4996_v12  ;;  %v14229_v27 = vpop.f32.mrb[175].mxu0 }
 0x8a3   :  { %14261 = vmatmul.mubr.msk.bf16.gmra.mrb[204].mxu1 %vm1309_vm4, %v5018_v58 }
 0x8a4   :  { %14266 = vmatprep.mubr.msk.bf16.mxu1 %vm1309_vm4, %v20507_v13 }
 0x8ab   :  { %14267 = vmatmul.mubr.msk.bf16.vlgmr.msra.gmra.mrb[176].mxu1 %vm1309_vm4, %v20508_v56 }
 0x8ac   :  { %14270 = vmatprep.mubr.msk.bf16.mxu1 %vm1309_vm4, %v20509_v57 }
 0x8b3   :  { %14271 = vmatmul.mubr.msk.bf16.gmra.mrb[180].mxu1 %vm1309_vm4, %v20510_v55 }
 0x8b4   :  { %14274 = vmatprep.mubr.msk.bf16.mxu1 %vm1309_vm4, %v20513_v2  ;;  %v20551_v2 = vld [vmem:[#allocation7_spill] sm:$0xff] }
 0x8bb   :  { %14275 = vmatmul.mubr.msk.bf16.gmra.mrb[184].mxu1 %vm1309_vm4, %v20516_v0 }
 0x8bc   :  { %14278 = vmatprep.mubr.msk.bf16.mxu1 %vm1309_vm4, %v20519_v4 }
 0x8c3   :  { %14279 = vmatmul.mubr.msk.bf16.gmra.mrb[188].mxu1 %vm1309_vm4, %v20522_v10  ;;  %v20554_v10 = vld [vmem:[#allocation6_spill] sm:$0xff] }
 0x8c4   :  { %14282 = vmatprep.mubr.msk.bf16.mxu1 %vm1309_vm4, %v20525_v53 }
 0x8cb   :  { %14283 = vmatmul.mubr.msk.bf16.gmra.mrb[192].mxu1 %vm1309_vm4, %v20528_v18 }
 0x8cc   :  { %14286 = vmatprep.mubr.msk.bf16.mxu1 %vm1309_vm4, %v20531_v48 }
 0x8d3   :  { %14287 = vmatmul.mubr.msk.bf16.gmra.mrb[196].mxu1 %vm1309_vm4, %v20534_v5 }
 0x8d4   :  { %14290 = vmatprep.mubr.msk.bf16.mxu1 %vm1309_vm4, %v20537_v6  ;;  %v20555_v6 = vld [vmem:[#allocation11_spill] sm:$0xff] }
 0x8db   :  { %14291 = vmatmul.mubr.msk.bf16.gmra.mrb[200].mxu1 %vm1309_vm4, %v20540_v36 }
 0x8dc   :  { %14294 = vmatprep.mubr.msk.bf16.mxu1 %vm1309_vm4, %v20543_v50  ;;  %v20557_v50 = vld [vmem:[#allocation13_spill] sm:$0xff] }
 0x8e3   :  { %14295 = vmatmul.mubr.msk.bf16.gmra.mrb[204].mxu1 %vm1309_vm4, %v20546_v14  ;;  %v20558_v14 = vld [vmem:[#allocation10_spill] sm:$0xff] }
 0x97e   :  { %v14268_v60 = vpop.f32.mrb[176].mxu1 }
 0x97f   :  { %v5458_v38 = vmul.f32 %v14268_v60, %v17782_v35  ;;  %v5322_v63 = vpop.f32.mrb[177].mxu1 }
 0x980   :  { %v5456_v17 = vmul.f32 %v17782_v35, %v5322_v63  ;;  %v14269_v43 = vpop.f32.mrb[178].mxu1 }
 0x981   :  { %v5325_v54 = vpop.f32.mrb[179].mxu1  ;;  %v17787_v40 = vadd.f32 %v5458_v38, %v20547_v41  ;;  %v5459_v32 = vmul.f32 %v14269_v43, %v17782_v35 }
 0x982   :  { %v17790_v20 = vadd.f32 %v5456_v17, %v20548_v61  ;;  %v5457_v23 = vmul.f32 %v17782_v35, %v5325_v54 }
 0x983   :  { %v17800_v39 = vadd.f32 %v5459_v32, %v20550_v21  ;;  %v5522_v58 = vmul.f32 %v17787_v40, %v17787_v40 }
 0x984   :  { %v17795_v49 = vadd.f32 %v5457_v23, %v20549_v34  ;;  %v5520_v52 = vmul.f32 %v17790_v20, %v17790_v20 }
 0x985   :  { %v5558_v0 = vsel %vm449_vm1, %v5522_v58, 0.0  ;;  %v5523_v7 = vmul.f32 %v17800_v39, %v17800_v39 }
 0x986   :  { %v14272_v12 = vpop.f32.mrb[180].mxu1  ;;  %v5552_v30 = vsel %vm449_vm1, %v5520_v52, 0.0  ;;  %v5521_v51 = vmul.f32 %v17795_v49, %v17795_v49 }
 0x987   :  { %5553 = vadd.xlane.f32.xlu0 %v5552_v30  ;;  %v5338_v27 = vpop.f32.mrb[181].mxu1  ;;  %v5462_v55 = vmul.f32 %v14272_v12, %v17782_v35  ;;  %v5561_v53 = vsel %vm449_vm1, %v5523_v7, 0.0  ;;  %v20559_v12 = vld [vmem:[#allocation15_spill] sm:$0xff] }
 0x988   :  { %v5460_v13 = vmul.f32 %v17782_v35, %v5338_v27  ;;  %v14273_v56 = vpop.f32.mrb[182].mxu1  ;;  %v5555_v57 = vsel %vm449_vm1, %v5521_v51, 0.0 }
 0x989   :  { %v5463_v16 = vmul.f32 %v14273_v56, %v17782_v35  ;;  %5556 = vadd.xlane.f32.xlu1 %v5555_v57  ;;  %v5341_v1 = vpop.f32.mrb[183].mxu1  ;;  %v17825_v11 = vadd.f32 %v5462_v55, %v20554_v10  ;;  %v20561_v57 = vld [vmem:[#allocation17_spill] sm:$0xff] }
 0x98a   :  { %v17812_v9 = vadd.f32 %v5460_v13, %v20551_v2  ;;  %v5461_v3 = vmul.f32 %v17782_v35, %v5341_v1  ;;  %v20560_v13 = vld [vmem:[#allocation16_spill] sm:$0xff]  ;;  %v20562_v1 = vld [vmem:[#allocation14_spill] sm:$0xff] }
 0x98b   :  { %5559 = vadd.xlane.f32.xlu0 %v5558_v0  ;;  %v17819_v4 = vadd.f32 %v5463_v16, %v20552_v28  ;;  %v5526_v31 = vmul.f32 %v17825_v11, %v17825_v11 }
 0x98c   :  { %v17822_v59 = vadd.f32 %v5461_v3, %v20553_v22  ;;  %v5524_v46 = vmul.f32 %v17812_v9, %v17812_v9 }
 0x98d   :  { %v5527_v29 = vmul.f32 %v17819_v4, %v17819_v4  ;;  %v5570_v63 = vsel %vm449_vm1, %v5526_v31, 0.0  ;;  %v20564_v31 = vld [vmem:[#allocation20_spill] sm:$0xff] }
 0x98e   :  { %v14276_v47 = vpop.f32.mrb[184].mxu1  ;;  %v5525_v45 = vmul.f32 %v17822_v59, %v17822_v59  ;;  %v5564_v36 = vsel %vm449_vm1, %v5524_v46, 0.0 }
 0x98f   :  { %5562 = vadd.xlane.f32.xlu0 %v5561_v53  ;;  %v5354_v18 = vpop.f32.mrb[185].mxu1  ;;  %v5466_v44 = vmul.f32 %v14276_v47, %v17782_v35  ;;  %v5573_v42 = vsel %vm449_vm1, %v5527_v29, 0.0 }
 0x990   :  { %v5464_v15 = vmul.f32 %v17782_v35, %v5354_v18  ;;  %v14277_v26 = vpop.f32.mrb[186].mxu1  ;;  %v5567_v48 = vsel %vm449_vm1, %v5525_v45, 0.0 }
 0x991   :  { %v5467_v19 = vmul.f32 %v14277_v26, %v17782_v35  ;;  %5568 = vadd.xlane.f32.xlu1 %v5567_v48  ;;  %v5357_v5 = vpop.f32.mrb[187].mxu1  ;;  %v17853_v60 = vadd.f32 %v5466_v44, %v20558_v14  ;;  %v20563_v48 = vld [vmem:[#allocation19_spill] sm:$0xff] }
 0x992   :  { %v17841_v33 = vadd.f32 %v5464_v15, %v20555_v6  ;;  %v5465_v37 = vmul.f32 %v17782_v35, %v5357_v5  ;;  %v20565_v6 = vld [vmem:[#allocation21_spill] sm:$0xff] }
 0x993   :  { %5565 = vadd.xlane.f32.xlu0 %v5564_v36  ;;  %v17846_v62 = vadd.f32 %v5467_v19, %v20556_v8  ;;  %v5530_v27 = vmul.f32 %v17853_v60, %v17853_v60 }
 0x994   :  { %v17849_v25 = vadd.f32 %v5465_v37, %v20557_v50  ;;  %v5528_v43 = vmul.f32 %v17841_v33, %v17841_v33  ;;  %v20566_v50 = vld [vmem:[#allocation18_spill] sm:$0xff] }
 0x995   :  { %5574 = vadd.xlane.f32.xlu1 %v5573_v42  ;;  %v5531_v23 = vmul.f32 %v17846_v62, %v17846_v62  ;;  %v5582_v0 = vsel %vm449_vm1, %v5530_v27, 0.0 }
 0x996   :  { %v14280_v38 = vpop.f32.mrb[188].mxu1  ;;  %v5529_v17 = vmul.f32 %v17849_v25, %v17849_v25  ;;  %v5576_v58 = vsel %vm449_vm1, %v5528_v43, 0.0 }
 0x997   :  { %5571 = vadd.xlane.f32.xlu0 %v5570_v63  ;;  %v5370_v54 = vpop.f32.mrb[189].mxu1  ;;  %v5470_v34 = vmul.f32 %v14280_v38, %v17782_v35  ;;  %v5585_v16 = vsel %vm449_vm1, %v5531_v23, 0.0 }
 0x998   :  { %v5468_v41 = vmul.f32 %v17782_v35, %v5370_v54  ;;  %v14281_v61 = vpop.f32.mrb[190].mxu1  ;;  %v5579_v32 = vsel %vm449_vm1, %v5529_v17, 0.0 }
 0x999   :  { %v5471_v52 = vmul.f32 %v14281_v61, %v17782_v35  ;;  %5580 = vadd.xlane.f32.xlu1 %v5579_v32  ;;  %v5373_v21 = vpop.f32.mrb[191].mxu1  ;;  %v17881_v2 = vadd.f32 %v5470_v34, %v20562_v1  ;;  %v15084_v32 = vld [vmem:[%s20249_s7] sm:$0xff]   ;;  %v20569_v1 = vld [vmem:[#allocation25_spill] sm:$0xff] }
 0x99a   :  { %v17867_v30 = vadd.f32 %v5468_v41, %v20559_v12  ;;  %v5469_v51 = vmul.f32 %v17782_v35, %v5373_v21  ;;  %v20567_v12 = vld [vmem:[#allocation23_spill] sm:$0xff]  ;;  %14298 = vmatprep.subr.bf16.mxu0 %v15084_v32 }
 0x99b   :  { %5577 = vadd.xlane.f32.xlu0 %v5576_v58  ;;  %v17874_v56 = vadd.f32 %v5471_v52, %v20560_v13  ;;  %v5534_v15 = vmul.f32 %v17881_v2, %v17881_v2  ;;  %14299 = vmatpush3.bf16.msra.mxu0 %v15084_v32  ;;  %v15085_v13 = vld [vmem:[%s20249_s7 + $0x8] sm:$0xff]  }
 0x99c   :  { %v17877_v55 = vadd.f32 %v5469_v51, %v20561_v57  ;;  %v5532_v28 = vmul.f32 %v17867_v30, %v17867_v30  ;;  %v20568_v57 = vld [vmem:[#allocation24_spill] sm:$0xff]  ;;  %14300 = vmatprep.subr.bf16.mxu0 %v15085_v13 }
 0x99d   :  { %5586 = vadd.xlane.f32.xlu1 %v5585_v16  ;;  %v5535_v45 = vmul.f32 %v17874_v56, %v17874_v56  ;;  %v5594_v38 = vsel %vm449_vm1, %v5534_v15, 0.0 }
 0x99e   :  { %v14284_v3 = vpop.f32.mrb[192].mxu1  ;;  %v5533_v7 = vmul.f32 %v17877_v55, %v17877_v55  ;;  %v5588_v5 = vsel %vm449_vm1, %v5532_v28, 0.0 }
 0x99f   :  { %5583 = vadd.xlane.f32.xlu0 %v5582_v0  ;;  %v5386_v22 = vpop.f32.mrb[193].mxu1  ;;  %v5474_v26 = vmul.f32 %v14284_v3, %v17782_v35  ;;  %v5597_v36 = vsel %vm449_vm1, %v5535_v45, 0.0  ;;  %14301 = vmatpush3.bf16.msra.mxu0 %v15085_v13 }
 0x9a0   :  { %v5472_v10 = vmul.f32 %v17782_v35, %v5386_v22  ;;  %v14285_v47 = vpop.f32.mrb[194].mxu1  ;;  %v5591_v53 = vsel %vm449_vm1, %v5533_v7, 0.0  ;;  %v20570_v7 = vld [vmem:[#allocation22_spill] sm:$0xff] }
 0x9a1   :  { %v5475_v46 = vmul.f32 %v14285_v47, %v17782_v35  ;;  %5592 = vadd.xlane.f32.xlu1 %v5591_v53  ;;  %v5389_v18 = vpop.f32.mrb[195].mxu1  ;;  %v17911_v42 = vadd.f32 %v5474_v26, %v20566_v50 }
 0x9a2   :  { %v17897_v29 = vadd.f32 %v5472_v10, %v20563_v48  ;;  %v5473_v19 = vmul.f32 %v17782_v35, %v5389_v18 }
 0x9a3   :  { %5589 = vadd.xlane.f32.xlu0 %v5588_v5  ;;  %v17902_v44 = vadd.f32 %v5475_v46, %v20564_v31  ;;  %v5538_v27 = vmul.f32 %v17911_v42, %v17911_v42 }
 0x9a4   :  { %v17905_v37 = vadd.f32 %v5473_v19, %v20565_v6  ;;  %v5536_v8 = vmul.f32 %v17897_v29, %v17897_v29  ;;  %v20571_v6 = vld [vmem:[#allocation27_spill] sm:$0xff] }
 0x9a5   :  { %5598 = vadd.xlane.f32.xlu1 %v5597_v36  ;;  %v5539_v61 = vmul.f32 %v17902_v44, %v17902_v44  ;;  %v5606_v10 = vsel %vm449_vm1, %v5538_v27, 0.0 }
 0x9a6   :  { %v14288_v14 = vpop.f32.mrb[196].mxu1  ;;  %v5537_v63 = vmul.f32 %v17905_v37, %v17905_v37  ;;  %v5600_v21 = vsel %vm449_vm1, %v5536_v8, 0.0 }
 0x9a7   :  { %5595 = vadd.xlane.f32.xlu0 %v5594_v38  ;;  %v5402_v17 = vpop.f32.mrb[197].mxu1  ;;  %v5478_v23 = vmul.f32 %v14288_v14, %v17782_v35  ;;  %v5609_v0 = vsel %vm449_vm1, %v5539_v61, 0.0  ;;  %v20572_v14 = vld [vmem:[#allocation28_spill] sm:$0xff] }
 0x9a8   :  { %v5476_v43 = vmul.f32 %v17782_v35, %v5402_v17  ;;  %v14289_v54 = vpop.f32.mrb[198].mxu1  ;;  %v5603_v41 = vsel %vm449_vm1, %v5537_v63, 0.0  ;;  %v20573_v63 = vld [vmem:[#allocation29_spill] sm:$0xff] }
 0x9a9   :  { %v5479_v34 = vmul.f32 %v14289_v54, %v17782_v35  ;;  %5604 = vadd.xlane.f32.xlu1 %v5603_v41  ;;  %v5405_v52 = vpop.f32.mrb[199].mxu1  ;;  %v17943_v28 = vadd.f32 %v5478_v23, %v20570_v7  ;;  %v20574_v54 = vld [vmem:[#allocation26_spill] sm:$0xff] }
 0x9aa   :  { %v17927_v51 = vadd.f32 %v5476_v43, %v20567_v12  ;;  %v5477_v58 = vmul.f32 %v17782_v35, %v5405_v52 }
 0x9ab   :  { %5601 = vadd.xlane.f32.xlu0 %v5600_v21  ;;  %v17936_v16 = vadd.f32 %v5479_v34, %v20568_v57  ;;  %v5542_v5 = vmul.f32 %v17943_v28, %v17943_v28 }
 0x9ac   :  { %v17939_v3 = vadd.f32 %v5477_v58, %v20569_v1  ;;  %v5540_v53 = vmul.f32 %v17927_v51, %v17927_v51 }
 0x9ad   :  { %5610 = vadd.xlane.f32.xlu1 %v5609_v0  ;;  %v5543_v26 = vmul.f32 %v17936_v16, %v17936_v16  ;;  %v5618_v32 = vsel %vm449_vm1, %v5542_v5, 0.0  ;;  %v20575_v0 = vld [vmem:[#allocation31_spill] sm:$0xff] }
 0x9ae   :  { %v14292_v22 = vpop.f32.mrb[200].mxu1  ;;  %v5541_v47 = vmul.f32 %v17939_v3, %v17939_v3  ;;  %v5612_v50 = vsel %vm449_vm1, %v5540_v53, 0.0  ;;  %v20576_v53 = vld [vmem:[#allocation32_spill] sm:$0xff] }
 0x9af   :  { %5607 = vadd.xlane.f32.xlu0 %v5606_v10  ;;  %v5418_v45 = vpop.f32.mrb[201].mxu1  ;;  %v5482_v31 = vmul.f32 %v14292_v22, %v17782_v35  ;;  %v5621_v43 = vsel %vm449_vm1, %v5543_v26, 0.0  ;;  %v20578_v26 = vld [vmem:[#allocation30_spill] sm:$0xff] }
 0x9b0   :  { %v5480_v46 = vmul.f32 %v17782_v35, %v5418_v45  ;;  %v14293_v18 = vpop.f32.mrb[202].mxu1  ;;  %v5615_v15 = vsel %vm449_vm1, %v5541_v47, 0.0 }
 0x9b1   :  { %v5483_v48 = vmul.f32 %v14293_v18, %v17782_v35  ;;  %5616 = vadd.xlane.f32.xlu1 %v5615_v15  ;;  %v5421_v19 = vpop.f32.mrb[203].mxu1  ;;  %v17971_v41 = vadd.f32 %v5482_v31, %v20574_v54 }
 0x9b2   :  { %v17959_v36 = vadd.f32 %v5480_v46, %v20571_v6  ;;  %v5481_v8 = vmul.f32 %v17782_v35, %v5421_v19  ;;  %v20577_v46 = vld [vmem:[#allocation33_spill] sm:$0xff] }
 0x9b3   :  { %5613 = vadd.xlane.f32.xlu0 %v5612_v50  ;;  %v17964_v38 = vadd.f32 %v5483_v48, %v20572_v14  ;;  %v5546_v47 = vmul.f32 %v17971_v41, %v17971_v41 }
 0x9b4   :  { %v17967_v17 = vadd.f32 %v5481_v8, %v20573_v63  ;;  %v5544_v34 = vmul.f32 %v17959_v36, %v17959_v36 }
 0x9b5   :  { %5622 = vadd.xlane.f32.xlu1 %v5621_v43  ;;  %v5547_v13 = vmul.f32 %v17964_v38, %v17964_v38  ;;  %v18017_v43 = vld [vmem:[%s20250_s8] sm:$0xff]  }
 0x9b6   :  { %v14296_v61 = vpop.f32.mrb[204].mxu1  ;;  %v5545_v23 = vmul.f32 %v17967_v17, %v17967_v17  ;;  %v5624_v10 = vsel %vm449_vm1, %v5544_v34, 0.0  ;;  %14334 = vmatprep.subr.bf16.mxu0 %v18017_v43 }
 0x9b7   :  { %v5486_v52 = vmul.f32 %v14296_v61, %v17782_v35  ;;  %5619 = vadd.xlane.f32.xlu0 %v5618_v32  ;;  %v5434_v21 = vpop.f32.mrb[205].mxu1  ;;  %v5633_v15 = vsel %vm449_vm1, %v5547_v13, 0.0 }
 0x9b8   :  { %v5484_v12 = vmul.f32 %v17782_v35, %v5434_v21  ;;  %v14297_v58 = vpop.f32.mrb[206].mxu1  ;;  %v5627_v27 = vsel %vm449_vm1, %v5545_v23, 0.0 }
 0x9b9   :  { %v5487_v57 = vmul.f32 %v14297_v58, %v17782_v35  ;;  %5628 = vadd.xlane.f32.xlu1 %v5627_v27  ;;  %v5437_v1 = vpop.f32.mrb[207].mxu1  ;;  %v17999_v48 = vadd.f32 %v5486_v52, %v20578_v26 }
 0x9ba   :  { %v17985_v7 = vadd.f32 %v5484_v12, %v20575_v0  ;;  %v5485_v22 = vmul.f32 %v17782_v35, %v5437_v1  ;;  %v5630_v35 = vsel %vm449_vm1, %v5546_v47, 0.0 }
 0x9bb   :  { %5625 = vadd.xlane.f32.xlu0 %v5624_v10  ;;  %v17992_v45 = vadd.f32 %v5487_v57, %v20576_v53  ;;  %v5550_v50 = vmul.f32 %v17999_v48, %v17999_v48 }
 0x9bc   :  { %v17995_v18 = vadd.f32 %v5485_v22, %v20577_v46  ;;  %v5548_v5 = vmul.f32 %v17985_v7, %v17985_v7 }
 0x9bd   :  { %5634 = vadd.xlane.f32.xlu1 %v5633_v15  ;;  %v5551_v6 = vmul.f32 %v17992_v45, %v17992_v45  ;;  %v5642_v63 = vsel %vm449_vm1, %v5550_v50, 0.0 }
 0x9be   :  { %v5549_v19 = vmul.f32 %v17995_v18, %v17995_v18  ;;  %v5636_v8 = vsel %vm449_vm1, %v5548_v5, 0.0 }
 0x9bf   :  { %5631 = vadd.xlane.f32.xlu0 %v5630_v35  ;;  %v5645_v14 = vsel %vm449_vm1, %v5551_v6, 0.0 }
 0x9c0   :  { %v5639_v31 = vsel %vm449_vm1, %v5549_v19, 0.0 }
 0x9c1   :  { %5640 = vadd.xlane.f32.xlu1 %v5639_v31 }
 0x9c3   :  { %5637 = vadd.xlane.f32.xlu0 %v5636_v8 }
 0x9c5   :  { %5646 = vadd.xlane.f32.xlu1 %v5645_v14 }
 0x9c7   :  { %5643 = vadd.xlane.f32.xlu0 %v5642_v63 }
 0xa14   :  { %v5554_v54 = vpop.xlane.xlu0 %5553 }
 0xa15   :  { %v5648_v61 = vmul.f32 0.03125, %v5554_v54 }
 0xa16   :  { %v5557_v32 = vpop.xlane.xlu1 %5556 }
 0xa17   :  { %v5680_v23 = vadd.f32 1e-06, %v5648_v61  ;;  %v5649_v34 = vmul.f32 0.03125, %v5557_v32 }
 0xa18   :  { %v5560_v52 = vpop.xlane.xlu0 %5559 }
 0xa19   :  { %15490 = vrsqrt.f32 %v5680_v23  ;;  %v5681_v21 = vadd.f32 1e-06, %v5649_v34  ;;  %v5650_v12 = vmul.f32 0.03125, %v5560_v52 }
 0xa1b   :  { %15492 = vrsqrt.f32 %v5681_v21  ;;  %v5682_v58 = vadd.f32 1e-06, %v5650_v12 }
 0xa1c   :  { %v5563_v27 = vpop.xlane.xlu0 %5562 }
 0xa1d   :  { %v5651_v13 = vmul.f32 0.03125, %v5563_v27  ;;  %15494 = vrsqrt.f32 %v5682_v58 }
 0xa1e   :  { %v5569_v57 = vpop.xlane.xlu1 %5568 }
 0xa1f   :  { %v5683_v1 = vadd.f32 1e-06, %v5651_v13  ;;  %v5653_v0 = vmul.f32 0.03125, %v5569_v57 }
 0xa20   :  { %v5566_v22 = vpop.xlane.xlu0 %5565 }
 0xa21   :  { %15496 = vrsqrt.f32 %v5683_v1  ;;  %v5685_v10 = vadd.f32 1e-06, %v5653_v0  ;;  %v5652_v47 = vmul.f32 0.03125, %v5566_v22 }
 0xa22   :  { %v5575_v53 = vpop.xlane.xlu1 %5574 }
 0xa23   :  { %v15491_v46 = vpop.eup %15490  ;;  %15498 = vrsqrt.f32 %v5685_v10  ;;  %v5684_v15 = vadd.f32 1e-06, %v5652_v47  ;;  %v5655_v26 = vmul.f32 0.03125, %v5575_v53  ;;  %v15087_v53 = vld [vmem:[%s20250_s8 + $0x8] sm:$0xff]  }
 0xa24   :  { %v5572_v35 = vpop.xlane.xlu0 %5571  ;;  %v5744_v8 = vmul.f32 %v15491_v46, %v17790_v20 }
 0xa25   :  { %v15493_v19 = vpop.eup %15492  ;;  %15500 = vrsqrt.f32 %v5684_v15  ;;  %v5687_v5 = vadd.f32 1e-06, %v5655_v26  ;;  %v5654_v31 = vmul.f32 0.03125, %v5572_v35 }
 0xa26   :  { %v5581_v6 = vpop.xlane.xlu1 %5580  ;;  %v5745_v50 = vmul.f32 %v15493_v19, %v17795_v49 }
 0xa27   :  { %15502 = vrsqrt.f32 %v5687_v5  ;;  %v5686_v14 = vadd.f32 1e-06, %v5654_v31  ;;  %v5657_v63 = vmul.f32 0.03125, %v5581_v6  ;;  %v15495_v32 = vpop.eup %15494 }
 0xa28   :  { %v5578_v54 = vpop.xlane.xlu0 %5577  ;;  %v5776_v61 = vpack.c.bf16 %v5745_v50, %v5744_v8  ;;  %v5746_v27 = vmul.f32 %v15495_v32, %v17787_v40 }
 0xa29   :  { %15504 = vrsqrt.f32 %v5686_v14  ;;  %v5689_v23 = vadd.f32 1e-06, %v5657_v63  ;;  %v5656_v34 = vmul.f32 0.03125, %v5578_v54 }
 0xa2a   :  { %14302 = vmatprep.mubr.msk.bf16.mxu0 %vm449_vm1, %v5776_v61  ;;  %v5587_v52 = vpop.xlane.xlu1 %5586 }
 0xa2b   :  { %v15497_v21 = vpop.eup %15496  ;;  %15506 = vrsqrt.f32 %v5689_v23  ;;  %v5688_v12 = vadd.f32 1e-06, %v5656_v34  ;;  %v5659_v58 = vmul.f32 0.03125, %v5587_v52 }
 0xa2c   :  { %v5747_v13 = vmul.f32 %v15497_v21, %v17800_v39  ;;  %v5584_v57 = vpop.xlane.xlu0 %5583 }
 0xa2d   :  { %v15499_v1 = vpop.eup %15498  ;;  %15508 = vrsqrt.f32 %v5688_v12  ;;  %v5691_v0 = vadd.f32 1e-06, %v5659_v58  ;;  %v5658_v22 = vmul.f32 0.03125, %v5584_v57 }
 0xa2e   :  { %v5593_v10 = vpop.xlane.xlu1 %5592  ;;  %v5777_v47 = vpack.c.bf16 %v5747_v13, %v5746_v27  ;;  %v5749_v5 = vmul.f32 %v15499_v1, %v17822_v59 }
 0xa2f   :  { %v15501_v46 = vpop.eup %15500  ;;  %15510 = vrsqrt.f32 %v5691_v0  ;;  %v5690_v15 = vadd.f32 1e-06, %v5658_v22  ;;  %v5661_v26 = vmul.f32 0.03125, %v5593_v10 }
 0xa30   :  { %14303 = vmatmul.mubr.msk.bf16.vlgmr.msra.gmra.mrb[176].mxu0 %vm449_vm1, %v5777_v47  ;;  %v5590_v35 = vpop.xlane.xlu0 %5589  ;;  %v5748_v19 = vmul.f32 %v15501_v46, %v17812_v9 }
 0xa31   :  { %v15503_v31 = vpop.eup %15502  ;;  %15512 = vrsqrt.f32 %v5690_v15  ;;  %v5693_v6 = vadd.f32 1e-06, %v5661_v26  ;;  %v5660_v8 = vmul.f32 0.03125, %v5590_v35  ;;  %14335 = vmatpush3.bf16.msra.mxu0 %v18017_v43 }
 0xa32   :  { %v5599_v50 = vpop.xlane.xlu1 %5598  ;;  %v5778_v14 = vpack.c.bf16 %v5749_v5, %v5748_v19  ;;  %14336 = vmatprep.subr.bf16.mxu0 %v15087_v53  ;;  %v5751_v34 = vmul.f32 %v15503_v31, %v17819_v4 }
 0xa33   :  { %v15505_v63 = vpop.eup %15504  ;;  %15514 = vrsqrt.f32 %v5693_v6  ;;  %v5692_v54 = vadd.f32 1e-06, %v5660_v8  ;;  %v5663_v61 = vmul.f32 0.03125, %v5599_v50 }
 0xa34   :  { %14306 = vmatprep.mubr.msk.bf16.mxu0 %vm449_vm1, %v5778_v14  ;;  %v5596_v32 = vpop.xlane.xlu0 %5595  ;;  %v5750_v23 = vmul.f32 %v15505_v63, %v17825_v11 }
 0xa35   :  { %v15507_v52 = vpop.eup %15506  ;;  %15516 = vrsqrt.f32 %v5692_v54  ;;  %v5695_v21 = vadd.f32 1e-06, %v5663_v61  ;;  %v5662_v12 = vmul.f32 0.03125, %v5596_v32  ;;  %14337 = vmatpush3.bf16.msra.mxu0 %v15087_v53 }
 0xa36   :  { %v5605_v43 = vpop.xlane.xlu1 %5604  ;;  %v5779_v58 = vpack.c.bf16 %v5751_v34, %v5750_v23  ;;  %v5753_v22 = vmul.f32 %v15507_v52, %v17849_v25 }
 0xa37   :  { %v15509_v27 = vpop.eup %15508  ;;  %15518 = vrsqrt.f32 %v5695_v21  ;;  %v5694_v13 = vadd.f32 1e-06, %v5662_v12  ;;  %v5665_v57 = vmul.f32 0.03125, %v5605_v43 }
 0xa38   :  { %14307 = vmatmul.mubr.msk.bf16.gmra.mrb[180].mxu0 %vm449_vm1, %v5779_v58  ;;  %v5602_v1 = vpop.xlane.xlu0 %5601  ;;  %v5752_v0 = vmul.f32 %v15509_v27, %v17841_v33 }
 0xa39   :  { %v15511_v10 = vpop.eup %15510  ;;  %15520 = vrsqrt.f32 %v5694_v13  ;;  %v5697_v47 = vadd.f32 1e-06, %v5665_v57  ;;  %v5664_v46 = vmul.f32 0.03125, %v5602_v1 }
 0xa3a   :  { %v5611_v15 = vpop.xlane.xlu1 %5610  ;;  %v5780_v26 = vpack.c.bf16 %v5753_v22, %v5752_v0  ;;  %v5755_v6 = vmul.f32 %v15511_v10, %v17846_v62 }
 0xa3b   :  { %v15513_v53 = vpop.eup %15512  ;;  %15522 = vrsqrt.f32 %v5697_v47  ;;  %v5696_v35 = vadd.f32 1e-06, %v5664_v46  ;;  %v5667_v19 = vmul.f32 0.03125, %v5611_v15 }
 0xa3c   :  { %14310 = vmatprep.mubr.msk.bf16.mxu0 %vm449_vm1, %v5780_v26  ;;  %v5608_v5 = vpop.xlane.xlu0 %5607  ;;  %v5754_v31 = vmul.f32 %v15513_v53, %v17853_v60 }
 0xa3d   :  { %v15515_v8 = vpop.eup %15514  ;;  %15524 = vrsqrt.f32 %v5696_v35  ;;  %v5699_v50 = vadd.f32 1e-06, %v5667_v19  ;;  %v5666_v14 = vmul.f32 0.03125, %v5608_v5 }
 0xa3e   :  { %v5617_v63 = vpop.xlane.xlu1 %5616  ;;  %v5781_v54 = vpack.c.bf16 %v5755_v6, %v5754_v31  ;;  %v5757_v21 = vmul.f32 %v15515_v8, %v17877_v55 }
 0xa3f   :  { %v15517_v61 = vpop.eup %15516  ;;  %15526 = vrsqrt.f32 %v5699_v50  ;;  %v5698_v32 = vadd.f32 1e-06, %v5666_v14  ;;  %v5669_v23 = vmul.f32 0.03125, %v5617_v63 }
 0xa40   :  { %14311 = vmatmul.mubr.msk.bf16.gmra.mrb[184].mxu0 %vm449_vm1, %v5781_v54  ;;  %v5614_v34 = vpop.xlane.xlu0 %5613  ;;  %v5756_v52 = vmul.f32 %v15517_v61, %v17867_v30 }
 0xa41   :  { %v15519_v12 = vpop.eup %15518  ;;  %15528 = vrsqrt.f32 %v5698_v32  ;;  %v5701_v43 = vadd.f32 1e-06, %v5669_v23  ;;  %v5668_v58 = vmul.f32 0.03125, %v5614_v34 }
 0xa42   :  { %v5623_v27 = vpop.xlane.xlu1 %5622  ;;  %v5782_v13 = vpack.c.bf16 %v5757_v21, %v5756_v52  ;;  %v5759_v47 = vmul.f32 %v15519_v12, %v17874_v56 }
 0xa43   :  { %v15521_v57 = vpop.eup %15520  ;;  %15530 = vrsqrt.f32 %v5701_v43  ;;  %v5700_v1 = vadd.f32 1e-06, %v5668_v58  ;;  %v5671_v0 = vmul.f32 0.03125, %v5623_v27 }
 0xa44   :  { %14314 = vmatprep.mubr.msk.bf16.mxu0 %vm449_vm1, %v5782_v13  ;;  %v5620_v22 = vpop.xlane.xlu0 %5619  ;;  %v5758_v10 = vmul.f32 %v15521_v57, %v17881_v2 }
 0xa45   :  { %v15523_v46 = vpop.eup %15522  ;;  %15532 = vrsqrt.f32 %v5700_v1  ;;  %v5703_v15 = vadd.f32 1e-06, %v5671_v0  ;;  %v5670_v26 = vmul.f32 0.03125, %v5620_v22 }
 0xa46   :  { %v5629_v53 = vpop.xlane.xlu1 %5628  ;;  %v5783_v35 = vpack.c.bf16 %v5759_v47, %v5758_v10  ;;  %v5761_v50 = vmul.f32 %v15523_v46, %v17905_v37 }
 0xa47   :  { %v15525_v19 = vpop.eup %15524  ;;  %15534 = vrsqrt.f32 %v5703_v15  ;;  %v5702_v5 = vadd.f32 1e-06, %v5670_v26  ;;  %v5673_v31 = vmul.f32 0.03125, %v5629_v53 }
 0xa48   :  { %14315 = vmatmul.mubr.msk.bf16.gmra.mrb[188].mxu0 %vm449_vm1, %v5783_v35  ;;  %v5626_v6 = vpop.xlane.xlu0 %5625  ;;  %v5760_v8 = vmul.f32 %v15525_v19, %v17897_v29 }
 0xa49   :  { %v15527_v14 = vpop.eup %15526  ;;  %15536 = vrsqrt.f32 %v5702_v5  ;;  %v5705_v63 = vadd.f32 1e-06, %v5673_v31  ;;  %v5672_v54 = vmul.f32 0.03125, %v5626_v6 }
 0xa4a   :  { %v5635_v61 = vpop.xlane.xlu1 %5634  ;;  %v5784_v32 = vpack.c.bf16 %v5761_v50, %v5760_v8  ;;  %v5763_v43 = vmul.f32 %v15527_v14, %v17902_v44 }
 0xa4b   :  { %v15529_v23 = vpop.eup %15528  ;;  %15538 = vrsqrt.f32 %v5705_v63  ;;  %v5704_v34 = vadd.f32 1e-06, %v5672_v54  ;;  %v5675_v52 = vmul.f32 0.03125, %v5635_v61 }
 0xa4c   :  { %14318 = vmatprep.mubr.msk.bf16.mxu0 %vm449_vm1, %v5784_v32  ;;  %v5632_v21 = vpop.xlane.xlu0 %5631  ;;  %v5762_v12 = vmul.f32 %v15529_v23, %v17911_v42 }
 0xa4d   :  { %v15531_v58 = vpop.eup %15530  ;;  %15540 = vrsqrt.f32 %v5704_v34  ;;  %v5707_v27 = vadd.f32 1e-06, %v5675_v52  ;;  %v5674_v13 = vmul.f32 0.03125, %v5632_v21 }
 0xa4e   :  { %v5641_v57 = vpop.xlane.xlu1 %5640  ;;  %v5785_v1 = vpack.c.bf16 %v5763_v43, %v5762_v12  ;;  %v5765_v15 = vmul.f32 %v15531_v58, %v17939_v3 }
 0xa4f   :  { %v15533_v0 = vpop.eup %15532  ;;  %15542 = vrsqrt.f32 %v5707_v27  ;;  %v5706_v22 = vadd.f32 1e-06, %v5674_v13  ;;  %v5677_v10 = vmul.f32 0.03125, %v5641_v57 }
 0xa50   :  { %14319 = vmatmul.mubr.msk.bf16.gmra.mrb[192].mxu0 %vm449_vm1, %v5785_v1  ;;  %v5638_v47 = vpop.xlane.xlu0 %5637  ;;  %v5764_v46 = vmul.f32 %v15533_v0, %v17927_v51 }
 0xa51   :  { %v15535_v26 = vpop.eup %15534  ;;  %15544 = vrsqrt.f32 %v5706_v22  ;;  %v5709_v53 = vadd.f32 1e-06, %v5677_v10  ;;  %v5676_v35 = vmul.f32 0.03125, %v5638_v47 }
 0xa52   :  { %v5647_v19 = vpop.xlane.xlu1 %5646  ;;  %v5786_v5 = vpack.c.bf16 %v5765_v15, %v5764_v46  ;;  %v5767_v63 = vmul.f32 %v15535_v26, %v17936_v16 }
 0xa53   :  { %v15537_v31 = vpop.eup %15536  ;;  %15546 = vrsqrt.f32 %v5709_v53  ;;  %v5708_v6 = vadd.f32 1e-06, %v5676_v35  ;;  %v5679_v8 = vmul.f32 0.03125, %v5647_v19 }
 0xa54   :  { %14322 = vmatprep.mubr.msk.bf16.mxu0 %vm449_vm1, %v5786_v5  ;;  %v5644_v50 = vpop.xlane.xlu0 %5643  ;;  %v5766_v14 = vmul.f32 %v15537_v31, %v17943_v28  ;;  %v15088_v5 = vld [vmem:[%s20250_s8 + $0x10] sm:$0xff]   ;;  %v15089_v31 = vld [vmem:[%s20250_s8 + $0x18] sm:$0xff]  }
 0xa55   :  { %v15539_v54 = vpop.eup %15538  ;;  %15548 = vrsqrt.f32 %v5708_v6  ;;  %v5711_v61 = vadd.f32 1e-06, %v5679_v8  ;;  %v5678_v32 = vmul.f32 0.03125, %v5644_v50  ;;  %14338 = vmatprep.subr.bf16.mxu0 %v15088_v5 }
 0xa56   :  { %v5787_v23 = vpack.c.bf16 %v5767_v63, %v5766_v14  ;;  %v5769_v12 = vmul.f32 %v15539_v54, %v17967_v17  ;;  %14339 = vmatpush3.bf16.msra.mxu0 %v15088_v5 }
 0xa57   :  { %v15541_v34 = vpop.eup %15540  ;;  %15550 = vrsqrt.f32 %v5711_v61  ;;  %v5710_v52 = vadd.f32 1e-06, %v5678_v32  ;;  %14340 = vmatprep.subr.bf16.mxu0 %v15089_v31 }
 0xa58   :  { %14323 = vmatmul.mubr.msk.bf16.gmra.mrb[196].mxu0 %vm449_vm1, %v5787_v23  ;;  %v5768_v21 = vmul.f32 %v15541_v34, %v17959_v36 }
 0xa59   :  { %v15543_v43 = vpop.eup %15542  ;;  %15552 = vrsqrt.f32 %v5710_v52 }
 0xa5a   :  { %v5788_v58 = vpack.c.bf16 %v5769_v12, %v5768_v21  ;;  %v5771_v57 = vmul.f32 %v15543_v43, %v17964_v38  ;;  %14341 = vmatpush3.bf16.msra.mxu0 %v15089_v31 }
 0xa5b   :  { %v15545_v27 = vpop.eup %15544 }
 0xa5c   :  { %14326 = vmatprep.mubr.msk.bf16.mxu0 %vm449_vm1, %v5788_v58  ;;  %v5770_v13 = vmul.f32 %v15545_v27, %v17971_v41 }
 0xa5d   :  { %v15547_v1 = vpop.eup %15546 }
 0xa5e   :  { %v5789_v0 = vpack.c.bf16 %v5771_v57, %v5770_v13  ;;  %v5773_v47 = vmul.f32 %v15547_v1, %v17995_v18 }
 0xa5f   :  { %v15549_v22 = vpop.eup %15548 }
 0xa60   :  { %14327 = vmatmul.mubr.msk.bf16.gmra.mrb[200].mxu0 %vm449_vm1, %v5789_v0  ;;  %v5772_v10 = vmul.f32 %v15549_v22, %v17985_v7 }
 0xa61   :  { %v15551_v46 = vpop.eup %15550 }
 0xa62   :  { %v5790_v15 = vpack.c.bf16 %v5773_v47, %v5772_v10  ;;  %v5775_v35 = vmul.f32 %v15551_v46, %v17992_v45 }
 0xa63   :  { %v15553_v26 = vpop.eup %15552 }
 0xa64   :  { %14330 = vmatprep.mubr.msk.bf16.mxu0 %vm449_vm1, %v5790_v15  ;;  %v5774_v53 = vmul.f32 %v15553_v26, %v17999_v48 }
 0xa66   :  { %v5791_v19 = vpack.c.bf16 %v5775_v35, %v5774_v53 }
 0xa68   :  { %14331 = vmatmul.mubr.msk.bf16.gmra.mrb[204].mxu0 %vm449_vm1, %v5791_v19 }
 0xb03   :  { %v14304_v6 = vpop.f32.mrb[176].mxu0 }
 0xb04   :  { %v6019_v8 = vmax.f32 %v14304_v6, 0.0  ;;  %v5890_v50 = vpop.f32.mrb[177].mxu0 }
 0xb05   :  { %v6017_v14 = vmax.f32 %v5890_v50, 0.0  ;;  %v14305_v63 = vpop.f32.mrb[178].mxu0 }
 0xb06   :  { %v6020_v54 = vmax.f32 %v14305_v63, 0.0  ;;  %v5893_v61 = vpop.f32.mrb[179].mxu0  ;;  %v6051_v23 = vmul.f32 %v6019_v8, %v6019_v8 }
 0xb07   :  { %v6018_v32 = vmax.f32 %v5893_v61, 0.0  ;;  %v6049_v52 = vmul.f32 %v6017_v14, %v6017_v14 }
 0xb08   :  { %v6052_v34 = vmul.f32 %v6020_v54, %v6020_v54 }
 0xb09   :  { %v6050_v21 = vmul.f32 %v6018_v32, %v6018_v32 }
 0xb0a   :  { %v6082_v12 = vpack.c.bf16 %v6052_v34, %v6051_v23 }
 0xb0b   :  { %v6081_v43 = vpack.c.bf16 %v6050_v21, %v6049_v52  ;;  %v14308_v58 = vpop.f32.mrb[180].mxu0 }
 0xb0c   :  { %v6023_v27 = vmax.f32 %v14308_v58, 0.0  ;;  %v5906_v13 = vpop.f32.mrb[181].mxu0 }
 0xb0d   :  { %v6021_v57 = vmax.f32 %v5906_v13, 0.0  ;;  %v14309_v1 = vpop.f32.mrb[182].mxu0  ;;  %14342 = vmatprep.mubr.msk.bf16.mxu0 %vm996_vm2, %v6081_v43 }
 0xb0e   :  { %v6024_v0 = vmax.f32 %v14309_v1, 0.0  ;;  %v5909_v22 = vpop.f32.mrb[183].mxu0  ;;  %14343 = vmatmul.mubr.msk.bf16.vlgmr.msra.gmra.mrb[208].mxu0 %vm996_vm2, %v6082_v12  ;;  %v6055_v47 = vmul.f32 %v6023_v27, %v6023_v27 }
 0xb0f   :  { %v6022_v10 = vmax.f32 %v5909_v22, 0.0  ;;  %v6053_v15 = vmul.f32 %v6021_v57, %v6021_v57 }
 0xb10   :  { %v6056_v46 = vmul.f32 %v6024_v0, %v6024_v0 }
 0xb11   :  { %v6054_v26 = vmul.f32 %v6022_v10, %v6022_v10 }
 0xb12   :  { %v6084_v53 = vpack.c.bf16 %v6056_v46, %v6055_v47 }
 0xb13   :  { %v6083_v35 = vpack.c.bf16 %v6054_v26, %v6053_v15  ;;  %v14312_v19 = vpop.f32.mrb[184].mxu0 }
 0xb14   :  { %v6027_v5 = vmax.f32 %v14312_v19, 0.0  ;;  %v5922_v31 = vpop.f32.mrb[185].mxu0 }
 0xb15   :  { %v6025_v6 = vmax.f32 %v5922_v31, 0.0  ;;  %v14313_v8 = vpop.f32.mrb[186].mxu0  ;;  %14346 = vmatprep.mubr.msk.bf16.mxu0 %vm996_vm2, %v6083_v35 }
 0xb16   :  { %v6028_v50 = vmax.f32 %v14313_v8, 0.0  ;;  %v5925_v14 = vpop.f32.mrb[187].mxu0  ;;  %14347 = vmatmul.mubr.msk.bf16.gmra.mrb[212].mxu0 %vm996_vm2, %v6084_v53  ;;  %v6059_v54 = vmul.f32 %v6027_v5, %v6027_v5 }
 0xb17   :  { %v6026_v63 = vmax.f32 %v5925_v14, 0.0  ;;  %v6057_v32 = vmul.f32 %v6025_v6, %v6025_v6 }
 0xb18   :  { %v6060_v61 = vmul.f32 %v6028_v50, %v6028_v50 }
 0xb19   :  { %v6058_v23 = vmul.f32 %v6026_v63, %v6026_v63 }
 0xb1a   :  { %v6086_v34 = vpack.c.bf16 %v6060_v61, %v6059_v54 }
 0xb1b   :  { %v6085_v52 = vpack.c.bf16 %v6058_v23, %v6057_v32  ;;  %v14316_v21 = vpop.f32.mrb[188].mxu0 }
 0xb1c   :  { %v6031_v12 = vmax.f32 %v14316_v21, 0.0  ;;  %v5938_v43 = vpop.f32.mrb[189].mxu0 }
 0xb1d   :  { %v6029_v58 = vmax.f32 %v5938_v43, 0.0  ;;  %v14317_v27 = vpop.f32.mrb[190].mxu0  ;;  %14350 = vmatprep.mubr.msk.bf16.mxu0 %vm996_vm2, %v6085_v52 }
 0xb1e   :  { %v6032_v13 = vmax.f32 %v14317_v27, 0.0  ;;  %v5941_v57 = vpop.f32.mrb[191].mxu0  ;;  %14351 = vmatmul.mubr.msk.bf16.gmra.mrb[216].mxu0 %vm996_vm2, %v6086_v34  ;;  %v6063_v0 = vmul.f32 %v6031_v12, %v6031_v12 }
 0xb1f   :  { %v6030_v1 = vmax.f32 %v5941_v57, 0.0  ;;  %v6061_v10 = vmul.f32 %v6029_v58, %v6029_v58 }
 0xb20   :  { %v6064_v22 = vmul.f32 %v6032_v13, %v6032_v13 }
 0xb21   :  { %v6062_v47 = vmul.f32 %v6030_v1, %v6030_v1 }
 0xb22   :  { %v6088_v46 = vpack.c.bf16 %v6064_v22, %v6063_v0 }
 0xb23   :  { %v6087_v15 = vpack.c.bf16 %v6062_v47, %v6061_v10  ;;  %v14320_v26 = vpop.f32.mrb[192].mxu0 }
 0xb24   :  { %v6035_v53 = vmax.f32 %v14320_v26, 0.0  ;;  %v5954_v35 = vpop.f32.mrb[193].mxu0 }
 0xb25   :  { %v6033_v19 = vmax.f32 %v5954_v35, 0.0  ;;  %v14321_v5 = vpop.f32.mrb[194].mxu0  ;;  %14354 = vmatprep.mubr.msk.bf16.mxu0 %vm996_vm2, %v6087_v15 }
 0xb26   :  { %v6036_v31 = vmax.f32 %v14321_v5, 0.0  ;;  %v5957_v6 = vpop.f32.mrb[195].mxu0  ;;  %14355 = vmatmul.mubr.msk.bf16.gmra.mrb[220].mxu0 %vm996_vm2, %v6088_v46  ;;  %v6067_v50 = vmul.f32 %v6035_v53, %v6035_v53 }
 0xb27   :  { %v6034_v8 = vmax.f32 %v5957_v6, 0.0  ;;  %v6065_v63 = vmul.f32 %v6033_v19, %v6033_v19 }
 0xb28   :  { %v6068_v14 = vmul.f32 %v6036_v31, %v6036_v31 }
 0xb29   :  { %v6066_v54 = vmul.f32 %v6034_v8, %v6034_v8 }
 0xb2a   :  { %v6090_v61 = vpack.c.bf16 %v6068_v14, %v6067_v50 }
 0xb2b   :  { %v6089_v32 = vpack.c.bf16 %v6066_v54, %v6065_v63  ;;  %v14324_v23 = vpop.f32.mrb[196].mxu0 }
 0xb2c   :  { %v6039_v34 = vmax.f32 %v14324_v23, 0.0  ;;  %v5970_v52 = vpop.f32.mrb[197].mxu0 }
 0xb2d   :  { %v6037_v21 = vmax.f32 %v5970_v52, 0.0  ;;  %v14325_v12 = vpop.f32.mrb[198].mxu0  ;;  %14358 = vmatprep.mubr.msk.bf16.mxu0 %vm996_vm2, %v6089_v32 }
 0xb2e   :  { %v6040_v43 = vmax.f32 %v14325_v12, 0.0  ;;  %v5973_v58 = vpop.f32.mrb[199].mxu0  ;;  %14359 = vmatmul.mubr.msk.bf16.gmra.mrb[224].mxu0 %vm996_vm2, %v6090_v61  ;;  %v6071_v13 = vmul.f32 %v6039_v34, %v6039_v34 }
 0xb2f   :  { %v6038_v27 = vmax.f32 %v5973_v58, 0.0  ;;  %v6069_v1 = vmul.f32 %v6037_v21, %v6037_v21 }
 0xb30   :  { %v6072_v57 = vmul.f32 %v6040_v43, %v6040_v43 }
 0xb31   :  { %v6070_v0 = vmul.f32 %v6038_v27, %v6038_v27 }
 0xb32   :  { %v6092_v22 = vpack.c.bf16 %v6072_v57, %v6071_v13 }
 0xb33   :  { %v6091_v10 = vpack.c.bf16 %v6070_v0, %v6069_v1  ;;  %v14328_v47 = vpop.f32.mrb[200].mxu0  ;;  %v18097_v0 = vld [vmem:[%s20251_s9] ss:$0 sm:$0xff] }
 0xb34   :  { %v6043_v46 = vmax.f32 %v14328_v47, 0.0  ;;  %v5986_v15 = vpop.f32.mrb[201].mxu0 }
 0xb35   :  { %v6041_v26 = vmax.f32 %v5986_v15, 0.0  ;;  %v14329_v53 = vpop.f32.mrb[202].mxu0  ;;  %14362 = vmatprep.mubr.msk.bf16.mxu0 %vm996_vm2, %v6091_v10 }
 0xb36   :  { %v6044_v35 = vmax.f32 %v14329_v53, 0.0  ;;  %v5989_v19 = vpop.f32.mrb[203].mxu0  ;;  %14363 = vmatmul.mubr.msk.bf16.gmra.mrb[228].mxu0 %vm996_vm2, %v6092_v22  ;;  %v6075_v31 = vmul.f32 %v6043_v46, %v6043_v46 }
 0xb37   :  { %v6042_v5 = vmax.f32 %v5989_v19, 0.0  ;;  %v6073_v8 = vmul.f32 %v6041_v26, %v6041_v26 }
 0xb38   :  { %v6076_v6 = vmul.f32 %v6044_v35, %v6044_v35 }
 0xb39   :  { %v6074_v50 = vmul.f32 %v6042_v5, %v6042_v5 }
 0xb3a   :  { %v6094_v14 = vpack.c.bf16 %v6076_v6, %v6075_v31 }
 0xb3b   :  { %v6093_v63 = vpack.c.bf16 %v6074_v50, %v6073_v8  ;;  %v14332_v54 = vpop.f32.mrb[204].mxu0 }
 0xb3c   :  { %v6047_v61 = vmax.f32 %v14332_v54, 0.0  ;;  %v6002_v32 = vpop.f32.mrb[205].mxu0 }
 0xb3d   :  { %v6045_v23 = vmax.f32 %v6002_v32, 0.0  ;;  %v14333_v34 = vpop.f32.mrb[206].mxu0  ;;  %14366 = vmatprep.mubr.msk.bf16.mxu0 %vm996_vm2, %v6093_v63 }
 0xb3e   :  { %v6048_v52 = vmax.f32 %v14333_v34, 0.0  ;;  %v6005_v21 = vpop.f32.mrb[207].mxu0  ;;  %14367 = vmatmul.mubr.msk.bf16.gmra.mrb[232].mxu0 %vm996_vm2, %v6094_v14  ;;  %v6079_v43 = vmul.f32 %v6047_v61, %v6047_v61 }
 0xb3f   :  { %v6046_v12 = vmax.f32 %v6005_v21, 0.0  ;;  %v6077_v27 = vmul.f32 %v6045_v23, %v6045_v23 }
 0xb40   :  { %v6080_v58 = vmul.f32 %v6048_v52, %v6048_v52 }
 0xb41   :  { %v6078_v13 = vmul.f32 %v6046_v12, %v6046_v12 }
 0xb42   :  { %v6096_v57 = vpack.c.bf16 %v6080_v58, %v6079_v43 }
 0xb43   :  { %v6095_v1 = vpack.c.bf16 %v6078_v13, %v6077_v27 }
 0xb45   :  { %14370 = vmatprep.mubr.msk.bf16.mxu0 %vm996_vm2, %v6095_v1 }
 0xb46   :  { %14371 = vmatmul.mubr.msk.bf16.gmra.mrb[236].mxu0 %vm996_vm2, %v6096_v57 }
 0xbe1   :  { %v14344_v22 = vpop.f32.mrb[208].mxu0 }
 0xbe2   :  { %v6347_v10 = vmul.f32 %v14344_v22, %v18097_v0  ;;  %v6211_v47 = vpop.f32.mrb[209].mxu0 }
 0xbe3   :  { %v6345_v46 = vmul.f32 %v18097_v0, %v6211_v47  ;;  %v14345_v15 = vpop.f32.mrb[210].mxu0 }
 0xbe4   :  { %v6348_v26 = vmul.f32 %v14345_v15, %v18097_v0  ;;  %v6214_v53 = vpop.f32.mrb[211].mxu0  ;;  %v18103_v35 = vadd.f32 %v6347_v10, %v17787_v40 }
 0xbe5   :  { %v18106_v19 = vadd.f32 %v6345_v46, %v17790_v20  ;;  %v6346_v5 = vmul.f32 %v18097_v0, %v6214_v53 }
 0xbe6   :  { %20579 = vst [vmem:[#allocation46_spill] sm:$0xff] %v18103_v35  ;;  %v18110_v31 = vadd.f32 %v6348_v26, %v17800_v39  ;;  %v6411_v20 = vmul.f32 %v18103_v35, %v18103_v35 }
 0xbe7   :  { %20580 = vst [vmem:[#allocation47_spill] sm:$0xff] %v18106_v19  ;;  %v18113_v6 = vadd.f32 %v6346_v5, %v17795_v49  ;;  %v6409_v8 = vmul.f32 %v18106_v19, %v18106_v19 }
 0xbe8   :  { %20581 = vst [vmem:[#allocation49_spill] sm:$0xff] %v18110_v31  ;;  %v6412_v32 = vmul.f32 %v18110_v31, %v18110_v31  ;;  %v6447_v43 = vsel %vm449_vm1, %v6411_v20, 0.0 }
 0xbe9   :  { %20582 = vst [vmem:[#allocation37_spill] sm:$0xff] %v18113_v6  ;;  %v14348_v50 = vpop.f32.mrb[212].mxu0  ;;  %v6441_v14 = vsel %vm449_vm1, %v6409_v8, 0.0  ;;  %v6410_v40 = vmul.f32 %v18113_v6, %v18113_v6 }
 0xbea   :  { %v6351_v63 = vmul.f32 %v14348_v50, %v18097_v0  ;;  %6442 = vadd.xlane.f32.xlu0 %v6441_v14  ;;  %v6227_v39 = vpop.f32.mrb[213].mxu0  ;;  %v6450_v13 = vsel %vm449_vm1, %v6412_v32, 0.0 }
 0xbeb   :  { %v6349_v54 = vmul.f32 %v18097_v0, %v6227_v39  ;;  %v14349_v49 = vpop.f32.mrb[214].mxu0  ;;  %v6444_v61 = vsel %vm449_vm1, %v6410_v40, 0.0 }
 0xbec   :  { %v6352_v23 = vmul.f32 %v14349_v49, %v18097_v0  ;;  %6445 = vadd.xlane.f32.xlu1 %v6444_v61  ;;  %v6230_v34 = vpop.f32.mrb[215].mxu0  ;;  %v18129_v52 = vadd.f32 %v6351_v63, %v17825_v11 }
 0xbed   :  { %v18132_v21 = vadd.f32 %v6349_v54, %v17812_v9  ;;  %v6350_v12 = vmul.f32 %v18097_v0, %v6230_v34 }
 0xbee   :  { %20583 = vst [vmem:[#allocation39_spill] sm:$0xff] %v18129_v52  ;;  %6448 = vadd.xlane.f32.xlu0 %v6447_v43  ;;  %v18137_v58 = vadd.f32 %v6352_v23, %v17819_v4  ;;  %v6415_v22 = vmul.f32 %v18129_v52, %v18129_v52 }
 0xbef   :  { %20584 = vst [vmem:[#allocation52_spill] sm:$0xff] %v18132_v21  ;;  %v18140_v27 = vadd.f32 %v6350_v12, %v17822_v59  ;;  %v6413_v11 = vmul.f32 %v18132_v21, %v18132_v21 }
 0xbf0   :  { %20585 = vst [vmem:[#allocation51_spill] sm:$0xff] %v18137_v58  ;;  %6451 = vadd.xlane.f32.xlu1 %v6450_v13  ;;  %v6416_v15 = vmul.f32 %v18137_v58, %v18137_v58  ;;  %v6459_v14 = vsel %vm449_vm1, %v6415_v22, 0.0 }
 0xbf1   :  { %20586 = vst [vmem:[#allocation56_spill] sm:$0xff] %v18140_v27  ;;  %v14352_v57 = vpop.f32.mrb[216].mxu0  ;;  %v6453_v9 = vsel %vm449_vm1, %v6413_v11, 0.0  ;;  %v6414_v1 = vmul.f32 %v18140_v27, %v18140_v27 }
 0xbf2   :  { %v6355_v4 = vmul.f32 %v14352_v57, %v18097_v0  ;;  %6454 = vadd.xlane.f32.xlu0 %v6453_v9  ;;  %v6243_v59 = vpop.f32.mrb[217].mxu0  ;;  %v6462_v63 = vsel %vm449_vm1, %v6416_v15, 0.0 }
 0xbf3   :  { %v6353_v10 = vmul.f32 %v18097_v0, %v6243_v59  ;;  %v14353_v47 = vpop.f32.mrb[218].mxu0  ;;  %v6456_v46 = vsel %vm449_vm1, %v6414_v1, 0.0 }
 0xbf4   :  { %v6356_v26 = vmul.f32 %v14353_v47, %v18097_v0  ;;  %6457 = vadd.xlane.f32.xlu1 %v6456_v46  ;;  %v6246_v53 = vpop.f32.mrb[219].mxu0  ;;  %v18157_v5 = vadd.f32 %v6355_v4, %v17853_v60 }
 0xbf5   :  { %v18160_v8 = vadd.f32 %v6353_v10, %v17841_v33  ;;  %v6354_v50 = vmul.f32 %v18097_v0, %v6246_v53 }
 0xbf6   :  { %20587 = vst [vmem:[#allocation45_spill] sm:$0xff] %v18157_v5  ;;  %6460 = vadd.xlane.f32.xlu0 %v6459_v14  ;;  %v18165_v40 = vadd.f32 %v6356_v26, %v17846_v62  ;;  %v6419_v49 = vmul.f32 %v18157_v5, %v18157_v5 }
 0xbf7   :  { %20588 = vst [vmem:[#allocation41_spill] sm:$0xff] %v18160_v8  ;;  %v18168_v20 = vadd.f32 %v6354_v50, %v17849_v25  ;;  %v6417_v60 = vmul.f32 %v18160_v8, %v18160_v8 }
 0xbf8   :  { %20589 = vst [vmem:[#allocation48_spill] sm:$0xff] %v18165_v40  ;;  %6463 = vadd.xlane.f32.xlu1 %v6462_v63  ;;  %v6420_v34 = vmul.f32 %v18165_v40, %v18165_v40  ;;  %v6471_v9 = vsel %vm449_vm1, %v6419_v49, 0.0 }
 0xbf9   :  { %20590 = vst [vmem:[#allocation50_spill] sm:$0xff] %v18168_v20  ;;  %v14356_v39 = vpop.f32.mrb[220].mxu0  ;;  %v6465_v33 = vsel %vm449_vm1, %v6417_v60, 0.0  ;;  %v6418_v54 = vmul.f32 %v18168_v20, %v18168_v20 }
 0xbfa   :  { %v6359_v62 = vmul.f32 %v14356_v39, %v18097_v0  ;;  %6466 = vadd.xlane.f32.xlu0 %v6465_v33  ;;  %v6259_v25 = vpop.f32.mrb[221].mxu0  ;;  %v6474_v4 = vsel %vm449_vm1, %v6420_v34, 0.0 }
 0xbfb   :  { %v6357_v61 = vmul.f32 %v18097_v0, %v6259_v25  ;;  %v14357_v32 = vpop.f32.mrb[222].mxu0  ;;  %v6468_v23 = vsel %vm449_vm1, %v6418_v54, 0.0 }
 0xbfc   :  { %v6360_v12 = vmul.f32 %v14357_v32, %v18097_v0  ;;  %6469 = vadd.xlane.f32.xlu1 %v6468_v23  ;;  %v6262_v43 = vpop.f32.mrb[223].mxu0  ;;  %v18185_v13 = vadd.f32 %v6359_v62, %v17881_v2 }
 0xbfd   :  { %v18188_v11 = vadd.f32 %v6357_v61, %v17867_v30  ;;  %v6358_v57 = vmul.f32 %v18097_v0, %v6262_v43 }
 0xbfe   :  { %20591 = vst [vmem:[#allocation36_spill] sm:$0xff] %v18185_v13  ;;  %6472 = vadd.xlane.f32.xlu0 %v6471_v9  ;;  %v18193_v1 = vadd.f32 %v6360_v12, %v17874_v56  ;;  %v6423_v47 = vmul.f32 %v18185_v13, %v18185_v13 }
 0xbff   :  { %20592 = vst [vmem:[#allocation34_spill] sm:$0xff] %v18188_v11  ;;  %v18196_v22 = vadd.f32 %v6358_v57, %v17877_v55  ;;  %v6421_v2 = vmul.f32 %v18188_v11, %v18188_v11 }
 0xc00   :  { %20593 = vst [vmem:[#allocation38_spill] sm:$0xff] %v18193_v1  ;;  %6475 = vadd.xlane.f32.xlu1 %v6474_v4  ;;  %v6424_v53 = vmul.f32 %v18193_v1, %v18193_v1  ;;  %v6483_v33 = vsel %vm449_vm1, %v6423_v47, 0.0 }
 0xc01   :  { %20594 = vst [vmem:[#allocation35_spill] sm:$0xff] %v18196_v22  ;;  %v14360_v59 = vpop.f32.mrb[224].mxu0  ;;  %v6477_v30 = vsel %vm449_vm1, %v6421_v2, 0.0  ;;  %v6422_v10 = vmul.f32 %v18196_v22, %v18196_v22  ;;  %v15091_v2 = vld [vmem:[%s20245_s4 + $0x18] sm:$0xff]  }
 0xc02   :  { %v6363_v56 = vmul.f32 %v14360_v59, %v18097_v0  ;;  %6478 = vadd.xlane.f32.xlu0 %v6477_v30  ;;  %v6275_v55 = vpop.f32.mrb[225].mxu0  ;;  %v6486_v62 = vsel %vm449_vm1, %v6424_v53, 0.0 }
 0xc03   :  { %v6361_v46 = vmul.f32 %v18097_v0, %v6275_v55  ;;  %v14361_v15 = vpop.f32.mrb[226].mxu0  ;;  %v6480_v26 = vsel %vm449_vm1, %v6422_v10, 0.0 }
 0xc04   :  { %v6364_v50 = vmul.f32 %v14361_v15, %v18097_v0  ;;  %6481 = vadd.xlane.f32.xlu1 %v6480_v26  ;;  %v6278_v14 = vpop.f32.mrb[227].mxu0  ;;  %v18213_v63 = vadd.f32 %v6363_v56, %v17911_v42 }
 0xc05   :  { %v18216_v60 = vadd.f32 %v6361_v46, %v17897_v29  ;;  %v6362_v39 = vmul.f32 %v18097_v0, %v6278_v14  ;;  %v15090_v29 = vld [vmem:[%s20245_s4 + $0x10] sm:$0xff]  }
 0xc06   :  { %20595 = vst [vmem:[#allocation53_spill] sm:$0xff] %v18213_v63  ;;  %6484 = vadd.xlane.f32.xlu0 %v6483_v33  ;;  %v18221_v54 = vadd.f32 %v6364_v50, %v17902_v44  ;;  %14374 = vmatprep.subr.bf16.mxu1 %v15090_v29 }
 0xc07   :  { %20596 = vst [vmem:[#allocation40_spill] sm:$0xff] %v18216_v60  ;;  %v18224_v49 = vadd.f32 %v6362_v39, %v17905_v37  ;;  %v6425_v42 = vmul.f32 %v18216_v60, %v18216_v60  ;;  %v6427_v37 = vmul.f32 %v18213_v63, %v18213_v63  ;;  %14375 = vmatpush3.bf16.msra.mxu1 %v15090_v29 }
 0xc08   :  { %20597 = vst [vmem:[#allocation54_spill] sm:$0xff] %v18221_v54  ;;  %6487 = vadd.xlane.f32.xlu1 %v6486_v62  ;;  %v6428_v57 = vmul.f32 %v18221_v54, %v18221_v54  ;;  %14376 = vmatprep.subr.bf16.mxu1 %v15091_v2 }
 0xc09   :  { %20598 = vst [vmem:[#allocation43_spill] sm:$0xff] %v18224_v49  ;;  %v14364_v25 = vpop.f32.mrb[228].mxu0  ;;  %v6489_v61 = vsel %vm449_vm1, %v6425_v42, 0.0  ;;  %v6426_v44 = vmul.f32 %v18224_v49, %v18224_v49  ;;  %v6495_v47 = vsel %vm449_vm1, %v6427_v37, 0.0 }
 0xc0a   :  { %v6367_v32 = vmul.f32 %v14364_v25, %v18097_v0  ;;  %6490 = vadd.xlane.f32.xlu0 %v6489_v61  ;;  %v6291_v23 = vpop.f32.mrb[229].mxu0  ;;  %v6498_v46 = vsel %vm449_vm1, %v6428_v57, 0.0 }
 0xc0b   :  { %v6365_v34 = vmul.f32 %v18097_v0, %v6291_v23  ;;  %v14365_v12 = vpop.f32.mrb[230].mxu0  ;;  %v6492_v43 = vsel %vm449_vm1, %v6426_v44, 0.0  ;;  %14377 = vmatpush3.bf16.msra.mxu1 %v15091_v2 }
 0xc0c   :  { %v6368_v9 = vmul.f32 %v14365_v12, %v18097_v0  ;;  %6493 = vadd.xlane.f32.xlu1 %v6492_v43  ;;  %v6294_v4 = vpop.f32.mrb[231].mxu0  ;;  %v18247_v59 = vadd.f32 %v6367_v32, %v17943_v28  ;;  %14450 = vmatprep.subr.bf16.mxu1 %v20450_v24 }
 0xc0d   :  { %v18250_v30 = vadd.f32 %v6365_v34, %v17927_v51  ;;  %v6366_v10 = vmul.f32 %v18097_v0, %v6294_v4 }
 0xc0e   :  { %20599 = vst [vmem:[#allocation57_spill] sm:$0xff] %v18247_v59  ;;  %6496 = vadd.xlane.f32.xlu0 %v6495_v47  ;;  %v18255_v56 = vadd.f32 %v6368_v9, %v17936_v16  ;;  %v6431_v16 = vmul.f32 %v18247_v59, %v18247_v59 }
 0xc0f   :  { %20600 = vst [vmem:[#allocation55_spill] sm:$0xff] %v18250_v30  ;;  %v18258_v55 = vadd.f32 %v6366_v10, %v17939_v3  ;;  %v6429_v28 = vmul.f32 %v18250_v30, %v18250_v30 }
 0xc10   :  { %20601 = vst [vmem:[#allocation44_spill] sm:$0xff] %v18255_v56  ;;  %6499 = vadd.xlane.f32.xlu1 %v6498_v46  ;;  %v6432_v33 = vmul.f32 %v18255_v56, %v18255_v56  ;;  %v6507_v44 = vsel %vm449_vm1, %v6431_v16, 0.0 }
 0xc11   :  { %20602 = vst [vmem:[#allocation42_spill] sm:$0xff] %v18258_v55  ;;  %v14368_v51 = vpop.f32.mrb[232].mxu0  ;;  %v6501_v15 = vsel %vm449_vm1, %v6429_v28, 0.0  ;;  %v6430_v26 = vmul.f32 %v18258_v55, %v18258_v55 }
 0xc12   :  { %v6371_v3 = vmul.f32 %v14368_v51, %v18097_v0  ;;  %6502 = vadd.xlane.f32.xlu0 %v6501_v15  ;;  %v6307_v53 = vpop.f32.mrb[233].mxu0  ;;  %v6510_v23 = vsel %vm449_vm1, %v6432_v33, 0.0  ;;  %v15093_v33 = vld [vmem:[%s20246_s3 + $0x8] sm:$0xff]  }
 0xc13   :  { %v6369_v50 = vmul.f32 %v18097_v0, %v6307_v53  ;;  %v14369_v14 = vpop.f32.mrb[234].mxu0  ;;  %v6504_v39 = vsel %vm449_vm1, %v6430_v26, 0.0 }
 0xc14   :  { %v6372_v62 = vmul.f32 %v14369_v14, %v18097_v0  ;;  %6505 = vadd.xlane.f32.xlu1 %v6504_v39  ;;  %v6310_v42 = vpop.f32.mrb[235].mxu0  ;;  %v18276_v29 = vadd.f32 %v6371_v3, %v17971_v41  ;;  %v15092_v39 = vld [vmem:[%s20246_s3] sm:$0xff]  }
 0xc15   :  { %v18279_v25 = vadd.f32 %v6369_v50, %v17959_v36  ;;  %v6370_v61 = vmul.f32 %v18097_v0, %v6310_v42  ;;  %14410 = vmatprep.subr.bf16.mxu0 %v15092_v39 }
 0xc16   :  { %20603 = vst [vmem:[#allocation59_spill] sm:$0xff] %v18276_v29  ;;  %6508 = vadd.xlane.f32.xlu0 %v6507_v44  ;;  %v18284_v37 = vadd.f32 %v6372_v62, %v17964_v38  ;;  %v6435_v43 = vmul.f32 %v18276_v29, %v18276_v29  ;;  %14411 = vmatpush3.bf16.msra.mxu0 %v15092_v39 }
 0xc17   :  { %20604 = vst [vmem:[#allocation58_spill] sm:$0xff] %v18279_v25  ;;  %v18287_v32 = vadd.f32 %v6370_v61, %v17967_v17  ;;  %v6433_v41 = vmul.f32 %v18279_v25, %v18279_v25  ;;  %14412 = vmatprep.subr.bf16.mxu0 %v15093_v33 }
 0xc18   :  { %20605 = vst [vmem:[#allocation2_spill] sm:$0xff] %v18284_v37  ;;  %6511 = vadd.xlane.f32.xlu1 %v6510_v23  ;;  %v6436_v2 = vmul.f32 %v18284_v37, %v18284_v37  ;;  %v6519_v15 = vsel %vm449_vm1, %v6435_v43, 0.0 }
 0xc19   :  { %20606 = vst [vmem:[#allocation3_spill] sm:$0xff] %v18287_v32  ;;  %v14372_v34 = vpop.f32.mrb[236].mxu0  ;;  %v6513_v36 = vsel %vm449_vm1, %v6433_v41, 0.0  ;;  %v6434_v12 = vmul.f32 %v18287_v32, %v18287_v32 }
 0xc1a   :  { %v6375_v38 = vmul.f32 %v14372_v34, %v18097_v0  ;;  %6514 = vadd.xlane.f32.xlu0 %v6513_v36  ;;  %v6323_v17 = vpop.f32.mrb[237].mxu0  ;;  %v6522_v3 = vsel %vm449_vm1, %v6436_v2, 0.0  ;;  %14413 = vmatpush3.bf16.msra.mxu0 %v15093_v33 }
 0xc1b   :  { %v6373_v57 = vmul.f32 %v18097_v0, %v6323_v17  ;;  %v14373_v9 = vpop.f32.mrb[238].mxu0  ;;  %v6516_v4 = vsel %vm449_vm1, %v6434_v12, 0.0 }
 0xc1c   :  { %v6376_v10 = vmul.f32 %v14373_v9, %v18097_v0  ;;  %6517 = vadd.xlane.f32.xlu1 %v6516_v4  ;;  %v6326_v47 = vpop.f32.mrb[239].mxu0  ;;  %v18304_v46 = vadd.f32 %v6375_v38, %v17999_v48 }
 0xc1d   :  { %v18307_v28 = vadd.f32 %v6373_v57, %v17985_v7  ;;  %v6374_v51 = vmul.f32 %v18097_v0, %v6326_v47 }
 0xc1e   :  { %20607 = vst [vmem:[#allocation5_spill] sm:$0xff] %v18304_v46  ;;  %6520 = vadd.xlane.f32.xlu0 %v6519_v15  ;;  %v18312_v26 = vadd.f32 %v6376_v10, %v17992_v45  ;;  %v6439_v53 = vmul.f32 %v18304_v46, %v18304_v46 }
 0xc1f   :  { %20608 = vst [vmem:[#allocation4_spill] sm:$0xff] %v18307_v28  ;;  %v18315_v16 = vadd.f32 %v6374_v51, %v17995_v18  ;;  %v6437_v48 = vmul.f32 %v18307_v28, %v18307_v28 }
 0xc20   :  { %20609 = vst [vmem:[#allocation7_spill] sm:$0xff] %v18312_v26  ;;  %6523 = vadd.xlane.f32.xlu1 %v6522_v3  ;;  %v6440_v18 = vmul.f32 %v18312_v26, %v18312_v26  ;;  %v6531_v50 = vsel %vm449_vm1, %v6439_v53, 0.0 }
 0xc21   :  { %20610 = vst [vmem:[#allocation8_spill] sm:$0xff] %v18315_v16  ;;  %v6525_v7 = vsel %vm449_vm1, %v6437_v48, 0.0  ;;  %v6438_v0 = vmul.f32 %v18315_v16, %v18315_v16 }
 0xc22   :  { %6526 = vadd.xlane.f32.xlu0 %v6525_v7  ;;  %v6534_v14 = vsel %vm449_vm1, %v6440_v18, 0.0 }
 0xc23   :  { %v6528_v45 = vsel %vm449_vm1, %v6438_v0, 0.0 }
 0xc24   :  { %6529 = vadd.xlane.f32.xlu1 %v6528_v45 }
 0xc26   :  { %6532 = vadd.xlane.f32.xlu0 %v6531_v50 }
 0xc28   :  { %6535 = vadd.xlane.f32.xlu1 %v6534_v14 }
 0xc77   :  { %v6443_v62 = vpop.xlane.xlu0 %6442 }
 0xc78   :  { %v6537_v42 = vmul.f32 0.03125, %v6443_v62 }
 0xc79   :  { %v6446_v61 = vpop.xlane.xlu1 %6445 }
 0xc7a   :  { %v6569_v44 = vadd.f32 1e-06, %v6537_v42  ;;  %v6538_v23 = vmul.f32 0.03125, %v6446_v61 }
 0xc7b   :  { %v6449_v41 = vpop.xlane.xlu0 %6448 }
 0xc7c   :  { %15554 = vrsqrt.f32 %v6569_v44  ;;  %v6570_v34 = vadd.f32 1e-06, %v6538_v23  ;;  %v6539_v36 = vmul.f32 0.03125, %v6449_v41 }
 0xc7d   :  { %v6452_v12 = vpop.xlane.xlu1 %6451 }
 0xc7e   :  { %15556 = vrsqrt.f32 %v6570_v34  ;;  %v6571_v43 = vadd.f32 1e-06, %v6539_v36  ;;  %v6540_v38 = vmul.f32 0.03125, %v6452_v12 }
 0xc7f   :  { %v6455_v17 = vpop.xlane.xlu0 %6454 }
 0xc80   :  { %15558 = vrsqrt.f32 %v6571_v43  ;;  %v6572_v57 = vadd.f32 1e-06, %v6540_v38  ;;  %v6541_v9 = vmul.f32 0.03125, %v6455_v17 }
 0xc81   :  { %v6458_v4 = vpop.xlane.xlu1 %6457 }
 0xc82   :  { %15560 = vrsqrt.f32 %v6572_v57  ;;  %v6573_v2 = vadd.f32 1e-06, %v6541_v9  ;;  %v6542_v10 = vmul.f32 0.03125, %v6458_v4 }
 0xc83   :  { %v6461_v47 = vpop.xlane.xlu0 %6460 }
 0xc84   :  { %15562 = vrsqrt.f32 %v6573_v2  ;;  %v6574_v51 = vadd.f32 1e-06, %v6542_v10  ;;  %v6543_v15 = vmul.f32 0.03125, %v6461_v47 }
 0xc85   :  { %v6464_v3 = vpop.xlane.xlu1 %6463 }
 0xc86   :  { %v15555_v48 = vpop.eup %15554  ;;  %15564 = vrsqrt.f32 %v6574_v51  ;;  %v6575_v7 = vadd.f32 1e-06, %v6543_v15  ;;  %v6544_v0 = vmul.f32 0.03125, %v6464_v3 }
 0xc87   :  { %v6467_v53 = vpop.xlane.xlu0 %6466  ;;  %v6633_v39 = vmul.f32 %v15555_v48, %v18106_v19 }
 0xc88   :  { %v15557_v45 = vpop.eup %15556  ;;  %15566 = vrsqrt.f32 %v6575_v7  ;;  %v6576_v18 = vadd.f32 1e-06, %v6544_v0  ;;  %v6545_v50 = vmul.f32 0.03125, %v6467_v53 }
 0xc89   :  { %v6470_v14 = vpop.xlane.xlu1 %6469  ;;  %v6634_v33 = vmul.f32 %v15557_v45, %v18113_v6 }
 0xc8a   :  { %v15559_v62 = vpop.eup %15558  ;;  %15568 = vrsqrt.f32 %v6576_v18  ;;  %v6577_v42 = vadd.f32 1e-06, %v6545_v50  ;;  %v6546_v61 = vmul.f32 0.03125, %v6470_v14 }
 0xc8b   :  { %v6473_v44 = vpop.xlane.xlu0 %6472  ;;  %v6665_v23 = vpack.c.bf16 %v6634_v33, %v6633_v39  ;;  %v6635_v12 = vmul.f32 %v15559_v62, %v18103_v35 }
 0xc8c   :  { %v15561_v41 = vpop.eup %15560  ;;  %15570 = vrsqrt.f32 %v6577_v42  ;;  %v6578_v34 = vadd.f32 1e-06, %v6546_v61  ;;  %v6547_v36 = vmul.f32 0.03125, %v6473_v44 }
 0xc8d   :  { %v6636_v43 = vmul.f32 %v15561_v41, %v18110_v31  ;;  %14378 = vmatprep.mubr.msk.bf16.mxu1 %vm449_vm1, %v6665_v23  ;;  %v6476_v38 = vpop.xlane.xlu1 %6475 }
 0xc8e   :  { %v15563_v17 = vpop.eup %15562  ;;  %15572 = vrsqrt.f32 %v6578_v34  ;;  %v6579_v57 = vadd.f32 1e-06, %v6547_v36  ;;  %v6548_v9 = vmul.f32 0.03125, %v6476_v38 }
 0xc8f   :  { %v6666_v4 = vpack.c.bf16 %v6636_v43, %v6635_v12  ;;  %v6479_v2 = vpop.xlane.xlu0 %6478  ;;  %v6637_v3 = vmul.f32 %v15563_v17, %v18132_v21 }
 0xc90   :  { %v15565_v10 = vpop.eup %15564  ;;  %15574 = vrsqrt.f32 %v6579_v57  ;;  %v6580_v47 = vadd.f32 1e-06, %v6548_v9  ;;  %v6549_v51 = vmul.f32 0.03125, %v6479_v2 }
 0xc91   :  { %14379 = vmatmul.mubr.msk.bf16.vlgmr.msra.gmra.mrb[208].mxu1 %vm449_vm1, %v6666_v4  ;;  %v6482_v15 = vpop.xlane.xlu1 %6481  ;;  %v6638_v48 = vmul.f32 %v15565_v10, %v18140_v27 }
 0xc92   :  { %v15567_v7 = vpop.eup %15566  ;;  %15576 = vrsqrt.f32 %v6580_v47  ;;  %v6581_v0 = vadd.f32 1e-06, %v6549_v51  ;;  %v6550_v53 = vmul.f32 0.03125, %v6482_v15 }
 0xc93   :  { %v6485_v45 = vpop.xlane.xlu0 %6484  ;;  %v6667_v18 = vpack.c.bf16 %v6638_v48, %v6637_v3  ;;  %v6639_v62 = vmul.f32 %v15567_v7, %v18129_v52 }
 0xc94   :  { %v15569_v50 = vpop.eup %15568  ;;  %15578 = vrsqrt.f32 %v6581_v0  ;;  %v6582_v14 = vadd.f32 1e-06, %v6550_v53  ;;  %v6551_v39 = vmul.f32 0.03125, %v6485_v45 }
 0xc95   :  { %14382 = vmatprep.mubr.msk.bf16.mxu1 %vm449_vm1, %v6667_v18  ;;  %v6488_v33 = vpop.xlane.xlu1 %6487  ;;  %v6640_v42 = vmul.f32 %v15569_v50, %v18137_v58 }
 0xc96   :  { %v15571_v61 = vpop.eup %15570  ;;  %15580 = vrsqrt.f32 %v6582_v14  ;;  %v6583_v44 = vadd.f32 1e-06, %v6551_v39  ;;  %v6552_v23 = vmul.f32 0.03125, %v6488_v33 }
 0xc97   :  { %v6491_v41 = vpop.xlane.xlu0 %6490  ;;  %v6668_v34 = vpack.c.bf16 %v6640_v42, %v6639_v62  ;;  %v6641_v17 = vmul.f32 %v15571_v61, %v18160_v8 }
 0xc98   :  { %v15573_v36 = vpop.eup %15572  ;;  %15582 = vrsqrt.f32 %v6583_v44  ;;  %v6584_v12 = vadd.f32 1e-06, %v6552_v23  ;;  %v6553_v43 = vmul.f32 0.03125, %v6491_v41 }
 0xc99   :  { %14383 = vmatmul.mubr.msk.bf16.gmra.mrb[212].mxu1 %vm449_vm1, %v6668_v34  ;;  %v6494_v38 = vpop.xlane.xlu1 %6493  ;;  %v6642_v57 = vmul.f32 %v15573_v36, %v18168_v20 }
 0xc9a   :  { %v15575_v9 = vpop.eup %15574  ;;  %15584 = vrsqrt.f32 %v6584_v12  ;;  %v6585_v4 = vadd.f32 1e-06, %v6553_v43  ;;  %v6554_v2 = vmul.f32 0.03125, %v6494_v38 }
 0xc9b   :  { %v6497_v10 = vpop.xlane.xlu0 %6496  ;;  %v6669_v47 = vpack.c.bf16 %v6642_v57, %v6641_v17  ;;  %v6643_v7 = vmul.f32 %v15575_v9, %v18157_v5 }
 0xc9c   :  { %v15577_v51 = vpop.eup %15576  ;;  %15586 = vrsqrt.f32 %v6585_v4  ;;  %v6586_v15 = vadd.f32 1e-06, %v6554_v2  ;;  %v6555_v3 = vmul.f32 0.03125, %v6497_v10 }
 0xc9d   :  { %14386 = vmatprep.mubr.msk.bf16.mxu1 %vm449_vm1, %v6669_v47  ;;  %v6500_v48 = vpop.xlane.xlu1 %6499  ;;  %v6644_v0 = vmul.f32 %v15577_v51, %v18165_v40 }
 0xc9e   :  { %v15579_v53 = vpop.eup %15578  ;;  %15588 = vrsqrt.f32 %v6586_v15  ;;  %v6587_v45 = vadd.f32 1e-06, %v6555_v3  ;;  %v6556_v18 = vmul.f32 0.03125, %v6500_v48 }
 0xc9f   :  { %v6503_v50 = vpop.xlane.xlu0 %6502  ;;  %v6670_v14 = vpack.c.bf16 %v6644_v0, %v6643_v7  ;;  %v6645_v61 = vmul.f32 %v15579_v53, %v18188_v11 }
 0xca0   :  { %v15581_v39 = vpop.eup %15580  ;;  %15590 = vrsqrt.f32 %v6587_v45  ;;  %v6588_v33 = vadd.f32 1e-06, %v6556_v18  ;;  %v6557_v62 = vmul.f32 0.03125, %v6503_v50 }
 0xca1   :  { %14387 = vmatmul.mubr.msk.bf16.gmra.mrb[216].mxu1 %vm449_vm1, %v6670_v14  ;;  %v6506_v42 = vpop.xlane.xlu1 %6505  ;;  %v6646_v44 = vmul.f32 %v15581_v39, %v18196_v22 }
 0xca2   :  { %v15583_v23 = vpop.eup %15582  ;;  %15592 = vrsqrt.f32 %v6588_v33  ;;  %v6589_v41 = vadd.f32 1e-06, %v6557_v62  ;;  %v6558_v34 = vmul.f32 0.03125, %v6506_v42 }
 0xca3   :  { %v6509_v36 = vpop.xlane.xlu0 %6508  ;;  %v6671_v12 = vpack.c.bf16 %v6646_v44, %v6645_v61  ;;  %v6647_v9 = vmul.f32 %v15583_v23, %v18185_v13 }
 0xca4   :  { %v15585_v43 = vpop.eup %15584  ;;  %15594 = vrsqrt.f32 %v6589_v41  ;;  %v6590_v38 = vadd.f32 1e-06, %v6558_v34  ;;  %v6559_v17 = vmul.f32 0.03125, %v6509_v36 }
 0xca5   :  { %14390 = vmatprep.mubr.msk.bf16.mxu1 %vm449_vm1, %v6671_v12  ;;  %v6512_v57 = vpop.xlane.xlu1 %6511  ;;  %v6648_v4 = vmul.f32 %v15585_v43, %v18193_v1 }
 0xca6   :  { %v15587_v2 = vpop.eup %15586  ;;  %15596 = vrsqrt.f32 %v6590_v38  ;;  %v6591_v10 = vadd.f32 1e-06, %v6559_v17  ;;  %v6560_v47 = vmul.f32 0.03125, %v6512_v57 }
 0xca7   :  { %v6515_v51 = vpop.xlane.xlu0 %6514  ;;  %v6672_v15 = vpack.c.bf16 %v6648_v4, %v6647_v9  ;;  %v6649_v53 = vmul.f32 %v15587_v2, %v18216_v60 }
 0xca8   :  { %v15589_v3 = vpop.eup %15588  ;;  %15598 = vrsqrt.f32 %v6591_v10  ;;  %v6592_v48 = vadd.f32 1e-06, %v6560_v47  ;;  %v6561_v7 = vmul.f32 0.03125, %v6515_v51 }
 0xca9   :  { %14391 = vmatmul.mubr.msk.bf16.gmra.mrb[220].mxu1 %vm449_vm1, %v6672_v15  ;;  %v6518_v0 = vpop.xlane.xlu1 %6517  ;;  %v6650_v45 = vmul.f32 %v15589_v3, %v18224_v49 }
 0xcaa   :  { %v15591_v18 = vpop.eup %15590  ;;  %15600 = vrsqrt.f32 %v6592_v48  ;;  %v6593_v50 = vadd.f32 1e-06, %v6561_v7  ;;  %v6562_v14 = vmul.f32 0.03125, %v6518_v0 }
 0xcab   :  { %v6521_v39 = vpop.xlane.xlu0 %6520  ;;  %v6673_v33 = vpack.c.bf16 %v6650_v45, %v6649_v53  ;;  %v6651_v23 = vmul.f32 %v15591_v18, %v18213_v63 }
 0xcac   :  { %v15593_v62 = vpop.eup %15592  ;;  %15602 = vrsqrt.f32 %v6593_v50  ;;  %v6594_v42 = vadd.f32 1e-06, %v6562_v14  ;;  %v6563_v61 = vmul.f32 0.03125, %v6521_v39 }
 0xcad   :  { %14394 = vmatprep.mubr.msk.bf16.mxu1 %vm449_vm1, %v6673_v33  ;;  %v6524_v44 = vpop.xlane.xlu1 %6523  ;;  %v6652_v41 = vmul.f32 %v15593_v62, %v18221_v54 }
 0xcae   :  { %v15595_v34 = vpop.eup %15594  ;;  %15604 = vrsqrt.f32 %v6594_v42  ;;  %v6595_v36 = vadd.f32 1e-06, %v6563_v61  ;;  %v6564_v12 = vmul.f32 0.03125, %v6524_v44 }
 0xcaf   :  { %v6527_v43 = vpop.xlane.xlu0 %6526  ;;  %v6674_v38 = vpack.c.bf16 %v6652_v41, %v6651_v23  ;;  %v6653_v2 = vmul.f32 %v15595_v34, %v18250_v30 }
 0xcb0   :  { %v15597_v17 = vpop.eup %15596  ;;  %15606 = vrsqrt.f32 %v6595_v36  ;;  %v6596_v57 = vadd.f32 1e-06, %v6564_v12  ;;  %v6565_v9 = vmul.f32 0.03125, %v6527_v43 }
 0xcb1   :  { %14395 = vmatmul.mubr.msk.bf16.gmra.mrb[224].mxu1 %vm449_vm1, %v6674_v38  ;;  %v6530_v4 = vpop.xlane.xlu1 %6529  ;;  %v6654_v10 = vmul.f32 %v15597_v17, %v18258_v55 }
 0xcb2   :  { %v15599_v47 = vpop.eup %15598  ;;  %15608 = vrsqrt.f32 %v6596_v57  ;;  %v6597_v51 = vadd.f32 1e-06, %v6565_v9  ;;  %v6566_v15 = vmul.f32 0.03125, %v6530_v4 }
 0xcb3   :  { %v6533_v3 = vpop.xlane.xlu0 %6532  ;;  %v6675_v48 = vpack.c.bf16 %v6654_v10, %v6653_v2  ;;  %v6655_v18 = vmul.f32 %v15599_v47, %v18247_v59 }
 0xcb4   :  { %v15601_v7 = vpop.eup %15600  ;;  %15610 = vrsqrt.f32 %v6597_v51  ;;  %v6598_v0 = vadd.f32 1e-06, %v6566_v15  ;;  %v6567_v53 = vmul.f32 0.03125, %v6533_v3 }
 0xcb5   :  { %14398 = vmatprep.mubr.msk.bf16.mxu1 %vm449_vm1, %v6675_v48  ;;  %v6536_v45 = vpop.xlane.xlu1 %6535  ;;  %v6656_v50 = vmul.f32 %v15601_v7, %v18255_v56  ;;  %v15094_v48 = vld [vmem:[%s20246_s3 + $0x10] sm:$0xff]   ;;  %v15095_v7 = vld [vmem:[%s20246_s3 + $0x18] sm:$0xff]  }
 0xcb6   :  { %v15603_v14 = vpop.eup %15602  ;;  %15612 = vrsqrt.f32 %v6598_v0  ;;  %v6599_v39 = vadd.f32 1e-06, %v6567_v53  ;;  %v6568_v33 = vmul.f32 0.03125, %v6536_v45  ;;  %14414 = vmatprep.subr.bf16.mxu0 %v15094_v48 }
 0xcb7   :  { %v6676_v62 = vpack.c.bf16 %v6656_v50, %v6655_v18  ;;  %v6657_v44 = vmul.f32 %v15603_v14, %v18279_v25  ;;  %14415 = vmatpush3.bf16.msra.mxu0 %v15094_v48 }
 0xcb8   :  { %v15605_v42 = vpop.eup %15604  ;;  %15614 = vrsqrt.f32 %v6599_v39  ;;  %v6600_v61 = vadd.f32 1e-06, %v6568_v33  ;;  %14416 = vmatprep.subr.bf16.mxu0 %v15095_v7 }
 0xcb9   :  { %14399 = vmatmul.mubr.msk.bf16.gmra.mrb[228].mxu1 %vm449_vm1, %v6676_v62  ;;  %v6658_v23 = vmul.f32 %v15605_v42, %v18287_v32 }
 0xcba   :  { %v15607_v41 = vpop.eup %15606  ;;  %15616 = vrsqrt.f32 %v6600_v61 }
 0xcbb   :  { %v6677_v34 = vpack.c.bf16 %v6658_v23, %v6657_v44  ;;  %v6659_v12 = vmul.f32 %v15607_v41, %v18276_v29  ;;  %14417 = vmatpush3.bf16.msra.mxu0 %v15095_v7 }
 0xcbc   :  { %v15609_v36 = vpop.eup %15608  ;;  %14456 = vmatprep.subr.bf16.mxu0 %v20450_v24 }
 0xcbd   :  { %14402 = vmatprep.mubr.msk.bf16.mxu1 %vm449_vm1, %v6677_v34  ;;  %v6660_v43 = vmul.f32 %v15609_v36, %v18284_v37 }
 0xcbe   :  { %v15611_v38 = vpop.eup %15610 }
 0xcbf   :  { %v6678_v17 = vpack.c.bf16 %v6660_v43, %v6659_v12  ;;  %v6661_v9 = vmul.f32 %v15611_v38, %v18307_v28 }
 0xcc0   :  { %v15613_v57 = vpop.eup %15612 }
 0xcc1   :  { %14403 = vmatmul.mubr.msk.bf16.gmra.mrb[232].mxu1 %vm449_vm1, %v6678_v17  ;;  %v6662_v4 = vmul.f32 %v15613_v57, %v18315_v16 }
 0xcc2   :  { %v15615_v2 = vpop.eup %15614 }
 0xcc3   :  { %v6679_v10 = vpack.c.bf16 %v6662_v4, %v6661_v9  ;;  %v6663_v51 = vmul.f32 %v15615_v2, %v18304_v46 }
 0xcc4   :  { %v15617_v47 = vpop.eup %15616 }
 0xcc5   :  { %14406 = vmatprep.mubr.msk.bf16.mxu1 %vm449_vm1, %v6679_v10  ;;  %v6664_v15 = vmul.f32 %v15617_v47, %v18312_v26 }
 0xcc7   :  { %v6680_v3 = vpack.c.bf16 %v6664_v15, %v6663_v51 }
 0xcc9   :  { %14407 = vmatmul.mubr.msk.bf16.gmra.mrb[236].mxu1 %vm449_vm1, %v6680_v3 }
 0xcca   :  { %14452 = vmatprep.mubr.msk.bf16.mxu1 %vm16007_vm3, %v20450_v24 }
 0xd64   :  { %v18393_v0 = vpop.f32.mrb[208].mxu1 }
 0xd65   :  { %v18395_v53 = vpop.f32.mrb[209].mxu1  ;;  %v6909_v18 = vmul.f32 %v18393_v0, %v18393_v0 }
 0xd66   :  { %v18397_v45 = vpop.f32.mrb[210].mxu1  ;;  %v6907_v33 = vmul.f32 %v18395_v53, %v18395_v53 }
 0xd67   :  { %v6910_v50 = vmul.f32 %v18397_v45, %v18397_v45  ;;  %v18405_v14 = vpack.c.bf16 %v18397_v45, %v18393_v0  ;;  %v18407_v39 = vpop.f32.mrb[211].mxu1 }
 0xd68   :  { %v6908_v62 = vmul.f32 %v18407_v39, %v18407_v39  ;;  %v18415_v42 = vpack.c.bf16 %v18407_v39, %v18395_v53 }
 0xd69   :  { %v6940_v61 = vpack.c.bf16 %v6910_v50, %v6909_v18 }
 0xd6a   :  { %v6939_v44 = vpack.c.bf16 %v6908_v62, %v6907_v33 }
 0xd6c   :  { %v18417_v23 = vpop.f32.mrb[212].mxu1  ;;  %14418 = vmatprep.mubr.msk.bf16.mxu0 %vm996_vm2, %v6939_v44 }
 0xd6d   :  { %v18420_v41 = vpop.f32.mrb[213].mxu1  ;;  %14419 = vmatmul.mubr.msk.bf16.vlgmr.msra.gmra.mrb[240].mxu0 %vm996_vm2, %v6940_v61  ;;  %v6913_v36 = vmul.f32 %v18417_v23, %v18417_v23 }
 0xd6e   :  { %v18423_v34 = vpop.f32.mrb[214].mxu1  ;;  %v6911_v17 = vmul.f32 %v18420_v41, %v18420_v41 }
 0xd6f   :  { %v6914_v12 = vmul.f32 %v18423_v34, %v18423_v34  ;;  %v18431_v43 = vpack.c.bf16 %v18423_v34, %v18417_v23  ;;  %v18433_v38 = vpop.f32.mrb[215].mxu1 }
 0xd70   :  { %v6912_v57 = vmul.f32 %v18433_v38, %v18433_v38  ;;  %v18441_v9 = vpack.c.bf16 %v18433_v38, %v18420_v41 }
 0xd71   :  { %v6942_v4 = vpack.c.bf16 %v6914_v12, %v6913_v36 }
 0xd72   :  { %v6941_v2 = vpack.c.bf16 %v6912_v57, %v6911_v17 }
 0xd74   :  { %v18443_v10 = vpop.f32.mrb[216].mxu1  ;;  %14422 = vmatprep.mubr.msk.bf16.mxu0 %vm996_vm2, %v6941_v2 }
 0xd75   :  { %v18446_v47 = vpop.f32.mrb[217].mxu1  ;;  %14423 = vmatmul.mubr.msk.bf16.gmra.mrb[244].mxu0 %vm996_vm2, %v6942_v4  ;;  %v6917_v15 = vmul.f32 %v18443_v10, %v18443_v10 }
 0xd76   :  { %v18449_v51 = vpop.f32.mrb[218].mxu1  ;;  %v6915_v18 = vmul.f32 %v18446_v47, %v18446_v47 }
 0xd77   :  { %v6918_v3 = vmul.f32 %v18449_v51, %v18449_v51  ;;  %v18457_v48 = vpack.c.bf16 %v18449_v51, %v18443_v10  ;;  %v18459_v7 = vpop.f32.mrb[219].mxu1 }
 0xd78   :  { %v6916_v50 = vmul.f32 %v18459_v7, %v18459_v7  ;;  %v18467_v33 = vpack.c.bf16 %v18459_v7, %v18446_v47 }
 0xd79   :  { %v6944_v62 = vpack.c.bf16 %v6918_v3, %v6917_v15 }
 0xd7a   :  { %v6943_v61 = vpack.c.bf16 %v6916_v50, %v6915_v18 }
 0xd7c   :  { %v18469_v44 = vpop.f32.mrb[220].mxu1  ;;  %14426 = vmatprep.mubr.msk.bf16.mxu0 %vm996_vm2, %v6943_v61 }
 0xd7d   :  { %v18472_v36 = vpop.f32.mrb[221].mxu1  ;;  %14427 = vmatmul.mubr.msk.bf16.gmra.mrb[248].mxu0 %vm996_vm2, %v6944_v62  ;;  %v6921_v17 = vmul.f32 %v18469_v44, %v18469_v44 }
 0xd7e   :  { %v18475_v12 = vpop.f32.mrb[222].mxu1  ;;  %v6919_v15 = vmul.f32 %v18472_v36, %v18472_v36 }
 0xd7f   :  { %v6922_v57 = vmul.f32 %v18475_v12, %v18475_v12  ;;  %v18483_v4 = vpack.c.bf16 %v18475_v12, %v18469_v44  ;;  %v18485_v2 = vpop.f32.mrb[223].mxu1 }
 0xd80   :  { %v6920_v3 = vmul.f32 %v18485_v2, %v18485_v2  ;;  %v18493_v18 = vpack.c.bf16 %v18485_v2, %v18472_v36 }
 0xd81   :  { %v6946_v50 = vpack.c.bf16 %v6922_v57, %v6921_v17 }
 0xd82   :  { %v6945_v62 = vpack.c.bf16 %v6920_v3, %v6919_v15 }
 0xd84   :  { %v18495_v61 = vpop.f32.mrb[224].mxu1  ;;  %14430 = vmatprep.mubr.msk.bf16.mxu0 %vm996_vm2, %v6945_v62 }
 0xd85   :  { %v18498_v46 = vpop.f32.mrb[225].mxu1  ;;  %14431 = vmatmul.mubr.msk.bf16.gmra.mrb[252].mxu0 %vm996_vm2, %v6946_v50  ;;  %v6925_v26 = vmul.f32 %v18495_v61, %v18495_v61 }
 0xd86   :  { %v18501_v16 = vpop.f32.mrb[226].mxu1  ;;  %v6923_v15 = vmul.f32 %v18498_v46, %v18498_v46 }
 0xd87   :  { %v6926_v28 = vmul.f32 %v18501_v16, %v18501_v16  ;;  %v18509_v17 = vpack.c.bf16 %v18501_v16, %v18495_v61  ;;  %v18511_v57 = vpop.f32.mrb[227].mxu1 }
 0xd88   :  { %v6924_v3 = vmul.f32 %v18511_v57, %v18511_v57  ;;  %v18519_v50 = vpack.c.bf16 %v18511_v57, %v18498_v46 }
 0xd89   :  { %v6948_v62 = vpack.c.bf16 %v6926_v28, %v6925_v26 }
 0xd8a   :  { %v6947_v29 = vpack.c.bf16 %v6924_v3, %v6923_v15 }
 0xd8c   :  { %v18521_v32 = vpop.f32.mrb[228].mxu1  ;;  %14434 = vmatprep.mubr.msk.bf16.mxu0 %vm996_vm2, %v6947_v29 }
 0xd8d   :  { %v18524_v37 = vpop.f32.mrb[229].mxu1  ;;  %14435 = vmatmul.mubr.msk.bf16.gmra.mrb[0].mxu0 %vm996_vm2, %v6948_v62  ;;  %v6929_v59 = vmul.f32 %v18521_v32, %v18521_v32 }
 0xd8e   :  { %v18527_v25 = vpop.f32.mrb[230].mxu1  ;;  %v6927_v29 = vmul.f32 %v18524_v37, %v18524_v37 }
 0xd8f   :  { %v6930_v55 = vmul.f32 %v18527_v25, %v18527_v25  ;;  %v18535_v28 = vpack.c.bf16 %v18527_v25, %v18521_v32  ;;  %v18537_v26 = vpop.f32.mrb[231].mxu1 }
 0xd90   :  { %v6928_v15 = vmul.f32 %v18537_v26, %v18537_v26  ;;  %v18545_v3 = vpack.c.bf16 %v18537_v26, %v18524_v37 }
 0xd91   :  { %v6950_v62 = vpack.c.bf16 %v6930_v55, %v6929_v59 }
 0xd92   :  { %v6949_v56 = vpack.c.bf16 %v6928_v15, %v6927_v29 }
 0xd94   :  { %v18547_v30 = vpop.f32.mrb[232].mxu1  ;;  %14438 = vmatprep.mubr.msk.bf16.mxu0 %vm996_vm2, %v6949_v56 }
 0xd95   :  { %v18550_v63 = vpop.f32.mrb[233].mxu1  ;;  %14439 = vmatmul.mubr.msk.bf16.gmra.mrb[4].mxu0 %vm996_vm2, %v6950_v62  ;;  %v6933_v54 = vmul.f32 %v18547_v30, %v18547_v30 }
 0xd96   :  { %v18553_v49 = vpop.f32.mrb[234].mxu1  ;;  %v6931_v56 = vmul.f32 %v18550_v63, %v18550_v63 }
 0xd97   :  { %v6934_v60 = vmul.f32 %v18553_v49, %v18553_v49  ;;  %v18561_v59 = vpack.c.bf16 %v18553_v49, %v18547_v30  ;;  %v18563_v55 = vpop.f32.mrb[235].mxu1 }
 0xd98   :  { %v6932_v29 = vmul.f32 %v18563_v55, %v18563_v55  ;;  %v18571_v15 = vpack.c.bf16 %v18563_v55, %v18550_v63 }
 0xd99   :  { %v6952_v62 = vpack.c.bf16 %v6934_v60, %v6933_v54 }
 0xd9a   :  { %v6951_v13 = vpack.c.bf16 %v6932_v29, %v6931_v56 }
 0xd9c   :  { %v18573_v22 = vpop.f32.mrb[236].mxu1  ;;  %14442 = vmatprep.mubr.msk.bf16.mxu0 %vm996_vm2, %v6951_v13 }
 0xd9d   :  { %v18576_v1 = vpop.f32.mrb[237].mxu1  ;;  %14443 = vmatmul.mubr.msk.bf16.gmra.mrb[8].mxu0 %vm996_vm2, %v6952_v62  ;;  %v6937_v5 = vmul.f32 %v18573_v22, %v18573_v22 }
 0xd9e   :  { %v18579_v11 = vpop.f32.mrb[238].mxu1  ;;  %v6935_v13 = vmul.f32 %v18576_v1, %v18576_v1 }
 0xd9f   :  { %v6938_v20 = vmul.f32 %v18579_v11, %v18579_v11  ;;  %v18587_v60 = vpack.c.bf16 %v18579_v11, %v18573_v22  ;;  %v18589_v54 = vpop.f32.mrb[239].mxu1 }
 0xda0   :  { %v6936_v56 = vmul.f32 %v18589_v54, %v18589_v54  ;;  %v18597_v29 = vpack.c.bf16 %v18589_v54, %v18576_v1 }
 0xda1   :  { %20611 = vst [vmem:[#allocation9_spill] sm:$0xff] %v18587_v60  ;;  %v6954_v62 = vpack.c.bf16 %v6938_v20, %v6937_v5 }
 0xda2   :  { %20612 = vst [vmem:[#allocation6_spill] sm:$0xff] %v18597_v29  ;;  %v6953_v40 = vpack.c.bf16 %v6936_v56, %v6935_v13 }
 0xda4   :  { %14446 = vmatprep.mubr.msk.bf16.mxu0 %vm996_vm2, %v6953_v40 }
 0xda5   :  { %14447 = vmatmul.mubr.msk.bf16.gmra.mrb[12].mxu0 %vm996_vm2, %v6954_v62 }
 0xda6   :  { %14458 = vmatprep.mubr.msk.bf16.mxu0 %vm16007_vm3, %v20450_v24 }
 0xe40   :  { %v14420_v8 = vpop.f32.mrb[240].mxu0 }
 0xe41   :  { %v7078_v52 = vadd.f32 1e-06, %v14420_v8  ;;  %v7069_v27 = vpop.f32.mrb[241].mxu0 }
 0xe42   :  { %v7070_v58 = vadd.f32 1e-06, %v7069_v27  ;;  %v14421_v21 = vpop.f32.mrb[242].mxu0 }
 0xe43   :  { %15618 = vrsqrt.f32 %v7078_v52  ;;  %v7081_v31 = vadd.f32 1e-06, %v14421_v21  ;;  %v7072_v6 = vpop.f32.mrb[243].mxu0 }
 0xe44   :  { %15620 = vrsqrt.f32 %v7070_v58  ;;  %v7073_v19 = vadd.f32 1e-06, %v7072_v6 }
 0xe45   :  { %15622 = vrsqrt.f32 %v7081_v31 }
 0xe46   :  { %15624 = vrsqrt.f32 %v7073_v19 }
 0xe48   :  { %v14424_v5 = vpop.f32.mrb[244].mxu0 }
 0xe49   :  { %v7094_v20 = vadd.f32 1e-06, %v14424_v5  ;;  %v7085_v40 = vpop.f32.mrb[245].mxu0 }
 0xe4a   :  { %v7086_v13 = vadd.f32 1e-06, %v7085_v40  ;;  %v14425_v56 = vpop.f32.mrb[246].mxu0 }
 0xe4b   :  { %15626 = vrsqrt.f32 %v7094_v20  ;;  %v7097_v62 = vadd.f32 1e-06, %v14425_v56  ;;  %v7088_v35 = vpop.f32.mrb[247].mxu0 }
 0xe4c   :  { %15628 = vrsqrt.f32 %v7086_v13  ;;  %v7089_v8 = vadd.f32 1e-06, %v7088_v35 }
 0xe4d   :  { %v15619_v24 = vpop.eup %15618  ;;  %15630 = vrsqrt.f32 %v7097_v62 }
 0xe4e   :  { %v15621_v27 = vpop.eup %15620  ;;  %15632 = vrsqrt.f32 %v7089_v8  ;;  %v7230_v52 = vmul.f32 %v15619_v24, %v18393_v0 }
 0xe4f   :  { %v15623_v21 = vpop.eup %15622  ;;  %v7228_v31 = vmul.f32 %v15621_v27, %v18395_v53 }
 0xe50   :  { %v15625_v19 = vpop.eup %15624  ;;  %v14428_v6 = vpop.f32.mrb[248].mxu0  ;;  %v7231_v58 = vmul.f32 %v15623_v21, %v18397_v45 }
 0xe51   :  { %v7110_v5 = vadd.f32 1e-06, %v14428_v6  ;;  %v7101_v40 = vpop.f32.mrb[249].mxu0  ;;  %v7229_v20 = vmul.f32 %v15625_v19, %v18407_v39 }
 0xe52   :  { %v7102_v56 = vadd.f32 1e-06, %v7101_v40  ;;  %v14429_v13 = vpop.f32.mrb[250].mxu0  ;;  %v18607_v35 = vpack.c.bf16 %v7231_v58, %v7230_v52 }
 0xe53   :  { %15634 = vrsqrt.f32 %v7110_v5  ;;  %v7113_v62 = vadd.f32 1e-06, %v14429_v13  ;;  %v7104_v8 = vpop.f32.mrb[251].mxu0  ;;  %v18609_v60 = vpack.c.bf16 %v7229_v20, %v7228_v31 }
 0xe54   :  { %15636 = vrsqrt.f32 %v7102_v56  ;;  %v7105_v24 = vadd.f32 1e-06, %v7104_v8  ;;  %7348 = vrot.lane.b32.xlu1 %v18607_v35, %s16008_s26 }
 0xe55   :  { %v15627_v0 = vpop.eup %15626  ;;  %15638 = vrsqrt.f32 %v7113_v62  ;;  %7298 = vrot.lane.b32.xlu0 %v18609_v60, %s16008_s26 }
 0xe56   :  { %v15629_v53 = vpop.eup %15628  ;;  %15640 = vrsqrt.f32 %v7105_v24  ;;  %v7234_v45 = vmul.f32 %v15627_v0, %v18417_v23 }
 0xe57   :  { %v15631_v39 = vpop.eup %15630  ;;  %v7232_v27 = vmul.f32 %v15629_v53, %v18420_v41 }
 0xe58   :  { %v15633_v52 = vpop.eup %15632  ;;  %v14432_v21 = vpop.f32.mrb[252].mxu0  ;;  %v7235_v31 = vmul.f32 %v15631_v39, %v18423_v34 }
 0xe59   :  { %v7126_v19 = vadd.f32 1e-06, %v14432_v21  ;;  %v7117_v6 = vpop.f32.mrb[253].mxu0  ;;  %v7233_v58 = vmul.f32 %v15633_v52, %v18433_v38 }
 0xe5a   :  { %v7118_v5 = vadd.f32 1e-06, %v7117_v6  ;;  %v14433_v40 = vpop.f32.mrb[254].mxu0  ;;  %v18619_v20 = vpack.c.bf16 %v7235_v31, %v7234_v45 }
 0xe5b   :  { %15642 = vrsqrt.f32 %v7126_v19  ;;  %v7129_v56 = vadd.f32 1e-06, %v14433_v40  ;;  %v7120_v13 = vpop.f32.mrb[255].mxu0  ;;  %v18621_v62 = vpack.c.bf16 %v7233_v58, %v7232_v27 }
 0xe5c   :  { %15644 = vrsqrt.f32 %v7118_v5  ;;  %v7121_v23 = vadd.f32 1e-06, %v7120_v13 }
 0xe5d   :  { %v15635_v41 = vpop.eup %15634  ;;  %15646 = vrsqrt.f32 %v7129_v56  ;;  %7398 = vrot.lane.b32.xlu1 %v18621_v62, %s16008_s26 }
 0xe5e   :  { %v15637_v34 = vpop.eup %15636  ;;  %15648 = vrsqrt.f32 %v7121_v23  ;;  %v7238_v38 = vmul.f32 %v15635_v41, %v18443_v10 }
 0xe5f   :  { %v15639_v8 = vpop.eup %15638  ;;  %v7236_v24 = vmul.f32 %v15637_v34, %v18446_v47 }
 0xe60   :  { %v15641_v0 = vpop.eup %15640  ;;  %v14436_v53 = vpop.f32.mrb[0].mxu0  ;;  %v7239_v45 = vmul.f32 %v15639_v8, %v18449_v51 }
 0xe61   :  { %v7142_v39 = vadd.f32 1e-06, %v14436_v53  ;;  %v7133_v27 = vpop.f32.mrb[1].mxu0  ;;  %7448 = vrot.lane.b32.xlu1 %v18619_v20, %s16008_s26  ;;  %v7237_v52 = vmul.f32 %v15641_v0, %v18459_v7 }
 0xe62   :  { %v7134_v21 = vadd.f32 1e-06, %v7133_v27  ;;  %v14437_v31 = vpop.f32.mrb[2].mxu0  ;;  %v18631_v19 = vpack.c.bf16 %v7239_v45, %v7238_v38 }
 0xe63   :  { %15650 = vrsqrt.f32 %v7142_v39  ;;  %v7145_v10 = vadd.f32 1e-06, %v14437_v31  ;;  %v7136_v6 = vpop.f32.mrb[3].mxu0  ;;  %v18633_v58 = vpack.c.bf16 %v7237_v52, %v7236_v24 }
 0xe64   :  { %15652 = vrsqrt.f32 %v7134_v21  ;;  %v7137_v47 = vadd.f32 1e-06, %v7136_v6 }
 0xe65   :  { %v15643_v5 = vpop.eup %15642  ;;  %15654 = vrsqrt.f32 %v7145_v10  ;;  %7498 = vrot.lane.b32.xlu0 %v18633_v58, %s16008_s26  ;;  %7548 = vrot.lane.b32.xlu1 %v18631_v19, %s16008_s26 }
 0xe66   :  { %v15645_v51 = vpop.eup %15644  ;;  %15656 = vrsqrt.f32 %v7137_v47  ;;  %v7242_v7 = vmul.f32 %v15643_v5, %v18469_v44 }
 0xe67   :  { %v15647_v40 = vpop.eup %15646  ;;  %v7240_v56 = vmul.f32 %v15645_v51, %v18472_v36 }
 0xe68   :  { %v15649_v13 = vpop.eup %15648  ;;  %v14440_v23 = vpop.f32.mrb[4].mxu0  ;;  %v7243_v41 = vmul.f32 %v15647_v40, %v18475_v12 }
 0xe69   :  { %v7158_v34 = vadd.f32 1e-06, %v14440_v23  ;;  %v7149_v38 = vpop.f32.mrb[5].mxu0  ;;  %v7241_v8 = vmul.f32 %v15649_v13, %v18485_v2 }
 0xe6a   :  { %v7150_v24 = vadd.f32 1e-06, %v7149_v38  ;;  %v14441_v0 = vpop.f32.mrb[6].mxu0  ;;  %v18643_v53 = vpack.c.bf16 %v7243_v41, %v7242_v7 }
 0xe6b   :  { %15658 = vrsqrt.f32 %v7158_v34  ;;  %v7161_v45 = vadd.f32 1e-06, %v14441_v0  ;;  %v7152_v39 = vpop.f32.mrb[7].mxu0  ;;  %v18645_v27 = vpack.c.bf16 %v7241_v8, %v7240_v56 }
 0xe6c   :  { %15660 = vrsqrt.f32 %v7150_v24  ;;  %v7153_v44 = vadd.f32 1e-06, %v7152_v39  ;;  %7648 = vrot.lane.b32.xlu1 %v18643_v53, %s16008_s26 }
 0xe6d   :  { %v15651_v36 = vpop.eup %15650  ;;  %15662 = vrsqrt.f32 %v7161_v45  ;;  %7598 = vrot.lane.b32.xlu0 %v18645_v27, %s16008_s26 }
 0xe6e   :  { %v15653_v12 = vpop.eup %15652  ;;  %15664 = vrsqrt.f32 %v7153_v44  ;;  %v7246_v2 = vmul.f32 %v15651_v36, %v18495_v61 }
 0xe6f   :  { %v15655_v52 = vpop.eup %15654  ;;  %v7244_v21 = vmul.f32 %v15653_v12, %v18498_v46 }
 0xe70   :  { %v15657_v31 = vpop.eup %15656  ;;  %v14444_v10 = vpop.f32.mrb[8].mxu0  ;;  %v7247_v6 = vmul.f32 %v15655_v52, %v18501_v16 }
 0xe71   :  { %v7174_v47 = vadd.f32 1e-06, %v14444_v10  ;;  %v7165_v5 = vpop.f32.mrb[9].mxu0  ;;  %v7245_v51 = vmul.f32 %v15657_v31, %v18511_v57 }
 0xe72   :  { %v7166_v7 = vadd.f32 1e-06, %v7165_v5  ;;  %v14445_v40 = vpop.f32.mrb[10].mxu0  ;;  %v18655_v56 = vpack.c.bf16 %v7247_v6, %v7246_v2 }
 0xe73   :  { %15666 = vrsqrt.f32 %v7174_v47  ;;  %v7177_v13 = vadd.f32 1e-06, %v14445_v40  ;;  %v7168_v23 = vpop.f32.mrb[11].mxu0  ;;  %v18657_v41 = vpack.c.bf16 %v7245_v51, %v7244_v21 }
 0xe74   :  { %15668 = vrsqrt.f32 %v7166_v7  ;;  %v7169_v61 = vadd.f32 1e-06, %v7168_v23  ;;  %7748 = vrot.lane.b32.xlu1 %v18655_v56, %s16008_s26 }
 0xe75   :  { %v15659_v46 = vpop.eup %15658  ;;  %15670 = vrsqrt.f32 %v7177_v13  ;;  %7698 = vrot.lane.b32.xlu0 %v18657_v41, %s16008_s26 }
 0xe76   :  { %v15661_v16 = vpop.eup %15660  ;;  %15672 = vrsqrt.f32 %v7169_v61  ;;  %v7250_v57 = vmul.f32 %v15659_v46, %v18521_v32 }
 0xe77   :  { %v15663_v34 = vpop.eup %15662  ;;  %v7248_v38 = vmul.f32 %v15661_v16, %v18524_v37 }
 0xe78   :  { %v15665_v8 = vpop.eup %15664  ;;  %v14448_v24 = vpop.f32.mrb[12].mxu0  ;;  %v7251_v0 = vmul.f32 %v15663_v34, %v18527_v25 }
 0xe79   :  { %v7190_v45 = vadd.f32 1e-06, %v14448_v24  ;;  %v7181_v39 = vpop.f32.mrb[13].mxu0  ;;  %v7249_v44 = vmul.f32 %v15665_v8, %v18537_v26 }
 0xe7a   :  { %v7182_v36 = vadd.f32 1e-06, %v7181_v39  ;;  %v14449_v12 = vpop.f32.mrb[14].mxu0  ;;  %v18667_v2 = vpack.c.bf16 %v7251_v0, %v7250_v57 }
 0xe7b   :  { %15674 = vrsqrt.f32 %v7190_v45  ;;  %v7193_v52 = vadd.f32 1e-06, %v14449_v12  ;;  %v7184_v21 = vpop.f32.mrb[15].mxu0  ;;  %v18669_v31 = vpack.c.bf16 %v7249_v44, %v7248_v38  ;;  %v20614_v38 = vmov 0.0  }
 0xe7c   :  { %15676 = vrsqrt.f32 %v7182_v36  ;;  %v7185_v32 = vadd.f32 1e-06, %v7184_v21  ;;  %7848 = vrot.lane.b32.xlu1 %v18667_v2, %s16008_s26 }
 0xe7d   :  { %v15667_v37 = vpop.eup %15666  ;;  %15678 = vrsqrt.f32 %v7193_v52  ;;  %7798 = vrot.lane.b32.xlu0 %v18669_v31, %s16008_s26 }
 0xe7e   :  { %v15669_v25 = vpop.eup %15668  ;;  %15680 = vrsqrt.f32 %v7185_v32  ;;  %v7254_v26 = vmul.f32 %v15667_v37, %v18547_v30 }
 0xe7f   :  { %v15671_v10 = vpop.eup %15670  ;;  %v7252_v6 = vmul.f32 %v15669_v25, %v18550_v63 }
 0xe80   :  { %v15673_v47 = vpop.eup %15672  ;;  %v7255_v5 = vmul.f32 %v15671_v10, %v18553_v49 }
 0xe81   :  { %v7253_v51 = vmul.f32 %v15673_v47, %v18563_v55 }
 0xe82   :  { %v18679_v7 = vpack.c.bf16 %v7255_v5, %v7254_v26 }
 0xe83   :  { %v18681_v40 = vpack.c.bf16 %v7253_v51, %v7252_v6 }
 0xe84   :  { %7948 = vrot.lane.b32.xlu1 %v18679_v7, %s16008_s26 }
 0xe85   :  { %v15675_v13 = vpop.eup %15674  ;;  %7898 = vrot.lane.b32.xlu0 %v18681_v40, %s16008_s26 }
 0xe86   :  { %v15677_v30 = vpop.eup %15676  ;;  %v7258_v23 = vmul.f32 %v15675_v13, %v18573_v22 }
 0xe87   :  { %v15679_v63 = vpop.eup %15678  ;;  %v7256_v61 = vmul.f32 %v15677_v30, %v18576_v1 }
 0xe88   :  { %v15681_v49 = vpop.eup %15680  ;;  %v7259_v55 = vmul.f32 %v15679_v63, %v18579_v11  ;;  %v20613_v11 = vld [vmem:[#allocation9_spill] sm:$0xff] }
 0xe89   :  { %v7257_v46 = vmul.f32 %v15681_v49, %v18589_v54 }
 0xe8a   :  { %v18691_v16 = vpack.c.bf16 %v7259_v55, %v7258_v23 }
 0xe8b   :  { %v18693_v57 = vpack.c.bf16 %v7257_v46, %v7256_v61 }
 0xe8c   :  { %8048 = vrot.lane.b32.xlu1 %v18691_v16, %s16008_s26 }
 0xe8d   :  { %7998 = vrot.lane.b32.xlu0 %v18693_v57, %s16008_s26 }
 0xe90   :  { %8418 = vrot.lane.b32.xlu1 %v18405_v14, %s16009_s27 }
 0xe91   :  { %8370 = vrot.lane.b32.xlu0 %v18415_v42, %s16009_s27 }
 0xe94   :  { %8514 = vrot.lane.b32.xlu1 %v18431_v43, %s16009_s27 }
 0xe95   :  { %8466 = vrot.lane.b32.xlu0 %v18441_v9, %s16009_s27 }
 0xe98   :  { %8610 = vrot.lane.b32.xlu1 %v18457_v48, %s16009_s27 }
 0xe99   :  { %8562 = vrot.lane.b32.xlu0 %v18467_v33, %s16009_s27 }
 0xe9c   :  { %8706 = vrot.lane.b32.xlu1 %v18483_v4, %s16009_s27 }
 0xe9d   :  { %8658 = vrot.lane.b32.xlu0 %v18493_v18, %s16009_s27 }
 0xea0   :  { %8802 = vrot.lane.b32.xlu1 %v18509_v17, %s16009_s27 }
 0xea1   :  { %8754 = vrot.lane.b32.xlu0 %v18519_v50, %s16009_s27 }
 0xea4   :  { %8850 = vrot.lane.b32.xlu1 %v18545_v3, %s16009_s27 }
 0xea5   :  { %8946 = vrot.lane.b32.xlu0 %v18571_v15, %s16009_s27 }
 0xea8   :  { %8898 = vrot.lane.b32.xlu1 %v18535_v28, %s16009_s27 }
 0xea9   :  { %9042 = vrot.lane.b32.xlu0 %v18597_v29, %s16009_s27 }
 0xeac   :  { %8994 = vrot.lane.b32.xlu1 %v18561_v59, %s16009_s27 }
 0xeb0   :  { %9090 = vrot.lane.b32.xlu1 %v20613_v11, %s16009_s27 }
 0xec6   :  { %v7349_v1 = vpop.permute.xlu1 %7348 }
 0xec7   :  { %v7354_v22 = vsel %vm1309_vm4, %v7349_v1, 0  ;;  %v7299_v54 = vpop.permute.xlu0 %7298 }
 0xec8   :  { %v7304_v34 = vsel %vm1309_vm4, %v7299_v54, 0  ;;  %14457 = vmatpush3.bf16.xpose.msra.mxu0 %v7354_v22 }
 0xec9   :  { %14451 = vmatpush3.bf16.xpose.msra.mxu1 %v7304_v34  ;;  %14468 = vmatprep.subr.bf16.mxu0 %v20614_v38 }
 0xeca   :  { %14462 = vmatprep.subr.bf16.mxu1 %v20614_v38 }
 0xecf   :  { %14459 = vmatmul.mubr.msk.bf16.vlgmr.msra.gmra.mrb[16].mxu0 %vm1309_vm4, %v18607_v35  ;;  %v7399_v8 = vpop.permute.xlu1 %7398 }
 0xed0   :  { %v7404_v24 = vsel %vm1309_vm4, %v7399_v8, 0  ;;  %14453 = vmatmul.mubr.msk.bf16.vlgmr.msra.gmra.mrb[240].mxu1 %vm1309_vm4, %v18609_v60  ;;  %14470 = vmatprep.mubr.msk.bf16.mxu0 %vm16007_vm3, %v20614_v38 }
 0xed1   :  { %14463 = vmatpush3.bf16.xpose.msra.mxu1 %v7404_v24  ;;  %14464 = vmatprep.mubr.msk.bf16.mxu1 %vm16007_vm3, %v20614_v38 }
 0xed2   :  { %14474 = vmatprep.subr.bf16.mxu1 %v20614_v38 }
 0xed3   :  { %v7449_v0 = vpop.permute.xlu1 %7448 }
 0xed4   :  { %v7454_v45 = vsel %vm1309_vm4, %v7449_v0, 0 }
 0xed5   :  { %14469 = vmatpush3.bf16.xpose.msra.mxu0 %v7454_v45 }
 0xed6   :  { %14480 = vmatprep.subr.bf16.mxu0 %v20614_v38 }
 0xed7   :  { %v7499_v39 = vpop.permute.xlu0 %7498  ;;  %v7549_v36 = vpop.permute.xlu1 %7548 }
 0xed8   :  { %v7504_v44 = vsel %vm1309_vm4, %v7499_v39, 0  ;;  %14465 = vmatmul.mubr.msk.bf16.vlgmr.msra.gmra.mrb[244].mxu1 %vm1309_vm4, %v18621_v62  ;;  %v7554_v12 = vsel %vm1309_vm4, %v7549_v36, 0 }
 0xed9   :  { %14475 = vmatpush3.bf16.xpose.msra.mxu1 %v7504_v44  ;;  %14476 = vmatprep.mubr.msk.bf16.mxu1 %vm16007_vm3, %v20614_v38 }
 0xeda   :  { %14486 = vmatprep.subr.bf16.mxu1 %v20614_v38 }
 0xedc   :  { %14471 = vmatmul.mubr.msk.bf16.vlgmr.msra.gmra.mrb[20].mxu0 %vm1309_vm4, %v18619_v20 }
 0xedd   :  { %14481 = vmatpush3.bf16.xpose.msra.mxu0 %v7554_v12  ;;  %14482 = vmatprep.mubr.msk.bf16.mxu0 %vm16007_vm3, %v20614_v38 }
 0xede   :  { %14492 = vmatprep.subr.bf16.mxu0 %v20614_v38  ;;  %v7649_v32 = vpop.permute.xlu1 %7648 }
 0xedf   :  { %v7599_v52 = vpop.permute.xlu0 %7598  ;;  %v7654_v37 = vsel %vm1309_vm4, %v7649_v32, 0 }
 0xee0   :  { %v7604_v21 = vsel %vm1309_vm4, %v7599_v52, 0  ;;  %14477 = vmatmul.mubr.msk.bf16.vlgmr.msra.gmra.mrb[248].mxu1 %vm1309_vm4, %v18633_v58 }
 0xee1   :  { %14487 = vmatpush3.bf16.xpose.msra.mxu1 %v7604_v21  ;;  %14488 = vmatprep.mubr.msk.bf16.mxu1 %vm16007_vm3, %v20614_v38 }
 0xee2   :  { %14498 = vmatprep.subr.bf16.mxu1 %v20614_v38 }
 0xee4   :  { %14483 = vmatmul.mubr.msk.bf16.vlgmr.msra.gmra.mrb[24].mxu0 %vm1309_vm4, %v18631_v19 }
 0xee5   :  { %14493 = vmatpush3.bf16.xpose.msra.mxu0 %v7654_v37  ;;  %14494 = vmatprep.mubr.msk.bf16.mxu0 %vm16007_vm3, %v20614_v38 }
 0xee6   :  { %14504 = vmatprep.subr.bf16.mxu0 %v20614_v38  ;;  %v7749_v10 = vpop.permute.xlu1 %7748 }
 0xee7   :  { %v7699_v25 = vpop.permute.xlu0 %7698  ;;  %v7754_v6 = vsel %vm1309_vm4, %v7749_v10, 0 }
 0xee8   :  { %v7704_v26 = vsel %vm1309_vm4, %v7699_v25, 0  ;;  %14489 = vmatmul.mubr.msk.bf16.vlgmr.msra.gmra.mrb[252].mxu1 %vm1309_vm4, %v18645_v27 }
 0xee9   :  { %14499 = vmatpush3.bf16.xpose.msra.mxu1 %v7704_v26  ;;  %14500 = vmatprep.mubr.msk.bf16.mxu1 %vm16007_vm3, %v20614_v38 }
 0xeea   :  { %14510 = vmatprep.subr.bf16.mxu1 %v20614_v38 }
 0xeec   :  { %14495 = vmatmul.mubr.msk.bf16.vlgmr.msra.gmra.mrb[28].mxu0 %vm1309_vm4, %v18643_v53 }
 0xeed   :  { %14505 = vmatpush3.bf16.xpose.msra.mxu0 %v7754_v6  ;;  %14506 = vmatprep.mubr.msk.bf16.mxu0 %vm16007_vm3, %v20614_v38 }
 0xeee   :  { %14516 = vmatprep.subr.bf16.mxu0 %v20614_v38  ;;  %v7849_v51 = vpop.permute.xlu1 %7848 }
 0xeef   :  { %v7799_v47 = vpop.permute.xlu0 %7798  ;;  %v7854_v13 = vsel %vm1309_vm4, %v7849_v51, 0 }
 0xef0   :  { %v7804_v5 = vsel %vm1309_vm4, %v7799_v47, 0  ;;  %14501 = vmatmul.mubr.msk.bf16.vlgmr.msra.gmra.mrb[0].mxu1 %vm1309_vm4, %v18657_v41 }
 0xef1   :  { %14511 = vmatpush3.bf16.xpose.msra.mxu1 %v7804_v5  ;;  %14512 = vmatprep.mubr.msk.bf16.mxu1 %vm16007_vm3, %v20614_v38 }
 0xef2   :  { %14522 = vmatprep.subr.bf16.mxu1 %v20614_v38 }
 0xef4   :  { %14507 = vmatmul.mubr.msk.bf16.vlgmr.msra.gmra.mrb[32].mxu0 %vm1309_vm4, %v18655_v56 }
 0xef5   :  { %14517 = vmatpush3.bf16.xpose.msra.mxu0 %v7854_v13  ;;  %14518 = vmatprep.mubr.msk.bf16.mxu0 %vm16007_vm3, %v20614_v38 }
 0xef6   :  { %14528 = vmatprep.subr.bf16.mxu0 %v20614_v38  ;;  %v7949_v63 = vpop.permute.xlu1 %7948 }
 0xef7   :  { %v7899_v30 = vpop.permute.xlu0 %7898  ;;  %v7954_v61 = vsel %vm1309_vm4, %v7949_v63, 0 }
 0xef8   :  { %v7904_v23 = vsel %vm1309_vm4, %v7899_v30, 0  ;;  %14513 = vmatmul.mubr.msk.bf16.vlgmr.msra.gmra.mrb[4].mxu1 %vm1309_vm4, %v18669_v31 }
 0xef9   :  { %14523 = vmatpush3.bf16.xpose.msra.mxu1 %v7904_v23  ;;  %14524 = vmatprep.mubr.msk.bf16.mxu1 %vm16007_vm3, %v20614_v38 }
 0xefa   :  { %14534 = vmatprep.subr.bf16.mxu1 %v20614_v38 }
 0xefc   :  { %14519 = vmatmul.mubr.msk.bf16.vlgmr.msra.gmra.mrb[36].mxu0 %vm1309_vm4, %v18667_v2 }
 0xefd   :  { %14529 = vmatpush3.bf16.xpose.msra.mxu0 %v7954_v61  ;;  %14530 = vmatprep.mubr.msk.bf16.mxu0 %vm16007_vm3, %v20614_v38 }
 0xefe   :  { %14540 = vmatprep.subr.bf16.mxu0 %v20614_v38  ;;  %v8049_v46 = vpop.permute.xlu1 %8048 }
 0xeff   :  { %v7999_v49 = vpop.permute.xlu0 %7998  ;;  %v8054_v1 = vsel %vm1309_vm4, %v8049_v46, 0 }
 0xf00   :  { %v8004_v55 = vsel %vm1309_vm4, %v7999_v49, 0  ;;  %14525 = vmatmul.mubr.msk.bf16.vlgmr.msra.gmra.mrb[8].mxu1 %vm1309_vm4, %v18681_v40 }
 0xf01   :  { %14535 = vmatpush3.bf16.xpose.msra.mxu1 %v8004_v55  ;;  %14536 = vmatprep.mubr.msk.bf16.mxu1 %vm16007_vm3, %v20614_v38 }
 0xf02   :  { %14546 = vmatprep.subr.bf16.mxu1 %v20614_v38  ;;  %v8419_v54 = vpop.permute.xlu1 %8418 }
 0xf03   :  { %v8371_v22 = vpop.permute.xlu0 %8370 }
 0xf04   :  { %14531 = vmatmul.mubr.msk.bf16.vlgmr.msra.gmra.mrb[40].mxu0 %vm1309_vm4, %v18679_v7 }
 0xf05   :  { %14541 = vmatpush3.bf16.xpose.msra.mxu0 %v8054_v1  ;;  %14542 = vmatprep.mubr.msk.bf16.mxu0 %vm16007_vm3, %v20614_v38 }
 0xf06   :  { %14552 = vmatprep.subr.bf16.mxu0 %v20614_v38 }
 0xf08   :  { %14537 = vmatmul.mubr.msk.bf16.vlgmr.msra.gmra.mrb[12].mxu1 %vm1309_vm4, %v18693_v57 }
 0xf09   :  { %14547 = vmatpush3.bf16.msra.mxu1 %v8371_v22  ;;  %14548 = vmatprep.mubr.msk.bf16.mxu1 %vm16007_vm3, %v20614_v38 }
 0xf0a   :  { %14558 = vmatprep.subr.bf16.mxu1 %v20614_v38 }
 0xf0c   :  { %14543 = vmatmul.mubr.msk.bf16.vlgmr.msra.gmra.mrb[44].mxu0 %vm1309_vm4, %v18691_v16 }
 0xf0d   :  { %14553 = vmatpush3.bf16.msra.mxu0 %v8419_v54  ;;  %14554 = vmatprep.mubr.msk.bf16.mxu0 %vm16007_vm3, %v20614_v38 }
 0xf0e   :  { %14564 = vmatprep.subr.bf16.mxu0 %v20614_v38 }
 0xfa2   :  { %v7390_v34 = vpop.f32.mrb[16].mxu0 }
 0xfa3   :  { %v8099_v8 = vmul.f32 0.25, %v7390_v34  ;;  %v7340_v24 = vpop.f32.mrb[240].mxu1  ;;  %v14460_v0 = vpop.f32.mrb[17].mxu0 }
 0xfa4   :  { %v8097_v45 = vmul.f32 0.25, %v7340_v24  ;;  %v14454_v39 = vpop.f32.mrb[241].mxu1  ;;  %v7393_v44 = vpop.f32.mrb[18].mxu0 }
 0xfa5   :  { %v8133_v36 = vmul.f32 1.442695, %v8099_v8  ;;  %v8100_v12 = vmul.f32 0.25, %v7393_v44  ;;  %v7343_v52 = vpop.f32.mrb[242].mxu1  ;;  %v14461_v21 = vpop.f32.mrb[19].mxu0 }
 0xfa6   :  { %v8129_v32 = vmul.f32 1.442695, %v8097_v45  ;;  %v8098_v37 = vmul.f32 0.25, %v7343_v52  ;;  %v14455_v25 = vpop.f32.mrb[243].mxu1 }
 0xfa7   :  { %15682 = vpow2.f32 %v8133_v36  ;;  %v8135_v10 = vmul.f32 1.442695, %v8100_v12 }
 0xfa8   :  { %v8131_v26 = vmul.f32 1.442695, %v8098_v37  ;;  %15684 = vpow2.f32 %v8129_v32 }
 0xfaa   :  { %15686 = vpow2.f32 %v8131_v26 }
 0xfab   :  { %v7440_v6 = vpop.f32.mrb[244].mxu1  ;;  %15688 = vpow2.f32 %v8135_v10 }
 0xfac   :  { %v14466_v47 = vpop.f32.mrb[245].mxu1  ;;  %v8101_v5 = vmul.f32 0.25, %v7440_v6 }
 0xfad   :  { %v7443_v51 = vpop.f32.mrb[246].mxu1 }
 0xfae   :  { %v14467_v13 = vpop.f32.mrb[247].mxu1  ;;  %v8102_v23 = vmul.f32 0.25, %v7443_v51  ;;  %v8137_v55 = vmul.f32 1.442695, %v8101_v5 }
 0xfaf   :  { %v7490_v30 = vpop.f32.mrb[20].mxu0 }
 0xfb0   :  { %v8103_v63 = vmul.f32 0.25, %v7490_v30  ;;  %v14472_v61 = vpop.f32.mrb[21].mxu0  ;;  %v8139_v45 = vmul.f32 1.442695, %v8102_v23 }
 0xfb1   :  { %v18829_v49 = vpop.eup %15682  ;;  %v7493_v46 = vpop.f32.mrb[22].mxu0 }
 0xfb2   :  { %v8141_v1 = vmul.f32 1.442695, %v8103_v63  ;;  %v8104_v22 = vmul.f32 0.25, %v7493_v46  ;;  %v14473_v54 = vpop.f32.mrb[23].mxu0  ;;  %v8199_v34 = vsel %vm1309_vm4, %v18829_v49, 0.0  ;;  %v18833_v8 = vpop.eup %15684 }
 0xfb3   :  { %8200 = vadd.xlane.f32.xlu0 %v8199_v34  ;;  %v7540_v24 = vpop.f32.mrb[248].mxu1  ;;  %v8193_v32 = vsel %vm1309_vm4, %v18833_v8, 0.0 }
 0xfb4   :  { %v18835_v0 = vpop.eup %15686  ;;  %15690 = vpow2.f32 %v8141_v1  ;;  %v8143_v39 = vmul.f32 1.442695, %v8104_v22  ;;  %v14478_v44 = vpop.f32.mrb[249].mxu1  ;;  %v8105_v36 = vmul.f32 0.25, %v7540_v24 }
 0xfb5   :  { %15692 = vpow2.f32 %v8137_v55  ;;  %v7543_v12 = vpop.f32.mrb[250].mxu1  ;;  %v8196_v52 = vsel %vm1309_vm4, %v18835_v0, 0.0  ;;  %v18841_v37 = vpop.eup %15688 }
 0xfb6   :  { %15694 = vpow2.f32 %v8143_v39  ;;  %8197 = vadd.xlane.f32.xlu1 %v8196_v52  ;;  %v14479_v21 = vpop.f32.mrb[251].mxu1  ;;  %v8106_v26 = vmul.f32 0.25, %v7543_v12  ;;  %v8145_v47 = vmul.f32 1.442695, %v8105_v36  ;;  %v8202_v23 = vsel %vm1309_vm4, %v18841_v37, 0.0 }
 0xfb7   :  { %8194 = vadd.xlane.f32.xlu0 %v8193_v32  ;;  %v7590_v25 = vpop.f32.mrb[24].mxu0  ;;  %15696 = vpow2.f32 %v8139_v45 }
 0xfb8   :  { %v8107_v10 = vmul.f32 0.25, %v7590_v25  ;;  %v14484_v6 = vpop.f32.mrb[25].mxu0  ;;  %v8147_v61 = vmul.f32 1.442695, %v8106_v26 }
 0xfb9   :  { %v7593_v5 = vpop.f32.mrb[26].mxu0 }
 0xfba   :  { %v8149_v51 = vmul.f32 1.442695, %v8107_v10  ;;  %v8108_v13 = vmul.f32 0.25, %v7593_v5  ;;  %v14485_v30 = vpop.f32.mrb[27].mxu0 }
 0xfbb   :  { %8203 = vadd.xlane.f32.xlu0 %v8202_v23  ;;  %v7640_v63 = vpop.f32.mrb[252].mxu1 }
 0xfbc   :  { %15698 = vpow2.f32 %v8149_v51  ;;  %v8151_v55 = vmul.f32 1.442695, %v8108_v13  ;;  %v14490_v46 = vpop.f32.mrb[253].mxu1  ;;  %v8109_v1 = vmul.f32 0.25, %v7640_v63 }
 0xfbd   :  { %15700 = vpow2.f32 %v8145_v47  ;;  %v7643_v22 = vpop.f32.mrb[254].mxu1 }
 0xfbe   :  { %v18845_v54 = vpop.eup %15690  ;;  %15702 = vpow2.f32 %v8151_v55  ;;  %v14491_v34 = vpop.f32.mrb[255].mxu1  ;;  %v8110_v36 = vmul.f32 0.25, %v7643_v22  ;;  %v8153_v21 = vmul.f32 1.442695, %v8109_v1 }
 0xfbf   :  { %v18847_v24 = vpop.eup %15692  ;;  %v7690_v45 = vpop.f32.mrb[28].mxu0  ;;  %v8211_v39 = vsel %vm1309_vm4, %v18845_v54, 0.0  ;;  %15704 = vpow2.f32 %v8147_v61 }
 0xfc0   :  { %v18851_v44 = vpop.eup %15694  ;;  %v8111_v12 = vmul.f32 0.25, %v7690_v45  ;;  %8212 = vadd.xlane.f32.xlu0 %v8211_v39  ;;  %v14496_v52 = vpop.f32.mrb[29].mxu0  ;;  %v8205_v51 = vsel %vm1309_vm4, %v18847_v24, 0.0  ;;  %v8155_v13 = vmul.f32 1.442695, %v8110_v36 }
 0xfc1   :  { %v7693_v32 = vpop.f32.mrb[30].mxu0  ;;  %v8214_v25 = vsel %vm1309_vm4, %v18851_v44, 0.0  ;;  %v18855_v26 = vpop.eup %15696 }
 0xfc2   :  { %v8157_v10 = vmul.f32 1.442695, %v8111_v12  ;;  %v8112_v6 = vmul.f32 0.25, %v7693_v32  ;;  %8215 = vadd.xlane.f32.xlu1 %v8214_v25  ;;  %v14497_v47 = vpop.f32.mrb[31].mxu0  ;;  %v8208_v55 = vsel %vm1309_vm4, %v18855_v26, 0.0 }
 0xfc3   :  { %v7740_v5 = vpop.f32.mrb[0].mxu1 }
 0xfc4   :  { %15706 = vpow2.f32 %v8157_v10  ;;  %v8159_v30 = vmul.f32 1.442695, %v8112_v6  ;;  %v8113_v23 = vmul.f32 0.25, %v7740_v5  ;;  %v14502_v63 = vpop.f32.mrb[1].mxu1  ;;  %8206 = vadd.xlane.f32.xlu0 %v8205_v51 }
 0xfc5   :  { %15708 = vpow2.f32 %v8153_v21  ;;  %v7743_v61 = vpop.f32.mrb[2].mxu1 }
 0xfc6   :  { %v18861_v46 = vpop.eup %15698  ;;  %15710 = vpow2.f32 %v8159_v30  ;;  %v8114_v1 = vmul.f32 0.25, %v7743_v61  ;;  %v14503_v22 = vpop.f32.mrb[3].mxu1  ;;  %8209 = vadd.xlane.f32.xlu1 %v8208_v55  ;;  %v8161_v45 = vmul.f32 1.442695, %v8113_v23 }
 0xfc7   :  { %v18863_v34 = vpop.eup %15700  ;;  %v7790_v39 = vpop.f32.mrb[32].mxu0  ;;  %v8223_v36 = vsel %vm1309_vm4, %v18861_v46, 0.0  ;;  %15712 = vpow2.f32 %v8155_v13 }
 0xfc8   :  { %v18867_v12 = vpop.eup %15702  ;;  %v8115_v52 = vmul.f32 0.25, %v7790_v39  ;;  %8224 = vadd.xlane.f32.xlu0 %v8223_v36  ;;  %v14508_v21 = vpop.f32.mrb[33].mxu0  ;;  %v8163_v6 = vmul.f32 1.442695, %v8114_v1  ;;  %15714 = vpow2.f32 %v8161_v45  ;;  %v8217_v23 = vsel %vm1309_vm4, %v18863_v34, 0.0 }
 0xfc9   :  { %v7793_v32 = vpop.f32.mrb[34].mxu0  ;;  %v8226_v25 = vsel %vm1309_vm4, %v18867_v12, 0.0  ;;  %v18871_v10 = vpop.eup %15704 }
 0xfca   :  { %v8165_v47 = vmul.f32 1.442695, %v8115_v52  ;;  %v8116_v5 = vmul.f32 0.25, %v7793_v32  ;;  %8227 = vadd.xlane.f32.xlu1 %v8226_v25  ;;  %v14509_v51 = vpop.f32.mrb[35].mxu0  ;;  %v8220_v22 = vsel %vm1309_vm4, %v18871_v10, 0.0 }
 0xfcb   :  { %v7840_v30 = vpop.f32.mrb[4].mxu1 }
 0xfcc   :  { %15716 = vpow2.f32 %v8165_v47  ;;  %v8167_v13 = vmul.f32 1.442695, %v8116_v5  ;;  %v8117_v63 = vmul.f32 0.25, %v7840_v30  ;;  %v14514_v61 = vpop.f32.mrb[5].mxu1  ;;  %8218 = vadd.xlane.f32.xlu0 %v8217_v23 }
 0xfcd   :  { %v7843_v55 = vpop.f32.mrb[6].mxu1  ;;  %15718 = vpow2.f32 %v8163_v6 }
 0xfce   :  { %v18877_v39 = vpop.eup %15706  ;;  %v8118_v1 = vmul.f32 0.25, %v7843_v55  ;;  %v14515_v36 = vpop.f32.mrb[7].mxu1  ;;  %8221 = vadd.xlane.f32.xlu1 %v8220_v22  ;;  %v8169_v52 = vmul.f32 1.442695, %v8117_v63  ;;  %15720 = vpow2.f32 %v8167_v13 }
 0xfcf   :  { %v18879_v45 = vpop.eup %15708  ;;  %v7890_v21 = vpop.f32.mrb[36].mxu0  ;;  %v8235_v32 = vsel %vm1309_vm4, %v18877_v39, 0.0 }
 0xfd0   :  { %v18883_v25 = vpop.eup %15710  ;;  %v8119_v47 = vmul.f32 0.25, %v7890_v21  ;;  %8236 = vadd.xlane.f32.xlu0 %v8235_v32  ;;  %v14520_v5 = vpop.f32.mrb[37].mxu0  ;;  %v8171_v23 = vmul.f32 1.442695, %v8118_v1  ;;  %15722 = vpow2.f32 %v8169_v52  ;;  %v8229_v36 = vsel %vm1309_vm4, %v18879_v45, 0.0 }
 0xfd1   :  { %v7893_v51 = vpop.f32.mrb[38].mxu0  ;;  %v8238_v6 = vsel %vm1309_vm4, %v18883_v25, 0.0  ;;  %v18887_v30 = vpop.eup %15712 }
 0xfd2   :  { %20615 = vst [vmem:[#allocation11_spill] sm:$0xff] %v18887_v30  ;;  %v8173_v61 = vmul.f32 1.442695, %v8119_v47  ;;  %v8120_v55 = vmul.f32 0.25, %v7893_v51  ;;  %8239 = vadd.xlane.f32.xlu1 %v8238_v6  ;;  %v14521_v63 = vpop.f32.mrb[39].mxu0  ;;  %v18891_v5 = vpop.eup %15714  ;;  %v8232_v1 = vsel %vm1309_vm4, %v18887_v30, 0.0 }
 0xfd3   :  { %v7940_v22 = vpop.f32.mrb[8].mxu1  ;;  %20616 = vst [vmem:[#allocation12_spill] sm:$0xff] %v18891_v5  ;;  %v8241_v11 = vsel %vm1309_vm4, %v18891_v5, 0.0 }
 0xfd4   :  { %15724 = vpow2.f32 %v8173_v61  ;;  %v8175_v13 = vmul.f32 1.442695, %v8120_v55  ;;  %v8121_v21 = vmul.f32 0.25, %v7940_v22  ;;  %v14526_v32 = vpop.f32.mrb[9].mxu1  ;;  %8230 = vadd.xlane.f32.xlu0 %v8229_v36 }
 0xfd5   :  { %v7943_v29 = vpop.f32.mrb[10].mxu1  ;;  %15726 = vpow2.f32 %v8171_v23 }
 0xfd6   :  { %v18895_v47 = vpop.eup %15716  ;;  %v8122_v51 = vmul.f32 0.25, %v7943_v29  ;;  %v14527_v52 = vpop.f32.mrb[11].mxu1  ;;  %8233 = vadd.xlane.f32.xlu1 %v8232_v1  ;;  %v8177_v6 = vmul.f32 1.442695, %v8121_v21  ;;  %15728 = vpow2.f32 %v8175_v13 }
 0xfd7   :  { %20617 = vst [vmem:[#allocation13_spill] sm:$0xff] %v18895_v47  ;;  %v7990_v63 = vpop.f32.mrb[40].mxu0  ;;  %v8247_v61 = vsel %vm1309_vm4, %v18895_v47, 0.0  ;;  %v18899_v55 = vpop.eup %15718 }
 0xfd8   :  { %20618 = vst [vmem:[#allocation10_spill] sm:$0xff] %v18899_v55  ;;  %v8123_v22 = vmul.f32 0.25, %v7990_v63  ;;  %8248 = vadd.xlane.f32.xlu0 %v8247_v61  ;;  %v14532_v36 = vpop.f32.mrb[41].mxu0  ;;  %v18903_v30 = vpop.eup %15720  ;;  %v8179_v29 = vmul.f32 1.442695, %v8122_v51  ;;  %15730 = vpow2.f32 %v8177_v6  ;;  %v8244_v47 = vsel %vm1309_vm4, %v18899_v55, 0.0 }
 0xfd9   :  { %v7993_v32 = vpop.f32.mrb[42].mxu0  ;;  %20619 = vst [vmem:[#allocation15_spill] sm:$0xff] %v18903_v30  ;;  %v8250_v51 = vsel %vm1309_vm4, %v18903_v30, 0.0 }
 0xfda   :  { %v8181_v23 = vmul.f32 1.442695, %v8123_v22  ;;  %v8124_v1 = vmul.f32 0.25, %v7993_v32  ;;  %8242 = vadd.xlane.f32.xlu1 %v8241_v11  ;;  %v14533_v21 = vpop.f32.mrb[43].mxu0  ;;  %v18907_v36 = vpop.eup %15722 }
 0xfdb   :  { %v8040_v52 = vpop.f32.mrb[12].mxu1  ;;  %v8253_v30 = vsel %vm1309_vm4, %v18907_v36, 0.0 }
 0xfdc   :  { %15732 = vpow2.f32 %v8181_v23  ;;  %v8183_v13 = vmul.f32 1.442695, %v8124_v1  ;;  %v8125_v63 = vmul.f32 0.25, %v8040_v52  ;;  %v14538_v61 = vpop.f32.mrb[13].mxu1  ;;  %8245 = vadd.xlane.f32.xlu0 %v8244_v47 }
 0xfdd   :  { %v8043_v5 = vpop.f32.mrb[14].mxu1  ;;  %15734 = vpow2.f32 %v8179_v29 }
 0xfde   :  { %v18911_v22 = vpop.eup %15724  ;;  %v8126_v11 = vmul.f32 0.25, %v8043_v5  ;;  %v14539_v6 = vpop.f32.mrb[15].mxu1  ;;  %8251 = vadd.xlane.f32.xlu1 %v8250_v51  ;;  %v8185_v32 = vmul.f32 1.442695, %v8125_v63  ;;  %15736 = vpow2.f32 %v8183_v13 }
 0xfdf   :  { %v8090_v21 = vpop.f32.mrb[44].mxu0  ;;  %v8259_v23 = vsel %vm1309_vm4, %v18911_v22, 0.0  ;;  %v18915_v1 = vpop.eup %15726 }
 0xfe0   :  { %v8127_v47 = vmul.f32 0.25, %v8090_v21  ;;  %8260 = vadd.xlane.f32.xlu0 %v8259_v23  ;;  %v14544_v52 = vpop.f32.mrb[45].mxu0  ;;  %v18919_v55 = vpop.eup %15728  ;;  %v8187_v5 = vmul.f32 1.442695, %v8126_v11  ;;  %15738 = vpow2.f32 %v8185_v32  ;;  %v8256_v6 = vsel %vm1309_vm4, %v18915_v1, 0.0 }
 0xfe1   :  { %v8093_v61 = vpop.f32.mrb[46].mxu0  ;;  %v8262_v23 = vsel %vm1309_vm4, %v18919_v55, 0.0 }
 0xfe2   :  { %v8189_v29 = vmul.f32 1.442695, %v8127_v47  ;;  %v8128_v51 = vmul.f32 0.25, %v8093_v61  ;;  %8254 = vadd.xlane.f32.xlu1 %v8253_v30  ;;  %v14545_v63 = vpop.f32.mrb[47].mxu0  ;;  %v18923_v21 = vpop.eup %15730 }
 0xfe3   :  { %v8265_v32 = vsel %vm1309_vm4, %v18923_v21, 0.0 }
 0xfe4   :  { %15740 = vpow2.f32 %v8189_v29  ;;  %v8191_v13 = vmul.f32 1.442695, %v8128_v51  ;;  %8257 = vadd.xlane.f32.xlu0 %v8256_v6 }
 0xfe5   :  { %15742 = vpow2.f32 %v8187_v5 }
 0xfe6   :  { %v18927_v52 = vpop.eup %15732  ;;  %8263 = vadd.xlane.f32.xlu1 %v8262_v23  ;;  %15744 = vpow2.f32 %v8191_v13 }
 0xfe7   :  { %v8271_v30 = vsel %vm1309_vm4, %v18927_v52, 0.0  ;;  %v18931_v11 = vpop.eup %15734 }
 0xfe8   :  { %8272 = vadd.xlane.f32.xlu0 %v8271_v30  ;;  %v18935_v47 = vpop.eup %15736  ;;  %v8268_v61 = vsel %vm1309_vm4, %v18931_v11, 0.0 }
 0xfe9   :  { %v8274_v5 = vsel %vm1309_vm4, %v18935_v47, 0.0 }
 0xfea   :  { %8266 = vadd.xlane.f32.xlu1 %v8265_v32  ;;  %v18939_v29 = vpop.eup %15738 }
 0xfeb   :  { %v8277_v13 = vsel %vm1309_vm4, %v18939_v29, 0.0 }
 0xfec   :  { %8269 = vadd.xlane.f32.xlu0 %v8268_v61  ;;  %v18971_v61 = vpop.permute.xlu1 %8514 }
 0xfee   :  { %v18943_v51 = vpop.eup %15740  ;;  %8275 = vadd.xlane.f32.xlu1 %v8274_v5 }
 0xfef   :  { %v8283_v63 = vsel %vm1309_vm4, %v18943_v51, 0.0  ;;  %v18947_v6 = vpop.eup %15742 }
 0xff0   :  { %8284 = vadd.xlane.f32.xlu0 %v8283_v63  ;;  %v18951_v23 = vpop.eup %15744  ;;  %v8280_v30 = vsel %vm1309_vm4, %v18947_v6, 0.0 }
 0xff1   :  { %v8286_v32 = vsel %vm1309_vm4, %v18951_v23, 0.0 }
 0xff2   :  { %8278 = vadd.xlane.f32.xlu1 %v8277_v13 }
 0xff4   :  { %8281 = vadd.xlane.f32.xlu0 %v8280_v30 }
 0xff6   :  { %8287 = vadd.xlane.f32.xlu1 %v8286_v32 }
0x1007   :  { %9206 = vrot.lane.b32.xlu1 %v18607_v35, %s16010_s28 }
0x100a   :  { %9155 = vrot.lane.b32.xlu0 %v18609_v60, %s16010_s28 }
0x100b   :  { %9257 = vrot.lane.b32.xlu1 %v18621_v62, %s16010_s28 }
0x100e   :  { %9153 = vrot.lane.b32.xlu0 %v18609_v60, %s16011_s29  ;;  %v18979_v60 = vpop.permute.xlu1 %8610 }
0x100f   :  { %9308 = vrot.lane.b32.xlu1 %v18619_v20, %s16010_s28 }
0x1012   :  { %9204 = vrot.lane.b32.xlu0 %v18607_v35, %s16011_s29  ;;  %v18983_v35 = vpop.permute.xlu0 %8466 }
0x1013   :  { %9359 = vrot.lane.b32.xlu1 %v18633_v58, %s16010_s28 }
0x1016   :  { %9255 = vrot.lane.b32.xlu0 %v18621_v62, %s16011_s29  ;;  %v18989_v62 = vpop.permute.xlu1 %8706 }
0x1017   :  { %9410 = vrot.lane.b32.xlu1 %v18631_v19, %s16010_s28 }
0x101a   :  { %9306 = vrot.lane.b32.xlu0 %v18619_v20, %s16011_s29  ;;  %v18995_v20 = vpop.permute.xlu0 %8562  ;;  %v18999_v5 = vpop.permute.xlu1 %8802 }
0x101b   :  { %9461 = vrot.lane.b32.xlu1 %v18645_v27, %s16010_s28 }
0x101e   :  { %9357 = vrot.lane.b32.xlu0 %v18633_v58, %s16011_s29  ;;  %v19003_v58 = vpop.permute.xlu0 %8658 }
0x101f   :  { %9512 = vrot.lane.b32.xlu1 %v18643_v53, %s16010_s28 }
0x1022   :  { %9408 = vrot.lane.b32.xlu0 %v18631_v19, %s16011_s29  ;;  %v19009_v19 = vpop.permute.xlu1 %8850 }
0x1023   :  { %9563 = vrot.lane.b32.xlu1 %v18657_v41, %s16010_s28 }
0x1026   :  { %9459 = vrot.lane.b32.xlu0 %v18645_v27, %s16011_s29  ;;  %v19015_v27 = vpop.permute.xlu0 %8754  ;;  %v19019_v63 = vpop.permute.xlu1 %8898 }
0x1027   :  { %9614 = vrot.lane.b32.xlu1 %v18655_v56, %s16010_s28 }
0x102a   :  { %9510 = vrot.lane.b32.xlu0 %v18643_v53, %s16011_s29  ;;  %v19023_v53 = vpop.permute.xlu0 %8946 }
0x102b   :  { %9665 = vrot.lane.b32.xlu1 %v18669_v31, %s16010_s28 }
0x102e   :  { %9561 = vrot.lane.b32.xlu0 %v18657_v41, %s16011_s29  ;;  %v19029_v41 = vpop.permute.xlu1 %8994 }
0x102f   :  { %9716 = vrot.lane.b32.xlu1 %v18667_v2, %s16010_s28 }
0x1032   :  { %9612 = vrot.lane.b32.xlu0 %v18655_v56, %s16011_s29  ;;  %v19035_v56 = vpop.permute.xlu0 %9042  ;;  %v19039_v13 = vpop.permute.xlu1 %9090 }
0x1033   :  { %9767 = vrot.lane.b32.xlu1 %v18681_v40, %s16010_s28 }
0x1036   :  { %9663 = vrot.lane.b32.xlu0 %v18669_v31, %s16011_s29 }
0x1037   :  { %9818 = vrot.lane.b32.xlu1 %v18679_v7, %s16010_s28 }
0x103a   :  { %9714 = vrot.lane.b32.xlu0 %v18667_v2, %s16011_s29 }
0x103b   :  { %9869 = vrot.lane.b32.xlu1 %v18693_v57, %s16010_s28 }
0x103e   :  { %9765 = vrot.lane.b32.xlu0 %v18681_v40, %s16011_s29 }
0x103f   :  { %9920 = vrot.lane.b32.xlu1 %v18691_v16, %s16010_s28 }
0x1040   :  { %v8201_v31 = vpop.xlane.xlu0 %8200 }
0x1042   :  { %9816 = vrot.lane.b32.xlu0 %v18679_v7, %s16011_s29 }
0x1043   :  { %9918 = vrot.lane.b32.xlu1 %v18691_v16, %s16011_s29  ;;  %v8198_v2 = vpop.xlane.xlu1 %8197 }
0x1044   :  { %15746 = vrcp.f32 %v8198_v2  ;;  %v8195_v30 = vpop.xlane.xlu0 %8194 }
0x1045   :  { %15748 = vrcp.f32 %v8195_v30 }
0x1046   :  { %9867 = vrot.lane.b32.xlu0 %v18693_v57, %s16011_s29  ;;  %15750 = vrcp.f32 %v8201_v31 }
0x1047   :  { %10288 = vrot.lane.b32.xlu1 %v18405_v14, %s16012_s30 }
0x1048   :  { %v8204_v40 = vpop.xlane.xlu0 %8203 }
0x1049   :  { %15752 = vrcp.f32 %v8204_v40 }
0x104a   :  { %10241 = vrot.lane.b32.xlu0 %v18415_v42, %s16012_s30 }
0x104b   :  { %10382 = vrot.lane.b32.xlu1 %v18431_v43, %s16012_s30 }
0x104d   :  { %v8213_v7 = vpop.xlane.xlu0 %8212 }
0x104e   :  { %v15747_v16 = vpop.eup %15746  ;;  %15754 = vrcp.f32 %v8213_v7  ;;  %10335 = vrot.lane.b32.xlu0 %v18441_v9, %s16012_s30 }
0x104f   :  { %v15749_v32 = vpop.eup %15748  ;;  %v8322_v57 = vmul.f32 %v15747_v16, %v18835_v0  ;;  %10476 = vrot.lane.b32.xlu1 %v18457_v48, %s16012_s30  ;;  %v8216_v14 = vpop.xlane.xlu1 %8215 }
0x1050   :  { %v8321_v31 = vmul.f32 %v15749_v32, %v18833_v8  ;;  %15756 = vrcp.f32 %v8216_v14  ;;  %v15751_v42 = vpop.eup %15750 }
0x1051   :  { %v8207_v2 = vpop.xlane.xlu0 %8206  ;;  %v8323_v0 = vmul.f32 %v15751_v42, %v18829_v49 }
0x1052   :  { %v8353_v30 = vpack.c.bf16 %v8322_v57, %v8321_v31  ;;  %15758 = vrcp.f32 %v8207_v2  ;;  %10429 = vrot.lane.b32.xlu0 %v18467_v33, %s16012_s30 }
0x1053   :  { %v15753_v43 = vpop.eup %15752  ;;  %10570 = vrot.lane.b32.xlu1 %v18483_v4, %s16012_s30  ;;  %v8210_v9 = vpop.xlane.xlu1 %8209 }
0x1054   :  { %v8324_v48 = vmul.f32 %v15753_v43, %v18841_v37  ;;  %15760 = vrcp.f32 %v8210_v9  ;;  %14549 = vmatmul.mubr.msk.bf16.vlgmr.msra.gmra.mrb[16].mxu1 %vm1309_vm4, %v8353_v30 }
0x1055   :  { %14559 = vmatpush3.bf16.msra.mxu1 %v18983_v35  ;;  %v8225_v8 = vpop.xlane.xlu0 %8224  ;;  %14560 = vmatprep.mubr.msk.bf16.mxu1 %vm16007_vm3, %v20614_v38 }
0x1056   :  { %v8354_v40 = vpack.c.bf16 %v8324_v48, %v8323_v0  ;;  %15762 = vrcp.f32 %v8225_v8  ;;  %10523 = vrot.lane.b32.xlu0 %v18493_v18, %s16012_s30  ;;  %14570 = vmatprep.subr.bf16.mxu1 %v20614_v38 }
0x1057   :  { %10664 = vrot.lane.b32.xlu1 %v18509_v17, %s16012_s30  ;;  %v8228_v33 = vpop.xlane.xlu1 %8227 }
0x1058   :  { %v15755_v4 = vpop.eup %15754  ;;  %15764 = vrcp.f32 %v8228_v33  ;;  %14555 = vmatmul.mubr.msk.bf16.vlgmr.msra.gmra.mrb[48].mxu0 %vm1309_vm4, %v8354_v40 }
0x1059   :  { %14565 = vmatpush3.bf16.msra.mxu0 %v18971_v61  ;;  %v8219_v49 = vpop.xlane.xlu0 %8218  ;;  %14566 = vmatprep.mubr.msk.bf16.mxu0 %vm16007_vm3, %v20614_v38  ;;  %v8327_v18 = vmul.f32 %v15755_v4, %v18845_v54 }
0x105a   :  { %v15757_v37 = vpop.eup %15756  ;;  %15766 = vrcp.f32 %v8219_v49  ;;  %10617 = vrot.lane.b32.xlu0 %v18519_v50, %s16012_s30  ;;  %14576 = vmatprep.subr.bf16.mxu0 %v20614_v38 }
0x105b   :  { %v8328_v17 = vmul.f32 %v15757_v37, %v18851_v44  ;;  %10711 = vrot.lane.b32.xlu1 %v18545_v3, %s16012_s30  ;;  %v8222_v35 = vpop.xlane.xlu1 %8221 }
0x105c   :  { %v15759_v61 = vpop.eup %15758  ;;  %15768 = vrcp.f32 %v8222_v35 }
0x105d   :  { %v8356_v7 = vpack.c.bf16 %v8328_v17, %v8327_v18  ;;  %v8237_v16 = vpop.xlane.xlu0 %8236  ;;  %v8325_v50 = vmul.f32 %v15759_v61, %v18847_v24 }
0x105e   :  { %v15761_v32 = vpop.eup %15760  ;;  %15770 = vrcp.f32 %v8237_v16  ;;  %10805 = vrot.lane.b32.xlu0 %v18571_v15, %s16012_s30  ;;  %v20622_v16 = vld [vmem:[#allocation13_spill] sm:$0xff] }
0x105f   :  { %v8326_v57 = vmul.f32 %v15761_v32, %v18855_v26  ;;  %10758 = vrot.lane.b32.xlu1 %v18535_v28, %s16012_s30  ;;  %v8240_v54 = vpop.xlane.xlu1 %8239 }
0x1060   :  { %v15763_v44 = vpop.eup %15762  ;;  %15772 = vrcp.f32 %v8240_v54  ;;  %14567 = vmatmul.mubr.msk.bf16.vlgmr.msra.gmra.mrb[52].mxu0 %vm1309_vm4, %v8356_v7  ;;  %v20624_v54 = vld [vmem:[#allocation15_spill] sm:$0xff] }
0x1061   :  { %v8355_v3 = vpack.c.bf16 %v8326_v57, %v8325_v50  ;;  %14577 = vmatpush3.bf16.msra.mxu0 %v18979_v60  ;;  %v8231_v14 = vpop.xlane.xlu0 %8230  ;;  %14578 = vmatprep.mubr.msk.bf16.mxu0 %vm16007_vm3, %v20614_v38  ;;  %v8331_v24 = vmul.f32 %v15763_v44, %v18861_v46  ;;  %v20623_v50 = vld [vmem:[#allocation12_spill] sm:$0xff] }
0x1062   :  { %v15765_v15 = vpop.eup %15764  ;;  %15774 = vrcp.f32 %v8231_v14  ;;  %14588 = vmatprep.subr.bf16.mxu0 %v20614_v38 }
0x1063   :  { %v8332_v28 = vmul.f32 %v15765_v15, %v18867_v12  ;;  %10852 = vrot.lane.b32.xlu1 %v18561_v59, %s16012_s30  ;;  %14561 = vmatmul.mubr.msk.bf16.vlgmr.msra.gmra.mrb[20].mxu1 %vm1309_vm4, %v8355_v3  ;;  %v8234_v26 = vpop.xlane.xlu1 %8233 }
0x1064   :  { %v15767_v31 = vpop.eup %15766  ;;  %14571 = vmatpush3.bf16.msra.mxu1 %v18995_v20  ;;  %15776 = vrcp.f32 %v8234_v26  ;;  %14572 = vmatprep.mubr.msk.bf16.mxu1 %vm16007_vm3, %v20614_v38 }
0x1065   :  { %v8358_v60 = vpack.c.bf16 %v8332_v28, %v8331_v24  ;;  %v8249_v42 = vpop.xlane.xlu0 %8248  ;;  %14582 = vmatprep.subr.bf16.mxu1 %v20614_v38  ;;  %v8329_v12 = vmul.f32 %v15767_v31, %v18863_v34 }
0x1066   :  { %v15769_v46 = vpop.eup %15768  ;;  %15778 = vrcp.f32 %v8249_v42 }
0x1067   :  { %v8330_v2 = vmul.f32 %v15769_v46, %v18871_v10  ;;  %v8243_v59 = vpop.xlane.xlu1 %8242 }
0x1068   :  { %v15771_v30 = vpop.eup %15770  ;;  %14579 = vmatmul.mubr.msk.bf16.vlgmr.msra.gmra.mrb[56].mxu0 %vm1309_vm4, %v8358_v60  ;;  %15780 = vrcp.f32 %v8243_v59 }
0x1069   :  { %v8357_v43 = vpack.c.bf16 %v8330_v2, %v8329_v12  ;;  %14589 = vmatpush3.bf16.msra.mxu0 %v18989_v62  ;;  %v8246_v20 = vpop.xlane.xlu0 %8245  ;;  %14590 = vmatprep.mubr.msk.bf16.mxu0 %vm16007_vm3, %v20614_v38  ;;  %v8335_v34 = vmul.f32 %v15771_v30, %v18877_v39  ;;  %v20620_v39 = vld [vmem:[#allocation11_spill] sm:$0xff] }
0x106a   :  { %v15773_v9 = vpop.eup %15772  ;;  %15782 = vrcp.f32 %v8246_v20  ;;  %14600 = vmatprep.subr.bf16.mxu0 %v20614_v38 }
0x106b   :  { %v8336_v10 = vmul.f32 %v15773_v9, %v18883_v25  ;;  %14573 = vmatmul.mubr.msk.bf16.vlgmr.msra.gmra.mrb[24].mxu1 %vm1309_vm4, %v8357_v43  ;;  %v8252_v0 = vpop.xlane.xlu1 %8251 }
0x106c   :  { %v15775_v48 = vpop.eup %15774  ;;  %14583 = vmatpush3.bf16.msra.mxu1 %v19003_v58  ;;  %15784 = vrcp.f32 %v8252_v0  ;;  %14584 = vmatprep.mubr.msk.bf16.mxu1 %vm16007_vm3, %v20614_v38 }
0x106d   :  { %v8360_v62 = vpack.c.bf16 %v8336_v10, %v8335_v34  ;;  %v8261_v8 = vpop.xlane.xlu0 %8260  ;;  %14594 = vmatprep.subr.bf16.mxu1 %v20614_v38  ;;  %v8333_v33 = vmul.f32 %v15775_v48, %v18879_v45 }
0x106e   :  { %v15777_v40 = vpop.eup %15776  ;;  %15786 = vrcp.f32 %v8261_v8 }
0x106f   :  { %v8334_v4 = vmul.f32 %v15777_v40, %v20620_v39  ;;  %v8255_v25 = vpop.xlane.xlu1 %8254 }
0x1070   :  { %14591 = vmatmul.mubr.msk.bf16.vlgmr.msra.gmra.mrb[60].mxu0 %vm1309_vm4, %v8360_v62  ;;  %15788 = vrcp.f32 %v8255_v25  ;;  %v15779_v37 = vpop.eup %15778 }
0x1071   :  { %v8359_v49 = vpack.c.bf16 %v8334_v4, %v8333_v33  ;;  %14601 = vmatpush3.bf16.msra.mxu0 %v18999_v5  ;;  %v8258_v58 = vpop.xlane.xlu0 %8257  ;;  %14602 = vmatprep.mubr.msk.bf16.mxu0 %vm16007_vm3, %v20614_v38  ;;  %v20621_v5 = vld [vmem:[#allocation10_spill] sm:$0xff]  ;;  %v8339_v32 = vmul.f32 %v15779_v37, %v20622_v16 }
0x1072   :  { %15790 = vrcp.f32 %v8258_v58  ;;  %14612 = vmatprep.subr.bf16.mxu0 %v20614_v38  ;;  %v15781_v18 = vpop.eup %15780 }
0x1073   :  { %14585 = vmatmul.mubr.msk.bf16.vlgmr.msra.gmra.mrb[28].mxu1 %vm1309_vm4, %v8359_v49  ;;  %v8264_v45 = vpop.xlane.xlu1 %8263  ;;  %v8337_v57 = vmul.f32 %v15781_v18, %v20623_v50 }
0x1074   :  { %v15783_v17 = vpop.eup %15782  ;;  %14595 = vmatpush3.bf16.msra.mxu1 %v19015_v27  ;;  %15792 = vrcp.f32 %v8264_v45  ;;  %14596 = vmatprep.mubr.msk.bf16.mxu1 %vm16007_vm3, %v20614_v38 }
0x1075   :  { %v8338_v35 = vmul.f32 %v15783_v17, %v20621_v5  ;;  %v8273_v61 = vpop.xlane.xlu0 %8272  ;;  %14606 = vmatprep.subr.bf16.mxu1 %v20614_v38 }
0x1076   :  { %v15785_v7 = vpop.eup %15784  ;;  %15794 = vrcp.f32 %v8273_v61 }
0x1077   :  { %v8340_v44 = vmul.f32 %v15785_v7, %v20624_v54  ;;  %v8267_v3 = vpop.xlane.xlu1 %8266  ;;  %v8361_v14 = vpack.c.bf16 %v8338_v35, %v8337_v57 }
0x1078   :  { %15796 = vrcp.f32 %v8267_v3  ;;  %v15787_v24 = vpop.eup %15786 }
0x1079   :  { %v8362_v27 = vpack.c.bf16 %v8340_v44, %v8339_v32  ;;  %v8270_v15 = vpop.xlane.xlu0 %8269  ;;  %v8343_v12 = vmul.f32 %v15787_v24, %v18911_v22 }
0x107a   :  { %15798 = vrcp.f32 %v8270_v15  ;;  %v15789_v28 = vpop.eup %15788 }
0x107b   :  { %14597 = vmatmul.mubr.msk.bf16.vlgmr.msra.gmra.mrb[32].mxu1 %vm1309_vm4, %v8361_v14  ;;  %14603 = vmatmul.mubr.msk.bf16.vlgmr.msra.gmra.mrb[64].mxu0 %vm1309_vm4, %v8362_v27  ;;  %v8276_v26 = vpop.xlane.xlu1 %8275 }
0x107c   :  { %v15791_v31 = vpop.eup %15790  ;;  %14607 = vmatpush3.bf16.msra.mxu1 %v19009_v19  ;;  %14613 = vmatpush3.bf16.msra.mxu0 %v19019_v63  ;;  %15800 = vrcp.f32 %v8276_v26  ;;  %v8341_v19 = vmul.f32 %v15789_v28, %v18907_v36 }
0x107d   :  { %v8342_v60 = vmul.f32 %v15791_v31, %v18915_v1  ;;  %v8285_v42 = vpop.xlane.xlu0 %8284  ;;  %14608 = vmatprep.mubr.msk.bf16.mxu1 %vm16007_vm3, %v20614_v38  ;;  %14614 = vmatprep.mubr.msk.bf16.mxu0 %vm16007_vm3, %v20614_v38 }
0x107e   :  { %v15793_v46 = vpop.eup %15792  ;;  %14618 = vmatprep.subr.bf16.mxu1 %v20614_v38  ;;  %14624 = vmatprep.subr.bf16.mxu0 %v20614_v38  ;;  %15802 = vrcp.f32 %v8285_v42 }
0x107f   :  { %v8344_v63 = vmul.f32 %v15793_v46, %v18919_v55  ;;  %v8279_v2 = vpop.xlane.xlu1 %8278  ;;  %v8363_v1 = vpack.c.bf16 %v8342_v60, %v8341_v19 }
0x1080   :  { %15804 = vrcp.f32 %v8279_v2  ;;  %v15795_v43 = vpop.eup %15794 }
0x1081   :  { %v8364_v59 = vpack.c.bf16 %v8344_v63, %v8343_v12  ;;  %v8282_v30 = vpop.xlane.xlu0 %8281  ;;  %v8347_v10 = vmul.f32 %v15795_v43, %v18927_v52 }
0x1082   :  { %15806 = vrcp.f32 %v8282_v30  ;;  %v15797_v20 = vpop.eup %15796 }
0x1083   :  { %14609 = vmatmul.mubr.msk.bf16.vlgmr.msra.gmra.mrb[36].mxu1 %vm1309_vm4, %v8363_v1  ;;  %14615 = vmatmul.mubr.msk.bf16.vlgmr.msra.gmra.mrb[68].mxu0 %vm1309_vm4, %v8364_v59  ;;  %v8288_v9 = vpop.xlane.xlu1 %8287 }
0x1084   :  { %v15799_v34 = vpop.eup %15798  ;;  %14619 = vmatpush3.bf16.msra.mxu1 %v19023_v53  ;;  %14625 = vmatpush3.bf16.msra.mxu0 %v19029_v41  ;;  %15808 = vrcp.f32 %v8288_v9  ;;  %v8345_v53 = vmul.f32 %v15797_v20, %v18923_v21 }
0x1085   :  { %v8346_v55 = vmul.f32 %v15799_v34, %v18931_v11  ;;  %v9156_v36 = vpop.permute.xlu0 %9155  ;;  %14620 = vmatprep.mubr.msk.bf16.mxu1 %vm16007_vm3, %v20614_v38  ;;  %14626 = vmatprep.mubr.msk.bf16.mxu0 %vm16007_vm3, %v20614_v38 }
0x1086   :  { %v15801_v22 = vpop.eup %15800  ;;  %14630 = vmatprep.subr.bf16.mxu1 %v20614_v38  ;;  %14636 = vmatprep.subr.bf16.mxu0 %v20614_v38  ;;  %v9161_v18 = vsel %vm1309_vm4, %v9156_v36, 0 }
0x1087   :  { %v8348_v41 = vmul.f32 %v15801_v22, %v18935_v47  ;;  %v9207_v0 = vpop.permute.xlu1 %9206  ;;  %v8365_v11 = vpack.c.bf16 %v8346_v55, %v8345_v53 }
0x1088   :  { %v15803_v8 = vpop.eup %15802  ;;  %v9212_v45 = vsel %vm1309_vm4, %v9207_v0, 0 }
0x1089   :  { %v8366_v48 = vpack.c.bf16 %v8348_v41, %v8347_v10  ;;  %v9154_v62 = vpop.permute.xlu0 %9153  ;;  %v8351_v4 = vmul.f32 %v15803_v8, %v18943_v51 }
0x108a   :  { %v15805_v40 = vpop.eup %15804 }
0x108b   :  { %14621 = vmatmul.mubr.msk.bf16.vlgmr.msra.gmra.mrb[40].mxu1 %vm1309_vm4, %v8365_v11  ;;  %14627 = vmatmul.mubr.msk.bf16.vlgmr.msra.gmra.mrb[72].mxu0 %vm1309_vm4, %v8366_v48  ;;  %v9258_v33 = vpop.permute.xlu1 %9257 }
0x108c   :  { %v15807_v39 = vpop.eup %15806  ;;  %14631 = vmatpush3.bf16.msra.mxu1 %v19035_v56  ;;  %14637 = vmatpush3.bf16.msra.mxu0 %v19039_v13  ;;  %v8349_v56 = vmul.f32 %v15805_v40, %v18939_v29  ;;  %v9263_v5 = vsel %vm1309_vm4, %v9258_v33, 0 }
0x108d   :  { %v8350_v21 = vmul.f32 %v15807_v39, %v18947_v6  ;;  %v9205_v52 = vpop.permute.xlu0 %9204  ;;  %14632 = vmatprep.mubr.msk.bf16.mxu1 %vm16007_vm3, %v20614_v38  ;;  %14638 = vmatprep.mubr.msk.bf16.mxu0 %vm16007_vm3, %v20614_v38 }
0x108e   :  { %v15809_v47 = vpop.eup %15808  ;;  %14642 = vmatprep.subr.bf16.mxu1 %v20614_v38  ;;  %14648 = vmatprep.subr.bf16.mxu0 %v20614_v38 }
0x108f   :  { %v8352_v13 = vmul.f32 %v15809_v47, %v18951_v23  ;;  %v9309_v25 = vpop.permute.xlu1 %9308  ;;  %v8367_v6 = vpack.c.bf16 %v8350_v21, %v8349_v56 }
0x1090   :  { %v9314_v35 = vsel %vm1309_vm4, %v9309_v25, 0 }
0x1091   :  { %v8368_v49 = vpack.c.bf16 %v8352_v13, %v8351_v4  ;;  %v9256_v58 = vpop.permute.xlu0 %9255 }
0x1093   :  { %14633 = vmatmul.mubr.msk.bf16.vlgmr.msra.gmra.mrb[44].mxu1 %vm1309_vm4, %v8367_v6  ;;  %14639 = vmatmul.mubr.msk.bf16.vlgmr.msra.gmra.mrb[76].mxu0 %vm1309_vm4, %v8368_v49  ;;  %v9360_v37 = vpop.permute.xlu1 %9359 }
0x1094   :  { %14644 = vmatprep.mubr.msk.bf16.mxu1 %vm16007_vm3, %v20614_v38  ;;  %14650 = vmatprep.mubr.msk.bf16.mxu0 %vm16007_vm3, %v20614_v38  ;;  %v9365_v50 = vsel %vm1309_vm4, %v9360_v37, 0 }
0x1095   :  { %14643 = vmatpush3.bf16.xpose.msra.mxu1 %v9161_v18  ;;  %14649 = vmatpush3.bf16.xpose.msra.mxu0 %v9212_v45  ;;  %v9307_v29 = vpop.permute.xlu0 %9306 }
0x1096   :  { %14654 = vmatprep.subr.bf16.mxu1 %v20614_v38  ;;  %14660 = vmatprep.subr.bf16.mxu0 %v20614_v38 }
0x1097   :  { %v9411_v51 = vpop.permute.xlu1 %9410 }
0x1098   :  { %v9416_v57 = vsel %vm1309_vm4, %v9411_v51, 0 }
0x1099   :  { %v9358_v23 = vpop.permute.xlu0 %9357 }
0x109b   :  { %v9462_v17 = vpop.permute.xlu1 %9461 }
0x109c   :  { %14645 = vmatmul.mubr.msk.bf16.vlgmr.msra.gmra.mrb[48].mxu1 %vm1309_vm4, %v9154_v62  ;;  %14651 = vmatmul.mubr.msk.bf16.vlgmr.msra.gmra.mrb[80].mxu0 %vm1309_vm4, %v9205_v52  ;;  %v9467_v27 = vsel %vm1309_vm4, %v9462_v17, 0 }
0x109d   :  { %14655 = vmatpush3.bf16.xpose.msra.mxu1 %v9263_v5  ;;  %14661 = vmatpush3.bf16.xpose.msra.mxu0 %v9314_v35  ;;  %v9409_v61 = vpop.permute.xlu0 %9408 }
0x109e   :  { %14656 = vmatprep.mubr.msk.bf16.mxu1 %vm16007_vm3, %v20614_v38  ;;  %14662 = vmatprep.mubr.msk.bf16.mxu0 %vm16007_vm3, %v20614_v38 }
0x109f   :  { %v9513_v7 = vpop.permute.xlu1 %9512  ;;  %14666 = vmatprep.subr.bf16.mxu1 %v20614_v38  ;;  %14672 = vmatprep.subr.bf16.mxu0 %v20614_v38 }
0x10a0   :  { %v9518_v15 = vsel %vm1309_vm4, %v9513_v7, 0 }
0x10a1   :  { %v9460_v16 = vpop.permute.xlu0 %9459 }
0x10a3   :  { %v9564_v32 = vpop.permute.xlu1 %9563 }
0x10a4   :  { %14657 = vmatmul.mubr.msk.bf16.vlgmr.msra.gmra.mrb[52].mxu1 %vm1309_vm4, %v9256_v58  ;;  %14663 = vmatmul.mubr.msk.bf16.vlgmr.msra.gmra.mrb[84].mxu0 %vm1309_vm4, %v9307_v29  ;;  %v9569_v26 = vsel %vm1309_vm4, %v9564_v32, 0 }
0x10a5   :  { %14667 = vmatpush3.bf16.xpose.msra.mxu1 %v9365_v50  ;;  %14673 = vmatpush3.bf16.xpose.msra.mxu0 %v9416_v57  ;;  %v9511_v54 = vpop.permute.xlu0 %9510 }
0x10a6   :  { %14668 = vmatprep.mubr.msk.bf16.mxu1 %vm16007_vm3, %v20614_v38  ;;  %14674 = vmatprep.mubr.msk.bf16.mxu0 %vm16007_vm3, %v20614_v38 }
0x10a7   :  { %v9615_v44 = vpop.permute.xlu1 %9614  ;;  %14678 = vmatprep.subr.bf16.mxu1 %v20614_v38  ;;  %14684 = vmatprep.subr.bf16.mxu0 %v20614_v38 }
0x10a8   :  { %v9620_v31 = vsel %vm1309_vm4, %v9615_v44, 0 }
0x10a9   :  { %v9562_v3 = vpop.permute.xlu0 %9561 }
0x10ab   :  { %v9666_v14 = vpop.permute.xlu1 %9665 }
0x10ac   :  { %14669 = vmatmul.mubr.msk.bf16.vlgmr.msra.gmra.mrb[56].mxu1 %vm1309_vm4, %v9358_v23  ;;  %14675 = vmatmul.mubr.msk.bf16.vlgmr.msra.gmra.mrb[88].mxu0 %vm1309_vm4, %v9409_v61  ;;  %v9671_v46 = vsel %vm1309_vm4, %v9666_v14, 0 }
0x10ad   :  { %14679 = vmatpush3.bf16.xpose.msra.mxu1 %v9467_v27  ;;  %14685 = vmatpush3.bf16.xpose.msra.mxu0 %v9518_v15  ;;  %v9613_v24 = vpop.permute.xlu0 %9612 }
0x10ae   :  { %14680 = vmatprep.mubr.msk.bf16.mxu1 %vm16007_vm3, %v20614_v38  ;;  %14686 = vmatprep.mubr.msk.bf16.mxu0 %vm16007_vm3, %v20614_v38 }
0x10af   :  { %14690 = vmatprep.subr.bf16.mxu1 %v20614_v38  ;;  %14696 = vmatprep.subr.bf16.mxu0 %v20614_v38  ;;  %v9717_v28 = vpop.permute.xlu1 %9716 }
0x10b0   :  { %v9722_v12 = vsel %vm1309_vm4, %v9717_v28, 0 }
0x10b1   :  { %v9664_v60 = vpop.permute.xlu0 %9663 }
0x10b3   :  { %v9768_v42 = vpop.permute.xlu1 %9767 }
0x10b4   :  { %14681 = vmatmul.mubr.msk.bf16.vlgmr.msra.gmra.mrb[60].mxu1 %vm1309_vm4, %v9460_v16  ;;  %14687 = vmatmul.mubr.msk.bf16.vlgmr.msra.gmra.mrb[92].mxu0 %vm1309_vm4, %v9511_v54  ;;  %v9773_v59 = vsel %vm1309_vm4, %v9768_v42, 0 }
0x10b5   :  { %14691 = vmatpush3.bf16.xpose.msra.mxu1 %v9569_v26  ;;  %14697 = vmatpush3.bf16.xpose.msra.mxu0 %v9620_v31  ;;  %v9715_v19 = vpop.permute.xlu0 %9714 }
0x10b6   :  { %14692 = vmatprep.mubr.msk.bf16.mxu1 %vm16007_vm3, %v20614_v38  ;;  %14698 = vmatprep.mubr.msk.bf16.mxu0 %vm16007_vm3, %v20614_v38 }
0x10b7   :  { %14702 = vmatprep.subr.bf16.mxu1 %v20614_v38  ;;  %14708 = vmatprep.subr.bf16.mxu0 %v20614_v38  ;;  %v9819_v63 = vpop.permute.xlu1 %9818 }
0x10b8   :  { %v9824_v30 = vsel %vm1309_vm4, %v9819_v63, 0 }
0x10b9   :  { %v9766_v2 = vpop.permute.xlu0 %9765 }
0x10bb   :  { %v9870_v1 = vpop.permute.xlu1 %9869 }
0x10bc   :  { %14693 = vmatmul.mubr.msk.bf16.vlgmr.msra.gmra.mrb[64].mxu1 %vm1309_vm4, %v9562_v3  ;;  %14699 = vmatmul.mubr.msk.bf16.vlgmr.msra.gmra.mrb[96].mxu0 %vm1309_vm4, %v9613_v24  ;;  %v9875_v9 = vsel %vm1309_vm4, %v9870_v1, 0 }
0x10bd   :  { %14703 = vmatpush3.bf16.xpose.msra.mxu1 %v9671_v46  ;;  %14709 = vmatpush3.bf16.xpose.msra.mxu0 %v9722_v12  ;;  %v9817_v43 = vpop.permute.xlu0 %9816 }
0x10be   :  { %14704 = vmatprep.mubr.msk.bf16.mxu1 %vm16007_vm3, %v20614_v38  ;;  %14710 = vmatprep.mubr.msk.bf16.mxu0 %vm16007_vm3, %v20614_v38 }
0x10bf   :  { %14714 = vmatprep.subr.bf16.mxu1 %v20614_v38  ;;  %14720 = vmatprep.subr.bf16.mxu0 %v20614_v38  ;;  %v9921_v20 = vpop.permute.xlu1 %9920 }
0x10c0   :  { %v9926_v34 = vsel %vm1309_vm4, %v9921_v20, 0 }
0x10c1   :  { %v9868_v55 = vpop.permute.xlu0 %9867 }
0x10c3   :  { %v9919_v36 = vpop.permute.xlu1 %9918 }
0x10c4   :  { %14705 = vmatmul.mubr.msk.bf16.vlgmr.msra.gmra.mrb[68].mxu1 %vm1309_vm4, %v9664_v60  ;;  %14711 = vmatmul.mubr.msk.bf16.vlgmr.msra.gmra.mrb[100].mxu0 %vm1309_vm4, %v9715_v19 }
0x10c5   :  { %14715 = vmatpush3.bf16.xpose.msra.mxu1 %v9773_v59  ;;  %14721 = vmatpush3.bf16.xpose.msra.mxu0 %v9824_v30  ;;  %v10242_v22 = vpop.permute.xlu0 %10241 }
0x10c6   :  { %14716 = vmatprep.mubr.msk.bf16.mxu1 %vm16007_vm3, %v20614_v38  ;;  %14722 = vmatprep.mubr.msk.bf16.mxu0 %vm16007_vm3, %v20614_v38 }
0x10c7   :  { %14726 = vmatprep.subr.bf16.mxu1 %v20614_v38  ;;  %14732 = vmatprep.subr.bf16.mxu0 %v20614_v38  ;;  %v10289_v10 = vpop.permute.xlu1 %10288 }
0x10cc   :  { %14717 = vmatmul.mubr.msk.bf16.vlgmr.msra.gmra.mrb[72].mxu1 %vm1309_vm4, %v9766_v2  ;;  %14723 = vmatmul.mubr.msk.bf16.vlgmr.msra.gmra.mrb[104].mxu0 %vm1309_vm4, %v9817_v43 }
0x10cd   :  { %14727 = vmatpush3.bf16.xpose.msra.mxu1 %v9875_v9  ;;  %14733 = vmatpush3.bf16.xpose.msra.mxu0 %v9926_v34 }
0x10ce   :  { %14728 = vmatprep.mubr.msk.bf16.mxu1 %vm16007_vm3, %v20614_v38  ;;  %14734 = vmatprep.mubr.msk.bf16.mxu0 %vm16007_vm3, %v20614_v38 }
0x10cf   :  { %14738 = vmatprep.subr.bf16.mxu1 %v20614_v38  ;;  %14744 = vmatprep.subr.bf16.mxu0 %v20614_v38 }
0x10d4   :  { %14729 = vmatmul.mubr.msk.bf16.vlgmr.msra.gmra.mrb[76].mxu1 %vm1309_vm4, %v9868_v55  ;;  %14735 = vmatmul.mubr.msk.bf16.vlgmr.msra.gmra.mrb[108].mxu0 %vm1309_vm4, %v9919_v36 }
0x10d5   :  { %14739 = vmatpush3.bf16.msra.mxu1 %v10242_v22  ;;  %14745 = vmatpush3.bf16.msra.mxu0 %v10289_v10 }
0x10d6   :  { %14740 = vmatprep.mubr.msk.bf16.mxu1 %vm16007_vm3, %v20614_v38  ;;  %14750 = vmatprep.subr.bf16.mxu1 %v20614_v38 }
0x10d7   :  { %14746 = vmatprep.mubr.msk.bf16.mxu0 %vm16007_vm3, %v20614_v38  ;;  %14756 = vmatprep.subr.bf16.mxu0 %v20614_v38 }
0x1127   :  { %v19267_v53 = vpop.f32.mrb[16].mxu1 }
0x1128   :  { %v14550_v41 = vpop.f32.mrb[17].mxu1 }
0x1129   :  { %v19269_v0 = vpop.f32.mrb[18].mxu1 }
0x112a   :  { %v14551_v48 = vpop.f32.mrb[19].mxu1 }
0x112b   :  { %v19273_v62 = vpop.f32.mrb[48].mxu0 }
0x112c   :  { %v14556_v8 = vpop.f32.mrb[49].mxu0 }
0x112d   :  { %v19275_v40 = vpop.f32.mrb[50].mxu0 }
0x112e   :  { %v14557_v39 = vpop.f32.mrb[51].mxu0 }
0x1133   :  { %v19279_v21 = vpop.f32.mrb[52].mxu0 }
0x1134   :  { %20625 = vst [vmem:[#allocation16_spill] sm:$0xff] %v19279_v21  ;;  %v14568_v52 = vpop.f32.mrb[53].mxu0 }
0x1135   :  { %v19281_v47 = vpop.f32.mrb[54].mxu0 }
0x1136   :  { %20626 = vst [vmem:[#allocation17_spill] sm:$0xff] %v19281_v47  ;;  %v19285_v56 = vpop.f32.mrb[20].mxu1  ;;  %v14569_v13 = vpop.f32.mrb[55].mxu0 }
0x1137   :  { %20627 = vst [vmem:[#allocation14_spill] sm:$0xff] %v19285_v56  ;;  %v14562_v25 = vpop.f32.mrb[21].mxu1 }
0x1138   :  { %v19287_v6 = vpop.f32.mrb[22].mxu1 }
0x1139   :  { %20628 = vst [vmem:[#allocation19_spill] sm:$0xff] %v19287_v6  ;;  %v14563_v58 = vpop.f32.mrb[23].mxu1 }
0x113b   :  { %v19291_v37 = vpop.f32.mrb[56].mxu0 }
0x113c   :  { %20629 = vst [vmem:[#allocation20_spill] sm:$0xff] %v19291_v37  ;;  %v14580_v18 = vpop.f32.mrb[57].mxu0 }
0x113d   :  { %v19293_v45 = vpop.f32.mrb[58].mxu0 }
0x113e   :  { %20630 = vst [vmem:[#allocation21_spill] sm:$0xff] %v19293_v45  ;;  %v19297_v51 = vpop.f32.mrb[24].mxu1  ;;  %v14581_v23 = vpop.f32.mrb[59].mxu0 }
0x113f   :  { %20631 = vst [vmem:[#allocation18_spill] sm:$0xff] %v19297_v51  ;;  %v14574_v17 = vpop.f32.mrb[25].mxu1 }
0x1140   :  { %v19299_v5 = vpop.f32.mrb[26].mxu1 }
0x1141   :  { %20632 = vst [vmem:[#allocation23_spill] sm:$0xff] %v19299_v5  ;;  %v14575_v61 = vpop.f32.mrb[27].mxu1 }
0x1143   :  { %v19303_v7 = vpop.f32.mrb[60].mxu0 }
0x1144   :  { %20633 = vst [vmem:[#allocation24_spill] sm:$0xff] %v19303_v7  ;;  %v14592_v16 = vpop.f32.mrb[61].mxu0 }
0x1145   :  { %v19305_v32 = vpop.f32.mrb[62].mxu0 }
0x1146   :  { %20634 = vst [vmem:[#allocation25_spill] sm:$0xff] %v19305_v32  ;;  %v19309_v57 = vpop.f32.mrb[28].mxu1  ;;  %v14593_v54 = vpop.f32.mrb[63].mxu0 }
0x1147   :  { %20635 = vst [vmem:[#allocation22_spill] sm:$0xff] %v19309_v57  ;;  %v14586_v44 = vpop.f32.mrb[29].mxu1 }
0x1148   :  { %v19311_v3 = vpop.f32.mrb[30].mxu1 }
0x1149   :  { %20636 = vst [vmem:[#allocation27_spill] sm:$0xff] %v19311_v3  ;;  %v14587_v27 = vpop.f32.mrb[31].mxu1 }
0x114e   :  { %v19315_v15 = vpop.f32.mrb[32].mxu1  ;;  %v19317_v24 = vpop.f32.mrb[64].mxu0 }
0x114f   :  { %20637 = vst [vmem:[#allocation28_spill] sm:$0xff] %v19315_v15  ;;  %20638 = vst [vmem:[#allocation29_spill] sm:$0xff] %v19317_v24  ;;  %v14598_v28 = vpop.f32.mrb[33].mxu1  ;;  %v14604_v26 = vpop.f32.mrb[65].mxu0 }
0x1150   :  { %v19319_v31 = vpop.f32.mrb[34].mxu1  ;;  %v19321_v60 = vpop.f32.mrb[66].mxu0 }
0x1151   :  { %20639 = vst [vmem:[#allocation26_spill] sm:$0xff] %v19319_v31  ;;  %20640 = vst [vmem:[#allocation31_spill] sm:$0xff] %v19321_v60  ;;  %v14599_v12 = vpop.f32.mrb[35].mxu1  ;;  %v14605_v19 = vpop.f32.mrb[67].mxu0 }
0x1156   :  { %v19327_v63 = vpop.f32.mrb[36].mxu1  ;;  %v19329_v2 = vpop.f32.mrb[68].mxu0 }
0x1157   :  { %20641 = vst [vmem:[#allocation32_spill] sm:$0xff] %v19327_v63  ;;  %20642 = vst [vmem:[#allocation33_spill] sm:$0xff] %v19329_v2  ;;  %v14610_v1 = vpop.f32.mrb[37].mxu1  ;;  %v14616_v59 = vpop.f32.mrb[69].mxu0 }
0x1158   :  { %v19331_v30 = vpop.f32.mrb[38].mxu1  ;;  %v19333_v43 = vpop.f32.mrb[70].mxu0 }
0x1159   :  { %20643 = vst [vmem:[#allocation30_spill] sm:$0xff] %v19331_v30  ;;  %20644 = vst [vmem:[#allocation11_spill] sm:$0xff] %v19333_v43  ;;  %v14611_v34 = vpop.f32.mrb[39].mxu1  ;;  %v14617_v55 = vpop.f32.mrb[71].mxu0 }
0x115a   :  { %v10336_v2 = vpop.permute.xlu0 %10335 }
0x115e   :  { %v19339_v36 = vpop.f32.mrb[40].mxu1  ;;  %v19341_v22 = vpop.f32.mrb[72].mxu0 }
0x115f   :  { %20645 = vst [vmem:[#allocation10_spill] sm:$0xff] %v19339_v36  ;;  %20646 = vst [vmem:[#allocation13_spill] sm:$0xff] %v19341_v22  ;;  %v14622_v10 = vpop.f32.mrb[41].mxu1  ;;  %v14628_v41 = vpop.f32.mrb[73].mxu0 }
0x1160   :  { %v19343_v48 = vpop.f32.mrb[42].mxu1  ;;  %v19345_v8 = vpop.f32.mrb[74].mxu0 }
0x1161   :  { %20647 = vst [vmem:[#allocation12_spill] sm:$0xff] %v19343_v48  ;;  %20648 = vst [vmem:[#allocation15_spill] sm:$0xff] %v19345_v8  ;;  %v14623_v13 = vpop.f32.mrb[43].mxu1  ;;  %v14629_v25 = vpop.f32.mrb[75].mxu0 }
0x1166   :  { %v19351_v58 = vpop.f32.mrb[44].mxu1  ;;  %v19353_v18 = vpop.f32.mrb[76].mxu0 }
0x1167   :  { %20649 = vst [vmem:[#allocation60_spill] sm:$0xff] %v19351_v58  ;;  %20650 = vst [vmem:[#allocation61_spill] sm:$0xff] %v19353_v18  ;;  %v14634_v23 = vpop.f32.mrb[45].mxu1  ;;  %v14640_v17 = vpop.f32.mrb[77].mxu0 }
0x1168   :  { %v19355_v61 = vpop.f32.mrb[46].mxu1  ;;  %v19357_v16 = vpop.f32.mrb[78].mxu0 }
0x1169   :  { %20651 = vst [vmem:[#allocation62_spill] sm:$0xff] %v19355_v61  ;;  %20652 = vst [vmem:[#allocation63_spill] sm:$0xff] %v19357_v16  ;;  %v14635_v27 = vpop.f32.mrb[47].mxu1  ;;  %v14641_v28 = vpop.f32.mrb[79].mxu0 }
0x116f   :  { %v9197_v26 = vpop.f32.mrb[48].mxu1  ;;  %v9248_v12 = vpop.f32.mrb[80].mxu0 }
0x1170   :  { %v9969_v19 = vmul.f32 0.25, %v9197_v26  ;;  %v9971_v1 = vmul.f32 0.25, %v9248_v12  ;;  %v14646_v59 = vpop.f32.mrb[49].mxu1  ;;  %v14652_v34 = vpop.f32.mrb[81].mxu0 }
0x1171   :  { %v9200_v55 = vpop.f32.mrb[50].mxu1  ;;  %v9251_v10 = vpop.f32.mrb[82].mxu0 }
0x1172   :  { %v10005_v41 = vmul.f32 1.442695, %v9971_v1  ;;  %v9970_v13 = vmul.f32 0.25, %v9200_v55  ;;  %v10001_v25 = vmul.f32 1.442695, %v9969_v19  ;;  %v9972_v23 = vmul.f32 0.25, %v9251_v10 }
0x1173   :  { %v14647_v17 = vpop.f32.mrb[51].mxu1  ;;  %v14653_v52 = vpop.f32.mrb[83].mxu0 }
0x1174   :  { %v10003_v54 = vmul.f32 1.442695, %v9970_v13  ;;  %15810 = vpow2.f32 %v10005_v41  ;;  %v10007_v27 = vmul.f32 1.442695, %v9972_v23 }
0x1176   :  { %15812 = vpow2.f32 %v10003_v54 }
0x1177   :  { %15814 = vpow2.f32 %v10001_v25  ;;  %v9299_v28 = vpop.f32.mrb[52].mxu1  ;;  %v9350_v44 = vpop.f32.mrb[84].mxu0 }
0x1178   :  { %v9975_v39 = vmul.f32 0.25, %v9350_v44  ;;  %v14658_v26 = vpop.f32.mrb[53].mxu1  ;;  %v14664_v12 = vpop.f32.mrb[85].mxu0  ;;  %15816 = vpow2.f32 %v10007_v27  ;;  %v9973_v19 = vmul.f32 0.25, %v9299_v28 }
0x1179   :  { %v9302_v59 = vpop.f32.mrb[54].mxu1  ;;  %v9353_v34 = vpop.f32.mrb[86].mxu0 }
0x117a   :  { %v10013_v9 = vmul.f32 1.442695, %v9975_v39  ;;  %v9974_v20 = vmul.f32 0.25, %v9302_v59  ;;  %v9976_v1 = vmul.f32 0.25, %v9353_v34  ;;  %v14659_v55 = vpop.f32.mrb[55].mxu1  ;;  %v14665_v10 = vpop.f32.mrb[87].mxu0 }
0x117b   :  { %v10009_v13 = vmul.f32 1.442695, %v9973_v19 }
0x117c   :  { %v10015_v52 = vmul.f32 1.442695, %v9976_v1  ;;  %15818 = vpow2.f32 %v10013_v9  ;;  %v10011_v41 = vmul.f32 1.442695, %v9974_v20 }
0x117e   :  { %v19363_v54 = vpop.eup %15810  ;;  %15820 = vpow2.f32 %v10015_v52 }
0x117f   :  { %v9401_v25 = vpop.f32.mrb[56].mxu1  ;;  %v9452_v44 = vpop.f32.mrb[88].mxu0  ;;  %v10071_v39 = vsel %vm1309_vm4, %v19363_v54, 0.0  ;;  %15822 = vpow2.f32 %v10011_v41 }
0x1180   :  { %v19365_v23 = vpop.eup %15812  ;;  %v9979_v17 = vmul.f32 0.25, %v9452_v44  ;;  %v14670_v26 = vpop.f32.mrb[57].mxu1  ;;  %10072 = vadd.xlane.f32.xlu0 %v10071_v39  ;;  %15824 = vpow2.f32 %v10009_v13  ;;  %v9977_v19 = vmul.f32 0.25, %v9401_v25 }
0x1181   :  { %v14676_v27 = vpop.f32.mrb[89].mxu0  ;;  %v19369_v28 = vpop.eup %15814  ;;  %v10068_v20 = vsel %vm1309_vm4, %v19365_v23, 0.0 }
0x1182   :  { %v9404_v12 = vpop.f32.mrb[58].mxu1  ;;  %v9455_v9 = vpop.f32.mrb[90].mxu0  ;;  %v10021_v59 = vmul.f32 1.442695, %v9979_v17  ;;  %10069 = vadd.xlane.f32.xlu1 %v10068_v20  ;;  %v10065_v44 = vsel %vm1309_vm4, %v19369_v28, 0.0 }
0x1183   :  { %v9978_v34 = vmul.f32 0.25, %v9404_v12  ;;  %v9980_v1 = vmul.f32 0.25, %v9455_v9  ;;  %v14671_v55 = vpop.f32.mrb[59].mxu1  ;;  %v14677_v10 = vpop.f32.mrb[91].mxu0  ;;  %v10017_v27 = vmul.f32 1.442695, %v9977_v19 }
0x1184   :  { %v19375_v26 = vpop.eup %15816  ;;  %10066 = vadd.xlane.f32.xlu0 %v10065_v44  ;;  %15826 = vpow2.f32 %v10021_v59 }
0x1185   :  { %v10023_v52 = vmul.f32 1.442695, %v9980_v1  ;;  %v10019_v39 = vmul.f32 1.442695, %v9978_v34  ;;  %v10074_v13 = vsel %vm1309_vm4, %v19375_v26, 0.0 }
0x1186   :  { %v19377_v12 = vpop.eup %15818 }
0x1187   :  { %15828 = vpow2.f32 %v10023_v52  ;;  %v9503_v41 = vpop.f32.mrb[60].mxu1  ;;  %v9554_v17 = vpop.f32.mrb[92].mxu0 }
0x1188   :  { %v9983_v9 = vmul.f32 0.25, %v9554_v17  ;;  %v14682_v25 = vpop.f32.mrb[61].mxu1  ;;  %v14688_v20 = vpop.f32.mrb[93].mxu0  ;;  %10075 = vadd.xlane.f32.xlu0 %v10074_v13  ;;  %15830 = vpow2.f32 %v10019_v39  ;;  %v9981_v52 = vmul.f32 0.25, %v9503_v41  ;;  %v10083_v13 = vsel %vm1309_vm4, %v19377_v12, 0.0 }
0x1189   :  { %v19381_v1 = vpop.eup %15820  ;;  %v9506_v55 = vpop.f32.mrb[62].mxu1  ;;  %15832 = vpow2.f32 %v10017_v27 }
0x118a   :  { %v9557_v10 = vpop.f32.mrb[94].mxu0  ;;  %v10029_v59 = vmul.f32 1.442695, %v9983_v9  ;;  %v9982_v34 = vmul.f32 0.25, %v9506_v55  ;;  %v10086_v44 = vsel %vm1309_vm4, %v19381_v1, 0.0  ;;  %v14683_v17 = vpop.f32.mrb[63].mxu1 }
0x118b   :  { %v9984_v19 = vmul.f32 0.25, %v9557_v10  ;;  %v14689_v46 = vpop.f32.mrb[95].mxu0  ;;  %v19385_v42 = vpop.eup %15822  ;;  %10087 = vadd.xlane.f32.xlu1 %v10086_v44  ;;  %v10025_v9 = vmul.f32 1.442695, %v9981_v52 }
0x118c   :  { %v19389_v20 = vpop.eup %15824  ;;  %10084 = vadd.xlane.f32.xlu0 %v10083_v13  ;;  %15834 = vpow2.f32 %v10029_v59  ;;  %v10027_v39 = vmul.f32 1.442695, %v9982_v34  ;;  %v10080_v27 = vsel %vm1309_vm4, %v19385_v42, 0.0 }
0x118d   :  { %v10031_v25 = vmul.f32 1.442695, %v9984_v19  ;;  %v10077_v44 = vsel %vm1309_vm4, %v19389_v20, 0.0 }
0x118e   :  { %v19393_v46 = vpop.eup %15826 }
0x118f   :  { %15836 = vpow2.f32 %v10031_v25  ;;  %v9605_v41 = vpop.f32.mrb[64].mxu1  ;;  %v9656_v55 = vpop.f32.mrb[96].mxu0  ;;  %10081 = vadd.xlane.f32.xlu1 %v10080_v27 }
0x1190   :  { %v9985_v10 = vmul.f32 0.25, %v9605_v41  ;;  %v9987_v19 = vmul.f32 0.25, %v9656_v55  ;;  %v14694_v17 = vpop.f32.mrb[65].mxu1  ;;  %v14700_v50 = vpop.f32.mrb[97].mxu0  ;;  %10078 = vadd.xlane.f32.xlu0 %v10077_v44  ;;  %15838 = vpow2.f32 %v10027_v39 }
0x1191   :  { %v19397_v13 = vpop.eup %15828  ;;  %v9608_v59 = vpop.f32.mrb[66].mxu1  ;;  %15840 = vpow2.f32 %v10025_v9  ;;  %v10095_v50 = vsel %vm1309_vm4, %v19393_v46, 0.0 }
0x1192   :  { %v9659_v34 = vpop.f32.mrb[98].mxu0  ;;  %v10033_v52 = vmul.f32 1.442695, %v9985_v10  ;;  %v10037_v14 = vmul.f32 1.442695, %v9987_v19  ;;  %v9986_v29 = vmul.f32 0.25, %v9608_v59  ;;  %v19401_v35 = vpop.eup %15830 }
0x1193   :  { %v9988_v25 = vmul.f32 0.25, %v9659_v34  ;;  %v10098_v27 = vsel %vm1309_vm4, %v19397_v13, 0.0  ;;  %v14695_v41 = vpop.f32.mrb[67].mxu1  ;;  %v14701_v55 = vpop.f32.mrb[99].mxu0  ;;  %v10092_v10 = vsel %vm1309_vm4, %v19401_v35, 0.0 }
0x1194   :  { %10099 = vadd.xlane.f32.xlu1 %v10098_v27  ;;  %v19405_v44 = vpop.eup %15832  ;;  %10096 = vadd.xlane.f32.xlu0 %v10095_v50  ;;  %15842 = vpow2.f32 %v10033_v52  ;;  %v10035_v9 = vmul.f32 1.442695, %v9986_v29 }
0x1195   :  { %v10039_v39 = vmul.f32 1.442695, %v9988_v25  ;;  %15844 = vpow2.f32 %v10037_v14  ;;  %v10089_v41 = vsel %vm1309_vm4, %v19405_v44, 0.0 }
0x1196   :  { %v19409_v59 = vpop.eup %15834 }
0x1197   :  { %v9707_v19 = vpop.f32.mrb[68].mxu1  ;;  %v9758_v17 = vpop.f32.mrb[100].mxu0  ;;  %15846 = vpow2.f32 %v10039_v39 }
0x1198   :  { %10093 = vadd.xlane.f32.xlu1 %v10092_v10  ;;  %v9989_v34 = vmul.f32 0.25, %v9707_v19  ;;  %v9991_v27 = vmul.f32 0.25, %v9758_v17  ;;  %v14706_v55 = vpop.f32.mrb[69].mxu1  ;;  %v14712_v4 = vpop.f32.mrb[101].mxu0  ;;  %10090 = vadd.xlane.f32.xlu0 %v10089_v41  ;;  %15848 = vpow2.f32 %v10035_v9 }
0x1199   :  { %v19413_v50 = vpop.eup %15836  ;;  %v9710_v14 = vpop.f32.mrb[70].mxu1  ;;  %v10107_v4 = vsel %vm1309_vm4, %v19409_v59, 0.0 }
0x119a   :  { %v9761_v29 = vpop.f32.mrb[102].mxu0  ;;  %v10041_v52 = vmul.f32 1.442695, %v9989_v34  ;;  %v10045_v49 = vmul.f32 1.442695, %v9991_v27  ;;  %v9990_v33 = vmul.f32 0.25, %v9710_v14  ;;  %v19417_v11 = vpop.eup %15838 }
0x119b   :  { %v9992_v25 = vmul.f32 0.25, %v9761_v29  ;;  %v10110_v10 = vsel %vm1309_vm4, %v19413_v50, 0.0  ;;  %v14707_v19 = vpop.f32.mrb[71].mxu1  ;;  %v14713_v17 = vpop.f32.mrb[103].mxu0  ;;  %v10104_v34 = vsel %vm1309_vm4, %v19417_v11, 0.0 }
0x119c   :  { %10111 = vadd.xlane.f32.xlu1 %v10110_v10  ;;  %v19421_v41 = vpop.eup %15840  ;;  %10108 = vadd.xlane.f32.xlu0 %v10107_v4  ;;  %15850 = vpow2.f32 %v10041_v52  ;;  %v10043_v9 = vmul.f32 1.442695, %v9990_v33 }
0x119d   :  { %v10047_v39 = vmul.f32 1.442695, %v9992_v25  ;;  %15852 = vpow2.f32 %v10045_v49  ;;  %v10101_v19 = vsel %vm1309_vm4, %v19421_v41, 0.0 }
0x119e   :  { %v19425_v14 = vpop.eup %15842 }
0x119f   :  { %v9809_v27 = vpop.f32.mrb[72].mxu1  ;;  %v9860_v55 = vpop.f32.mrb[104].mxu0  ;;  %15854 = vpow2.f32 %v10047_v39 }
0x11a0   :  { %10105 = vadd.xlane.f32.xlu1 %v10104_v34  ;;  %v9993_v29 = vmul.f32 0.25, %v9809_v27  ;;  %v9995_v10 = vmul.f32 0.25, %v9860_v55  ;;  %v14718_v17 = vpop.f32.mrb[73].mxu1  ;;  %v14724_v18 = vpop.f32.mrb[105].mxu0  ;;  %10102 = vadd.xlane.f32.xlu0 %v10101_v19  ;;  %15856 = vpow2.f32 %v10043_v9  ;;  %v10113_v34 = vsel %vm1309_vm4, %v19425_v14, 0.0 }
0x11a1   :  { %v19429_v4 = vpop.eup %15844  ;;  %v9812_v49 = vpop.f32.mrb[74].mxu1 }
0x11a2   :  { %v9863_v33 = vpop.f32.mrb[106].mxu0  ;;  %v10049_v52 = vmul.f32 1.442695, %v9993_v29  ;;  %v10053_v16 = vmul.f32 1.442695, %v9995_v10  ;;  %v9994_v58 = vmul.f32 0.25, %v9812_v49  ;;  %v19433_v61 = vpop.eup %15846 }
0x11a3   :  { %v9996_v25 = vmul.f32 0.25, %v9863_v33  ;;  %v14719_v27 = vpop.f32.mrb[75].mxu1  ;;  %v14725_v55 = vpop.f32.mrb[107].mxu0  ;;  %v10119_v18 = vsel %vm1309_vm4, %v19429_v4, 0.0  ;;  %v10122_v29 = vsel %vm1309_vm4, %v19433_v61, 0.0 }
0x11a4   :  { %10114 = vadd.xlane.f32.xlu1 %v10113_v34  ;;  %v19437_v19 = vpop.eup %15848  ;;  %10120 = vadd.xlane.f32.xlu0 %v10119_v18  ;;  %15858 = vpow2.f32 %v10049_v52  ;;  %v10051_v9 = vmul.f32 1.442695, %v9994_v58 }
0x11a5   :  { %v10055_v39 = vmul.f32 1.442695, %v9996_v25  ;;  %15860 = vpow2.f32 %v10053_v16  ;;  %v10116_v27 = vsel %vm1309_vm4, %v19437_v19, 0.0 }
0x11a6   :  { %v19441_v49 = vpop.eup %15850 }
0x11a7   :  { %v9911_v10 = vpop.f32.mrb[76].mxu1  ;;  %v9962_v17 = vpop.f32.mrb[108].mxu0  ;;  %15862 = vpow2.f32 %v10055_v39 }
0x11a8   :  { %10123 = vadd.xlane.f32.xlu1 %v10122_v29  ;;  %v9997_v33 = vmul.f32 0.25, %v9911_v10  ;;  %v9999_v34 = vmul.f32 0.25, %v9962_v17  ;;  %v14730_v55 = vpop.f32.mrb[77].mxu1  ;;  %v14736_v22 = vpop.f32.mrb[109].mxu0  ;;  %10117 = vadd.xlane.f32.xlu0 %v10116_v27  ;;  %15864 = vpow2.f32 %v10051_v9  ;;  %v10125_v29 = vsel %vm1309_vm4, %v19441_v49, 0.0 }
0x11a9   :  { %v19445_v18 = vpop.eup %15852  ;;  %v9914_v16 = vpop.f32.mrb[78].mxu1 }
0x11aa   :  { %v9965_v58 = vpop.f32.mrb[110].mxu0  ;;  %v10057_v52 = vmul.f32 1.442695, %v9997_v33  ;;  %v10061_v8 = vmul.f32 1.442695, %v9999_v34  ;;  %v9998_v36 = vmul.f32 0.25, %v9914_v16  ;;  %v19449_v48 = vpop.eup %15854 }
0x11ab   :  { %v10000_v25 = vmul.f32 0.25, %v9965_v58  ;;  %v14731_v10 = vpop.f32.mrb[79].mxu1  ;;  %v14737_v17 = vpop.f32.mrb[111].mxu0  ;;  %v10131_v22 = vsel %vm1309_vm4, %v19445_v18, 0.0  ;;  %v10134_v33 = vsel %vm1309_vm4, %v19449_v48, 0.0 }
0x11ac   :  { %10126 = vadd.xlane.f32.xlu1 %v10125_v29  ;;  %v19453_v27 = vpop.eup %15856  ;;  %10132 = vadd.xlane.f32.xlu0 %v10131_v22  ;;  %15866 = vpow2.f32 %v10057_v52  ;;  %v10059_v9 = vmul.f32 1.442695, %v9998_v36 }
0x11ad   :  { %v10063_v39 = vmul.f32 1.442695, %v10000_v25  ;;  %15868 = vpow2.f32 %v10061_v8  ;;  %v10128_v55 = vsel %vm1309_vm4, %v19453_v27, 0.0 }
0x11ae   :  { %v19457_v34 = vpop.eup %15858 }
0x11af   :  { %v19461_v16 = vpop.eup %15860  ;;  %15870 = vpow2.f32 %v10063_v39  ;;  %v10137_v58 = vsel %vm1309_vm4, %v19457_v34, 0.0 }
0x11b0   :  { %10135 = vadd.xlane.f32.xlu1 %v10134_v33  ;;  %10129 = vadd.xlane.f32.xlu0 %v10128_v55  ;;  %15872 = vpow2.f32 %v10059_v9  ;;  %v10143_v36 = vsel %vm1309_vm4, %v19461_v16, 0.0 }
0x11b1   :  { %v19465_v52 = vpop.eup %15862 }
0x11b2   :  { %v19469_v8 = vpop.eup %15864  ;;  %v10146_v25 = vsel %vm1309_vm4, %v19465_v52, 0.0 }
0x11b3   :  { %v10140_v10 = vsel %vm1309_vm4, %v19469_v8, 0.0 }
0x11b4   :  { %10138 = vadd.xlane.f32.xlu1 %v10137_v58  ;;  %10144 = vadd.xlane.f32.xlu0 %v10143_v36  ;;  %v20653_v36 = vld [vmem:[#allocation9_spill] sm:$0xff] }
0x11b6   :  { %v19473_v29 = vpop.eup %15866 }
0x11b7   :  { %v19477_v17 = vpop.eup %15868  ;;  %v10149_v22 = vsel %vm1309_vm4, %v19473_v29, 0.0 }
0x11b8   :  { %10147 = vadd.xlane.f32.xlu1 %v10146_v25  ;;  %10141 = vadd.xlane.f32.xlu0 %v10140_v10  ;;  %v10155_v9 = vsel %vm1309_vm4, %v19477_v17, 0.0  ;;  %v20654_v25 = vld [vmem:[#allocation6_spill] sm:$0xff]  ;;  %v10383_v10 = vpop.permute.xlu1 %10382 }
0x11b9   :  { %v19481_v39 = vpop.eup %15870 }
0x11ba   :  { %v19485_v33 = vpop.eup %15872  ;;  %v10158_v55 = vsel %vm1309_vm4, %v19481_v39, 0.0 }
0x11bb   :  { %v10152_v58 = vsel %vm1309_vm4, %v19485_v33, 0.0 }
0x11bc   :  { %10150 = vadd.xlane.f32.xlu1 %v10149_v22  ;;  %10156 = vadd.xlane.f32.xlu0 %v10155_v9  ;;  %v19495_v22 = vpop.permute.xlu1 %10476  ;;  %v19499_v9 = vpop.permute.xlu0 %10429 }
0x11c0   :  { %10159 = vadd.xlane.f32.xlu1 %v10158_v55  ;;  %10153 = vadd.xlane.f32.xlu0 %v10152_v58  ;;  %v19497_v43 = vpop.permute.xlu1 %10570  ;;  %v19503_v55 = vpop.permute.xlu0 %10523 }
0x11c4   :  { %v19501_v63 = vpop.permute.xlu1 %10664  ;;  %v19507_v58 = vpop.permute.xlu0 %10617 }
0x11c8   :  { %v19505_v30 = vpop.permute.xlu1 %10711  ;;  %v19511_v24 = vpop.permute.xlu0 %10805 }
0x11d1   :  { %10946 = vrot.lane.b32.xlu1 %v20653_v36, %s16012_s30  ;;  %v19509_v36 = vpop.permute.xlu1 %10758 }
0x11d6   :  { %10899 = vrot.lane.b32.xlu0 %v20654_v25, %s16012_s30  ;;  %v19513_v25 = vpop.permute.xlu1 %10852 }
0x120d   :  { %v10073_v60 = vpop.xlane.xlu0 %10072 }
0x120f   :  { %v10070_v15 = vpop.xlane.xlu1 %10069 }
0x1210   :  { %15874 = vrcp.f32 %v10070_v15 }
0x1211   :  { %v10067_v31 = vpop.xlane.xlu0 %10066 }
0x1212   :  { %15876 = vrcp.f32 %v10067_v31 }
0x1213   :  { %15878 = vrcp.f32 %v10073_v60 }
0x1215   :  { %v10076_v7 = vpop.xlane.xlu0 %10075 }
0x1216   :  { %15880 = vrcp.f32 %v10076_v7 }
0x1218   :  { %v10088_v32 = vpop.xlane.xlu1 %10087 }
0x1219   :  { %v10085_v57 = vpop.xlane.xlu0 %10084 }
0x121a   :  { %v15875_v3 = vpop.eup %15874  ;;  %15882 = vrcp.f32 %v10085_v57 }
0x121b   :  { %15884 = vrcp.f32 %v10088_v32  ;;  %v10194_v51 = vmul.f32 %v15875_v3, %v19365_v23 }
0x121c   :  { %v15877_v37 = vpop.eup %15876  ;;  %v10082_v45 = vpop.xlane.xlu1 %10081 }
0x121d   :  { %v10193_v5 = vmul.f32 %v15877_v37, %v19369_v28  ;;  %15886 = vrcp.f32 %v10082_v45  ;;  %v10079_v21 = vpop.xlane.xlu0 %10078  ;;  %v15879_v47 = vpop.eup %15878 }
0x121e   :  { %15888 = vrcp.f32 %v10079_v21  ;;  %v10195_v7 = vmul.f32 %v15879_v47, %v19363_v54 }
0x121f   :  { %v10225_v15 = vpack.c.bf16 %v10194_v51, %v10193_v5 }
0x1220   :  { %v15881_v31 = vpop.eup %15880 }
0x1221   :  { %v10100_v60 = vpop.xlane.xlu1 %10099  ;;  %v10196_v56 = vmul.f32 %v15881_v31, %v19375_v26  ;;  %v10097_v6 = vpop.xlane.xlu0 %10096  ;;  %14741 = vmatmul.mubr.msk.bf16.vlgmr.msra.gmra.mrb[80].mxu1 %vm1309_vm4, %v10225_v15 }
0x1222   :  { %15890 = vrcp.f32 %v10097_v6  ;;  %14751 = vmatpush3.bf16.msra.mxu1 %v10336_v2  ;;  %14752 = vmatprep.mubr.msk.bf16.mxu1 %vm16007_vm3, %v20614_v38 }
0x1223   :  { %v10226_v37 = vpack.c.bf16 %v10196_v56, %v10195_v7  ;;  %14762 = vmatprep.subr.bf16.mxu1 %v20614_v38  ;;  %15892 = vrcp.f32 %v10100_v60 }
0x1224   :  { %v15883_v45 = vpop.eup %15882 }
0x1225   :  { %v10094_v21 = vpop.xlane.xlu1 %10093  ;;  %v10091_v51 = vpop.xlane.xlu0 %10090  ;;  %14747 = vmatmul.mubr.msk.bf16.vlgmr.msra.gmra.mrb[112].mxu0 %vm1309_vm4, %v10226_v37  ;;  %v10199_v5 = vmul.f32 %v15883_v45, %v19377_v12 }
0x1226   :  { %15894 = vrcp.f32 %v10094_v21  ;;  %v15885_v47 = vpop.eup %15884  ;;  %14757 = vmatpush3.bf16.msra.mxu0 %v10383_v10  ;;  %14758 = vmatprep.mubr.msk.bf16.mxu0 %vm16007_vm3, %v20614_v38 }
0x1227   :  { %15896 = vrcp.f32 %v10091_v51  ;;  %v15887_v6 = vpop.eup %15886  ;;  %14768 = vmatprep.subr.bf16.mxu0 %v20614_v38  ;;  %v10200_v57 = vmul.f32 %v15885_v47, %v19381_v1 }
0x1228   :  { %v15889_v56 = vpop.eup %15888  ;;  %v10198_v3 = vmul.f32 %v15887_v6, %v19385_v42 }
0x1229   :  { %v10112_v32 = vpop.xlane.xlu1 %10111  ;;  %v10197_v2 = vmul.f32 %v15889_v56, %v19389_v20  ;;  %v10109_v54 = vpop.xlane.xlu0 %10108  ;;  %v10228_v23 = vpack.c.bf16 %v10200_v57, %v10199_v5 }
0x122a   :  { %15898 = vrcp.f32 %v10109_v54 }
0x122b   :  { %v10227_v28 = vpack.c.bf16 %v10198_v3, %v10197_v2  ;;  %15900 = vrcp.f32 %v10112_v32 }
0x122c   :  { %v15891_v26 = vpop.eup %15890 }
0x122d   :  { %v10106_v10 = vpop.xlane.xlu1 %10105  ;;  %v10103_v15 = vpop.xlane.xlu0 %10102  ;;  %14753 = vmatmul.mubr.msk.bf16.vlgmr.msra.gmra.mrb[84].mxu1 %vm1309_vm4, %v10227_v28  ;;  %14759 = vmatmul.mubr.msk.bf16.vlgmr.msra.gmra.mrb[116].mxu0 %vm1309_vm4, %v10228_v23  ;;  %v10203_v1 = vmul.f32 %v15891_v26, %v19393_v46 }
0x122e   :  { %15902 = vrcp.f32 %v10106_v10  ;;  %v15893_v12 = vpop.eup %15892  ;;  %14763 = vmatpush3.bf16.msra.mxu1 %v19499_v9  ;;  %14769 = vmatpush3.bf16.msra.mxu0 %v19495_v22 }
0x122f   :  { %15904 = vrcp.f32 %v10103_v15  ;;  %14764 = vmatprep.mubr.msk.bf16.mxu1 %vm16007_vm3, %v20614_v38  ;;  %14770 = vmatprep.mubr.msk.bf16.mxu0 %vm16007_vm3, %v20614_v38  ;;  %v10204_v60 = vmul.f32 %v15893_v12, %v19397_v13 }
0x1230   :  { %v15895_v42 = vpop.eup %15894  ;;  %14774 = vmatprep.subr.bf16.mxu1 %v20614_v38  ;;  %14780 = vmatprep.subr.bf16.mxu0 %v20614_v38 }
0x1231   :  { %v15897_v20 = vpop.eup %15896  ;;  %v10115_v31 = vpop.xlane.xlu1 %10114  ;;  %v10202_v9 = vmul.f32 %v15895_v42, %v19401_v35  ;;  %v10230_v46 = vpack.c.bf16 %v10204_v60, %v10203_v1 }
0x1232   :  { %v10201_v22 = vmul.f32 %v15897_v20, %v19405_v44  ;;  %v10121_v7 = vpop.xlane.xlu0 %10120  ;;  %15906 = vrcp.f32 %v10115_v31 }
0x1233   :  { %15908 = vrcp.f32 %v10121_v7 }
0x1234   :  { %v10229_v37 = vpack.c.bf16 %v10202_v9, %v10201_v22  ;;  %v15899_v45 = vpop.eup %15898 }
0x1235   :  { %v10124_v21 = vpop.xlane.xlu1 %10123  ;;  %14771 = vmatmul.mubr.msk.bf16.vlgmr.msra.gmra.mrb[120].mxu0 %vm1309_vm4, %v10230_v46  ;;  %v15901_v47 = vpop.eup %15900  ;;  %v10207_v13 = vmul.f32 %v15899_v45, %v19409_v59 }
0x1236   :  { %15910 = vrcp.f32 %v10124_v21  ;;  %v10118_v51 = vpop.xlane.xlu0 %10117  ;;  %14765 = vmatmul.mubr.msk.bf16.vlgmr.msra.gmra.mrb[88].mxu1 %vm1309_vm4, %v10229_v37  ;;  %14781 = vmatpush3.bf16.msra.mxu0 %v19497_v43  ;;  %v10208_v5 = vmul.f32 %v15901_v47, %v19413_v50 }
0x1237   :  { %15912 = vrcp.f32 %v10118_v51  ;;  %14775 = vmatpush3.bf16.msra.mxu1 %v19503_v55  ;;  %14776 = vmatprep.mubr.msk.bf16.mxu1 %vm16007_vm3, %v20614_v38 }
0x1238   :  { %v15903_v35 = vpop.eup %15902  ;;  %14782 = vmatprep.mubr.msk.bf16.mxu0 %vm16007_vm3, %v20614_v38  ;;  %14786 = vmatprep.subr.bf16.mxu1 %v20614_v38  ;;  %v10232_v59 = vpack.c.bf16 %v10208_v5, %v10207_v13 }
0x1239   :  { %v15905_v44 = vpop.eup %15904  ;;  %v10127_v6 = vpop.xlane.xlu1 %10126  ;;  %14792 = vmatprep.subr.bf16.mxu0 %v20614_v38  ;;  %v10206_v55 = vmul.f32 %v15903_v35, %v19417_v11 }
0x123a   :  { %v10205_v43 = vmul.f32 %v15905_v44, %v19421_v41  ;;  %v10133_v56 = vpop.xlane.xlu0 %10132  ;;  %15914 = vrcp.f32 %v10127_v6 }
0x123b   :  { %15916 = vrcp.f32 %v10133_v56  ;;  %v15096_v56 = vld [vmem:[%s20247_s5 + $0x18] sm:$0xff]  }
0x123c   :  { %v10231_v32 = vpack.c.bf16 %v10206_v55, %v10205_v43  ;;  %v15907_v3 = vpop.eup %15906 }
0x123d   :  { %v10136_v57 = vpop.xlane.xlu1 %10135  ;;  %14783 = vmatmul.mubr.msk.bf16.vlgmr.msra.gmra.mrb[124].mxu0 %vm1309_vm4, %v10232_v59  ;;  %v15909_v54 = vpop.eup %15908  ;;  %v10209_v28 = vmul.f32 %v15907_v3, %v19425_v14 }
0x123e   :  { %15918 = vrcp.f32 %v10136_v57  ;;  %v10130_v2 = vpop.xlane.xlu0 %10129  ;;  %14777 = vmatmul.mubr.msk.bf16.vlgmr.msra.gmra.mrb[92].mxu1 %vm1309_vm4, %v10231_v32  ;;  %14793 = vmatpush3.bf16.msra.mxu0 %v19501_v63 }
0x123f   :  { %15920 = vrcp.f32 %v10130_v2  ;;  %14787 = vmatpush3.bf16.msra.mxu1 %v19507_v58  ;;  %14788 = vmatprep.mubr.msk.bf16.mxu1 %vm16007_vm3, %v20614_v38  ;;  %v10211_v58 = vmul.f32 %v15909_v54, %v19429_v4 }
0x1240   :  { %v15911_v11 = vpop.eup %15910  ;;  %14794 = vmatprep.mubr.msk.bf16.mxu0 %vm16007_vm3, %v20614_v38  ;;  %14798 = vmatprep.subr.bf16.mxu1 %v20614_v38 }
0x1241   :  { %v15913_v50 = vpop.eup %15912  ;;  %v10212_v41 = vmul.f32 %v15911_v11, %v19433_v61  ;;  %v10139_v23 = vpop.xlane.xlu1 %10138  ;;  %14804 = vmatprep.subr.bf16.mxu0 %v20614_v38 }
0x1242   :  { %v10210_v63 = vmul.f32 %v15913_v50, %v19437_v19  ;;  %v10145_v26 = vpop.xlane.xlu0 %10144  ;;  %15922 = vrcp.f32 %v10139_v23 }
0x1243   :  { %v10234_v10 = vpack.c.bf16 %v10212_v41, %v10211_v58  ;;  %15924 = vrcp.f32 %v10145_v26 }
0x1244   :  { %v10233_v15 = vpack.c.bf16 %v10210_v63, %v10209_v28  ;;  %v15915_v42 = vpop.eup %15914 }
0x1245   :  { %v10148_v12 = vpop.xlane.xlu1 %10147  ;;  %14795 = vmatmul.mubr.msk.bf16.vlgmr.msra.gmra.mrb[128].mxu0 %vm1309_vm4, %v10234_v10  ;;  %v15917_v1 = vpop.eup %15916  ;;  %v10213_v31 = vmul.f32 %v15915_v42, %v19441_v49 }
0x1246   :  { %15926 = vrcp.f32 %v10148_v12  ;;  %v10142_v61 = vpop.xlane.xlu0 %10141  ;;  %14789 = vmatmul.mubr.msk.bf16.vlgmr.msra.gmra.mrb[96].mxu1 %vm1309_vm4, %v10233_v15  ;;  %14805 = vmatpush3.bf16.msra.mxu0 %v19509_v36 }
0x1247   :  { %15928 = vrcp.f32 %v10142_v61  ;;  %14799 = vmatpush3.bf16.msra.mxu1 %v19505_v30  ;;  %14800 = vmatprep.mubr.msk.bf16.mxu1 %vm16007_vm3, %v20614_v38  ;;  %v10215_v30 = vmul.f32 %v15917_v1, %v19445_v18 }
0x1248   :  { %v15919_v14 = vpop.eup %15918  ;;  %14806 = vmatprep.mubr.msk.bf16.mxu0 %vm16007_vm3, %v20614_v38  ;;  %14810 = vmatprep.subr.bf16.mxu1 %v20614_v38 }
0x1249   :  { %v15921_v4 = vpop.eup %15920  ;;  %v10216_v19 = vmul.f32 %v15919_v14, %v19449_v48  ;;  %v10151_v20 = vpop.xlane.xlu1 %10150  ;;  %14816 = vmatprep.subr.bf16.mxu0 %v20614_v38 }
0x124a   :  { %v10214_v36 = vmul.f32 %v15921_v4, %v19453_v27  ;;  %v10157_v60 = vpop.xlane.xlu0 %10156  ;;  %15930 = vrcp.f32 %v10151_v20 }
0x124b   :  { %v10236_v9 = vpack.c.bf16 %v10216_v19, %v10215_v30  ;;  %15932 = vrcp.f32 %v10157_v60 }
0x124c   :  { %v10235_v22 = vpack.c.bf16 %v10214_v36, %v10213_v31  ;;  %v15923_v46 = vpop.eup %15922 }
0x124d   :  { %v10160_v7 = vpop.xlane.xlu1 %10159  ;;  %14807 = vmatmul.mubr.msk.bf16.vlgmr.msra.gmra.mrb[132].mxu0 %vm1309_vm4, %v10236_v9  ;;  %v15925_v37 = vpop.eup %15924  ;;  %v10217_v45 = vmul.f32 %v15923_v46, %v19457_v34 }
0x124e   :  { %15934 = vrcp.f32 %v10160_v7  ;;  %v10154_v48 = vpop.xlane.xlu0 %10153  ;;  %14801 = vmatmul.mubr.msk.bf16.vlgmr.msra.gmra.mrb[100].mxu1 %vm1309_vm4, %v10235_v22  ;;  %14817 = vmatpush3.bf16.msra.mxu0 %v19513_v25 }
0x124f   :  { %15936 = vrcp.f32 %v10154_v48  ;;  %14811 = vmatpush3.bf16.msra.mxu1 %v19511_v24  ;;  %14812 = vmatprep.mubr.msk.bf16.mxu1 %vm16007_vm3, %v20614_v38  ;;  %v10219_v24 = vmul.f32 %v15925_v37, %v19461_v16 }
0x1250   :  { %v15927_v49 = vpop.eup %15926  ;;  %14818 = vmatprep.mubr.msk.bf16.mxu0 %vm16007_vm3, %v20614_v38  ;;  %14822 = vmatprep.subr.bf16.mxu1 %v20614_v38 }
0x1251   :  { %v15929_v18 = vpop.eup %15928  ;;  %v10220_v27 = vmul.f32 %v15927_v49, %v19465_v52  ;;  %14828 = vmatprep.subr.bf16.mxu0 %v20614_v38  ;;  %v10947_v35 = vpop.permute.xlu1 %10946 }
0x1252   :  { %v10218_v25 = vmul.f32 %v15929_v18, %v19469_v8  ;;  %v10900_v13 = vpop.permute.xlu0 %10899 }
0x1253   :  { %v10238_v21 = vpack.c.bf16 %v10220_v27, %v10219_v24 }
0x1254   :  { %v10237_v51 = vpack.c.bf16 %v10218_v25, %v10217_v45  ;;  %v15931_v47 = vpop.eup %15930 }
0x1255   :  { %14819 = vmatmul.mubr.msk.bf16.vlgmr.msra.gmra.mrb[136].mxu0 %vm1309_vm4, %v10238_v21  ;;  %v15933_v52 = vpop.eup %15932  ;;  %v10221_v8 = vmul.f32 %v15931_v47, %v19473_v29  ;;  %v15097_v29 = vld [vmem:[%s20247_s5 + $0x10] sm:$0xff]  }
0x1256   :  { %14813 = vmatmul.mubr.msk.bf16.vlgmr.msra.gmra.mrb[104].mxu1 %vm1309_vm4, %v10237_v51  ;;  %14829 = vmatpush3.bf16.msra.mxu0 %v10947_v35  ;;  %v10223_v6 = vmul.f32 %v15933_v52, %v19477_v17 }
0x1257   :  { %14823 = vmatpush3.bf16.msra.mxu1 %v10900_v13  ;;  %14824 = vmatprep.mubr.msk.bf16.mxu1 %vm16007_vm3, %v20614_v38 }
0x1258   :  { %v15935_v44 = vpop.eup %15934  ;;  %14830 = vmatprep.mubr.msk.bf16.mxu0 %vm16007_vm3, %v20614_v38  ;;  %14834 = vmatprep.subr.bf16.mxu1 %v15096_v56 }
0x1259   :  { %v15937_v34 = vpop.eup %15936  ;;  %v10224_v16 = vmul.f32 %v15935_v44, %v19481_v39 }
0x125a   :  { %v10222_v5 = vmul.f32 %v15937_v34, %v19485_v33 }
0x125b   :  { %v10240_v55 = vpack.c.bf16 %v10224_v16, %v10223_v6 }
0x125c   :  { %v10239_v43 = vpack.c.bf16 %v10222_v5, %v10221_v8 }
0x125d   :  { %14831 = vmatmul.mubr.msk.bf16.vlgmr.msra.gmra.mrb[140].mxu0 %vm1309_vm4, %v10240_v55 }
0x125e   :  { %14825 = vmatmul.mubr.msk.bf16.vlgmr.msra.gmra.mrb[108].mxu1 %vm1309_vm4, %v10239_v43 }
0x125f   :  { %14835 = vmatpush3.bf16.msra.mxu1 %v15096_v56 }
0x1260   :  { %14868 = vmatprep.subr.bf16.mxu1 %v15097_v29 }
0x12f4   :  { %v10281_v17 = vpop.f32.mrb[80].mxu1 }
0x12f5   :  { %v14742_v39 = vpop.f32.mrb[81].mxu1 }
0x12f6   :  { %v10284_v33 = vpop.f32.mrb[82].mxu1 }
0x12f7   :  { %v10993_v59 = vpack.c.bf16 %v10284_v33, %v10281_v17  ;;  %v14743_v32 = vpop.f32.mrb[83].mxu1 }
0x12f8   :  { %v10328_v57 = vpop.f32.mrb[112].mxu0 }
0x12f9   :  { %v14748_v3 = vpop.f32.mrb[113].mxu0  ;;  %14836 = vmatprep.mubr.msk.bf16.mxu1 %vm1309_vm4, %v10993_v59 }
0x12fa   :  { %v10331_v2 = vpop.f32.mrb[114].mxu0 }
0x12fb   :  { %v10994_v54 = vpack.c.bf16 %v10331_v2, %v10328_v57  ;;  %v14749_v11 = vpop.f32.mrb[115].mxu0 }
0x12fd   :  { %14837 = vmatmul.mubr.msk.bf16.vlgmr.msra.gmra.mrb[112].mxu1 %vm1309_vm4, %v10994_v54 }
0x12fe   :  { %14869 = vmatpush3.bf16.msra.mxu1 %v15097_v29 }
0x12ff   :  { %14978 = vmatprep.subr.bf16.mxu1 %v20614_v38 }
0x1300   :  { %v10375_v50 = vpop.f32.mrb[84].mxu1  ;;  %v10422_v41 = vpop.f32.mrb[116].mxu0 }
0x1301   :  { %v14754_v23 = vpop.f32.mrb[85].mxu1  ;;  %v14760_v28 = vpop.f32.mrb[117].mxu0 }
0x1302   :  { %v10378_v58 = vpop.f32.mrb[86].mxu1  ;;  %v10425_v63 = vpop.f32.mrb[118].mxu0 }
0x1303   :  { %v10995_v26 = vpack.c.bf16 %v10378_v58, %v10375_v50  ;;  %v10996_v10 = vpack.c.bf16 %v10425_v63, %v10422_v41  ;;  %v14755_v15 = vpop.f32.mrb[87].mxu1  ;;  %v14761_v12 = vpop.f32.mrb[119].mxu0 }
0x1305   :  { %14840 = vmatprep.mubr.msk.bf16.mxu1 %vm1309_vm4, %v10995_v26 }
0x1306   :  { %14841 = vmatmul.mubr.msk.bf16.gmra.mrb[116].mxu1 %vm1309_vm4, %v10996_v10 }
0x1308   :  { %v10516_v61 = vpop.f32.mrb[120].mxu0 }
0x1309   :  { %v10469_v42 = vpop.f32.mrb[88].mxu1  ;;  %v14772_v14 = vpop.f32.mrb[121].mxu0 }
0x130a   :  { %v14766_v1 = vpop.f32.mrb[89].mxu1  ;;  %v10519_v19 = vpop.f32.mrb[122].mxu0  ;;  %v20657_v14 = vld [vmem:[#allocation19_spill] sm:$0xff] }
0x130b   :  { %v10472_v4 = vpop.f32.mrb[90].mxu1  ;;  %v10998_v31 = vpack.c.bf16 %v10519_v19, %v10516_v61  ;;  %v14773_v36 = vpop.f32.mrb[123].mxu0  ;;  %v20655_v61 = vpack.c.bf16 %v19269_v0, %v19267_v53  ;;  %v20656_v1 = vpack.c.bf16 %v19275_v40, %v19273_v62  ;;  %v20666_v0 = vld [vmem:[#allocation21_spill] sm:$0xff]  ;;  %v20669_v40 = vld [vmem:[#allocation27_spill] sm:$0xff] }
0x130c   :  { %v10997_v20 = vpack.c.bf16 %v10472_v4, %v10469_v42  ;;  %v14767_v30 = vpop.f32.mrb[91].mxu1  ;;  %v20658_v4 = vld [vmem:[#allocation14_spill] sm:$0xff]  ;;  %v20663_v36 = vld [vmem:[#allocation23_spill] sm:$0xff] }
0x130d   :  { %v20659_v19 = vpack.c.bf16 %v20657_v14, %v20658_v4 }
0x130e   :  { %14844 = vmatprep.mubr.msk.bf16.mxu1 %vm1309_vm4, %v10997_v20  ;;  %v20660_v20 = vld [vmem:[#allocation17_spill] sm:$0xff] }
0x130f   :  { %14845 = vmatmul.mubr.msk.bf16.gmra.mrb[120].mxu1 %vm1309_vm4, %v10998_v31  ;;  %v20661_v31 = vld [vmem:[#allocation16_spill] sm:$0xff] }
0x1310   :  { %v10610_v9 = vpop.f32.mrb[124].mxu0  ;;  %v20662_v30 = vpack.c.bf16 %v20660_v20, %v20661_v31 }
0x1311   :  { %v10563_v60 = vpop.f32.mrb[92].mxu1  ;;  %v14784_v7 = vpop.f32.mrb[125].mxu0 }
0x1312   :  { %v14778_v22 = vpop.f32.mrb[93].mxu1  ;;  %v10613_v48 = vpop.f32.mrb[126].mxu0 }
0x1313   :  { %v10566_v46 = vpop.f32.mrb[94].mxu1  ;;  %v11000_v49 = vpack.c.bf16 %v10613_v48, %v10610_v9  ;;  %v14785_v27 = vpop.f32.mrb[127].mxu0  ;;  %v20667_v9 = vld [vmem:[#allocation20_spill] sm:$0xff]  ;;  %v20670_v22 = vld [vmem:[#allocation22_spill] sm:$0xff] }
0x1314   :  { %v10999_v37 = vpack.c.bf16 %v10566_v46, %v10563_v60  ;;  %v14779_v18 = vpop.f32.mrb[95].mxu1  ;;  %v20664_v60 = vld [vmem:[#allocation18_spill] sm:$0xff]  ;;  %v20668_v62 = vpack.c.bf16 %v20666_v0, %v20667_v9  ;;  %v20671_v7 = vpack.c.bf16 %v20669_v40, %v20670_v22  ;;  %v20672_v46 = vld [vmem:[#allocation25_spill] sm:$0xff]  ;;  %v20673_v48 = vld [vmem:[#allocation24_spill] sm:$0xff] }
0x1315   :  { %v20665_v53 = vpack.c.bf16 %v20663_v36, %v20664_v60  ;;  %v20676_v18 = vld [vmem:[#allocation28_spill] sm:$0xff]  ;;  %v20704_v22 = vld [vmem:[#allocation51_spill] sm:$0xff] }
0x1316   :  { %14848 = vmatprep.mubr.msk.bf16.mxu1 %vm1309_vm4, %v10999_v37  ;;  %v20674_v37 = vpack.c.bf16 %v20672_v46, %v20673_v48  ;;  %v20705_v46 = vld [vmem:[#allocation56_spill] sm:$0xff] }
0x1317   :  { %14849 = vmatmul.mubr.msk.bf16.gmra.mrb[124].mxu1 %vm1309_vm4, %v11000_v49  ;;  %v20675_v49 = vld [vmem:[#allocation26_spill] sm:$0xff] }
0x1318   :  { %v10704_v24 = vpop.f32.mrb[128].mxu0  ;;  %v20677_v27 = vpack.c.bf16 %v20675_v49, %v20676_v18 }
0x1319   :  { %v10657_v45 = vpop.f32.mrb[96].mxu1  ;;  %v14796_v21 = vpop.f32.mrb[129].mxu0 }
0x131a   :  { %v14790_v25 = vpop.f32.mrb[97].mxu1  ;;  %v10707_v47 = vpop.f32.mrb[130].mxu0  ;;  %v20681_v21 = vld [vmem:[#allocation30_spill] sm:$0xff] }
0x131b   :  { %v10660_v51 = vpop.f32.mrb[98].mxu1  ;;  %v11002_v13 = vpack.c.bf16 %v10707_v47, %v10704_v24  ;;  %v14797_v44 = vpop.f32.mrb[131].mxu0  ;;  %v20679_v24 = vld [vmem:[#allocation29_spill] sm:$0xff] }
0x131c   :  { %v11001_v35 = vpack.c.bf16 %v10660_v51, %v10657_v45  ;;  %v14791_v52 = vpop.f32.mrb[99].mxu1  ;;  %v20678_v45 = vld [vmem:[#allocation31_spill] sm:$0xff]  ;;  %v20682_v51 = vld [vmem:[#allocation32_spill] sm:$0xff] }
0x131d   :  { %v20680_v25 = vpack.c.bf16 %v20678_v45, %v20679_v24  ;;  %v20683_v47 = vpack.c.bf16 %v20681_v21, %v20682_v51  ;;  %v20687_v44 = vld [vmem:[#allocation12_spill] sm:$0xff] }
0x131e   :  { %14852 = vmatprep.mubr.msk.bf16.mxu1 %vm1309_vm4, %v11001_v35  ;;  %v20684_v35 = vld [vmem:[#allocation11_spill] sm:$0xff] }
0x131f   :  { %14853 = vmatmul.mubr.msk.bf16.gmra.mrb[128].mxu1 %vm1309_vm4, %v11002_v13  ;;  %v20685_v13 = vld [vmem:[#allocation33_spill] sm:$0xff] }
0x1320   :  { %v10798_v16 = vpop.f32.mrb[132].mxu0  ;;  %v20686_v52 = vpack.c.bf16 %v20684_v35, %v20685_v13 }
0x1321   :  { %v10751_v34 = vpop.f32.mrb[100].mxu1  ;;  %v14808_v6 = vpop.f32.mrb[133].mxu0 }
0x1322   :  { %v14802_v8 = vpop.f32.mrb[101].mxu1  ;;  %v10801_v55 = vpop.f32.mrb[134].mxu0  ;;  %v20691_v6 = vld [vmem:[#allocation13_spill] sm:$0xff] }
0x1323   :  { %v10754_v5 = vpop.f32.mrb[102].mxu1  ;;  %v11004_v56 = vpack.c.bf16 %v10801_v55, %v10798_v16  ;;  %v14809_v17 = vpop.f32.mrb[135].mxu0  ;;  %v20690_v8 = vld [vmem:[#allocation15_spill] sm:$0xff]  ;;  %v20693_v55 = vld [vmem:[#allocation62_spill] sm:$0xff] }
0x1324   :  { %v11003_v43 = vpack.c.bf16 %v10754_v5, %v10751_v34  ;;  %v14803_v29 = vpop.f32.mrb[103].mxu1  ;;  %v20688_v34 = vld [vmem:[#allocation10_spill] sm:$0xff]  ;;  %v20692_v5 = vpack.c.bf16 %v20690_v8, %v20691_v6  ;;  %v20697_v17 = vld [vmem:[#allocation61_spill] sm:$0xff] }
0x1325   :  { %v20689_v16 = vpack.c.bf16 %v20687_v44, %v20688_v34  ;;  %v20696_v29 = vld [vmem:[#allocation63_spill] sm:$0xff] }
0x1326   :  { %14856 = vmatprep.mubr.msk.bf16.mxu1 %vm1309_vm4, %v11003_v43  ;;  %v20694_v43 = vld [vmem:[#allocation60_spill] sm:$0xff] }
0x1327   :  { %14857 = vmatmul.mubr.msk.bf16.gmra.mrb[132].mxu1 %vm1309_vm4, %v11004_v56  ;;  %v20695_v56 = vpack.c.bf16 %v20693_v55, %v20694_v43  ;;  %v20708_v55 = vld [vmem:[#allocation48_spill] sm:$0xff] }
0x1328   :  { %v10892_v33 = vpop.f32.mrb[136].mxu0 }
0x1329   :  { %v10845_v39 = vpop.f32.mrb[104].mxu1  ;;  %v14820_v32 = vpop.f32.mrb[137].mxu0 }
0x132a   :  { %v14814_v59 = vpop.f32.mrb[105].mxu1  ;;  %v10895_v3 = vpop.f32.mrb[138].mxu0 }
0x132b   :  { %v10848_v57 = vpop.f32.mrb[106].mxu1  ;;  %v11006_v54 = vpack.c.bf16 %v10895_v3, %v10892_v33  ;;  %v14821_v50 = vpop.f32.mrb[139].mxu0  ;;  %v19705_v33 = vld [vmem:[%s20248_s6 + $0x1] ss:$0 sm:$0xff] }
0x132c   :  { %v11005_v2 = vpack.c.bf16 %v10848_v57, %v10845_v39  ;;  %v14815_v11 = vpop.f32.mrb[107].mxu1  ;;  %v20698_v39 = vpack.c.bf16 %v20696_v29, %v20697_v17 }
0x132d   :  { %v20699_v11 = vld [vmem:[#allocation46_spill] sm:$0xff] }
0x132e   :  { %14860 = vmatprep.mubr.msk.bf16.mxu1 %vm1309_vm4, %v11005_v2 }
0x132f   :  { %14861 = vmatmul.mubr.msk.bf16.gmra.mrb[136].mxu1 %vm1309_vm4, %v11006_v54 }
0x1330   :  { %v10986_v23 = vpop.f32.mrb[140].mxu0 }
0x1331   :  { %v10939_v41 = vpop.f32.mrb[108].mxu1  ;;  %v14832_v58 = vpop.f32.mrb[141].mxu0 }
0x1332   :  { %v14826_v28 = vpop.f32.mrb[109].mxu1  ;;  %v10989_v26 = vpop.f32.mrb[142].mxu0 }
0x1333   :  { %v10942_v63 = vpop.f32.mrb[110].mxu1  ;;  %v11008_v15 = vpack.c.bf16 %v10989_v26, %v10986_v23  ;;  %v14833_v42 = vpop.f32.mrb[143].mxu0 }
0x1334   :  { %v11007_v10 = vpack.c.bf16 %v10942_v63, %v10939_v41  ;;  %v14827_v12 = vpop.f32.mrb[111].mxu1  ;;  %v20700_v41 = vld [vmem:[#allocation47_spill] sm:$0xff]  ;;  %v20701_v63 = vld [vmem:[#allocation37_spill] sm:$0xff] }
0x1336   :  { %14864 = vmatprep.mubr.msk.bf16.mxu1 %vm1309_vm4, %v11007_v10 }
0x1337   :  { %14865 = vmatmul.mubr.msk.bf16.gmra.mrb[140].mxu1 %vm1309_vm4, %v11008_v15  ;;  %v20702_v15 = vld [vmem:[#allocation49_spill] sm:$0xff] }
0x1338   :  { %14870 = vmatprep.mubr.msk.bf16.mxu1 %vm1309_vm4, %v20655_v61 }
0x133f   :  { %14871 = vmatmul.mubr.msk.bf16.vlgmr.msra.gmra.mrb[112].mxu1 %vm1309_vm4, %v20656_v1 }
0x1340   :  { %14874 = vmatprep.mubr.msk.bf16.mxu1 %vm1309_vm4, %v20659_v19 }
0x1347   :  { %14875 = vmatmul.mubr.msk.bf16.gmra.mrb[116].mxu1 %vm1309_vm4, %v20662_v30 }
0x1348   :  { %14878 = vmatprep.mubr.msk.bf16.mxu1 %vm1309_vm4, %v20665_v53  ;;  %v20703_v53 = vld [vmem:[#allocation52_spill] sm:$0xff] }
0x134f   :  { %14879 = vmatmul.mubr.msk.bf16.gmra.mrb[120].mxu1 %vm1309_vm4, %v20668_v62 }
0x1350   :  { %14882 = vmatprep.mubr.msk.bf16.mxu1 %vm1309_vm4, %v20671_v7 }
0x1357   :  { %14883 = vmatmul.mubr.msk.bf16.gmra.mrb[124].mxu1 %vm1309_vm4, %v20674_v37  ;;  %v20706_v37 = vld [vmem:[#allocation39_spill] sm:$0xff] }
0x1358   :  { %14886 = vmatprep.mubr.msk.bf16.mxu1 %vm1309_vm4, %v20677_v27 }
0x135f   :  { %14887 = vmatmul.mubr.msk.bf16.gmra.mrb[128].mxu1 %vm1309_vm4, %v20680_v25 }
0x1360   :  { %14890 = vmatprep.mubr.msk.bf16.mxu1 %vm1309_vm4, %v20683_v47 }
0x1367   :  { %14891 = vmatmul.mubr.msk.bf16.gmra.mrb[132].mxu1 %vm1309_vm4, %v20686_v52 }
0x1368   :  { %14894 = vmatprep.mubr.msk.bf16.mxu1 %vm1309_vm4, %v20689_v16  ;;  %v20707_v16 = vld [vmem:[#allocation41_spill] sm:$0xff] }
0x136f   :  { %14895 = vmatmul.mubr.msk.bf16.gmra.mrb[136].mxu1 %vm1309_vm4, %v20692_v5 }
0x1370   :  { %14898 = vmatprep.mubr.msk.bf16.mxu1 %vm1309_vm4, %v20695_v56  ;;  %v20709_v56 = vld [vmem:[#allocation50_spill] sm:$0xff] }
0x1377   :  { %14899 = vmatmul.mubr.msk.bf16.gmra.mrb[140].mxu1 %vm1309_vm4, %v20698_v39  ;;  %v20710_v39 = vld [vmem:[#allocation45_spill] sm:$0xff] }
0x1378   :  { %14982 = vmatprep.mubr.msk.bf16.mxu1 %vm16007_vm3, %v20614_v38 }
0x1412   :  { %v14872_v59 = vpop.f32.mrb[112].mxu1 }
0x1413   :  { %v11449_v32 = vmul.f32 %v14872_v59, %v19705_v33  ;;  %v11312_v57 = vpop.f32.mrb[113].mxu1 }
0x1414   :  { %v11447_v3 = vmul.f32 %v19705_v33, %v11312_v57  ;;  %v14873_v2 = vpop.f32.mrb[114].mxu1 }
0x1415   :  { %v11315_v54 = vpop.f32.mrb[115].mxu1  ;;  %v19710_v50 = vadd.f32 %v11449_v32, %v20699_v11  ;;  %v11450_v28 = vmul.f32 %v14873_v2, %v19705_v33 }
0x1416   :  { %v19713_v23 = vadd.f32 %v11447_v3, %v20700_v41  ;;  %v11448_v58 = vmul.f32 %v19705_v33, %v11315_v54 }
0x1417   :  { %v19723_v12 = vadd.f32 %v11450_v28, %v20702_v15  ;;  %v11513_v14 = vmul.f32 %v19710_v50, %v19710_v50 }
0x1418   :  { %v19718_v26 = vadd.f32 %v11448_v58, %v20701_v63  ;;  %v11511_v10 = vmul.f32 %v19713_v23, %v19713_v23 }
0x1419   :  { %v11549_v62 = vsel %vm449_vm1, %v11513_v14, 0.0  ;;  %v11514_v40 = vmul.f32 %v19723_v12, %v19723_v12 }
0x141a   :  { %v14876_v42 = vpop.f32.mrb[116].mxu1  ;;  %v11543_v61 = vsel %vm449_vm1, %v11511_v10, 0.0  ;;  %v11512_v1 = vmul.f32 %v19718_v26, %v19718_v26 }
0x141b   :  { %11544 = vadd.xlane.f32.xlu0 %v11543_v61  ;;  %v11328_v4 = vpop.f32.mrb[117].mxu1  ;;  %v11453_v30 = vmul.f32 %v14876_v42, %v19705_v33  ;;  %v11552_v27 = vsel %vm449_vm1, %v11514_v40, 0.0  ;;  %v20711_v42 = vld [vmem:[#allocation34_spill] sm:$0xff] }
0x141c   :  { %v11451_v19 = vmul.f32 %v19705_v33, %v11328_v4  ;;  %v14877_v20 = vpop.f32.mrb[118].mxu1  ;;  %v11546_v31 = vsel %vm449_vm1, %v11512_v1, 0.0 }
0x141d   :  { %v11454_v36 = vmul.f32 %v14877_v20, %v19705_v33  ;;  %11547 = vadd.xlane.f32.xlu1 %v11546_v31  ;;  %v11331_v60 = vpop.f32.mrb[119].mxu1  ;;  %v19748_v49 = vadd.f32 %v11453_v30, %v20706_v37  ;;  %v20713_v31 = vld [vmem:[#allocation35_spill] sm:$0xff] }
0x141e   :  { %v19735_v0 = vadd.f32 %v11451_v19, %v20703_v53  ;;  %v11452_v9 = vmul.f32 %v19705_v33, %v11331_v60  ;;  %v20712_v19 = vld [vmem:[#allocation38_spill] sm:$0xff]  ;;  %v20714_v60 = vld [vmem:[#allocation36_spill] sm:$0xff] }
0x141f   :  { %11550 = vadd.xlane.f32.xlu0 %v11549_v62  ;;  %v19742_v7 = vadd.f32 %v11454_v36, %v20704_v22  ;;  %v11517_v44 = vmul.f32 %v19748_v49, %v19748_v49 }
0x1420   :  { %v19745_v48 = vadd.f32 %v11452_v9, %v20705_v46  ;;  %v11515_v24 = vmul.f32 %v19735_v0, %v19735_v0 }
0x1421   :  { %v11518_v35 = vmul.f32 %v19742_v7, %v19742_v7  ;;  %v11561_v57 = vsel %vm449_vm1, %v11517_v44, 0.0  ;;  %v20716_v44 = vld [vmem:[#allocation54_spill] sm:$0xff] }
0x1422   :  { %v14880_v18 = vpop.f32.mrb[120].mxu1  ;;  %v11516_v45 = vmul.f32 %v19745_v48, %v19745_v48  ;;  %v11555_v5 = vsel %vm449_vm1, %v11515_v24, 0.0 }
0x1423   :  { %11553 = vadd.xlane.f32.xlu0 %v11552_v27  ;;  %v11344_v25 = vpop.f32.mrb[121].mxu1  ;;  %v11457_v34 = vmul.f32 %v14880_v18, %v19705_v33  ;;  %v11564_v17 = vsel %vm449_vm1, %v11518_v35, 0.0 }
0x1424   :  { %v11455_v21 = vmul.f32 %v19705_v33, %v11344_v25  ;;  %v14881_v51 = vpop.f32.mrb[122].mxu1  ;;  %v11558_v47 = vsel %vm449_vm1, %v11516_v45, 0.0 }
0x1425   :  { %v11458_v13 = vmul.f32 %v14881_v51, %v19705_v33  ;;  %11559 = vadd.xlane.f32.xlu1 %v11558_v47  ;;  %v11347_v52 = vpop.f32.mrb[123].mxu1  ;;  %v19776_v59 = vadd.f32 %v11457_v34, %v20710_v39  ;;  %v20715_v47 = vld [vmem:[#allocation40_spill] sm:$0xff] }
0x1426   :  { %v19764_v8 = vadd.f32 %v11455_v21, %v20707_v16  ;;  %v11456_v6 = vmul.f32 %v19705_v33, %v11347_v52  ;;  %v20717_v16 = vld [vmem:[#allocation43_spill] sm:$0xff] }
0x1427   :  { %11556 = vadd.xlane.f32.xlu0 %v11555_v5  ;;  %v19769_v43 = vadd.f32 %v11458_v13, %v20708_v55  ;;  %v11521_v4 = vmul.f32 %v19776_v59, %v19776_v59  ;;  %v20718_v55 = vld [vmem:[#allocation53_spill] sm:$0xff] }
0x1428   :  { %v19772_v29 = vadd.f32 %v11456_v6, %v20709_v56  ;;  %v11519_v2 = vmul.f32 %v19764_v8, %v19764_v8 }
0x1429   :  { %11565 = vadd.xlane.f32.xlu1 %v11564_v17  ;;  %v11522_v58 = vmul.f32 %v19769_v43, %v19769_v43  ;;  %v11573_v62 = vsel %vm449_vm1, %v11521_v4, 0.0 }
0x142a   :  { %v14884_v32 = vpop.f32.mrb[124].mxu1  ;;  %v11520_v3 = vmul.f32 %v19772_v29, %v19772_v29  ;;  %v11567_v14 = vsel %vm449_vm1, %v11519_v2, 0.0  ;;  %v15098_v2 = vld [vmem:[%s20249_s7 + $0x10] sm:$0xff]  }
0x142b   :  { %11562 = vadd.xlane.f32.xlu0 %v11561_v57  ;;  %v11360_v54 = vpop.f32.mrb[125].mxu1  ;;  %v11461_v63 = vmul.f32 %v14884_v32, %v19705_v33  ;;  %v11576_v36 = vsel %vm449_vm1, %v11522_v58, 0.0  ;;  %14902 = vmatprep.subr.bf16.mxu0 %v15098_v2 }
0x142c   :  { %v11459_v11 = vmul.f32 %v19705_v33, %v11360_v54  ;;  %v14885_v41 = vpop.f32.mrb[126].mxu1  ;;  %v11570_v28 = vsel %vm449_vm1, %v11520_v3, 0.0  ;;  %14903 = vmatpush3.bf16.msra.mxu0 %v15098_v2 }
0x142d   :  { %v11462_v10 = vmul.f32 %v14885_v41, %v19705_v33  ;;  %11571 = vadd.xlane.f32.xlu1 %v11570_v28  ;;  %v11363_v15 = vpop.f32.mrb[127].mxu1  ;;  %v19804_v53 = vadd.f32 %v11461_v63, %v20714_v60  ;;  %v20721_v60 = vld [vmem:[#allocation42_spill] sm:$0xff] }
0x142e   :  { %v19790_v61 = vadd.f32 %v11459_v11, %v20711_v42  ;;  %v11460_v1 = vmul.f32 %v19705_v33, %v11363_v15  ;;  %v20719_v15 = vld [vmem:[#allocation55_spill] sm:$0xff] }
0x142f   :  { %11568 = vadd.xlane.f32.xlu0 %v11567_v14  ;;  %v19797_v20 = vadd.f32 %v11462_v10, %v20712_v19  ;;  %v11525_v21 = vmul.f32 %v19804_v53, %v19804_v53  ;;  %v15099_v19 = vld [vmem:[%s20249_s7 + $0x18] sm:$0xff]  }
0x1430   :  { %v19800_v30 = vadd.f32 %v11460_v1, %v20713_v31  ;;  %v11523_v22 = vmul.f32 %v19790_v61, %v19790_v61  ;;  %v20720_v31 = vld [vmem:[#allocation44_spill] sm:$0xff]  ;;  %14904 = vmatprep.subr.bf16.mxu0 %v15099_v19 }
0x1431   :  { %11577 = vadd.xlane.f32.xlu1 %v11576_v36  ;;  %v11526_v45 = vmul.f32 %v19797_v20, %v19797_v20  ;;  %v11585_v39 = vsel %vm449_vm1, %v11525_v21, 0.0  ;;  %14905 = vmatpush3.bf16.msra.mxu0 %v15099_v19 }
0x1432   :  { %v14888_v9 = vpop.f32.mrb[128].mxu1  ;;  %v11524_v40 = vmul.f32 %v19800_v30, %v19800_v30  ;;  %v11579_v52 = vsel %vm449_vm1, %v11523_v22, 0.0 }
0x1433   :  { %11574 = vadd.xlane.f32.xlu0 %v11573_v62  ;;  %v11376_v46 = vpop.f32.mrb[129].mxu1  ;;  %v11465_v51 = vmul.f32 %v14888_v9, %v19705_v33  ;;  %v11588_v5 = vsel %vm449_vm1, %v11526_v45, 0.0 }
0x1434   :  { %v11463_v37 = vmul.f32 %v19705_v33, %v11376_v46  ;;  %v14889_v18 = vpop.f32.mrb[130].mxu1  ;;  %v11582_v27 = vsel %vm449_vm1, %v11524_v40, 0.0  ;;  %v20722_v40 = vld [vmem:[#allocation57_spill] sm:$0xff] }
0x1435   :  { %v11466_v24 = vmul.f32 %v14889_v18, %v19705_v33  ;;  %11583 = vadd.xlane.f32.xlu1 %v11582_v27  ;;  %v11379_v25 = vpop.f32.mrb[131].mxu1  ;;  %v19832_v56 = vadd.f32 %v11465_v51, %v20718_v55 }
0x1436   :  { %v19820_v35 = vadd.f32 %v11463_v37, %v20715_v47  ;;  %v11464_v13 = vmul.f32 %v19705_v33, %v11379_v25 }
0x1437   :  { %11580 = vadd.xlane.f32.xlu0 %v11579_v52  ;;  %v19825_v34 = vadd.f32 %v11466_v24, %v20716_v44  ;;  %v11529_v4 = vmul.f32 %v19832_v56, %v19832_v56 }
0x1438   :  { %v19828_v6 = vadd.f32 %v11464_v13, %v20717_v16  ;;  %v11527_v57 = vmul.f32 %v19820_v35, %v19820_v35  ;;  %v20723_v16 = vld [vmem:[#allocation58_spill] sm:$0xff] }
0x1439   :  { %11589 = vadd.xlane.f32.xlu1 %v11588_v5  ;;  %v11530_v28 = vmul.f32 %v19825_v34, %v19825_v34  ;;  %v11597_v37 = vsel %vm449_vm1, %v11529_v4, 0.0 }
0x143a   :  { %v14892_v17 = vpop.f32.mrb[132].mxu1  ;;  %v11528_v32 = vmul.f32 %v19828_v6, %v19828_v6  ;;  %v11591_v14 = vsel %vm449_vm1, %v11527_v57, 0.0  ;;  %v20725_v57 = vld [vmem:[#allocation3_spill] sm:$0xff] }
0x143b   :  { %11586 = vadd.xlane.f32.xlu0 %v11585_v39  ;;  %v11392_v3 = vpop.f32.mrb[133].mxu1  ;;  %v11469_v58 = vmul.f32 %v14892_v17, %v19705_v33  ;;  %v11600_v62 = vsel %vm449_vm1, %v11530_v28, 0.0  ;;  %v20724_v39 = vld [vmem:[#allocation2_spill] sm:$0xff] }
0x143c   :  { %v11467_v54 = vmul.f32 %v19705_v33, %v11392_v3  ;;  %v14893_v11 = vpop.f32.mrb[134].mxu1  ;;  %v11594_v41 = vsel %vm449_vm1, %v11528_v32, 0.0 }
0x143d   :  { %v11470_v63 = vmul.f32 %v14893_v11, %v19705_v33  ;;  %11595 = vadd.xlane.f32.xlu1 %v11594_v41  ;;  %v11395_v10 = vpop.f32.mrb[135].mxu1  ;;  %v19866_v22 = vadd.f32 %v11469_v58, %v20722_v40 }
0x143e   :  { %v19849_v42 = vadd.f32 %v11467_v54, %v20719_v15  ;;  %v11468_v1 = vmul.f32 %v19705_v33, %v11395_v10  ;;  %v20726_v54 = vld [vmem:[#allocation59_spill] sm:$0xff] }
0x143f   :  { %11592 = vadd.xlane.f32.xlu0 %v11591_v14  ;;  %v19859_v36 = vadd.f32 %v11470_v63, %v20720_v31  ;;  %v11533_v52 = vmul.f32 %v19866_v22, %v19866_v22 }
0x1440   :  { %v19862_v9 = vadd.f32 %v11468_v1, %v20721_v60  ;;  %v11531_v27 = vmul.f32 %v19849_v42, %v19849_v42 }
0x1441   :  { %11601 = vadd.xlane.f32.xlu1 %v11600_v62  ;;  %v11534_v51 = vmul.f32 %v19859_v36, %v19859_v36  ;;  %v11609_v28 = vsel %vm449_vm1, %v11533_v52, 0.0  ;;  %v20727_v62 = vld [vmem:[#allocation4_spill] sm:$0xff] }
0x1442   :  { %v14896_v46 = vpop.f32.mrb[136].mxu1  ;;  %v11532_v18 = vmul.f32 %v19862_v9, %v19862_v9  ;;  %v11603_v17 = vsel %vm449_vm1, %v11531_v27, 0.0  ;;  %v20728_v27 = vld [vmem:[#allocation7_spill] sm:$0xff] }
0x1443   :  { %11598 = vadd.xlane.f32.xlu0 %v11597_v37  ;;  %v11408_v45 = vpop.f32.mrb[137].mxu1  ;;  %v11473_v44 = vmul.f32 %v14896_v46, %v19705_v33  ;;  %v11612_v2 = vsel %vm449_vm1, %v11534_v51, 0.0  ;;  %v20730_v51 = vld [vmem:[#allocation5_spill] sm:$0xff] }
0x1444   :  { %v11471_v24 = vmul.f32 %v19705_v33, %v11408_v45  ;;  %v14897_v25 = vpop.f32.mrb[138].mxu1  ;;  %v11606_v21 = vsel %vm449_vm1, %v11532_v18, 0.0 }
0x1445   :  { %v11474_v47 = vmul.f32 %v14897_v25, %v19705_v33  ;;  %11607 = vadd.xlane.f32.xlu1 %v11606_v21  ;;  %v11411_v13 = vpop.f32.mrb[139].mxu1  ;;  %v19894_v11 = vadd.f32 %v11473_v44, %v20726_v54 }
0x1446   :  { %v19882_v5 = vadd.f32 %v11471_v24, %v20723_v16  ;;  %v11472_v55 = vmul.f32 %v19705_v33, %v11411_v13  ;;  %v20729_v24 = vld [vmem:[#allocation8_spill] sm:$0xff] }
0x1447   :  { %11604 = vadd.xlane.f32.xlu0 %v11603_v17  ;;  %v19887_v32 = vadd.f32 %v11474_v47, %v20724_v39  ;;  %v11537_v18 = vmul.f32 %v19894_v11, %v19894_v11 }
0x1448   :  { %v19890_v3 = vadd.f32 %v11472_v55, %v20725_v57  ;;  %v11535_v63 = vmul.f32 %v19882_v5, %v19882_v5 }
0x1449   :  { %11613 = vadd.xlane.f32.xlu1 %v11612_v2  ;;  %v11538_v19 = vmul.f32 %v19887_v32, %v19887_v32  ;;  %v19940_v2 = vld [vmem:[%s20250_s8 + $0x20] sm:$0xff]  }
0x144a   :  { %v14900_v41 = vpop.f32.mrb[140].mxu1  ;;  %v11536_v58 = vmul.f32 %v19890_v3, %v19890_v3  ;;  %v11615_v37 = vsel %vm449_vm1, %v11535_v63, 0.0  ;;  %14938 = vmatprep.subr.bf16.mxu0 %v19940_v2 }
0x144b   :  { %v11477_v10 = vmul.f32 %v14900_v41, %v19705_v33  ;;  %11610 = vadd.xlane.f32.xlu0 %v11609_v28  ;;  %v11424_v15 = vpop.f32.mrb[141].mxu1  ;;  %v11624_v21 = vsel %vm449_vm1, %v11538_v19, 0.0 }
0x144c   :  { %v11475_v1 = vmul.f32 %v19705_v33, %v11424_v15  ;;  %v14901_v14 = vpop.f32.mrb[142].mxu1  ;;  %v11618_v4 = vsel %vm449_vm1, %v11536_v58, 0.0 }
0x144d   :  { %v11478_v31 = vmul.f32 %v14901_v14, %v19705_v33  ;;  %11619 = vadd.xlane.f32.xlu1 %v11618_v4  ;;  %v11427_v60 = vpop.f32.mrb[143].mxu1  ;;  %v19922_v47 = vadd.f32 %v11477_v10, %v20730_v51 }
0x144e   :  { %v19908_v40 = vadd.f32 %v11475_v1, %v20727_v62  ;;  %v11476_v46 = vmul.f32 %v19705_v33, %v11427_v60  ;;  %v11621_v33 = vsel %vm449_vm1, %v11537_v18, 0.0 }
0x144f   :  { %11616 = vadd.xlane.f32.xlu0 %v11615_v37  ;;  %v19915_v45 = vadd.f32 %v11478_v31, %v20728_v27  ;;  %v11541_v17 = vmul.f32 %v19922_v47, %v19922_v47 }
0x1450   :  { %v19918_v25 = vadd.f32 %v11476_v46, %v20729_v24  ;;  %v11539_v52 = vmul.f32 %v19908_v40, %v19908_v40 }
0x1451   :  { %11625 = vadd.xlane.f32.xlu1 %v11624_v21  ;;  %v11542_v16 = vmul.f32 %v19915_v45, %v19915_v45  ;;  %v11633_v57 = vsel %vm449_vm1, %v11541_v17, 0.0 }
0x1452   :  { %v11540_v13 = vmul.f32 %v19918_v25, %v19918_v25  ;;  %v11627_v55 = vsel %vm449_vm1, %v11539_v52, 0.0 }
0x1453   :  { %11622 = vadd.xlane.f32.xlu0 %v11621_v33  ;;  %v11636_v39 = vsel %vm449_vm1, %v11542_v16, 0.0 }
0x1454   :  { %v11630_v44 = vsel %vm449_vm1, %v11540_v13, 0.0 }
0x1455   :  { %11631 = vadd.xlane.f32.xlu1 %v11630_v44 }
0x1457   :  { %11628 = vadd.xlane.f32.xlu0 %v11627_v55 }
0x1459   :  { %11637 = vadd.xlane.f32.xlu1 %v11636_v39 }
0x145b   :  { %11634 = vadd.xlane.f32.xlu0 %v11633_v57 }
0x14a8   :  { %v11545_v54 = vpop.xlane.xlu0 %11544 }
0x14a9   :  { %v11639_v41 = vmul.f32 0.03125, %v11545_v54 }
0x14aa   :  { %v11548_v28 = vpop.xlane.xlu1 %11547 }
0x14ab   :  { %v11671_v58 = vadd.f32 1e-06, %v11639_v41  ;;  %v11640_v63 = vmul.f32 0.03125, %v11548_v28 }
0x14ac   :  { %v11551_v10 = vpop.xlane.xlu0 %11550 }
0x14ad   :  { %15938 = vrsqrt.f32 %v11671_v58  ;;  %v11672_v15 = vadd.f32 1e-06, %v11640_v63  ;;  %v11641_v1 = vmul.f32 0.03125, %v11551_v10 }
0x14af   :  { %15940 = vrsqrt.f32 %v11672_v15  ;;  %v11673_v14 = vadd.f32 1e-06, %v11641_v1 }
0x14b0   :  { %v11554_v4 = vpop.xlane.xlu0 %11553 }
0x14b1   :  { %v11642_v19 = vmul.f32 0.03125, %v11554_v4  ;;  %15942 = vrsqrt.f32 %v11673_v14 }
0x14b2   :  { %v11560_v31 = vpop.xlane.xlu1 %11559 }
0x14b3   :  { %v11674_v60 = vadd.f32 1e-06, %v11642_v19  ;;  %v11644_v62 = vmul.f32 0.03125, %v11560_v31 }
0x14b4   :  { %v11557_v46 = vpop.xlane.xlu0 %11556 }
0x14b5   :  { %15944 = vrsqrt.f32 %v11674_v60  ;;  %v11676_v37 = vadd.f32 1e-06, %v11644_v62  ;;  %v11643_v18 = vmul.f32 0.03125, %v11557_v46 }
0x14b6   :  { %v11566_v27 = vpop.xlane.xlu1 %11565 }
0x14b7   :  { %v15939_v24 = vpop.eup %15938  ;;  %15946 = vrsqrt.f32 %v11676_v37  ;;  %v11675_v21 = vadd.f32 1e-06, %v11643_v18  ;;  %v11646_v51 = vmul.f32 0.03125, %v11566_v27  ;;  %v15101_v27 = vld [vmem:[%s20250_s8 + $0x28] sm:$0xff]  }
0x14b8   :  { %v11563_v33 = vpop.xlane.xlu0 %11562  ;;  %v11735_v55 = vmul.f32 %v15939_v24, %v19713_v23 }
0x14b9   :  { %v15941_v13 = vpop.eup %15940  ;;  %15948 = vrsqrt.f32 %v11675_v21  ;;  %v11678_v52 = vadd.f32 1e-06, %v11646_v51  ;;  %v11645_v44 = vmul.f32 0.03125, %v11563_v33 }
0x14ba   :  { %v11572_v16 = vpop.xlane.xlu1 %11571  ;;  %v11736_v17 = vmul.f32 %v15941_v13, %v19718_v26 }
0x14bb   :  { %15950 = vrsqrt.f32 %v11678_v52  ;;  %v11677_v39 = vadd.f32 1e-06, %v11645_v44  ;;  %v11648_v57 = vmul.f32 0.03125, %v11572_v16  ;;  %v15943_v28 = vpop.eup %15942 }
0x14bc   :  { %v11569_v54 = vpop.xlane.xlu0 %11568  ;;  %v11767_v41 = vpack.c.bf16 %v11736_v17, %v11735_v55  ;;  %v11737_v4 = vmul.f32 %v15943_v28, %v19710_v50 }
0x14bd   :  { %15952 = vrsqrt.f32 %v11677_v39  ;;  %v11680_v58 = vadd.f32 1e-06, %v11648_v57  ;;  %v11647_v63 = vmul.f32 0.03125, %v11569_v54 }
0x14be   :  { %14906 = vmatprep.mubr.msk.bf16.mxu0 %vm449_vm1, %v11767_v41  ;;  %v11578_v10 = vpop.xlane.xlu1 %11577 }
0x14bf   :  { %v15945_v15 = vpop.eup %15944  ;;  %15954 = vrsqrt.f32 %v11680_v58  ;;  %v11679_v1 = vadd.f32 1e-06, %v11647_v63  ;;  %v11650_v14 = vmul.f32 0.03125, %v11578_v10 }
0x14c0   :  { %v11738_v19 = vmul.f32 %v15945_v15, %v19723_v12  ;;  %v11575_v31 = vpop.xlane.xlu0 %11574 }
0x14c1   :  { %v15947_v60 = vpop.eup %15946  ;;  %15956 = vrsqrt.f32 %v11679_v1  ;;  %v11682_v62 = vadd.f32 1e-06, %v11650_v14  ;;  %v11649_v46 = vmul.f32 0.03125, %v11575_v31 }
0x14c2   :  { %v11768_v37 = vpack.c.bf16 %v11738_v19, %v11737_v4  ;;  %v11584_v18 = vpop.xlane.xlu1 %11583  ;;  %v11740_v52 = vmul.f32 %v15947_v60, %v19745_v48 }
0x14c3   :  { %v15949_v24 = vpop.eup %15948  ;;  %15958 = vrsqrt.f32 %v11682_v62  ;;  %v11681_v21 = vadd.f32 1e-06, %v11649_v46  ;;  %v11652_v51 = vmul.f32 0.03125, %v11584_v18 }
0x14c4   :  { %14907 = vmatmul.mubr.msk.bf16.vlgmr.msra.gmra.mrb[144].mxu0 %vm449_vm1, %v11768_v37  ;;  %v11581_v33 = vpop.xlane.xlu0 %11580  ;;  %v11739_v13 = vmul.f32 %v15949_v24, %v19735_v0 }
0x14c5   :  { %v15951_v44 = vpop.eup %15950  ;;  %15960 = vrsqrt.f32 %v11681_v21  ;;  %v11684_v16 = vadd.f32 1e-06, %v11652_v51  ;;  %v11651_v55 = vmul.f32 0.03125, %v11581_v33  ;;  %14939 = vmatpush3.bf16.msra.mxu0 %v19940_v2 }
0x14c6   :  { %v11590_v17 = vpop.xlane.xlu1 %11589  ;;  %v11769_v39 = vpack.c.bf16 %v11740_v52, %v11739_v13  ;;  %14940 = vmatprep.subr.bf16.mxu0 %v15101_v27  ;;  %v11742_v28 = vmul.f32 %v15951_v44, %v19742_v7 }
0x14c7   :  { %v15953_v57 = vpop.eup %15952  ;;  %15962 = vrsqrt.f32 %v11684_v16  ;;  %v11683_v54 = vadd.f32 1e-06, %v11651_v55  ;;  %v11654_v41 = vmul.f32 0.03125, %v11590_v17 }
0x14c8   :  { %v11741_v58 = vmul.f32 %v15953_v57, %v19748_v49  ;;  %14910 = vmatprep.mubr.msk.bf16.mxu0 %vm449_vm1, %v11769_v39  ;;  %v11587_v63 = vpop.xlane.xlu0 %11586 }
0x14c9   :  { %v15955_v10 = vpop.eup %15954  ;;  %15964 = vrsqrt.f32 %v11683_v54  ;;  %v11686_v15 = vadd.f32 1e-06, %v11654_v41  ;;  %v11653_v1 = vmul.f32 0.03125, %v11587_v63  ;;  %14941 = vmatpush3.bf16.msra.mxu0 %v15101_v27 }
0x14ca   :  { %v11770_v2 = vpack.c.bf16 %v11742_v28, %v11741_v58  ;;  %v11596_v14 = vpop.xlane.xlu1 %11595  ;;  %v11744_v46 = vmul.f32 %v15955_v10, %v19772_v29 }
0x14cb   :  { %v15957_v4 = vpop.eup %15956  ;;  %15966 = vrsqrt.f32 %v11686_v15  ;;  %v11685_v19 = vadd.f32 1e-06, %v11653_v1  ;;  %v11656_v31 = vmul.f32 0.03125, %v11596_v14 }
0x14cc   :  { %14911 = vmatmul.mubr.msk.bf16.gmra.mrb[148].mxu0 %vm449_vm1, %v11770_v2  ;;  %v11593_v60 = vpop.xlane.xlu0 %11592  ;;  %v11743_v62 = vmul.f32 %v15957_v4, %v19764_v8 }
0x14cd   :  { %v15959_v37 = vpop.eup %15958  ;;  %15968 = vrsqrt.f32 %v11685_v19  ;;  %v11688_v18 = vadd.f32 1e-06, %v11656_v31  ;;  %v11655_v24 = vmul.f32 0.03125, %v11593_v60 }
0x14ce   :  { %v11602_v21 = vpop.xlane.xlu1 %11601  ;;  %v11771_v51 = vpack.c.bf16 %v11744_v46, %v11743_v62  ;;  %v11746_v52 = vmul.f32 %v15959_v37, %v19769_v43 }
0x14cf   :  { %v15961_v27 = vpop.eup %15960  ;;  %15970 = vrsqrt.f32 %v11688_v18  ;;  %v11687_v33 = vadd.f32 1e-06, %v11655_v24  ;;  %v11658_v13 = vmul.f32 0.03125, %v11602_v21 }
0x14d0   :  { %v11745_v44 = vmul.f32 %v15961_v27, %v19776_v59  ;;  %14914 = vmatprep.mubr.msk.bf16.mxu0 %vm449_vm1, %v11771_v51  ;;  %v11599_v16 = vpop.xlane.xlu0 %11598 }
0x14d1   :  { %v15963_v55 = vpop.eup %15962  ;;  %15972 = vrsqrt.f32 %v11687_v33  ;;  %v11690_v17 = vadd.f32 1e-06, %v11658_v13  ;;  %v11657_v39 = vmul.f32 0.03125, %v11599_v16 }
0x14d2   :  { %v11772_v57 = vpack.c.bf16 %v11746_v52, %v11745_v44  ;;  %v11608_v54 = vpop.xlane.xlu1 %11607  ;;  %v11748_v15 = vmul.f32 %v15963_v55, %v19800_v30 }
0x14d3   :  { %v15965_v41 = vpop.eup %15964  ;;  %15974 = vrsqrt.f32 %v11690_v17  ;;  %v11689_v28 = vadd.f32 1e-06, %v11657_v39  ;;  %v11660_v58 = vmul.f32 0.03125, %v11608_v54 }
0x14d4   :  { %14915 = vmatmul.mubr.msk.bf16.gmra.mrb[152].mxu0 %vm449_vm1, %v11772_v57  ;;  %v11605_v63 = vpop.xlane.xlu0 %11604  ;;  %v11747_v10 = vmul.f32 %v15965_v41, %v19790_v61 }
0x14d5   :  { %v15967_v1 = vpop.eup %15966  ;;  %15976 = vrsqrt.f32 %v11689_v28  ;;  %v11692_v2 = vadd.f32 1e-06, %v11660_v58  ;;  %v11659_v14 = vmul.f32 0.03125, %v11605_v63 }
0x14d6   :  { %v11614_v4 = vpop.xlane.xlu1 %11613  ;;  %v11773_v19 = vpack.c.bf16 %v11748_v15, %v11747_v10  ;;  %v11750_v46 = vmul.f32 %v15967_v1, %v19797_v20 }
0x14d7   :  { %v15969_v31 = vpop.eup %15968  ;;  %15978 = vrsqrt.f32 %v11692_v2  ;;  %v11691_v60 = vadd.f32 1e-06, %v11659_v14  ;;  %v11662_v62 = vmul.f32 0.03125, %v11614_v4 }
0x14d8   :  { %v11749_v37 = vmul.f32 %v15969_v31, %v19804_v53  ;;  %14918 = vmatprep.mubr.msk.bf16.mxu0 %vm449_vm1, %v11773_v19  ;;  %v11611_v18 = vpop.xlane.xlu0 %11610 }
0x14d9   :  { %v15971_v24 = vpop.eup %15970  ;;  %15980 = vrsqrt.f32 %v11691_v60  ;;  %v11694_v21 = vadd.f32 1e-06, %v11662_v62  ;;  %v11661_v51 = vmul.f32 0.03125, %v11611_v18 }
0x14da   :  { %v11774_v27 = vpack.c.bf16 %v11750_v46, %v11749_v37  ;;  %v11620_v33 = vpop.xlane.xlu1 %11619  ;;  %v11752_v17 = vmul.f32 %v15971_v24, %v19828_v6 }
0x14db   :  { %v15973_v13 = vpop.eup %15972  ;;  %15982 = vrsqrt.f32 %v11694_v21  ;;  %v11693_v52 = vadd.f32 1e-06, %v11661_v51  ;;  %v11664_v44 = vmul.f32 0.03125, %v11620_v33 }
0x14dc   :  { %14919 = vmatmul.mubr.msk.bf16.gmra.mrb[156].mxu0 %vm449_vm1, %v11774_v27  ;;  %v11617_v16 = vpop.xlane.xlu0 %11616  ;;  %v11751_v55 = vmul.f32 %v15973_v13, %v19820_v35 }
0x14dd   :  { %v15975_v39 = vpop.eup %15974  ;;  %15984 = vrsqrt.f32 %v11693_v52  ;;  %v11696_v57 = vadd.f32 1e-06, %v11664_v44  ;;  %v11663_v54 = vmul.f32 0.03125, %v11617_v16 }
0x14de   :  { %v11626_v41 = vpop.xlane.xlu1 %11625  ;;  %v11775_v28 = vpack.c.bf16 %v11752_v17, %v11751_v55  ;;  %v11754_v15 = vmul.f32 %v15975_v39, %v19825_v34 }
0x14df   :  { %v15977_v58 = vpop.eup %15976  ;;  %15986 = vrsqrt.f32 %v11696_v57  ;;  %v11695_v63 = vadd.f32 1e-06, %v11663_v54  ;;  %v11666_v10 = vmul.f32 0.03125, %v11626_v41 }
0x14e0   :  { %v11753_v1 = vmul.f32 %v15977_v58, %v19832_v56  ;;  %14922 = vmatprep.mubr.msk.bf16.mxu0 %vm449_vm1, %v11775_v28  ;;  %v11623_v2 = vpop.xlane.xlu0 %11622 }
0x14e1   :  { %v15979_v14 = vpop.eup %15978  ;;  %15988 = vrsqrt.f32 %v11695_v63  ;;  %v11698_v4 = vadd.f32 1e-06, %v11666_v10  ;;  %v11665_v19 = vmul.f32 0.03125, %v11623_v2 }
0x14e2   :  { %v11776_v31 = vpack.c.bf16 %v11754_v15, %v11753_v1  ;;  %v11632_v60 = vpop.xlane.xlu1 %11631  ;;  %v11756_v21 = vmul.f32 %v15979_v14, %v19862_v9 }
0x14e3   :  { %v15981_v62 = vpop.eup %15980  ;;  %15990 = vrsqrt.f32 %v11698_v4  ;;  %v11697_v46 = vadd.f32 1e-06, %v11665_v19  ;;  %v11668_v37 = vmul.f32 0.03125, %v11632_v60 }
0x14e4   :  { %14923 = vmatmul.mubr.msk.bf16.gmra.mrb[160].mxu0 %vm449_vm1, %v11776_v31  ;;  %v11629_v18 = vpop.xlane.xlu0 %11628  ;;  %v11755_v24 = vmul.f32 %v15981_v62, %v19849_v42 }
0x14e5   :  { %v15983_v51 = vpop.eup %15982  ;;  %15992 = vrsqrt.f32 %v11697_v46  ;;  %v11700_v27 = vadd.f32 1e-06, %v11668_v37  ;;  %v11667_v33 = vmul.f32 0.03125, %v11629_v18 }
0x14e6   :  { %v11638_v13 = vpop.xlane.xlu1 %11637  ;;  %v11777_v52 = vpack.c.bf16 %v11756_v21, %v11755_v24  ;;  %v11758_v17 = vmul.f32 %v15983_v51, %v19859_v36 }
0x14e7   :  { %v15985_v44 = vpop.eup %15984  ;;  %15994 = vrsqrt.f32 %v11700_v27  ;;  %v11699_v16 = vadd.f32 1e-06, %v11667_v33  ;;  %v11670_v55 = vmul.f32 0.03125, %v11638_v13 }
0x14e8   :  { %v11757_v39 = vmul.f32 %v15985_v44, %v19866_v22  ;;  %14926 = vmatprep.mubr.msk.bf16.mxu0 %vm449_vm1, %v11777_v52  ;;  %v11635_v57 = vpop.xlane.xlu0 %11634  ;;  %v15102_v52 = vld [vmem:[%s20250_s8 + $0x30] sm:$0xff]   ;;  %v15103_v44 = vld [vmem:[%s20250_s8 + $0x38] sm:$0xff]  }
0x14e9   :  { %v15987_v54 = vpop.eup %15986  ;;  %15996 = vrsqrt.f32 %v11699_v16  ;;  %v11702_v41 = vadd.f32 1e-06, %v11670_v55  ;;  %v11669_v28 = vmul.f32 0.03125, %v11635_v57  ;;  %14942 = vmatprep.subr.bf16.mxu0 %v15102_v52 }
0x14ea   :  { %v11778_v58 = vpack.c.bf16 %v11758_v17, %v11757_v39  ;;  %v11760_v1 = vmul.f32 %v15987_v54, %v19890_v3  ;;  %14943 = vmatpush3.bf16.msra.mxu0 %v15102_v52 }
0x14eb   :  { %v15989_v63 = vpop.eup %15988  ;;  %15998 = vrsqrt.f32 %v11702_v41  ;;  %v11701_v10 = vadd.f32 1e-06, %v11669_v28  ;;  %14944 = vmatprep.subr.bf16.mxu0 %v15103_v44 }
0x14ec   :  { %14927 = vmatmul.mubr.msk.bf16.gmra.mrb[164].mxu0 %vm449_vm1, %v11778_v58  ;;  %v11759_v15 = vmul.f32 %v15989_v63, %v19882_v5 }
0x14ed   :  { %v15991_v2 = vpop.eup %15990  ;;  %16000 = vrsqrt.f32 %v11701_v10 }
0x14ee   :  { %v11779_v14 = vpack.c.bf16 %v11760_v1, %v11759_v15  ;;  %v11762_v19 = vmul.f32 %v15991_v2, %v19887_v32  ;;  %14945 = vmatpush3.bf16.msra.mxu0 %v15103_v44 }
0x14ef   :  { %v15993_v4 = vpop.eup %15992 }
0x14f0   :  { %v11761_v31 = vmul.f32 %v15993_v4, %v19894_v11  ;;  %14930 = vmatprep.mubr.msk.bf16.mxu0 %vm449_vm1, %v11779_v14 }
0x14f1   :  { %v15995_v60 = vpop.eup %15994 }
0x14f2   :  { %v11780_v62 = vpack.c.bf16 %v11762_v19, %v11761_v31  ;;  %v11764_v18 = vmul.f32 %v15995_v60, %v19918_v25 }
0x14f3   :  { %v15997_v46 = vpop.eup %15996 }
0x14f4   :  { %14931 = vmatmul.mubr.msk.bf16.gmra.mrb[168].mxu0 %vm449_vm1, %v11780_v62  ;;  %v11763_v37 = vmul.f32 %v15997_v46, %v19908_v40 }
0x14f5   :  { %v15999_v24 = vpop.eup %15998 }
0x14f6   :  { %v11781_v21 = vpack.c.bf16 %v11764_v18, %v11763_v37  ;;  %v11766_v27 = vmul.f32 %v15999_v24, %v19915_v45 }
0x14f7   :  { %v16001_v51 = vpop.eup %16000 }
0x14f8   :  { %v11765_v33 = vmul.f32 %v16001_v51, %v19922_v47  ;;  %14934 = vmatprep.mubr.msk.bf16.mxu0 %vm449_vm1, %v11781_v21 }
0x14fa   :  { %v11782_v13 = vpack.c.bf16 %v11766_v27, %v11765_v33 }
0x14fc   :  { %14935 = vmatmul.mubr.msk.bf16.gmra.mrb[172].mxu0 %vm449_vm1, %v11782_v13 }
0x1597   :  { %v14908_v16 = vpop.f32.mrb[144].mxu0 }
0x1598   :  { %v12011_v55 = vmax.f32 %v14908_v16, 0.0  ;;  %v11882_v17 = vpop.f32.mrb[145].mxu0 }
0x1599   :  { %v12009_v39 = vmax.f32 %v11882_v17, 0.0  ;;  %v14909_v57 = vpop.f32.mrb[146].mxu0 }
0x159a   :  { %v12012_v54 = vmax.f32 %v14909_v57, 0.0  ;;  %v11885_v41 = vpop.f32.mrb[147].mxu0  ;;  %v12043_v58 = vmul.f32 %v12011_v55, %v12011_v55 }
0x159b   :  { %v12010_v28 = vmax.f32 %v11885_v41, 0.0  ;;  %v12041_v10 = vmul.f32 %v12009_v39, %v12009_v39 }
0x159c   :  { %v12044_v63 = vmul.f32 %v12012_v54, %v12012_v54 }
0x159d   :  { %v12042_v15 = vmul.f32 %v12010_v28, %v12010_v28 }
0x159e   :  { %v12074_v1 = vpack.c.bf16 %v12044_v63, %v12043_v58 }
0x159f   :  { %v12073_v2 = vpack.c.bf16 %v12042_v15, %v12041_v10  ;;  %v14912_v14 = vpop.f32.mrb[148].mxu0 }
0x15a0   :  { %v12015_v4 = vmax.f32 %v14912_v14, 0.0  ;;  %v11898_v19 = vpop.f32.mrb[149].mxu0 }
0x15a1   :  { %v12013_v31 = vmax.f32 %v11898_v19, 0.0  ;;  %v14913_v60 = vpop.f32.mrb[150].mxu0  ;;  %14946 = vmatprep.mubr.msk.bf16.mxu0 %vm996_vm2, %v12073_v2 }
0x15a2   :  { %v12016_v62 = vmax.f32 %v14913_v60, 0.0  ;;  %v11901_v46 = vpop.f32.mrb[151].mxu0  ;;  %14947 = vmatmul.mubr.msk.bf16.vlgmr.msra.gmra.mrb[176].mxu0 %vm996_vm2, %v12074_v1  ;;  %v12047_v18 = vmul.f32 %v12015_v4, %v12015_v4 }
0x15a3   :  { %v12014_v37 = vmax.f32 %v11901_v46, 0.0  ;;  %v12045_v21 = vmul.f32 %v12013_v31, %v12013_v31 }
0x15a4   :  { %v12048_v24 = vmul.f32 %v12016_v62, %v12016_v62 }
0x15a5   :  { %v12046_v51 = vmul.f32 %v12014_v37, %v12014_v37 }
0x15a6   :  { %v12076_v27 = vpack.c.bf16 %v12048_v24, %v12047_v18 }
0x15a7   :  { %v12075_v33 = vpack.c.bf16 %v12046_v51, %v12045_v21  ;;  %v14916_v13 = vpop.f32.mrb[152].mxu0 }
0x15a8   :  { %v12019_v52 = vmax.f32 %v14916_v13, 0.0  ;;  %v11914_v44 = vpop.f32.mrb[153].mxu0 }
0x15a9   :  { %v12017_v16 = vmax.f32 %v11914_v44, 0.0  ;;  %v14917_v55 = vpop.f32.mrb[154].mxu0  ;;  %14950 = vmatprep.mubr.msk.bf16.mxu0 %vm996_vm2, %v12075_v33 }
0x15aa   :  { %v12020_v17 = vmax.f32 %v14917_v55, 0.0  ;;  %v11917_v39 = vpop.f32.mrb[155].mxu0  ;;  %14951 = vmatmul.mubr.msk.bf16.gmra.mrb[180].mxu0 %vm996_vm2, %v12076_v27  ;;  %v12051_v54 = vmul.f32 %v12019_v52, %v12019_v52 }
0x15ab   :  { %v12018_v57 = vmax.f32 %v11917_v39, 0.0  ;;  %v12049_v28 = vmul.f32 %v12017_v16, %v12017_v16 }
0x15ac   :  { %v12052_v41 = vmul.f32 %v12020_v17, %v12020_v17 }
0x15ad   :  { %v12050_v58 = vmul.f32 %v12018_v57, %v12018_v57 }
0x15ae   :  { %v12078_v63 = vpack.c.bf16 %v12052_v41, %v12051_v54 }
0x15af   :  { %v12077_v10 = vpack.c.bf16 %v12050_v58, %v12049_v28  ;;  %v14920_v15 = vpop.f32.mrb[156].mxu0 }
0x15b0   :  { %v12023_v1 = vmax.f32 %v14920_v15, 0.0  ;;  %v11930_v2 = vpop.f32.mrb[157].mxu0 }
0x15b1   :  { %v12021_v14 = vmax.f32 %v11930_v2, 0.0  ;;  %v14921_v4 = vpop.f32.mrb[158].mxu0  ;;  %14954 = vmatprep.mubr.msk.bf16.mxu0 %vm996_vm2, %v12077_v10 }
0x15b2   :  { %v12024_v19 = vmax.f32 %v14921_v4, 0.0  ;;  %v11933_v31 = vpop.f32.mrb[159].mxu0  ;;  %14955 = vmatmul.mubr.msk.bf16.gmra.mrb[184].mxu0 %vm996_vm2, %v12078_v63  ;;  %v12055_v62 = vmul.f32 %v12023_v1, %v12023_v1 }
0x15b3   :  { %v12022_v60 = vmax.f32 %v11933_v31, 0.0  ;;  %v12053_v37 = vmul.f32 %v12021_v14, %v12021_v14 }
0x15b4   :  { %v12056_v46 = vmul.f32 %v12024_v19, %v12024_v19 }
0x15b5   :  { %v12054_v18 = vmul.f32 %v12022_v60, %v12022_v60 }
0x15b6   :  { %v12080_v24 = vpack.c.bf16 %v12056_v46, %v12055_v62 }
0x15b7   :  { %v12079_v21 = vpack.c.bf16 %v12054_v18, %v12053_v37  ;;  %v14924_v51 = vpop.f32.mrb[160].mxu0 }
0x15b8   :  { %v12027_v27 = vmax.f32 %v14924_v51, 0.0  ;;  %v11946_v33 = vpop.f32.mrb[161].mxu0 }
0x15b9   :  { %v12025_v13 = vmax.f32 %v11946_v33, 0.0  ;;  %v14925_v52 = vpop.f32.mrb[162].mxu0  ;;  %14958 = vmatprep.mubr.msk.bf16.mxu0 %vm996_vm2, %v12079_v21 }
0x15ba   :  { %v12028_v44 = vmax.f32 %v14925_v52, 0.0  ;;  %v11949_v16 = vpop.f32.mrb[163].mxu0  ;;  %14959 = vmatmul.mubr.msk.bf16.gmra.mrb[188].mxu0 %vm996_vm2, %v12080_v24  ;;  %v12059_v17 = vmul.f32 %v12027_v27, %v12027_v27 }
0x15bb   :  { %v12026_v55 = vmax.f32 %v11949_v16, 0.0  ;;  %v12057_v57 = vmul.f32 %v12025_v13, %v12025_v13 }
0x15bc   :  { %v12060_v39 = vmul.f32 %v12028_v44, %v12028_v44 }
0x15bd   :  { %v12058_v54 = vmul.f32 %v12026_v55, %v12026_v55 }
0x15be   :  { %v12082_v41 = vpack.c.bf16 %v12060_v39, %v12059_v17 }
0x15bf   :  { %v12081_v28 = vpack.c.bf16 %v12058_v54, %v12057_v57  ;;  %v14928_v58 = vpop.f32.mrb[164].mxu0 }
0x15c0   :  { %v12031_v63 = vmax.f32 %v14928_v58, 0.0  ;;  %v11962_v10 = vpop.f32.mrb[165].mxu0 }
0x15c1   :  { %v12029_v15 = vmax.f32 %v11962_v10, 0.0  ;;  %v14929_v1 = vpop.f32.mrb[166].mxu0  ;;  %14962 = vmatprep.mubr.msk.bf16.mxu0 %vm996_vm2, %v12081_v28 }
0x15c2   :  { %v12032_v2 = vmax.f32 %v14929_v1, 0.0  ;;  %v11965_v14 = vpop.f32.mrb[167].mxu0  ;;  %14963 = vmatmul.mubr.msk.bf16.gmra.mrb[192].mxu0 %vm996_vm2, %v12082_v41  ;;  %v12063_v19 = vmul.f32 %v12031_v63, %v12031_v63 }
0x15c3   :  { %v12030_v4 = vmax.f32 %v11965_v14, 0.0  ;;  %v12061_v60 = vmul.f32 %v12029_v15, %v12029_v15 }
0x15c4   :  { %v12064_v31 = vmul.f32 %v12032_v2, %v12032_v2 }
0x15c5   :  { %v12062_v62 = vmul.f32 %v12030_v4, %v12030_v4 }
0x15c6   :  { %v12084_v46 = vpack.c.bf16 %v12064_v31, %v12063_v19 }
0x15c7   :  { %v12083_v37 = vpack.c.bf16 %v12062_v62, %v12061_v60  ;;  %v14932_v18 = vpop.f32.mrb[168].mxu0  ;;  %v20020_v62 = vld [vmem:[%s20251_s9 + $0x1] ss:$0 sm:$0xff] }
0x15c8   :  { %v12035_v24 = vmax.f32 %v14932_v18, 0.0  ;;  %v11978_v21 = vpop.f32.mrb[169].mxu0 }
0x15c9   :  { %v12033_v51 = vmax.f32 %v11978_v21, 0.0  ;;  %v14933_v27 = vpop.f32.mrb[170].mxu0  ;;  %14966 = vmatprep.mubr.msk.bf16.mxu0 %vm996_vm2, %v12083_v37 }
0x15ca   :  { %v12036_v33 = vmax.f32 %v14933_v27, 0.0  ;;  %v11981_v13 = vpop.f32.mrb[171].mxu0  ;;  %14967 = vmatmul.mubr.msk.bf16.gmra.mrb[196].mxu0 %vm996_vm2, %v12084_v46  ;;  %v12067_v44 = vmul.f32 %v12035_v24, %v12035_v24 }
0x15cb   :  { %v12034_v52 = vmax.f32 %v11981_v13, 0.0  ;;  %v12065_v55 = vmul.f32 %v12033_v51, %v12033_v51 }
0x15cc   :  { %v12068_v16 = vmul.f32 %v12036_v33, %v12036_v33 }
0x15cd   :  { %v12066_v17 = vmul.f32 %v12034_v52, %v12034_v52 }
0x15ce   :  { %v12086_v39 = vpack.c.bf16 %v12068_v16, %v12067_v44 }
0x15cf   :  { %v12085_v57 = vpack.c.bf16 %v12066_v17, %v12065_v55  ;;  %v14936_v54 = vpop.f32.mrb[172].mxu0 }
0x15d0   :  { %v12039_v41 = vmax.f32 %v14936_v54, 0.0  ;;  %v11994_v28 = vpop.f32.mrb[173].mxu0 }
0x15d1   :  { %v12037_v58 = vmax.f32 %v11994_v28, 0.0  ;;  %v14937_v63 = vpop.f32.mrb[174].mxu0  ;;  %14970 = vmatprep.mubr.msk.bf16.mxu0 %vm996_vm2, %v12085_v57 }
0x15d2   :  { %v12040_v10 = vmax.f32 %v14937_v63, 0.0  ;;  %v11997_v15 = vpop.f32.mrb[175].mxu0  ;;  %14971 = vmatmul.mubr.msk.bf16.gmra.mrb[200].mxu0 %vm996_vm2, %v12086_v39  ;;  %v12071_v2 = vmul.f32 %v12039_v41, %v12039_v41 }
0x15d3   :  { %v12038_v1 = vmax.f32 %v11997_v15, 0.0  ;;  %v12069_v4 = vmul.f32 %v12037_v58, %v12037_v58 }
0x15d4   :  { %v12072_v14 = vmul.f32 %v12040_v10, %v12040_v10 }
0x15d5   :  { %v12070_v19 = vmul.f32 %v12038_v1, %v12038_v1 }
0x15d6   :  { %v12088_v31 = vpack.c.bf16 %v12072_v14, %v12071_v2 }
0x15d7   :  { %v12087_v60 = vpack.c.bf16 %v12070_v19, %v12069_v4 }
0x15d9   :  { %14974 = vmatprep.mubr.msk.bf16.mxu0 %vm996_vm2, %v12087_v60 }
0x15da   :  { %14975 = vmatmul.mubr.msk.bf16.gmra.mrb[204].mxu0 %vm996_vm2, %v12088_v31 }
0x1675   :  { %v14948_v46 = vpop.f32.mrb[176].mxu0 }
0x1676   :  { %v12341_v37 = vmul.f32 %v14948_v46, %v20020_v62  ;;  %v12204_v18 = vpop.f32.mrb[177].mxu0 }
0x1677   :  { %v12339_v24 = vmul.f32 %v20020_v62, %v12204_v18  ;;  %v14949_v21 = vpop.f32.mrb[178].mxu0 }
0x1678   :  { %v12373_v51 = vadd.f32 %v12341_v37, %v19710_v50  ;;  %v12342_v27 = vmul.f32 %v14949_v21, %v20020_v62  ;;  %v12207_v33 = vpop.f32.mrb[179].mxu0 }
0x1679   :  { %v12371_v13 = vadd.f32 %v12339_v24, %v19713_v23  ;;  %v12340_v52 = vmul.f32 %v20020_v62, %v12207_v33 }
0x167a   :  { %v12374_v44 = vadd.f32 %v12342_v27, %v19723_v12  ;;  %v12412_v55 = vsel %vm449_vm1, %v12373_v51, 0.0 }
0x167b   :  { %v12372_v16 = vadd.f32 %v12340_v52, %v19718_v26  ;;  %v12403_v39 = vsel %vm449_vm1, %v12371_v13, 0.0 }
0x167c   :  { %v12413_v17 = vsel %vm449_vm1, %v12374_v44, 0.0 }
0x167d   :  { %v12414_v57 = vadd.f32 %v12413_v17, %v12412_v55  ;;  %v12404_v50 = vsel %vm449_vm1, %v12372_v16, 0.0  ;;  %v14952_v54 = vpop.f32.mrb[180].mxu0 }
0x167e   :  { %v12405_v41 = vadd.f32 %v12404_v50, %v12403_v39  ;;  %v12345_v28 = vmul.f32 %v14952_v54, %v20020_v62  ;;  %v12220_v23 = vpop.f32.mrb[181].mxu0 }
0x167f   :  { %v12415_v58 = vrot.slane %v12414_v57, 4  ;;  %v12343_v63 = vmul.f32 %v20020_v62, %v12220_v23  ;;  %v14953_v12 = vpop.f32.mrb[182].mxu0 }
0x1680   :  { %v12406_v10 = vrot.slane %v12405_v41, 4  ;;  %v12377_v26 = vadd.f32 %v12345_v28, %v19748_v49  ;;  %v12346_v15 = vmul.f32 %v14953_v12, %v20020_v62  ;;  %v12223_v1 = vpop.f32.mrb[183].mxu0 }
0x1681   :  { %v12416_v2 = vadd.f32 %v12415_v58, %v12414_v57  ;;  %v12375_v14 = vadd.f32 %v12343_v63, %v19735_v0  ;;  %v12344_v4 = vmul.f32 %v20020_v62, %v12223_v1 }
0x1682   :  { %v12407_v19 = vadd.f32 %v12406_v10, %v12405_v41  ;;  %v12378_v31 = vadd.f32 %v12346_v15, %v19742_v7  ;;  %v12430_v18 = vsel %vm449_vm1, %v12377_v26, 0.0 }
0x1683   :  { %v12417_v60 = vrot.slane %v12416_v2, 2  ;;  %v12376_v46 = vadd.f32 %v12344_v4, %v19745_v48  ;;  %v12421_v49 = vsel %vm449_vm1, %v12375_v14, 0.0 }
0x1684   :  { %v12408_v37 = vrot.slane %v12407_v19, 2  ;;  %v12431_v24 = vsel %vm449_vm1, %v12378_v31, 0.0 }
0x1685   :  { %v12432_v21 = vadd.f32 %v12431_v24, %v12430_v18  ;;  %v12422_v51 = vsel %vm449_vm1, %v12376_v46, 0.0  ;;  %v14956_v27 = vpop.f32.mrb[184].mxu0  ;;  %v12418_v52 = vadd.f32 %v12417_v60, %v12416_v2 }
0x1686   :  { %v12423_v0 = vadd.f32 %v12422_v51, %v12421_v49  ;;  %v12349_v33 = vmul.f32 %v14956_v27, %v20020_v62  ;;  %v12236_v13 = vpop.f32.mrb[185].mxu0  ;;  %v12409_v7 = vadd.f32 %v12408_v37, %v12407_v19 }
0x1687   :  { %v12433_v44 = vrot.slane %v12432_v21, 4  ;;  %v12347_v48 = vmul.f32 %v20020_v62, %v12236_v13  ;;  %v14957_v16 = vpop.f32.mrb[186].mxu0  ;;  %v12419_v58 = vrot.slane %v12418_v52, 1 }
0x1688   :  { %v12424_v55 = vrot.slane %v12423_v0, 4  ;;  %v12381_v17 = vadd.f32 %v12349_v33, %v19776_v59  ;;  %v12350_v39 = vmul.f32 %v14957_v16, %v20020_v62  ;;  %v12239_v57 = vpop.f32.mrb[187].mxu0  ;;  %v12410_v63 = vrot.slane %v12409_v7, 1 }
0x1689   :  { %v12434_v50 = vadd.f32 %v12433_v44, %v12432_v21  ;;  %v12379_v54 = vadd.f32 %v12347_v48, %v19764_v8  ;;  %v12348_v41 = vmul.f32 %v20020_v62, %v12239_v57  ;;  %v12420_v46 = vadd.f32 %v12419_v58, %v12418_v52 }
0x168a   :  { %v12425_v28 = vadd.f32 %v12424_v55, %v12423_v0  ;;  %v12382_v23 = vadd.f32 %v12350_v39, %v19769_v43  ;;  %v12448_v15 = vsel %vm449_vm1, %v12381_v17, 0.0  ;;  %v12411_v37 = vadd.f32 %v12410_v63, %v12409_v7 }
0x168b   :  { %v12435_v12 = vrot.slane %v12434_v50, 2  ;;  %v12380_v10 = vadd.f32 %v12348_v41, %v19772_v29  ;;  %v12439_v1 = vsel %vm449_vm1, %v12379_v54, 0.0  ;;  %v20065_v7 = vmul.f32 0.0625, %v12420_v46 }
0x168c   :  { %v12426_v26 = vrot.slane %v12425_v28, 2  ;;  %v12449_v59 = vsel %vm449_vm1, %v12382_v23, 0.0  ;;  %v20068_v57 = vmul.f32 0.0625, %v12411_v37 }
0x168d   :  { %v12450_v2 = vadd.f32 %v12449_v59, %v12448_v15  ;;  %v12440_v8 = vsel %vm449_vm1, %v12380_v10, 0.0  ;;  %v14960_v14 = vpop.f32.mrb[188].mxu0  ;;  %v12436_v4 = vadd.f32 %v12435_v12, %v12434_v50 }
0x168e   :  { %v12427_v19 = vadd.f32 %v12426_v26, %v12425_v28  ;;  %v12441_v31 = vadd.f32 %v12440_v8, %v12439_v1  ;;  %v12353_v43 = vmul.f32 %v14960_v14, %v20020_v62  ;;  %v12252_v60 = vpop.f32.mrb[189].mxu0 }
0x168f   :  { %v12451_v29 = vrot.slane %v12450_v2, 4  ;;  %v12351_v18 = vmul.f32 %v20020_v62, %v12252_v60  ;;  %v14961_v24 = vpop.f32.mrb[190].mxu0  ;;  %v12437_v48 = vrot.slane %v12436_v4, 1 }
0x1690   :  { %v12428_v49 = vrot.slane %v12427_v19, 1  ;;  %v12442_v21 = vrot.slane %v12441_v31, 4  ;;  %v12385_v51 = vadd.f32 %v12353_v43, %v19804_v53  ;;  %v12354_v27 = vmul.f32 %v14961_v24, %v20020_v62  ;;  %v12255_v0 = vpop.f32.mrb[191].mxu0 }
0x1691   :  { %v12452_v33 = vadd.f32 %v12451_v29, %v12450_v2  ;;  %v12383_v13 = vadd.f32 %v12351_v18, %v19790_v61  ;;  %v12352_v44 = vmul.f32 %v20020_v62, %v12255_v0  ;;  %v12438_v58 = vadd.f32 %v12437_v48, %v12436_v4 }
0x1692   :  { %v12443_v16 = vadd.f32 %v12442_v21, %v12441_v31  ;;  %v12386_v52 = vadd.f32 %v12354_v27, %v19797_v20  ;;  %v12429_v55 = vadd.f32 %v12428_v49, %v12427_v19  ;;  %v12466_v50 = vsel %vm449_vm1, %v12385_v51, 0.0 }
0x1693   :  { %v12453_v17 = vrot.slane %v12452_v33, 2  ;;  %v12384_v39 = vadd.f32 %v12352_v44, %v19800_v30  ;;  %v12457_v41 = vsel %vm449_vm1, %v12383_v13, 0.0  ;;  %v12565_v43 = vmul.f32 %v20065_v7, %v20065_v7 }
0x1694   :  { %v12444_v53 = vrot.slane %v12443_v16, 2  ;;  %v12467_v54 = vsel %vm449_vm1, %v12386_v52, 0.0  ;;  %v20075_v26 = vmul.f32 0.0625, %v12429_v55  ;;  %v12564_v29 = vmul.f32 %v20068_v57, %v20068_v57 }
0x1695   :  { %v12454_v61 = vadd.f32 %v12453_v17, %v12452_v33  ;;  %v12468_v28 = vadd.f32 %v12467_v54, %v12466_v50  ;;  %v12458_v23 = vsel %vm449_vm1, %v12384_v39, 0.0  ;;  %v14964_v20 = vpop.f32.mrb[192].mxu0 }
0x1696   :  { %v12445_v63 = vadd.f32 %v12444_v53, %v12443_v16  ;;  %v12459_v12 = vadd.f32 %v12458_v23, %v12457_v41  ;;  %v12357_v10 = vmul.f32 %v14964_v20, %v20020_v62  ;;  %v12268_v30 = vpop.f32.mrb[193].mxu0  ;;  %v12566_v0 = vmul.f32 %v20075_v26, %v20075_v26 }
0x1697   :  { %v12455_v15 = vrot.slane %v12454_v61, 1  ;;  %v12469_v59 = vrot.slane %v12468_v28, 4  ;;  %v12355_v1 = vmul.f32 %v20020_v62, %v12268_v30  ;;  %v14965_v2 = vpop.f32.mrb[194].mxu0 }
0x1698   :  { %v12446_v8 = vrot.slane %v12445_v63, 1  ;;  %v12460_v14 = vrot.slane %v12459_v12, 4  ;;  %v12389_v19 = vadd.f32 %v12357_v10, %v19832_v56  ;;  %v12358_v31 = vmul.f32 %v14965_v2, %v20020_v62  ;;  %v12271_v4 = vpop.f32.mrb[195].mxu0 }
0x1699   :  { %v12470_v60 = vadd.f32 %v12469_v59, %v12468_v28  ;;  %v12387_v46 = vadd.f32 %v12355_v1, %v19820_v35  ;;  %v12356_v37 = vmul.f32 %v20020_v62, %v12271_v4  ;;  %v12456_v18 = vadd.f32 %v12455_v15, %v12454_v61 }
0x169a   :  { %v12461_v24 = vadd.f32 %v12460_v14, %v12459_v12  ;;  %v12390_v49 = vadd.f32 %v12358_v31, %v19825_v34  ;;  %v20087_v56 = vmul.f32 0.0625, %v12438_v58  ;;  %v12447_v21 = vadd.f32 %v12446_v8, %v12445_v63 }
0x169b   :  { %v12471_v51 = vrot.slane %v12470_v60, 2  ;;  %v12388_v27 = vadd.f32 %v12356_v37, %v19828_v6  ;;  %v12484_v33 = vsel %vm449_vm1, %v12389_v19, 0.0  ;;  %v12475_v48 = vsel %vm449_vm1, %v12387_v46, 0.0 }
0x169c   :  { %v12462_v35 = vrot.slane %v12461_v24, 2  ;;  %v12485_v13 = vsel %vm449_vm1, %v12390_v49, 0.0  ;;  %v20096_v55 = vmul.f32 0.0625, %v12456_v18  ;;  %v20099_v50 = vmul.f32 0.0625, %v12447_v21 }
0x169d   :  { %v12472_v44 = vadd.f32 %v12471_v51, %v12470_v60  ;;  %v12486_v34 = vadd.f32 %v12485_v13, %v12484_v33  ;;  %v12476_v16 = vsel %vm449_vm1, %v12388_v27, 0.0  ;;  %v14968_v52 = vpop.f32.mrb[196].mxu0  ;;  %v12597_v59 = vsel %vm12596_vm5, %v12565_v43, %v12564_v29 }
0x169e   :  { %v12463_v6 = vadd.f32 %v12462_v35, %v12461_v24  ;;  %v12477_v17 = vadd.f32 %v12476_v16, %v12475_v48  ;;  %v12361_v39 = vmul.f32 %v14968_v52, %v20020_v62  ;;  %v12284_v53 = vpop.f32.mrb[197].mxu0  ;;  %v12567_v1 = vmul.f32 %v20087_v56, %v20087_v56 }
0x169f   :  { %v12473_v54 = vrot.slane %v12472_v44, 1  ;;  %v12487_v61 = vrot.slane %v12486_v34, 4  ;;  %v12359_v41 = vmul.f32 %v20020_v62, %v12284_v53  ;;  %v14969_v28 = vpop.f32.mrb[198].mxu0  ;;  %v12568_v31 = vmul.f32 %v20099_v50, %v20099_v50 }
0x16a0   :  { %v12464_v23 = vrot.slane %v12463_v6, 1  ;;  %v12478_v20 = vrot.slane %v12477_v17, 4  ;;  %v12393_v58 = vadd.f32 %v12361_v39, %v19866_v22  ;;  %v12362_v63 = vmul.f32 %v14969_v28, %v20020_v62  ;;  %v12287_v12 = vpop.f32.mrb[199].mxu0 }
0x16a1   :  { %v12488_v10 = vadd.f32 %v12487_v61, %v12486_v34  ;;  %v12391_v30 = vadd.f32 %v12359_v41, %v19849_v42  ;;  %v12360_v15 = vmul.f32 %v20020_v62, %v12287_v12  ;;  %v12474_v19 = vadd.f32 %v12473_v54, %v12472_v44 }
0x16a2   :  { %v12465_v2 = vadd.f32 %v12464_v23, %v12463_v6  ;;  %v12479_v8 = vadd.f32 %v12478_v20, %v12477_v17  ;;  %v12394_v14 = vadd.f32 %v12362_v63, %v19859_v36  ;;  %v12599_v42 = vsel %vm12598_vm6, %v12566_v0, %v12597_v59 }
0x16a3   :  { %v12392_v22 = vadd.f32 %v12360_v15, %v19862_v9  ;;  %v12502_v4 = vsel %vm449_vm1, %v12393_v58, 0.0  ;;  %v12569_v46 = vmul.f32 %v20096_v55, %v20096_v55  ;;  %v12489_v37 = vrot.slane %v12488_v10, 2 }
0x16a4   :  { %v12503_v43 = vsel %vm449_vm1, %v12394_v14, 0.0  ;;  %v20116_v60 = vmul.f32 0.0625, %v12465_v2  ;;  %v12493_v36 = vsel %vm449_vm1, %v12391_v30, 0.0  ;;  %v12480_v24 = vrot.slane %v12479_v8, 2 }
0x16a5   :  { %v12504_v29 = vadd.f32 %v12503_v43, %v12502_v4  ;;  %v12494_v9 = vsel %vm449_vm1, %v12392_v22, 0.0  ;;  %v14972_v18 = vpop.f32.mrb[200].mxu0  ;;  %v12601_v27 = vsel %vm12600_vm7, %v12567_v1, %v12599_v42  ;;  %v20125_v13 = vmul.f32 0.0625, %v12474_v19 }
0x16a6   :  { %v12495_v49 = vadd.f32 %v12494_v9, %v12493_v36  ;;  %v12365_v21 = vmul.f32 %v14972_v18, %v20020_v62  ;;  %v12300_v51 = vpop.f32.mrb[201].mxu0  ;;  %v12603_v44 = vsel %vm12602_vm8, %v12568_v31, %v12601_v27  ;;  %v12570_v6 = vmul.f32 %v20116_v60, %v20116_v60 }
0x16a7   :  { %v12505_v0 = vrot.slane %v12504_v29, 4  ;;  %v12363_v35 = vmul.f32 %v20020_v62, %v12300_v51  ;;  %v14973_v33 = vpop.f32.mrb[202].mxu0  ;;  %v12490_v17 = vadd.f32 %v12489_v37, %v12488_v10  ;;  %v12481_v61 = vadd.f32 %v12480_v24, %v12479_v8 }
0x16a8   :  { %v12496_v48 = vrot.slane %v12495_v49, 4  ;;  %v12397_v34 = vadd.f32 %v12365_v21, %v19894_v11  ;;  %v12366_v16 = vmul.f32 %v14973_v33, %v20020_v62  ;;  %v12303_v52 = vpop.f32.mrb[203].mxu0  ;;  %v12571_v20 = vmul.f32 %v20125_v13, %v20125_v13 }
0x16a9   :  { %v12506_v39 = vadd.f32 %v12505_v0, %v12504_v29  ;;  %v12395_v53 = vadd.f32 %v12363_v35, %v19882_v5  ;;  %v12364_v54 = vmul.f32 %v20020_v62, %v12303_v52  ;;  %v12605_v58 = vsel %vm12604_vm9, %v12569_v46, %v12603_v44 }
0x16aa   :  { %v12497_v41 = vadd.f32 %v12496_v48, %v12495_v49  ;;  %v12398_v28 = vadd.f32 %v12366_v16, %v19887_v32  ;;  %v12520_v12 = vsel %vm449_vm1, %v12397_v34, 0.0  ;;  %v12607_v10 = vsel %vm12606_vm10, %v12570_v6, %v12605_v58 }
0x16ab   :  { %v12507_v23 = vrot.slane %v12506_v39, 2  ;;  %v12396_v11 = vadd.f32 %v12364_v54, %v19890_v3  ;;  %v12491_v30 = vrot.slane %v12490_v17, 1  ;;  %v12511_v15 = vsel %vm449_vm1, %v12395_v53, 0.0 }
0x16ac   :  { %v12498_v63 = vrot.slane %v12497_v41, 2  ;;  %v12521_v5 = vsel %vm449_vm1, %v12398_v28, 0.0  ;;  %v12482_v3 = vrot.slane %v12481_v61, 1  ;;  %v12609_v14 = vsel %vm12608_vm11, %v12571_v20, %v12607_v10 }
0x16ad   :  { %v12522_v32 = vadd.f32 %v12521_v5, %v12520_v12  ;;  %v12512_v59 = vsel %vm449_vm1, %v12396_v11, 0.0  ;;  %v14976_v1 = vpop.f32.mrb[204].mxu0  ;;  %v12508_v19 = vadd.f32 %v12507_v23, %v12506_v39  ;;  %v12619_v42 = vsel %vm449_vm1, %v12609_v14, 0.0 }
0x16ae   :  { %v12499_v2 = vadd.f32 %v12498_v63, %v12497_v41  ;;  %v12513_v8 = vadd.f32 %v12512_v59, %v12511_v15  ;;  %v12316_v22 = vpop.f32.mrb[205].mxu0  ;;  %v12369_v4 = vmul.f32 %v14976_v1, %v20020_v62  ;;  %12620 = vadd.xlane.f32.xlu0 %v12619_v42  ;;  %v12492_v21 = vadd.f32 %v12491_v30, %v12490_v17 }
0x16af   :  { %v12523_v31 = vrot.slane %v12522_v32, 4  ;;  %v14977_v43 = vpop.f32.mrb[206].mxu0  ;;  %v12367_v36 = vmul.f32 %v20020_v62, %v12316_v22  ;;  %v12483_v35 = vadd.f32 %v12482_v3, %v12481_v61  ;;  %v12509_v33 = vrot.slane %v12508_v19, 1 }
0x16b0   :  { %v12500_v46 = vrot.slane %v12499_v2, 1  ;;  %v12514_v37 = vrot.slane %v12513_v8, 4  ;;  %v12370_v29 = vmul.f32 %v14977_v43, %v20020_v62  ;;  %v12319_v9 = vpop.f32.mrb[207].mxu0  ;;  %v12401_v24 = vadd.f32 %v12369_v4, %v19922_v47 }
0x16b1   :  { %v12524_v18 = vadd.f32 %v12523_v31, %v12522_v32  ;;  %v12368_v49 = vmul.f32 %v20020_v62, %v12319_v9  ;;  %v12399_v27 = vadd.f32 %v12367_v36, %v19908_v40  ;;  %v20160_v54 = vmul.f32 0.0625, %v12483_v35  ;;  %v15104_v35 = vld [vmem:[%s20252_s10] sm:$0xff]  }
0x16b2   :  { %v12515_v51 = vadd.f32 %v12514_v37, %v12513_v8  ;;  %v12402_v0 = vadd.f32 %v12370_v29, %v19915_v45  ;;  %v12501_v34 = vadd.f32 %v12500_v46, %v12499_v2  ;;  %v12538_v52 = vsel %vm449_vm1, %v12401_v24, 0.0  ;;  %14979 = vmatpush3.bf16.msra.mxu1 %v15104_v35 }
0x16b3   :  { %v12525_v44 = vrot.slane %v12524_v18, 2  ;;  %v12400_v48 = vadd.f32 %v12368_v49, %v19918_v25  ;;  %v12529_v62 = vsel %vm449_vm1, %v12399_v27, 0.0  ;;  %v20158_v45 = vmul.f32 0.0625, %v12492_v21  ;;  %14980 = vmatprep.subr.bf16.mxu1 %v20614_v38 }
0x16b4   :  { %v12516_v16 = vrot.slane %v12515_v51, 2  ;;  %v12539_v6 = vsel %vm449_vm1, %v12402_v0, 0.0  ;;  %v20162_v25 = vmul.f32 0.0625, %v12501_v34  ;;  %v12510_v23 = vadd.f32 %v12509_v33, %v12508_v19  ;;  %v15105_v33 = vld [vmem:[%s20252_s10 + $0x8] sm:$0xff]  }
0x16b5   :  { %v12526_v47 = vadd.f32 %v12525_v44, %v12524_v18  ;;  %v12540_v17 = vadd.f32 %v12539_v6, %v12538_v52  ;;  %v12530_v39 = vsel %vm449_vm1, %v12400_v48, 0.0  ;;  %v12573_v12 = vmul.f32 %v20158_v45, %v20158_v45 }
0x16b6   :  { %v12517_v40 = vadd.f32 %v12516_v16, %v12515_v51  ;;  %v12531_v53 = vadd.f32 %v12530_v39, %v12529_v62  ;;  %v12572_v5 = vmul.f32 %v20160_v54, %v20160_v54  ;;  %v12574_v30 = vmul.f32 %v20162_v25, %v20162_v25  ;;  %14981 = vmatpush3.bf16.msra.mxu1 %v15105_v33 }
0x16b7   :  { %v12541_v61 = vrot.slane %v12540_v17, 4  ;;  %v12527_v11 = vrot.slane %v12526_v47, 1  ;;  %v20172_v59 = vmul.f32 0.0625, %v12510_v23 }
0x16b8   :  { %v12518_v41 = vrot.slane %v12517_v40, 1  ;;  %v12532_v28 = vrot.slane %v12531_v53, 4  ;;  %v12610_v14 = vsel %vm12596_vm5, %v12573_v12, %v12572_v5 }
0x16b9   :  { %v12542_v20 = vadd.f32 %v12541_v61, %v12540_v17  ;;  %v12528_v1 = vadd.f32 %v12527_v11, %v12526_v47  ;;  %v12611_v31 = vsel %vm12598_vm6, %v12574_v30, %v12610_v14  ;;  %v12575_v42 = vmul.f32 %v20172_v59, %v20172_v59 }
0x16ba   :  { %v12519_v58 = vadd.f32 %v12518_v41, %v12517_v40  ;;  %v12533_v63 = vadd.f32 %v12532_v28, %v12531_v53 }
0x16bb   :  { %v12543_v10 = vrot.slane %v12542_v20, 2  ;;  %v20180_v4 = vmul.f32 0.0625, %v12528_v1  ;;  %v12612_v36 = vsel %vm12600_vm7, %v12575_v42, %v12611_v31 }
0x16bc   :  { %v20170_v15 = vmul.f32 0.0625, %v12519_v58  ;;  %v12534_v32 = vrot.slane %v12533_v63, 2 }
0x16bd   :  { %v12544_v3 = vadd.f32 %v12543_v10, %v12542_v20  ;;  %v12577_v18 = vmul.f32 %v20180_v4, %v20180_v4 }
0x16be   :  { %v12535_v2 = vadd.f32 %v12534_v32, %v12533_v63  ;;  %v12576_v19 = vmul.f32 %v20170_v15, %v20170_v15 }
0x16bf   :  { %v12545_v8 = vrot.slane %v12544_v3, 1 }
0x16c0   :  { %v12536_v22 = vrot.slane %v12535_v2, 1  ;;  %v12613_v9 = vsel %vm12602_vm8, %v12576_v19, %v12612_v36 }
0x16c1   :  { %v12546_v43 = vadd.f32 %v12545_v8, %v12544_v3  ;;  %v12614_v21 = vsel %vm12604_vm9, %v12577_v18, %v12613_v9 }
0x16c2   :  { %v12537_v46 = vadd.f32 %v12536_v22, %v12535_v2 }
0x16c3   :  { %v20182_v37 = vmul.f32 0.0625, %v12546_v43 }
0x16c4   :  { %v20185_v29 = vmul.f32 0.0625, %v12537_v46 }
0x16c5   :  { %v12579_v49 = vmul.f32 %v20182_v37, %v20182_v37 }
0x16c6   :  { %v12578_v24 = vmul.f32 %v20185_v29, %v20185_v29 }
0x16c8   :  { %v12615_v51 = vsel %vm12606_vm10, %v12578_v24, %v12614_v21 }
0x16c9   :  { %v12616_v27 = vsel %vm12608_vm11, %v12579_v49, %v12615_v51 }
0x16ca   :  { %v12622_v0 = vsel %vm449_vm1, %v12616_v27, 0.0 }
0x16cb   :  { %12623 = vadd.xlane.f32.xlu1 %v12622_v0 }
0x173b   :  { %v12621_v44 = vpop.xlane.xlu0 %12620 }
0x173c   :  { %v12625_v48 = vmul.f32 0.03125, %v12621_v44 }
0x173e   :  { %v12627_v34 = vadd.f32 1e-06, %v12625_v48 }
0x1740   :  { %16002 = vrsqrt.f32 %v12627_v34 }
0x174a   :  { %v16003_v16 = vpop.eup %16002 }
0x174b   :  { %v12633_v52 = vrot.slane %v16003_v16, 1  ;;  %v12634_v6 = vrot.slane %v16003_v16, 2  ;;  %v12635_v17 = vrot.slane %v16003_v16, 3  ;;  %v12663_v40 = vmul.f32 %v16003_v16, %v20068_v57 }
0x174c   :  { %v12636_v11 = vrot.slane %v16003_v16, 4  ;;  %v12637_v20 = vrot.slane %v16003_v16, 5  ;;  %v12638_v5 = vrot.slane %v16003_v16, 6 }
0x174d   :  { %v12664_v47 = vmul.f32 %v12633_v52, %v20065_v7  ;;  %v12665_v62 = vmul.f32 %v12634_v6, %v20075_v26  ;;  %v12666_v38 = vmul.f32 %v12635_v17, %v20087_v56  ;;  %v12679_v58 = vpack.c.bf16 %v12663_v40, %v12663_v40 }
0x174e   :  { %v12667_v26 = vmul.f32 %v12636_v11, %v20099_v50  ;;  %v12668_v10 = vmul.f32 %v12637_v20, %v20096_v55  ;;  %v12639_v56 = vrot.slane %v16003_v16, 7  ;;  %v12669_v3 = vmul.f32 %v12638_v5, %v20116_v60 }
0x174f   :  { %v12680_v39 = vpack.c.bf16 %v12664_v47, %v12664_v47  ;;  %v12681_v61 = vpack.c.bf16 %v12665_v62, %v12665_v62  ;;  %v12682_v12 = vpack.c.bf16 %v12666_v38, %v12666_v38  ;;  %v12715_v57 = vunpack.c.l.b16 %v12679_v58 }
0x1750   :  { %v12683_v2 = vpack.c.bf16 %v12667_v26, %v12667_v26  ;;  %v12684_v8 = vpack.c.bf16 %v12668_v10, %v12668_v10  ;;  %v12670_v19 = vmul.f32 %v12639_v56, %v20125_v13  ;;  %v12685_v42 = vpack.c.bf16 %v12669_v3, %v12669_v3 }
0x1751   :  { %v12716_v28 = vunpack.c.l.b16 %v12680_v39  ;;  %v12717_v63 = vunpack.c.l.b16 %v12681_v61  ;;  %v12718_v32 = vunpack.c.l.b16 %v12682_v12 }
0x1752   :  { %v12719_v50 = vunpack.c.l.b16 %v12683_v2  ;;  %v12720_v43 = vunpack.c.l.b16 %v12684_v8 }
0x1753   :  { %v12731_v7 = vrot.slane %v12716_v28, 7  ;;  %v12733_v30 = vrot.slane %v12717_v63, 6  ;;  %v12735_v22 = vrot.slane %v12718_v32, 5 }
0x1754   :  { %v12737_v62 = vrot.slane %v12719_v50, 4 }
0x1755   :  { %v12732_v1 = vsel %vm12596_vm5, %v12731_v7, %v12715_v57 }
0x1756   :  { %v12734_v14 = vsel %vm12598_vm6, %v12733_v30, %v12732_v1 }
0x1757   :  { %v12736_v55 = vsel %vm12600_vm7, %v12735_v22, %v12734_v14 }
0x1758   :  { %v12624_v53 = vpop.xlane.xlu1 %12623 }
0x1759   :  { %v12626_v41 = vmul.f32 0.03125, %v12624_v53 }
0x175b   :  { %v12628_v23 = vadd.f32 1e-06, %v12626_v41 }
0x175d   :  { %16004 = vrsqrt.f32 %v12628_v23 }
0x1767   :  { %v16005_v31 = vpop.eup %16004 }
0x1768   :  { %v12640_v46 = vrot.slane %v16005_v31, 1  ;;  %v12641_v36 = vrot.slane %v16005_v31, 2  ;;  %v12642_v9 = vrot.slane %v16005_v31, 3  ;;  %v12643_v18 = vrot.slane %v16005_v31, 4 }
0x1769   :  { %v12644_v24 = vrot.slane %v16005_v31, 5  ;;  %v12645_v49 = vrot.slane %v16005_v31, 6  ;;  %v12646_v60 = vrot.slane %v16005_v31, 7  ;;  %v12671_v21 = vmul.f32 %v16005_v31, %v20160_v54 }
0x176a   :  { %v12672_v51 = vmul.f32 %v12640_v46, %v20158_v45  ;;  %v12673_v27 = vmul.f32 %v12641_v36, %v20162_v25  ;;  %v12674_v13 = vmul.f32 %v12642_v9, %v20172_v59  ;;  %v12675_v0 = vmul.f32 %v12643_v18, %v20170_v15 }
0x176b   :  { %v12676_v35 = vmul.f32 %v12644_v24, %v20180_v4  ;;  %v12677_v33 = vmul.f32 %v12645_v49, %v20185_v29  ;;  %v12678_v44 = vmul.f32 %v12646_v60, %v20182_v37  ;;  %v12687_v48 = vpack.c.bf16 %v12671_v21, %v12671_v21 }
0x176c   :  { %v12688_v34 = vpack.c.bf16 %v12672_v51, %v12672_v51  ;;  %v12689_v16 = vpack.c.bf16 %v12673_v27, %v12673_v27  ;;  %v12690_v52 = vpack.c.bf16 %v12674_v13, %v12674_v13  ;;  %v12691_v6 = vpack.c.bf16 %v12675_v0, %v12675_v0 }
0x176d   :  { %v12686_v54 = vpack.c.bf16 %v12670_v19, %v12670_v19  ;;  %v12692_v47 = vpack.c.bf16 %v12676_v35, %v12676_v35  ;;  %v12693_v45 = vpack.c.bf16 %v12677_v33, %v12677_v33  ;;  %v12694_v25 = vpack.c.bf16 %v12678_v44, %v12678_v44 }
0x176e   :  { %v12724_v17 = vunpack.c.l.b16 %v12688_v34  ;;  %v12725_v59 = vunpack.c.l.b16 %v12689_v16  ;;  %v12726_v39 = vunpack.c.l.b16 %v12690_v52  ;;  %v12721_v15 = vunpack.c.l.b16 %v12685_v42 }
0x176f   :  { %v12727_v40 = vunpack.c.l.b16 %v12691_v6  ;;  %v12738_v4 = vsel %vm12602_vm8, %v12737_v62, %v12736_v55  ;;  %v12739_v29 = vrot.slane %v12720_v43, 3  ;;  %v12723_v53 = vunpack.c.l.b16 %v12687_v48 }
0x1770   :  { %v12728_v37 = vunpack.c.l.b16 %v12692_v47  ;;  %v12745_v61 = vrot.slane %v12724_v17, 7  ;;  %v12747_v41 = vrot.slane %v12725_v59, 6  ;;  %v12722_v38 = vunpack.c.l.b16 %v12686_v54 }
0x1771   :  { %v12729_v28 = vunpack.c.l.b16 %v12693_v45  ;;  %v12730_v23 = vunpack.c.l.b16 %v12694_v25  ;;  %v12740_v11 = vsel %vm12604_vm9, %v12739_v29, %v12738_v4  ;;  %v12749_v58 = vrot.slane %v12726_v39, 5 }
0x1772   :  { %v12746_v20 = vsel %vm12596_vm5, %v12745_v61, %v12723_v53  ;;  %v12741_v63 = vrot.slane %v12721_v15, 2  ;;  %v12751_v7 = vrot.slane %v12727_v40, 4  ;;  %v12753_v26 = vrot.slane %v12728_v37, 3 }
0x1773   :  { %v12748_v12 = vsel %vm12598_vm6, %v12747_v41, %v12746_v20  ;;  %v12755_v30 = vrot.slane %v12729_v28, 2  ;;  %v12743_v32 = vrot.slane %v12722_v38, 1  ;;  %v12757_v56 = vrot.slane %v12730_v23, 1 }
0x1774   :  { %v12750_v5 = vsel %vm12600_vm7, %v12749_v58, %v12748_v12  ;;  %v12742_v10 = vsel %vm12606_vm10, %v12741_v63, %v12740_v11 }
0x1775   :  { %v12752_v57 = vsel %vm12602_vm8, %v12751_v7, %v12750_v5  ;;  %v12744_v2 = vsel %vm12608_vm11, %v12743_v32, %v12742_v10 }
0x1776   :  { %v12754_v1 = vsel %vm12604_vm9, %v12753_v26, %v12752_v57 }
0x1777   :  { %v12756_v3 = vsel %vm12606_vm10, %v12755_v30, %v12754_v1 }
0x1778   :  { %v12758_v8 = vsel %vm12608_vm11, %v12757_v56, %v12756_v3 }
0x1779   :  { %v12759_v14 = vpack.c.b16 %v12758_v8, %v12744_v2 }
0x177b   :  { %14983 = vmatmul.mubr.msk.bf16.vlgmr.msra.gmra.mrb[144].mxu1 %vm449_vm1, %v12759_v14 }
0x184e   :  { %v12809_v22 = vpop.f32.mrb[144].mxu1 }
0x184f   :  { %12816 = vst [vmem:[%s20253_s11] sm:$0xff] %v12809_v22  ;;  %v14984_v19 = vpop.f32.mrb[145].mxu1 }
0x1850   :  { %v12812_v31 = vpop.f32.mrb[146].mxu1 }
0x1851   :  { %12817 = vst [vmem:[%s20253_s11 + $0x8] sm:$0xff] %v12812_v31  ;;  %v14985_v42 = vpop.f32.mrb[147].mxu1 }

</bundles_post_ra>
